<compile_context>
chip_gen: v5e
topology: v5e:2x2
jax: 0.10.0
libtpu: 0.0.40
codegen_flags: <defaults>
</compile_context>

<pallas_src>
import functools

import jax
import jax.numpy as jnp
from jax.experimental import pallas as pl
from jax.experimental.pallas import tpu as pltpu

LANE = 128


def _round_up(a, b):
    return (a + b - 1) // b * b


def _pick_tile(dim, pref):
    """Use 256-deep tiles when they divide the padded dim (v6e/v7x 2x256 MXU), else 128."""
    dp = _round_up(max(dim, 1), LANE)
    return pref if dp % pref == 0 else LANE


# ----------------------------------------------------------------------------
# Kernel 1: tiled matmul with fused bias + activation.
#   grid = (M/tm, N/tn, K/tk), f32 VMEM accumulator, bf16 operands on the MXU.
# ----------------------------------------------------------------------------
def _matmul_kernel(x_ref, w_ref, b_ref, o_ref, acc_ref, *, act):
    @pl.when(pl.program_id(2) == 0)
    def _init():
        acc_ref[...] = jnp.zeros_like(acc_ref)

    acc_ref[...] += jnp.dot(x_ref[...], w_ref[...],
                            preferred_element_type=jnp.float32)

    @pl.when(pl.program_id(2) == pl.num_programs(2) - 1)
    def _finalize():
        y = acc_ref[...] + b_ref[...]
        if act == "relu":
            y = jnp.maximum(y, 0.0)
        elif act == "sigmoid":
            y = jax.nn.sigmoid(y)
        o_ref[...] = y.astype(o_ref.dtype)


def matmul_bias(x, w, b, act="none", out_dtype=jnp.float32,
                tm=128, tn_pref=256, tk_pref=256):
    """y = act(x @ w + b). bf16 operands on the MXU, f32 accumulation, out_dtype store."""
    M, K = x.shape
    K2, N = w.shape
    assert K == K2
    tn = _pick_tile(N, tn_pref)
    tk = _pick_tile(K, tk_pref)
    Mp, Kp, Np = _round_up(M, tm), _round_up(K, tk), _round_up(N, tn)
    xp = jnp.pad(x.astype(jnp.bfloat16), ((0, Mp - M), (0, Kp - K)))
    wp = jnp.pad(w.astype(jnp.bfloat16), ((0, Kp - K), (0, Np - N)))
    bp = jnp.pad(b.astype(jnp.float32), (0, Np - N)).reshape(1, Np)
    grid = (Mp // tm, Np // tn, Kp // tk)
    cost = pl.CostEstimate(flops=2 * Mp * Np * Kp, transcendentals=0,
                           bytes_accessed=2 * (Mp * Kp + Kp * Np + Mp * Np))
    out = pl.pallas_call(
        functools.partial(_matmul_kernel, act=act),
        out_shape=jax.ShapeDtypeStruct((Mp, Np), out_dtype),
        grid=grid,
        in_specs=[
            pl.BlockSpec((tm, tk), lambda i, j, k: (i, k)),
            pl.BlockSpec((tk, tn), lambda i, j, k: (k, j)),
            pl.BlockSpec((1, tn), lambda i, j, k: (0, j)),
        ],
        out_specs=pl.BlockSpec((tm, tn), lambda i, j, k: (i, j)),
        scratch_shapes=[pltpu.VMEM((tm, tn), jnp.float32)],
        compiler_params=pltpu.CompilerParams(
            dimension_semantics=("parallel", "parallel", "arbitrary"),
            vmem_limit_bytes=32 * 1024 * 1024),
        cost_estimate=cost,
    )(xp, wp, bp)
    return out[:M, :N]


# ----------------------------------------------------------------------------
# Kernel 2: conv with taps fused into the MXU contraction (no HBM im2col for
#   the 128-channel feature convs; per-image flattened phase-split input).
# ----------------------------------------------------------------------------
def _conv_fused_kernel(x_ref, w_ref, b_ref, o_ref, *, taps, l_out, relu):
    # x_ref: (1, P, Lq, Cx) bf16 — flattened (phase-split) padded input, one image.
    # w_ref: (T*Cx, Coutp) bf16 — tap-major fused conv weight.
    # b_ref: (1, Coutp) f32;  o_ref: (1, l_out, Coutp) bf16 (lane-dense).
    parts = [x_ref[0, p, pl.ds(off, l_out), :] for (p, off) in taps]
    xc = parts[0] if len(parts) == 1 else jnp.concatenate(parts, axis=-1)
    y = jnp.dot(xc, w_ref[...], preferred_element_type=jnp.float32) + b_ref[...]
    if relu:
        y = jnp.maximum(y, 0.0)
    o_ref[0] = y.astype(o_ref.dtype)


def conv2d_pallas(x_nhwc, w, b, stride=1, pad=1, relu=True):
    """kh x kw conv, NHWC bf16 in -> NHWC bf16 out with Cout zero-padded to 128.

    Taps are fused into the matmul contraction (K = kh*kw*Cx) so accumulation happens
    inside the MXU.  Small-Cin convs (first layer) build the tap concat in the wrapper
    (cheap for a 3-channel image) and reuse the tiled matmul kernel.
    TODO(synk): at real detector resolutions the per-image block must be row-tiled over
    Ho with a (kh-1)-row halo (v7x 64 MiB VMEM); whole-image blocks are fine at toy sizes.
    """
    N, H, W, Cx = x_nhwc.shape
    Cout, Cin, kh, kw = w.shape
    assert Cx >= Cin
    s = stride
    Ho = (H + 2 * pad - kh) // s + 1
    Wo = (W + 2 * pad - kw) // s + 1
    Hp = _round_up(H + 2 * pad, s)
    Wp = _round_up(W + 2 * pad, 8 * s)      # Wq multiple of 8 -> sublane-aligned row taps
    Hq, Wq = Hp // s, Wp // s
    x = x_nhwc.astype(jnp.bfloat16)
    xh = jnp.pad(x, ((0, 0), (pad, Hp - H - pad), (pad, Wp - W - pad), (0, 0)))
    if s == 1:
        xq = xh[:, None]                                        # no phase-split copy
    else:
        xq = jnp.stack([xh[:, a::s, b::s, :] for a in range(s) for b in range(s)], axis=1)
    xq = jnp.pad(xq, ((0, 0), (0, 0), (0, 1), (0, 0), (0, 0)))  # +1 safety row
    P = s * s
    Lq = (Hq + 1) * Wq
    xq = xq.reshape(N, P, Lq, Cx)
    l_out = Ho * Wq                                             # wrap columns dropped below
    taps = tuple(((i % s) * s + (j % s), (i // s) * Wq + (j // s))
                 for i in range(kh) for j in range(kw))
    T = kh * kw
    Coutp = _round_up(Cout, LANE)
    # Fused weight, tap-major: row (t*Cx + c) holds w[:, c, i, j] for tap t = (i, j).
    wt = jnp.transpose(w, (2, 3, 1, 0))                         # (kh, kw, Cin, Cout)
    wt = jnp.pad(wt, ((0, 0), (0, 0), (0, Cx - Cin), (0, Coutp - Cout)))
    wt = wt.reshape(T * Cx, Coutp).astype(jnp.bfloat16)
    bp = jnp.pad(b.astype(jnp.float32), (0, Coutp - Cout)).reshape(1, Coutp)

    if Cx % LANE != 0:
        # First conv (tiny Cin): tap concat in the wrapper -> one big tiled matmul.
        xc = jnp.concatenate([xq[:, p, off:off + l_out, :] for (p, off) in taps], axis=-1)
        out = matmul_bias(xc.reshape(N * l_out, T * Cx), wt, bp[0],
                          act="relu" if relu else "none", out_dtype=jnp.bfloat16)
        out = out.reshape(N, Ho, Wq, Coutp)
        return out[:, :, :Wo, :]

    cost = pl.CostEstimate(
        flops=2 * N * l_out * T * Cx * Coutp, transcendentals=0,
        bytes_accessed=2 * N * P * Lq * Cx + 2 * T * Cx * Coutp + 2 * N * l_out * Coutp)
    out = pl.pallas_call(
        functools.partial(_conv_fused_kernel, taps=taps, l_out=l_out, relu=relu),
        out_shape=jax.ShapeDtypeStruct((N, l_out, Coutp), jnp.bfloat16),
        grid=(N,),
        in_specs=[
            pl.BlockSpec((1, P, Lq, Cx), lambda n: (n, 0, 0, 0)),
            pl.BlockSpec((T * Cx, Coutp), lambda n: (0, 0)),
            pl.BlockSpec((1, Coutp), lambda n: (0, 0)),
        ],
        out_specs=pl.BlockSpec((1, l_out, Coutp), lambda n: (n, 0, 0)),
        compiler_params=pltpu.CompilerParams(
            dimension_semantics=("parallel",),
            vmem_limit_bytes=48 * 1024 * 1024),
        cost_estimate=cost,
    )(xq, wt, bp)
    out = out.reshape(N, Ho, Wq, Coutp)
    return out[:, :, :Wo, :]


# ----------------------------------------------------------------------------
# Kernel 3: RPN box decode — 2-row vector math, one full (8, M) store per image,
#   anchors broadcast per image via the grid (same block every step).
# ----------------------------------------------------------------------------
def _decode_kernel(a_ref, d_ref, o_ref, *, img_w, img_h):
    # a_ref: (8, M) f32 anchors, rows x1,y1,x2,y2,0,0,0,0.
    # d_ref: (1, 8, M) bf16 deltas, rows dx,dy,dw,dh,0...; o_ref: (1, 8, M) f32.
    a = a_ref[...]
    d = d_ref[0].astype(jnp.float32)
    wh_a = a[2:4] - a[0:2]                              # (2, M): anchor w, h
    ctr_a = a[0:2] + 0.5 * wh_a
    ctr = d[0:2] * wh_a + ctr_a
    wh = jnp.exp(jnp.minimum(d[2:4], 4.135)) * wh_a     # clamp = log(1000/16)
    lo = ctr - 0.5 * wh
    hi = ctr + 0.5 * wh
    box = jnp.concatenate([lo, hi], axis=0)             # (4, M): x1,y1,x2,y2
    bnd = jnp.concatenate(
        [jnp.full((1, 1), v, jnp.float32) for v in (img_w, img_h, img_w, img_h)], axis=0)
    box = jnp.clip(box, 0.0, bnd)
    o_ref[0] = jnp.concatenate([box, jnp.zeros_like(box)], axis=0)


def decode_boxes_pallas(anchors8, deltas8, img_w, img_h):
    """anchors8: (8, M) f32; deltas8: (N, 8, M) bf16 -> decoded boxes (N, 4, M) f32."""
    Nb, _, M = deltas8.shape
    kern = functools.partial(_decode_kernel, img_w=float(img_w), img_h=float(img_h))
    out = pl.pallas_call(
        kern,
        out_shape=jax.ShapeDtypeStruct((Nb, 8, M), jnp.float32),
        grid=(Nb,),
        in_specs=[
            pl.BlockSpec((8, M), lambda n: (0, 0)),
            pl.BlockSpec((1, 8, M), lambda n: (n, 0, 0)),
        ],
        out_specs=pl.BlockSpec((1, 8, M), lambda n: (n, 0, 0)),
        compiler_params=pltpu.CompilerParams(dimension_semantics=("parallel",)),
    )(anchors8, deltas8)
    return out[:, :4, :]


def decode_boxes_jnp(boxes, deltas, img_w, img_h):
    # Tiny (N*K, 4) decode kept in plain jnp: a Pallas call here is pure overhead.
    x1, y1, x2, y2 = boxes[:, 0], boxes[:, 1], boxes[:, 2], boxes[:, 3]
    dx, dy, dw, dh = deltas[:, 0], deltas[:, 1], deltas[:, 2], deltas[:, 3]
    wa, ha = x2 - x1, y2 - y1
    cxa, cya = x1 + 0.5 * wa, y1 + 0.5 * ha
    cx, cy = dx * wa + cxa, dy * ha + cya
    w = jnp.exp(jnp.minimum(dw, 4.135)) * wa
    h = jnp.exp(jnp.minimum(dh, 4.135)) * ha
    return jnp.stack([
        jnp.clip(cx - 0.5 * w, 0.0, img_w),
        jnp.clip(cy - 0.5 * h, 0.0, img_h),
        jnp.clip(cx + 0.5 * w, 0.0, img_w),
        jnp.clip(cy + 0.5 * h, 0.0, img_h)], axis=-1)


# ----------------------------------------------------------------------------
# Kernel 4: fused ROI box head (fc1 -> relu -> fc2 -> relu -> [cls | bbox-reg]).
#   h1/h2 never leave VMEM; cls + bbox-reg weights concatenated and lane-padded.
# ----------------------------------------------------------------------------
def _roi_head_kernel(x_ref, w1_ref, b1_ref, w2_ref, b2_ref, w3_ref, b3_ref, o_ref):
    h1 = jnp.dot(x_ref[...], w1_ref[...], preferred_element_type=jnp.float32) + b1_ref[...]
    h1 = jnp.maximum(h1, 0.0).astype(jnp.bfloat16)
    h2 = jnp.dot(h1, w2_ref[...], preferred_element_type=jnp.float32) + b2_ref[...]
    h2 = jnp.maximum(h2, 0.0).astype(jnp.bfloat16)
    o_ref[...] = jnp.dot(h2, w3_ref[...], preferred_element_type=jnp.float32) + b3_ref[...]


def roi_box_head(roi_feat, params, num_classes):
    # roi_feat: (M, pool*pool*C) bf16 straight from the bf16 feature chain.
    # TODO(synk): pad M to a multiple of 128 when ROI counts grow beyond the toy size.
    M = roi_feat.shape[0]
    rep = params["fc1_b"].shape[0]
    w3 = jnp.concatenate([params["cls_w"], params["breg_w"]], axis=1)   # (rep, 5*ncls)
    b3 = jnp.concatenate([params["cls_b"], params["breg_b"]])
    Nh = w3.shape[1]
    Nhp = _round_up(Nh, LANE)
    args = (
        roi_feat.astype(jnp.bfloat16),
        params["fc1_w"].astype(jnp.bfloat16),
        params["fc1_b"].reshape(1, rep).astype(jnp.float32),
        params["fc2_w"].astype(jnp.bfloat16),
        params["fc2_b"].reshape(1, rep).astype(jnp.float32),
        jnp.pad(w3, ((0, 0), (0, Nhp - Nh))).astype(jnp.bfloat16),
        jnp.pad(b3.astype(jnp.float32), (0, Nhp - Nh)).reshape(1, Nhp),
    )
    out = pl.pallas_call(
        _roi_head_kernel,
        out_shape=jax.ShapeDtypeStruct((M, Nhp), jnp.float32),
        in_specs=[pl.BlockSpec(a.shape, lambda: (0, 0)) for a in args],
        out_specs=pl.BlockSpec((M, Nhp), lambda: (0, 0)),
    )(*args)
    cls_logits = out[:, :num_classes]
    box_reg = out[:, num_classes:num_classes + 4 * num_classes]
    return cls_logits, box_reg


# ----------------------------------------------------------------------------
# Glue helpers (plain JAX)
# ----------------------------------------------------------------------------
def make_anchors(Hf, Wf, stride, sizes):
    ys = (jnp.arange(Hf, dtype=jnp.float32) + 0.5) * stride
    xs = (jnp.arange(Wf, dtype=jnp.float32) + 0.5) * stride
    cy, cx = jnp.meshgrid(ys, xs, indexing="ij")
    per_size = []
    for s in sizes:
        half = s / 2.0
        per_size.append(jnp.stack([cx - half, cy - half, cx + half, cy + half], axis=-1))
    a = jnp.stack(per_size, axis=2)                              # (Hf, Wf, A, 4)
    return a.reshape(-1, 4)


def roi_pool_nearest(feat, boxes, out_size, stride):
    # feat: (Hf, Wf, C) NHWC bf16, boxes: (K, 4) in image coords.
    # TODO(synk): exact bilinear ROIAlign (data-dependent gather) kept as JAX glue.
    Hf, Wf, _ = feat.shape
    x1, y1, x2, y2 = boxes[:, 0], boxes[:, 1], boxes[:, 2], boxes[:, 3]
    g = (jnp.arange(out_size, dtype=jnp.float32) + 0.5) / out_size
    sx = (x1[:, None] + g[None, :] * (x2 - x1)[:, None]) / stride
    sy = (y1[:, None] + g[None, :] * (y2 - y1)[:, None]) / stride
    ix = jnp.clip(jnp.floor(sx).astype(jnp.int32), 0, Wf - 1)
    iy = jnp.clip(jnp.floor(sy).astype(jnp.int32), 0, Hf - 1)
    return feat[iy[:, :, None], ix[:, None, :], :]               # (K, S, S, C)


# ----------------------------------------------------------------------------
# Parameters (deterministic synthetic init)
# ----------------------------------------------------------------------------
def init_params(key, in_ch=3, C=32, A=3, num_classes=5, rep=256, pool=7):
    ks = jax.random.split(key, 9)

    def w(k, shape, scale=0.05):
        return jax.random.normal(k, shape, jnp.float32) * scale

    return {
        # backbone
        "conv1_w": w(ks[0], (C, in_ch, 3, 3)), "conv1_b": jnp.zeros((C,), jnp.float32),
        "conv2_w": w(ks[1], (C, C, 3, 3)),     "conv2_b": jnp.zeros((C,), jnp.float32),
        # rpn head
        "rpn_conv_w": w(ks[2], (C, C, 3, 3)),  "rpn_conv_b": jnp.zeros((C,), jnp.float32),
        "rpn_obj_w": w(ks[3], (C, A)),         "rpn_obj_b": jnp.zeros((A,), jnp.float32),
        "rpn_box_w": w(ks[4], (C, 4 * A)),     "rpn_box_b": jnp.zeros((4 * A,), jnp.float32),
        # roi box head
        "fc1_w": w(ks[5], (pool * pool * C, rep)),  "fc1_b": jnp.zeros((rep,), jnp.float32),
        "fc2_w": w(ks[6], (rep, rep)),              "fc2_b": jnp.zeros((rep,), jnp.float32),
        "cls_w": w(ks[7], (rep, num_classes)),      "cls_b": jnp.zeros((num_classes,), jnp.float32),
        "breg_w": w(ks[8], (rep, 4 * num_classes)), "breg_b": jnp.zeros((4 * num_classes,), jnp.float32),
    }


# ----------------------------------------------------------------------------
# GeneralizedRCNN forward (inference path)
# ----------------------------------------------------------------------------
def generalized_rcnn_forward(params, images, K=8, A=3, num_classes=5, pool=7):
    # TODO(synk): training branch (loss dict with targets) not implemented — inference only.
    N, _, H, W = images.shape
    C = params["conv1_w"].shape[0]

    # ---- backbone: NHWC bf16 chain, Cout lane-padded to 128 (padded channels exact zero) ----
    x = jnp.transpose(images, (0, 2, 3, 1)).astype(jnp.bfloat16)
    f1 = conv2d_pallas(x, params["conv1_w"], params["conv1_b"], stride=1, pad=1)
    feat = conv2d_pallas(f1, params["conv2_w"], params["conv2_b"], stride=2, pad=1)
    Hf, Wf, Cp = feat.shape[1], feat.shape[2], feat.shape[3]
    stride = H // Hf

    # ---- RPN ----
    rpn_feat = conv2d_pallas(feat, params["rpn_conv_w"], params["rpn_conv_b"], stride=1, pad=1)
    x_flat = rpn_feat.reshape(N * Hf * Wf, Cp)
    # Fused objectness + box-delta head: one tiled matmul over both heads, bf16 writeback.
    head_w = jnp.concatenate([params["rpn_obj_w"], params["rpn_box_w"]], axis=1)  # (C, 5A)
    head_w = jnp.pad(head_w, ((0, Cp - C), (0, 0)))
    head_b = jnp.concatenate([params["rpn_obj_b"], params["rpn_box_b"]])
    head = matmul_bias(x_flat, head_w, head_b, act="none",
                       out_dtype=jnp.bfloat16)                                    # (N*Hf*Wf, 5A)
    obj_logits = head[:, :A].astype(jnp.float32).reshape(N, Hf * Wf * A)  # sigmoid skipped: monotonic
    # NOTE: assumes (A, 4)-major grouping of the 4A delta columns (synthetic weights).
    deltas = head[:, A:5 * A].reshape(N, Hf * Wf * A, 4)

    anchors = make_anchors(Hf, Wf, stride, sizes=(8.0, 16.0, 32.0))               # (M, 4)
    anchors8 = jnp.pad(anchors.T, ((0, 4), (0, 0)))                               # (8, M) f32
    deltas8 = jnp.pad(deltas.transpose(0, 2, 1), ((0, 0), (0, 4), (0, 0)))        # (N, 8, M) bf16
    proposals_all = decode_boxes_pallas(anchors8, deltas8, W, H).transpose(0, 2, 1)  # (N, M, 4)

    # top-K proposals per image by objectness.
    # TODO(synk): per-image NMS (dynamic suppression) has no clean Pallas equivalent.
    _, topi = jax.lax.top_k(obj_logits, K)
    proposals = jnp.take_along_axis(proposals_all, topi[:, :, None], axis=1)      # (N, K, 4)

    # ---- ROI heads ----
    # TODO(synk): the gather becomes worth a Pallas scalar-prefetch kernel at real ROI counts.
    feat_c = feat[..., :C]
    pooled = jax.vmap(
        lambda f, bx: roi_pool_nearest(f, bx, out_size=pool, stride=stride)
    )(feat_c, proposals)                                                          # (N, K, S, S, C)
    roi_feat = pooled.reshape(N * K, pool * pool * C)

    cls_logits, box_reg = roi_box_head(roi_feat, params, num_classes)

    cls_prob = jax.nn.softmax(cls_logits, axis=-1)
    fg_prob = cls_prob[:, 1:]                                                     # class 0 = background
    labels = jnp.argmax(fg_prob, axis=-1).astype(jnp.int32) + 1
    scores = jnp.max(fg_prob, axis=-1)

    box_reg = box_reg.reshape(N * K, num_classes, 4)
    sel_deltas = jnp.take_along_axis(box_reg, labels[:, None, None], axis=1)[:, 0, :]
    final_boxes = decode_boxes_jnp(proposals.reshape(N * K, 4), sel_deltas, W, H)

    return {
        "boxes": final_boxes.reshape(N, K, 4),
        "scores": scores.reshape(N, K),
        "labels": labels.reshape(N, K),
    }


# ----------------------------------------------------------------------------
if __name__ == "__main__":
    key = jax.random.PRNGKey(0)
    pkey, ikey = jax.random.split(key)
    params = init_params(pkey)
    images = jax.random.normal(ikey, (2, 3, 32, 32), jnp.float32)  # NCHW, like PyTorch

    fwd = jax.jit(generalized_rcnn_forward)
    result = fwd(params, images)
    jax.block_until_ready(result)

    assert result["boxes"].shape == (2, 8, 4)
    assert result["scores"].shape == (2, 8)
    assert result["labels"].shape == (2, 8)
    print("KERNEL_OK")
</pallas_src>

<mosaic_0001>
module attributes {stable_mosaic.version = 11 : i64} {
  func.func @_matmul_kernel(%arg0: i32, %arg1: i32, %arg2: i32, %arg3: memref<128x128xbf16, #tpu.memory_space<vmem>>, %arg4: memref<128x128xbf16, #tpu.memory_space<vmem>>, %arg5: memref<1x128xf32, #tpu.memory_space<vmem>>, %arg6: memref<128x128xbf16, #tpu.memory_space<vmem>>, %arg7: memref<128x128xf32, #tpu.memory_space<vmem>>) attributes {dimension_semantics = [#tpu.dimension_semantics<parallel>, #tpu.dimension_semantics<parallel>, #tpu.dimension_semantics<arbitrary>], iteration_bounds = array<i64: 20, 1, 1>, scalar_prefetch = 0 : i64, scratch_operands = 1 : i64, tpu.core_type = #tpu.core_type<tc>, window_params = [{transform_indices = @transform_0, window_bounds = array<i64: 128, 128>}, {transform_indices = @transform_1, window_bounds = array<i64: 128, 128>}, {transform_indices = @transform_2, window_bounds = array<i64: 1, 128>}, {transform_indices = @transform_3, window_bounds = array<i64: 128, 128>}]} {
    %c0_i32 = arith.constant 0 : i32
    %0 = arith.cmpi eq, %arg2, %c0_i32 : i32
    %1 = arith.extui %0 : i1 to i32
    %c0_i32_0 = arith.constant 0 : i32
    %2 = arith.cmpi ne, %1, %c0_i32_0 : i32
    scf.if %2 {
      %cst_10 = arith.constant 0.000000e+00 : f32
      %12 = vector.broadcast %cst_10 : f32 to vector<128x128xf32>
      %c0_11 = arith.constant 0 : index
      %c0_12 = arith.constant 0 : index
      %13 = vector.load %arg7[%c0_11, %c0_12] : memref<128x128xf32, #tpu.memory_space<vmem>>, vector<128x128xf32>
      tpu.vector_store %arg7[%c0_11, %c0_12], %12 {strides = array<i32>} : memref<128x128xf32, #tpu.memory_space<vmem>>, vector<128x128xf32>,
    } else {
    }
    %c0 = arith.constant 0 : index
    %c0_1 = arith.constant 0 : index
    %3 = vector.load %arg7[%c0, %c0_1] : memref<128x128xf32, #tpu.memory_space<vmem>>, vector<128x128xf32>
    %c0_2 = arith.constant 0 : index
    %c0_3 = arith.constant 0 : index
    %4 = vector.load %arg3[%c0_2, %c0_3] : memref<128x128xbf16, #tpu.memory_space<vmem>>, vector<128x128xbf16>
    %c0_4 = arith.constant 0 : index
    %c0_5 = arith.constant 0 : index
    %5 = vector.load %arg4[%c0_4, %c0_5] : memref<128x128xbf16, #tpu.memory_space<vmem>>, vector<128x128xbf16>
    %cst = arith.constant dense<0.000000e+00> : vector<128x128xf32>
    %6 = tpu.matmul %4, %5, %cst {dimension_numbers = #tpu.dot_dimension_numbers<[1], [0], [0], [1], [0, 0, 1, 1], [], []>} : vector<128x128xbf16>, vector<128x128xbf16>, vector<128x128xf32> -> vector<128x128xf32>
    %7 = arith.addf %3, %6 : vector<128x128xf32>
    %c0_6 = arith.constant 0 : index
    %c0_7 = arith.constant 0 : index
    %8 = vector.load %arg7[%c0_6, %c0_7] : memref<128x128xf32, #tpu.memory_space<vmem>>, vector<128x128xf32>
    tpu.vector_store %arg7[%c0_6, %c0_7], %7 {strides = array<i32>} : memref<128x128xf32, #tpu.memory_space<vmem>>, vector<128x128xf32>,
    %c0_i32_8 = arith.constant 0 : i32
    %9 = arith.cmpi eq, %arg2, %c0_i32_8 : i32
    %10 = arith.extui %9 : i1 to i32
    %c0_i32_9 = arith.constant 0 : i32
    %11 = arith.cmpi ne, %10, %c0_i32_9 : i32
    scf.if %11 {
      %c0_10 = arith.constant 0 : index
      %c0_11 = arith.constant 0 : index
      %12 = vector.load %arg7[%c0_10, %c0_11] : memref<128x128xf32, #tpu.memory_space<vmem>>, vector<128x128xf32>
      %c0_12 = arith.constant 0 : index
      %c0_13 = arith.constant 0 : index
      %13 = vector.load %arg5[%c0_12, %c0_13] : memref<1x128xf32, #tpu.memory_space<vmem>>, vector<1x128xf32>
      %14 = vector.broadcast %13 : vector<1x128xf32> to vector<128x128xf32>
      %15 = arith.addf %12, %14 : vector<128x128xf32>
      %cst_14 = arith.constant 0.000000e+00 : f32
      %16 = vector.broadcast %cst_14 : f32 to vector<128x128xf32>
      %17 = arith.maximumf %15, %16 : vector<128x128xf32>
      %18 = arith.truncf %17 : vector<128x128xf32> to vector<128x128xbf16>
      %c0_15 = arith.constant 0 : index
      %c0_16 = arith.constant 0 : index
      %19 = vector.load %arg6[%c0_15, %c0_16] : memref<128x128xbf16, #tpu.memory_space<vmem>>, vector<128x128xbf16>
      tpu.vector_store %arg6[%c0_15, %c0_16], %18 {strides = array<i32>} : memref<128x128xbf16, #tpu.memory_space<vmem>>, vector<128x128xbf16>,
    } else {
    }
    return
  }
  func.func @transform_0(%arg0: i32, %arg1: i32, %arg2: i32) -> (i32, i32) {
    %c0_i32 = arith.constant 0 : i32
    return %arg0, %arg2 : i32, i32
  }
  func.func @transform_1(%arg0: i32, %arg1: i32, %arg2: i32) -> (i32, i32) {
    %c0_i32 = arith.constant 0 : i32
    return %arg2, %arg1 : i32, i32
  }
  func.func @transform_2(%arg0: i32, %arg1: i32, %arg2: i32) -> (i32, i32) {
    %c0_i32 = arith.constant 0 : i32
    %c0_i32_0 = arith.constant 0 : i32
    return %c0_i32, %arg1 : i32, i32
  }
  func.func @transform_3(%arg0: i32, %arg1: i32, %arg2: i32) -> (i32, i32) {
    %c0_i32 = arith.constant 0 : i32
    return %arg0, %arg1 : i32, i32
  }
}

module attributes {stable_mosaic.version = 11 : i64} {
  func.func @_conv_fused_kernel(%arg0: i32, %arg1: memref<1x4x432x128xbf16, #tpu.memory_space<vmem>>, %arg2: memref<1152x128xbf16, #tpu.memory_space<vmem>>, %arg3: memref<1x128xf32, #tpu.memory_space<vmem>>, %arg4: memref<1x384x128xbf16, #tpu.memory_space<vmem>>) attributes {dimension_semantics = [#tpu.dimension_semantics<parallel>], iteration_bounds = array<i64: 2>, scalar_prefetch = 0 : i64, scratch_operands = 0 : i64, tpu.core_type = #tpu.core_type<tc>, window_params = [{transform_indices = @transform_0, window_bounds = array<i64: 1, 4, 432, 128>}, {pipeline_mode = #tpu.pipeline_mode<synchronous>, transform_indices = @transform_1, window_bounds = array<i64: 1152, 128>}, {pipeline_mode = #tpu.pipeline_mode<synchronous>, transform_indices = @transform_2, window_bounds = array<i64: 1, 128>}, {transform_indices = @transform_3, window_bounds = array<i64: 1, 384, 128>}]} {
    %c0 = arith.constant 0 : index
    %c0_0 = arith.constant 0 : index
    %c0_1 = arith.constant 0 : index
    %c0_2 = arith.constant 0 : index
    %0 = vector.load %arg1[%c0, %c0_0, %c0_1, %c0_2] : memref<1x4x432x128xbf16, #tpu.memory_space<vmem>>, vector<1x1x384x128xbf16>
    %1 = vector.shape_cast %0 : vector<1x1x384x128xbf16> to vector<384x128xbf16>
    %c0_3 = arith.constant 0 : index
    %c1 = arith.constant 1 : index
    %c0_4 = arith.constant 0 : index
    %c0_5 = arith.constant 0 : index
    %2 = vector.load %arg1[%c0_3, %c1, %c0_4, %c0_5] : memref<1x4x432x128xbf16, #tpu.memory_space<vmem>>, vector<1x1x384x128xbf16>
    %3 = vector.shape_cast %2 : vector<1x1x384x128xbf16> to vector<384x128xbf16>
    %c0_6 = arith.constant 0 : index
    %c0_7 = arith.constant 0 : index
    %c1_8 = arith.constant 1 : index
    %c0_9 = arith.constant 0 : index
    %4 = vector.load %arg1[%c0_6, %c0_7, %c1_8, %c0_9] : memref<1x4x432x128xbf16, #tpu.memory_space<vmem>>, vector<1x1x384x128xbf16>
    %5 = vector.shape_cast %4 : vector<1x1x384x128xbf16> to vector<384x128xbf16>
    %c0_10 = arith.constant 0 : index
    %c2 = arith.constant 2 : index
    %c0_11 = arith.constant 0 : index
    %c0_12 = arith.constant 0 : index
    %6 = vector.load %arg1[%c0_10, %c2, %c0_11, %c0_12] : memref<1x4x432x128xbf16, #tpu.memory_space<vmem>>, vector<1x1x384x128xbf16>
    %7 = vector.shape_cast %6 : vector<1x1x384x128xbf16> to vector<384x128xbf16>
    %c0_13 = arith.constant 0 : index
    %c3 = arith.constant 3 : index
    %c0_14 = arith.constant 0 : index
    %c0_15 = arith.constant 0 : index
    %8 = vector.load %arg1[%c0_13, %c3, %c0_14, %c0_15] : memref<1x4x432x128xbf16, #tpu.memory_space<vmem>>, vector<1x1x384x128xbf16>
    %9 = vector.shape_cast %8 : vector<1x1x384x128xbf16> to vector<384x128xbf16>
    %c0_16 = arith.constant 0 : index
    %c2_17 = arith.constant 2 : index
    %c1_18 = arith.constant 1 : index
    %c0_19 = arith.constant 0 : index
    %10 = vector.load %arg1[%c0_16, %c2_17, %c1_18, %c0_19] : memref<1x4x432x128xbf16, #tpu.memory_space<vmem>>, vector<1x1x384x128xbf16>
    %11 = vector.shape_cast %10 : vector<1x1x384x128xbf16> to vector<384x128xbf16>
    %c0_20 = arith.constant 0 : index
    %c0_21 = arith.constant 0 : index
    %c24 = arith.constant 24 : index
    %c0_22 = arith.constant 0 : index
    %12 = vector.load %arg1[%c0_20, %c0_21, %c24, %c0_22] : memref<1x4x432x128xbf16, #tpu.memory_space<vmem>>, vector<1x1x384x128xbf16>
    %13 = vector.shape_cast %12 : vector<1x1x384x128xbf16> to vector<384x128xbf16>
    %c0_23 = arith.constant 0 : index
    %c1_24 = arith.constant 1 : index
    %c24_25 = arith.constant 24 : index
    %c0_26 = arith.constant 0 : index
    %14 = vector.load %arg1[%c0_23, %c1_24, %c24_25, %c0_26] : memref<1x4x432x128xbf16, #tpu.memory_space<vmem>>, vector<1x1x384x128xbf16>
    %15 = vector.shape_cast %14 : vector<1x1x384x128xbf16> to vector<384x128xbf16>
    %c0_27 = arith.constant 0 : index
    %c0_28 = arith.constant 0 : index
    %c25 = arith.constant 25 : index
    %c0_29 = arith.constant 0 : index
    %16 = vector.load %arg1[%c0_27, %c0_28, %c25, %c0_29] : memref<1x4x432x128xbf16, #tpu.memory_space<vmem>>, vector<1x1x384x128xbf16>
    %17 = vector.shape_cast %16 : vector<1x1x384x128xbf16> to vector<384x128xbf16>
    %18 = tpu.concatenate %1, %3, %5, %7, %9, %11, %13, %15, %17 in 1 : vector<384x128xbf16>, vector<384x128xbf16>, vector<384x128xbf16>, vector<384x128xbf16>, vector<384x128xbf16>, vector<384x128xbf16>, vector<384x128xbf16>, vector<384x128xbf16>, vector<384x128xbf16> -> vector<384x1152xbf16>
    %c0_30 = arith.constant 0 : index
    %c0_31 = arith.constant 0 : index
    %19 = vector.load %arg2[%c0_30, %c0_31] : memref<1152x128xbf16, #tpu.memory_space<vmem>>, vector<1152x128xbf16>
    %cst = arith.constant dense<0.000000e+00> : vector<384x128xf32>
    %20 = tpu.matmul %18, %19, %cst {dimension_numbers = #tpu.dot_dimension_numbers<[1], [0], [0], [1], [0, 0, 1, 1], [], []>} : vector<384x1152xbf16>, vector<1152x128xbf16>, vector<384x128xf32> -> vector<384x128xf32>
    %c0_32 = arith.constant 0 : index
    %c0_33 = arith.constant 0 : index
    %21 = vector.load %arg3[%c0_32, %c0_33] : memref<1x128xf32, #tpu.memory_space<vmem>>, vector<1x128xf32>
    %22 = vector.broadcast %21 : vector<1x128xf32> to vector<384x128xf32>
    %23 = arith.addf %20, %22 : vector<384x128xf32>
    %cst_34 = arith.constant 0.000000e+00 : f32
    %24 = vector.broadcast %cst_34 : f32 to vector<384x128xf32>
    %25 = arith.maximumf %23, %24 : vector<384x128xf32>
    %26 = arith.truncf %25 : vector<384x128xf32> to vector<384x128xbf16>
    %c0_35 = arith.constant 0 : index
    %c0_36 = arith.constant 0 : index
    %c0_37 = arith.constant 0 : index
    %27 = vector.load %arg4[%c0_35, %c0_36, %c0_37] : memref<1x384x128xbf16, #tpu.memory_space<vmem>>, vector<1x384x128xbf16>
    %28 = vector.shape_cast %27 : vector<1x384x128xbf16> to vector<384x128xbf16>
    %29 = vector.shape_cast %26 : vector<384x128xbf16> to vector<1x384x128xbf16>
    tpu.vector_store %arg4[%c0_35, %c0_36, %c0_37], %29 {strides = array<i32>} : memref<1x384x128xbf16, #tpu.memory_space<vmem>>, vector<1x384x128xbf16>,
    return
  }
  func.func @transform_0(%arg0: i32) -> (i32, i32, i32, i32) {
    %c0_i32 = arith.constant 0 : i32
    %c0_i32_0 = arith.constant 0 : i32
    %c0_i32_1 = arith.constant 0 : i32
    %c0_i32_2 = arith.constant 0 : i32
    return %arg0, %c0_i32, %c0_i32_0, %c0_i32_1 : i32, i32, i32, i32
  }
  func.func @transform_1(%arg0: i32) -> (i32, i32) {
    %c0_i32 = arith.constant 0 : i32
    %c0_i32_0 = arith.constant 0 : i32
    %c0_i32_1 = arith.constant 0 : i32
    return %c0_i32, %c0_i32_0 : i32, i32
  }
  func.func @transform_2(%arg0: i32) -> (i32, i32) {
    %c0_i32 = arith.constant 0 : i32
    %c0_i32_0 = arith.constant 0 : i32
    %c0_i32_1 = arith.constant 0 : i32
    return %c0_i32, %c0_i32_0 : i32, i32
  }
  func.func @transform_3(%arg0: i32) -> (i32, i32, i32) {
    %c0_i32 = arith.constant 0 : i32
    %c0_i32_0 = arith.constant 0 : i32
    %c0_i32_1 = arith.constant 0 : i32
    return %arg0, %c0_i32, %c0_i32_0 : i32, i32, i32
  }
}

module attributes {stable_mosaic.version = 11 : i64} {
  func.func @_conv_fused_kernel(%arg0: i32, %arg1: memref<1x1x456x128xbf16, #tpu.memory_space<vmem>>, %arg2: memref<1152x128xbf16, #tpu.memory_space<vmem>>, %arg3: memref<1x128xf32, #tpu.memory_space<vmem>>, %arg4: memref<1x384x128xbf16, #tpu.memory_space<vmem>>) attributes {dimension_semantics = [#tpu.dimension_semantics<parallel>], iteration_bounds = array<i64: 2>, scalar_prefetch = 0 : i64, scratch_operands = 0 : i64, tpu.core_type = #tpu.core_type<tc>, window_params = [{transform_indices = @transform_0, window_bounds = array<i64: 1, 1, 456, 128>}, {pipeline_mode = #tpu.pipeline_mode<synchronous>, transform_indices = @transform_1, window_bounds = array<i64: 1152, 128>}, {pipeline_mode = #tpu.pipeline_mode<synchronous>, transform_indices = @transform_2, window_bounds = array<i64: 1, 128>}, {transform_indices = @transform_3, window_bounds = array<i64: 1, 384, 128>}]} {
    %c0 = arith.constant 0 : index
    %c0_0 = arith.constant 0 : index
    %c0_1 = arith.constant 0 : index
    %c0_2 = arith.constant 0 : index
    %0 = vector.load %arg1[%c0, %c0_0, %c0_1, %c0_2] : memref<1x1x456x128xbf16, #tpu.memory_space<vmem>>, vector<1x1x384x128xbf16>
    %1 = vector.shape_cast %0 : vector<1x1x384x128xbf16> to vector<384x128xbf16>
    %c0_3 = arith.constant 0 : index
    %c0_4 = arith.constant 0 : index
    %c1 = arith.constant 1 : index
    %c0_5 = arith.constant 0 : index
    %2 = vector.load %arg1[%c0_3, %c0_4, %c1, %c0_5] : memref<1x1x456x128xbf16, #tpu.memory_space<vmem>>, vector<1x1x384x128xbf16>
    %3 = vector.shape_cast %2 : vector<1x1x384x128xbf16> to vector<384x128xbf16>
    %c0_6 = arith.constant 0 : index
    %c0_7 = arith.constant 0 : index
    %c2 = arith.constant 2 : index
    %c0_8 = arith.constant 0 : index
    %4 = vector.load %arg1[%c0_6, %c0_7, %c2, %c0_8] : memref<1x1x456x128xbf16, #tpu.memory_space<vmem>>, vector<1x1x384x128xbf16>
    %5 = vector.shape_cast %4 : vector<1x1x384x128xbf16> to vector<384x128xbf16>
    %c0_9 = arith.constant 0 : index
    %c0_10 = arith.constant 0 : index
    %c24 = arith.constant 24 : index
    %c0_11 = arith.constant 0 : index
    %6 = vector.load %arg1[%c0_9, %c0_10, %c24, %c0_11] : memref<1x1x456x128xbf16, #tpu.memory_space<vmem>>, vector<1x1x384x128xbf16>
    %7 = vector.shape_cast %6 : vector<1x1x384x128xbf16> to vector<384x128xbf16>
    %c0_12 = arith.constant 0 : index
    %c0_13 = arith.constant 0 : index
    %c25 = arith.constant 25 : index
    %c0_14 = arith.constant 0 : index
    %8 = vector.load %arg1[%c0_12, %c0_13, %c25, %c0_14] : memref<1x1x456x128xbf16, #tpu.memory_space<vmem>>, vector<1x1x384x128xbf16>
    %9 = vector.shape_cast %8 : vector<1x1x384x128xbf16> to vector<384x128xbf16>
    %c0_15 = arith.constant 0 : index
    %c0_16 = arith.constant 0 : index
    %c26 = arith.constant 26 : index
    %c0_17 = arith.constant 0 : index
    %10 = vector.load %arg1[%c0_15, %c0_16, %c26, %c0_17] : memref<1x1x456x128xbf16, #tpu.memory_space<vmem>>, vector<1x1x384x128xbf16>
    %11 = vector.shape_cast %10 : vector<1x1x384x128xbf16> to vector<384x128xbf16>
    %c0_18 = arith.constant 0 : index
    %c0_19 = arith.constant 0 : index
    %c48 = arith.constant 48 : index
    %c0_20 = arith.constant 0 : index
    %12 = vector.load %arg1[%c0_18, %c0_19, %c48, %c0_20] : memref<1x1x456x128xbf16, #tpu.memory_space<vmem>>, vector<1x1x384x128xbf16>
    %13 = vector.shape_cast %12 : vector<1x1x384x128xbf16> to vector<384x128xbf16>
    %c0_21 = arith.constant 0 : index
    %c0_22 = arith.constant 0 : index
    %c49 = arith.constant 49 : index
    %c0_23 = arith.constant 0 : index
    %14 = vector.load %arg1[%c0_21, %c0_22, %c49, %c0_23] : memref<1x1x456x128xbf16, #tpu.memory_space<vmem>>, vector<1x1x384x128xbf16>
    %15 = vector.shape_cast %14 : vector<1x1x384x128xbf16> to vector<384x128xbf16>
    %c0_24 = arith.constant 0 : index
    %c0_25 = arith.constant 0 : index
    %c50 = arith.constant 50 : index
    %c0_26 = arith.constant 0 : index
    %16 = vector.load %arg1[%c0_24, %c0_25, %c50, %c0_26] : memref<1x1x456x128xbf16, #tpu.memory_space<vmem>>, vector<1x1x384x128xbf16>
    %17 = vector.shape_cast %16 : vector<1x1x384x128xbf16> to vector<384x128xbf16>
    %18 = tpu.concatenate %1, %3, %5, %7, %9, %11, %13, %15, %17 in 1 : vector<384x128xbf16>, vector<384x128xbf16>, vector<384x128xbf16>, vector<384x128xbf16>, vector<384x128xbf16>, vector<384x128xbf16>, vector<384x128xbf16>, vector<384x128xbf16>, vector<384x128xbf16> -> vector<384x1152xbf16>
    %c0_27 = arith.constant 0 : index
    %c0_28 = arith.constant 0 : index
    %19 = vector.load %arg2[%c0_27, %c0_28] : memref<1152x128xbf16, #tpu.memory_space<vmem>>, vector<1152x128xbf16>
    %cst = arith.constant dense<0.000000e+00> : vector<384x128xf32>
    %20 = tpu.matmul %18, %19, %cst {dimension_numbers = #tpu.dot_dimension_numbers<[1], [0], [0], [1], [0, 0, 1, 1], [], []>} : vector<384x1152xbf16>, vector<1152x128xbf16>, vector<384x128xf32> -> vector<384x128xf32>
    %c0_29 = arith.constant 0 : index
    %c0_30 = arith.constant 0 : index
    %21 = vector.load %arg3[%c0_29, %c0_30] : memref<1x128xf32, #tpu.memory_space<vmem>>, vector<1x128xf32>
    %22 = vector.broadcast %21 : vector<1x128xf32> to vector<384x128xf32>
    %23 = arith.addf %20, %22 : vector<384x128xf32>
    %cst_31 = arith.constant 0.000000e+00 : f32
    %24 = vector.broadcast %cst_31 : f32 to vector<384x128xf32>
    %25 = arith.maximumf %23, %24 : vector<384x128xf32>
    %26 = arith.truncf %25 : vector<384x128xf32> to vector<384x128xbf16>
    %c0_32 = arith.constant 0 : index
    %c0_33 = arith.constant 0 : index
    %c0_34 = arith.constant 0 : index
    %27 = vector.load %arg4[%c0_32, %c0_33, %c0_34] : memref<1x384x128xbf16, #tpu.memory_space<vmem>>, vector<1x384x128xbf16>
    %28 = vector.shape_cast %27 : vector<1x384x128xbf16> to vector<384x128xbf16>
    %29 = vector.shape_cast %26 : vector<384x128xbf16> to vector<1x384x128xbf16>
    tpu.vector_store %arg4[%c0_32, %c0_33, %c0_34], %29 {strides = array<i32>} : memref<1x384x128xbf16, #tpu.memory_space<vmem>>, vector<1x384x128xbf16>,
    return
  }
  func.func @transform_0(%arg0: i32) -> (i32, i32, i32, i32) {
    %c0_i32 = arith.constant 0 : i32
    %c0_i32_0 = arith.constant 0 : i32
    %c0_i32_1 = arith.constant 0 : i32
    %c0_i32_2 = arith.constant 0 : i32
    return %arg0, %c0_i32, %c0_i32_0, %c0_i32_1 : i32, i32, i32, i32
  }
  func.func @transform_1(%arg0: i32) -> (i32, i32) {
    %c0_i32 = arith.constant 0 : i32
    %c0_i32_0 = arith.constant 0 : i32
    %c0_i32_1 = arith.constant 0 : i32
    return %c0_i32, %c0_i32_0 : i32, i32
  }
  func.func @transform_2(%arg0: i32) -> (i32, i32) {
    %c0_i32 = arith.constant 0 : i32
    %c0_i32_0 = arith.constant 0 : i32
    %c0_i32_1 = arith.constant 0 : i32
    return %c0_i32, %c0_i32_0 : i32, i32
  }
  func.func @transform_3(%arg0: i32) -> (i32, i32, i32) {
    %c0_i32 = arith.constant 0 : i32
    %c0_i32_0 = arith.constant 0 : i32
    %c0_i32_1 = arith.constant 0 : i32
    return %arg0, %c0_i32, %c0_i32_0 : i32, i32, i32
  }
}

module attributes {stable_mosaic.version = 11 : i64} {
  func.func @_matmul_kernel(%arg0: i32, %arg1: i32, %arg2: i32, %arg3: memref<128x128xbf16, #tpu.memory_space<vmem>>, %arg4: memref<128x128xbf16, #tpu.memory_space<vmem>>, %arg5: memref<1x128xf32, #tpu.memory_space<vmem>>, %arg6: memref<128x128xbf16, #tpu.memory_space<vmem>>, %arg7: memref<128x128xf32, #tpu.memory_space<vmem>>) attributes {dimension_semantics = [#tpu.dimension_semantics<parallel>, #tpu.dimension_semantics<parallel>, #tpu.dimension_semantics<arbitrary>], iteration_bounds = array<i64: 4, 1, 1>, scalar_prefetch = 0 : i64, scratch_operands = 1 : i64, tpu.core_type = #tpu.core_type<tc>, window_params = [{transform_indices = @transform_0, window_bounds = array<i64: 128, 128>}, {transform_indices = @transform_1, window_bounds = array<i64: 128, 128>}, {transform_indices = @transform_2, window_bounds = array<i64: 1, 128>}, {transform_indices = @transform_3, window_bounds = array<i64: 128, 128>}]} {
    %c0_i32 = arith.constant 0 : i32
    %0 = arith.cmpi eq, %arg2, %c0_i32 : i32
    %1 = arith.extui %0 : i1 to i32
    %c0_i32_0 = arith.constant 0 : i32
    %2 = arith.cmpi ne, %1, %c0_i32_0 : i32
    scf.if %2 {
      %cst_10 = arith.constant 0.000000e+00 : f32
      %12 = vector.broadcast %cst_10 : f32 to vector<128x128xf32>
      %c0_11 = arith.constant 0 : index
      %c0_12 = arith.constant 0 : index
      %13 = vector.load %arg7[%c0_11, %c0_12] : memref<128x128xf32, #tpu.memory_space<vmem>>, vector<128x128xf32>
      tpu.vector_store %arg7[%c0_11, %c0_12], %12 {strides = array<i32>} : memref<128x128xf32, #tpu.memory_space<vmem>>, vector<128x128xf32>,
    } else {
    }
    %c0 = arith.constant 0 : index
    %c0_1 = arith.constant 0 : index
    %3 = vector.load %arg7[%c0, %c0_1] : memref<128x128xf32, #tpu.memory_space<vmem>>, vector<128x128xf32>
    %c0_2 = arith.constant 0 : index
    %c0_3 = arith.constant 0 : index
    %4 = vector.load %arg3[%c0_2, %c0_3] : memref<128x128xbf16, #tpu.memory_space<vmem>>, vector<128x128xbf16>
    %c0_4 = arith.constant 0 : index
    %c0_5 = arith.constant 0 : index
    %5 = vector.load %arg4[%c0_4, %c0_5] : memref<128x128xbf16, #tpu.memory_space<vmem>>, vector<128x128xbf16>
    %cst = arith.constant dense<0.000000e+00> : vector<128x128xf32>
    %6 = tpu.matmul %4, %5, %cst {dimension_numbers = #tpu.dot_dimension_numbers<[1], [0], [0], [1], [0, 0, 1, 1], [], []>} : vector<128x128xbf16>, vector<128x128xbf16>, vector<128x128xf32> -> vector<128x128xf32>
    %7 = arith.addf %3, %6 : vector<128x128xf32>
    %c0_6 = arith.constant 0 : index
    %c0_7 = arith.constant 0 : index
    %8 = vector.load %arg7[%c0_6, %c0_7] : memref<128x128xf32, #tpu.memory_space<vmem>>, vector<128x128xf32>
    tpu.vector_store %arg7[%c0_6, %c0_7], %7 {strides = array<i32>} : memref<128x128xf32, #tpu.memory_space<vmem>>, vector<128x128xf32>,
    %c0_i32_8 = arith.constant 0 : i32
    %9 = arith.cmpi eq, %arg2, %c0_i32_8 : i32
    %10 = arith.extui %9 : i1 to i32
    %c0_i32_9 = arith.constant 0 : i32
    %11 = arith.cmpi ne, %10, %c0_i32_9 : i32
    scf.if %11 {
      %c0_10 = arith.constant 0 : index
      %c0_11 = arith.constant 0 : index
      %12 = vector.load %arg7[%c0_10, %c0_11] : memref<128x128xf32, #tpu.memory_space<vmem>>, vector<128x128xf32>
      %c0_12 = arith.constant 0 : index
      %c0_13 = arith.constant 0 : index
      %13 = vector.load %arg5[%c0_12, %c0_13] : memref<1x128xf32, #tpu.memory_space<vmem>>, vector<1x128xf32>
      %14 = vector.broadcast %13 : vector<1x128xf32> to vector<128x128xf32>
      %15 = arith.addf %12, %14 : vector<128x128xf32>
      %16 = arith.truncf %15 : vector<128x128xf32> to vector<128x128xbf16>
      %c0_14 = arith.constant 0 : index
      %c0_15 = arith.constant 0 : index
      %17 = vector.load %arg6[%c0_14, %c0_15] : memref<128x128xbf16, #tpu.memory_space<vmem>>, vector<128x128xbf16>
      tpu.vector_store %arg6[%c0_14, %c0_15], %16 {strides = array<i32>} : memref<128x128xbf16, #tpu.memory_space<vmem>>, vector<128x128xbf16>,
    } else {
    }
    return
  }
  func.func @transform_0(%arg0: i32, %arg1: i32, %arg2: i32) -> (i32, i32) {
    %c0_i32 = arith.constant 0 : i32
    return %arg0, %arg2 : i32, i32
  }
  func.func @transform_1(%arg0: i32, %arg1: i32, %arg2: i32) -> (i32, i32) {
    %c0_i32 = arith.constant 0 : i32
    return %arg2, %arg1 : i32, i32
  }
  func.func @transform_2(%arg0: i32, %arg1: i32, %arg2: i32) -> (i32, i32) {
    %c0_i32 = arith.constant 0 : i32
    %c0_i32_0 = arith.constant 0 : i32
    return %c0_i32, %arg1 : i32, i32
  }
  func.func @transform_3(%arg0: i32, %arg1: i32, %arg2: i32) -> (i32, i32) {
    %c0_i32 = arith.constant 0 : i32
    return %arg0, %arg1 : i32, i32
  }
}

module attributes {stable_mosaic.version = 11 : i64} {
  func.func @_decode_kernel(%arg0: i32, %arg1: memref<8x768xf32, #tpu.memory_space<vmem>>, %arg2: memref<1x8x768xbf16, #tpu.memory_space<vmem>>, %arg3: memref<1x8x768xf32, #tpu.memory_space<vmem>>) attributes {dimension_semantics = [#tpu.dimension_semantics<parallel>], iteration_bounds = array<i64: 2>, scalar_prefetch = 0 : i64, scratch_operands = 0 : i64, tpu.core_type = #tpu.core_type<tc>, window_params = [{pipeline_mode = #tpu.pipeline_mode<synchronous>, transform_indices = @transform_0, window_bounds = array<i64: 8, 768>}, {transform_indices = @transform_1, window_bounds = array<i64: 1, 8, 768>}, {transform_indices = @transform_2, window_bounds = array<i64: 1, 8, 768>}]} {
    %c0 = arith.constant 0 : index
    %c0_0 = arith.constant 0 : index
    %0 = vector.load %arg1[%c0, %c0_0] : memref<8x768xf32, #tpu.memory_space<vmem>>, vector<8x768xf32>
    %c0_1 = arith.constant 0 : index
    %c0_2 = arith.constant 0 : index
    %c0_3 = arith.constant 0 : index
    %1 = vector.load %arg2[%c0_1, %c0_2, %c0_3] : memref<1x8x768xbf16, #tpu.memory_space<vmem>>, vector<1x8x768xbf16>
    %2 = vector.shape_cast %1 : vector<1x8x768xbf16> to vector<8x768xbf16>
    %3 = arith.extf %2 : vector<8x768xbf16> to vector<8x768xf32>
    %4 = vector.extract_strided_slice %0 {offsets = [2, 0], sizes = [2, 768], strides = [1, 1]} : vector<8x768xf32> to vector<2x768xf32>
    %5 = vector.extract_strided_slice %0 {offsets = [0, 0], sizes = [2, 768], strides = [1, 1]} : vector<8x768xf32> to vector<2x768xf32>
    %6 = arith.subf %4, %5 : vector<2x768xf32>
    %7 = vector.extract_strided_slice %0 {offsets = [0, 0], sizes = [2, 768], strides = [1, 1]} : vector<8x768xf32> to vector<2x768xf32>
    %cst = arith.constant 5.000000e-01 : f32
    %8 = vector.broadcast %cst : f32 to vector<2x768xf32>
    %9 = arith.mulf %8, %6 : vector<2x768xf32>
    %10 = arith.addf %7, %9 : vector<2x768xf32>
    %11 = vector.extract_strided_slice %3 {offsets = [0, 0], sizes = [2, 768], strides = [1, 1]} : vector<8x768xf32> to vector<2x768xf32>
    %12 = arith.mulf %11, %6 : vector<2x768xf32>
    %13 = arith.addf %12, %10 : vector<2x768xf32>
    %14 = vector.extract_strided_slice %3 {offsets = [2, 0], sizes = [2, 768], strides = [1, 1]} : vector<8x768xf32> to vector<2x768xf32>
    %cst_4 = arith.constant 4.135000e+00 : f32
    %15 = vector.broadcast %cst_4 : f32 to vector<2x768xf32>
    %16 = arith.minimumf %14, %15 : vector<2x768xf32>
    %17 = math.exp %16 : vector<2x768xf32>
    %18 = arith.mulf %17, %6 : vector<2x768xf32>
    %cst_5 = arith.constant 5.000000e-01 : f32
    %19 = vector.broadcast %cst_5 : f32 to vector<2x768xf32>
    %20 = arith.mulf %19, %18 : vector<2x768xf32>
    %21 = arith.subf %13, %20 : vector<2x768xf32>
    %cst_6 = arith.constant 5.000000e-01 : f32
    %22 = vector.broadcast %cst_6 : f32 to vector<2x768xf32>
    %23 = arith.mulf %22, %18 : vector<2x768xf32>
    %24 = arith.addf %13, %23 : vector<2x768xf32>
    %25 = tpu.concatenate %21, %24 in 0 : vector<2x768xf32>, vector<2x768xf32> -> vector<4x768xf32>
    %cst_7 = arith.constant 3.200000e+01 : f32
    %26 = vector.broadcast %cst_7 : f32 to vector<1x1xf32>
    %cst_8 = arith.constant 3.200000e+01 : f32
    %27 = vector.broadcast %cst_8 : f32 to vector<1x1xf32>
    %cst_9 = arith.constant 3.200000e+01 : f32
    %28 = vector.broadcast %cst_9 : f32 to vector<1x1xf32>
    %cst_10 = arith.constant 3.200000e+01 : f32
    %29 = vector.broadcast %cst_10 : f32 to vector<1x1xf32>
    %30 = tpu.concatenate %26, %27, %28, %29 in 0 : vector<1x1xf32>, vector<1x1xf32>, vector<1x1xf32>, vector<1x1xf32> -> vector<4x1xf32>
    %cst_11 = arith.constant 0.000000e+00 : f32
    %31 = vector.broadcast %cst_11 : f32 to vector<4x768xf32>
    %32 = arith.maximumf %31, %25 : vector<4x768xf32>
    %33 = vector.broadcast %30 : vector<4x1xf32> to vector<4x768xf32>
    %34 = arith.minimumf %33, %32 : vector<4x768xf32>
    %cst_12 = arith.constant 0.000000e+00 : f32
    %35 = vector.broadcast %cst_12 : f32 to vector<4x768xf32>
    %36 = tpu.concatenate %34, %35 in 0 : vector<4x768xf32>, vector<4x768xf32> -> vector<8x768xf32>
    %c0_13 = arith.constant 0 : index
    %c0_14 = arith.constant 0 : index
    %c0_15 = arith.constant 0 : index
    %37 = vector.load %arg3[%c0_13, %c0_14, %c0_15] : memref<1x8x768xf32, #tpu.memory_space<vmem>>, vector<1x8x768xf32>
    %38 = vector.shape_cast %37 : vector<1x8x768xf32> to vector<8x768xf32>
    %39 = vector.shape_cast %36 : vector<8x768xf32> to vector<1x8x768xf32>
    tpu.vector_store %arg3[%c0_13, %c0_14, %c0_15], %39 {strides = array<i32>} : memref<1x8x768xf32, #tpu.memory_space<vmem>>, vector<1x8x768xf32>,
    return
  }
  func.func @transform_0(%arg0: i32) -> (i32, i32) {
    %c0_i32 = arith.constant 0 : i32
    %c0_i32_0 = arith.constant 0 : i32
    %c0_i32_1 = arith.constant 0 : i32
    return %c0_i32, %c0_i32_0 : i32, i32
  }
  func.func @transform_1(%arg0: i32) -> (i32, i32, i32) {
    %c0_i32 = arith.constant 0 : i32
    %c0_i32_0 = arith.constant 0 : i32
    %c0_i32_1 = arith.constant 0 : i32
    return %arg0, %c0_i32, %c0_i32_0 : i32, i32, i32
  }
  func.func @transform_2(%arg0: i32) -> (i32, i32, i32) {
    %c0_i32 = arith.constant 0 : i32
    %c0_i32_0 = arith.constant 0 : i32
    %c0_i32_1 = arith.constant 0 : i32
    return %arg0, %c0_i32, %c0_i32_0 : i32, i32, i32
  }
}

module attributes {stable_mosaic.version = 11 : i64} {
  func.func @_roi_head_kernel(%arg0: memref<16x1568xbf16, #tpu.memory_space<vmem>>, %arg1: memref<1568x256xbf16, #tpu.memory_space<vmem>>, %arg2: memref<1x256xf32, #tpu.memory_space<vmem>>, %arg3: memref<256x256xbf16, #tpu.memory_space<vmem>>, %arg4: memref<1x256xf32, #tpu.memory_space<vmem>>, %arg5: memref<256x128xbf16, #tpu.memory_space<vmem>>, %arg6: memref<1x128xf32, #tpu.memory_space<vmem>>, %arg7: memref<16x128xf32, #tpu.memory_space<vmem>>) attributes {dimension_semantics = [], scalar_prefetch = 0 : i64, scratch_operands = 0 : i64, tpu.core_type = #tpu.core_type<tc>} {
    %c0 = arith.constant 0 : index
    %c0_0 = arith.constant 0 : index
    %0 = vector.load %arg0[%c0, %c0_0] : memref<16x1568xbf16, #tpu.memory_space<vmem>>, vector<16x1568xbf16>
    %c0_1 = arith.constant 0 : index
    %c0_2 = arith.constant 0 : index
    %1 = vector.load %arg1[%c0_1, %c0_2] : memref<1568x256xbf16, #tpu.memory_space<vmem>>, vector<1568x256xbf16>
    %cst = arith.constant dense<0.000000e+00> : vector<16x256xf32>
    %2 = tpu.matmul %0, %1, %cst {dimension_numbers = #tpu.dot_dimension_numbers<[1], [0], [0], [1], [0, 0, 1, 1], [], []>} : vector<16x1568xbf16>, vector<1568x256xbf16>, vector<16x256xf32> -> vector<16x256xf32>
    %c0_3 = arith.constant 0 : index
    %c0_4 = arith.constant 0 : index
    %3 = vector.load %arg2[%c0_3, %c0_4] : memref<1x256xf32, #tpu.memory_space<vmem>>, vector<1x256xf32>
    %4 = vector.broadcast %3 : vector<1x256xf32> to vector<16x256xf32>
    %5 = arith.addf %2, %4 : vector<16x256xf32>
    %cst_5 = arith.constant 0.000000e+00 : f32
    %6 = vector.broadcast %cst_5 : f32 to vector<16x256xf32>
    %7 = arith.maximumf %5, %6 : vector<16x256xf32>
    %8 = arith.truncf %7 : vector<16x256xf32> to vector<16x256xbf16>
    %c0_6 = arith.constant 0 : index
    %c0_7 = arith.constant 0 : index
    %9 = vector.load %arg3[%c0_6, %c0_7] : memref<256x256xbf16, #tpu.memory_space<vmem>>, vector<256x256xbf16>
    %cst_8 = arith.constant dense<0.000000e+00> : vector<16x256xf32>
    %10 = tpu.matmul %8, %9, %cst_8 {dimension_numbers = #tpu.dot_dimension_numbers<[1], [0], [0], [1], [0, 0, 1, 1], [], []>} : vector<16x256xbf16>, vector<256x256xbf16>, vector<16x256xf32> -> vector<16x256xf32>
    %c0_9 = arith.constant 0 : index
    %c0_10 = arith.constant 0 : index
    %11 = vector.load %arg4[%c0_9, %c0_10] : memref<1x256xf32, #tpu.memory_space<vmem>>, vector<1x256xf32>
    %12 = vector.broadcast %11 : vector<1x256xf32> to vector<16x256xf32>
    %13 = arith.addf %10, %12 : vector<16x256xf32>
    %cst_11 = arith.constant 0.000000e+00 : f32
    %14 = vector.broadcast %cst_11 : f32 to vector<16x256xf32>
    %15 = arith.maximumf %13, %14 : vector<16x256xf32>
    %16 = arith.truncf %15 : vector<16x256xf32> to vector<16x256xbf16>
    %c0_12 = arith.constant 0 : index
    %c0_13 = arith.constant 0 : index
    %17 = vector.load %arg5[%c0_12, %c0_13] : memref<256x128xbf16, #tpu.memory_space<vmem>>, vector<256x128xbf16>
    %cst_14 = arith.constant dense<0.000000e+00> : vector<16x128xf32>
    %18 = tpu.matmul %16, %17, %cst_14 {dimension_numbers = #tpu.dot_dimension_numbers<[1], [0], [0], [1], [0, 0, 1, 1], [], []>} : vector<16x256xbf16>, vector<256x128xbf16>, vector<16x128xf32> -> vector<16x128xf32>
    %c0_15 = arith.constant 0 : index
    %c0_16 = arith.constant 0 : index
    %19 = vector.load %arg6[%c0_15, %c0_16] : memref<1x128xf32, #tpu.memory_space<vmem>>, vector<1x128xf32>
    %20 = vector.broadcast %19 : vector<1x128xf32> to vector<16x128xf32>
    %21 = arith.addf %18, %20 : vector<16x128xf32>
    %c0_17 = arith.constant 0 : index
    %c0_18 = arith.constant 0 : index
    %22 = vector.load %arg7[%c0_17, %c0_18] : memref<16x128xf32, #tpu.memory_space<vmem>>, vector<16x128xf32>
    tpu.vector_store %arg7[%c0_17, %c0_18], %21 {strides = array<i32>} : memref<16x128xf32, #tpu.memory_space<vmem>>, vector<16x128xf32>,
    return
  }
}

</mosaic_0001>

<bundles_post_ra>
// kernel: generalized_rcnn_forward.6
= control target key start
LH: loop header
LB: loop body
LE: loop exit
PB: predicated region body
PF: predicated region fallthrough
CT: control target
= control target key end

     0   :  { %s935_s12 = smov 0   ;;  %s937_s13 = smov 0   ;;  %s1015_s0 = inlined_call_operand.vmem [shape: bf16[2560,128], index: 0, kind: input, shape index: {}]   ;;  %s1016_s1 = inlined_call_operand.vmem [shape: bf16[128,128], index: 1, kind: input, shape index: {}]   ;;  %s1017_s2 = inlined_call_operand.vmem [shape: f32[1,128], index: 2, kind: input, shape index: {}]   ;;  %s1018_s3 = inlined_call_operand.vmem [shape: bf16[2560,128], index: 3, kind: output, shape index: {}]  }
   0x1   :  { %s939_s14 = smov 0  }
   0x2 LB: > { %s32_s15 = sadd.s32 1, %s909_s13  ;;  %p708_p0 = scmp.ge.s32.totalorder %s913_s14, 1  ;;  %s913_s14 = sphi %s939_s14, %s13_s14   ;;  %s909_s13 = sphi %s937_s13, %s1020_s13   ;;  %s905_s12 = sphi %s935_s12, %s1019_s12  }
   0x3   : > { %p34_p1 = scmp.ge.s32.totalorder %s32_s15, 20  ;;  %p188_p2 = scmp.lt.s32.totalorder %s913_s14, 21 }
   0x5   : > { %s1022_s15 = smov (%p34_p1, %s32_s15), 0  ;;  %p189_p3 = pnand %p708_p0, %p188_p2 }
   0x6   : > { %s709_s24 = sshll.u32 (!%p189_p3), %s905_s12, 4 }
   0x7   : > { %192 = sbr.rel (%p189_p3) target bundleno = 209 (0xd1), region = 32  ;;  %p230_p4 = scmp.lt.s32.totalorder (!%p189_p3), %s709_s24, 319 }
   0xc   : > { %v794_v0 = vld [vmem:[%s1016_s1 + $0x38] sm:$0xff]  ;;  %v793_v1 = vld [vmem:[%s1016_s1 + $0x30] sm:$0xff]  ;;  %v792_v2 = vld [vmem:[%s1016_s1 + $0x28] sm:$0xff]  ;;  %s1024_s24 = smov (!%p230_p4, %s709_s24), 319 }
   0xd   : > { %423 = vmatpush.bf16.msra.mxu0 %v794_v0  ;;  %842 = vmatpush.bf16.msra.mxu1 %v794_v0  ;;  %v791_v3 = vld [vmem:[%s1016_s1 + $0x20] sm:$0xff]  ;;  %v790_v4 = vld [vmem:[%s1016_s1 + $0x18] sm:$0xff]  ;;  %v789_v5 = vld [vmem:[%s1016_s1 + $0x10] sm:$0xff]  ;;  %s710_s4 = sshll.u32 %s1024_s24, 2 }
   0xe   : > { %843 = vmatpush.bf16.msra.mxu2 %v794_v0  ;;  %844 = vmatpush.bf16.msra.mxu3 %v794_v0  ;;  %v788_v6 = vld [vmem:[%s1016_s1 + $0x8] sm:$0xff]  ;;  %v787_v7 = vld [vmem:[%s1016_s1] sm:$0xff]  ;;  %s236_s9 = scalar_lea.vmem %s1015_s0, %s710_s4  ;;  %s996_s17 = scalar_lea.vmem %s1018_s3, %s710_s4 }
   0xf   : > { %v779_v8 = vld [vmem:[%s236_s9] sm:$0xff]  ;;  %v781_v9 = vld [vmem:[%s236_s9 + $0x10] sm:$0xff]  ;;  %v780_v12 = vld [vmem:[%s236_s9 + $0x8] sm:$0xff] }
  0x10   : > { %v783_v10 = vld [vmem:[%s236_s9 + $0x20] sm:$0xff]  ;;  %v785_v11 = vld [vmem:[%s236_s9 + $0x30] sm:$0xff]  ;;  %v782_v13 = vld [vmem:[%s236_s9 + $0x18] sm:$0xff] }
  0x11   : > { %424 = vmatpush.bf16.msra.mxu0 %v793_v1  ;;  %845 = vmatpush.bf16.msra.mxu1 %v793_v1  ;;  %v784_v14 = vld [vmem:[%s236_s9 + $0x28] sm:$0xff]  ;;  %v786_v15 = vld [vmem:[%s236_s9 + $0x38] sm:$0xff]  ;;  %v890_v18 = vld [vmem:[%s1017_s2] ss:$0 sm:$0xff] }
  0x12   : > { %846 = vmatpush.bf16.msra.mxu2 %v793_v1  ;;  %847 = vmatpush.bf16.msra.mxu3 %v793_v1 }
  0x15   : > { %425 = vmatpush.bf16.msra.mxu0 %v792_v2  ;;  %848 = vmatpush.bf16.msra.mxu1 %v792_v2 }
  0x16   : > { %849 = vmatpush.bf16.msra.mxu2 %v792_v2  ;;  %850 = vmatpush.bf16.msra.mxu3 %v792_v2 }
  0x19   : > { %426 = vmatpush.bf16.msra.mxu0 %v791_v3  ;;  %851 = vmatpush.bf16.msra.mxu1 %v791_v3 }
  0x1a   : > { %852 = vmatpush.bf16.msra.mxu2 %v791_v3  ;;  %853 = vmatpush.bf16.msra.mxu3 %v791_v3 }
  0x1d   : > { %427 = vmatpush.bf16.msra.mxu0 %v790_v4  ;;  %854 = vmatpush.bf16.msra.mxu1 %v790_v4 }
  0x1e   : > { %855 = vmatpush.bf16.msra.mxu2 %v790_v4  ;;  %856 = vmatpush.bf16.msra.mxu3 %v790_v4 }
  0x21   : > { %428 = vmatpush.bf16.msra.mxu0 %v789_v5  ;;  %857 = vmatpush.bf16.msra.mxu1 %v789_v5 }
  0x22   : > { %858 = vmatpush.bf16.msra.mxu2 %v789_v5  ;;  %859 = vmatpush.bf16.msra.mxu3 %v789_v5 }
  0x25   : > { %429 = vmatpush.bf16.msra.mxu0 %v788_v6  ;;  %860 = vmatpush.bf16.msra.mxu1 %v788_v6 }
  0x26   : > { %861 = vmatpush.bf16.msra.mxu2 %v788_v6  ;;  %862 = vmatpush.bf16.msra.mxu3 %v788_v6 }
  0x29   : > { %430 = vmatpush.bf16.msra.mxu0 %v787_v7  ;;  %863 = vmatpush.bf16.msra.mxu1 %v787_v7 }
  0x2a   : > { %864 = vmatpush.bf16.msra.mxu2 %v787_v7  ;;  %865 = vmatpush.bf16.msra.mxu3 %v787_v7 }
  0x2c   : > { %431 = vmatmul.bf16.vlgmr.msra.gmra.mxu0 %v779_v8  ;;  %441 = vmatmul.bf16.vlgmr.msra.gmra.mxu1 %v781_v9 }
  0x2d   : > { %451 = vmatmul.bf16.vlgmr.msra.gmra.mxu2 %v783_v10  ;;  %461 = vmatmul.bf16.vlgmr.msra.gmra.mxu3 %v785_v11 }
  0x3c   : > { %436 = vmatmul.bf16.gmra.mxu0 %v780_v12  ;;  %446 = vmatmul.bf16.gmra.mxu1 %v782_v13 }
  0x3d   : > { %456 = vmatmul.bf16.gmra.mxu2 %v784_v14  ;;  %466 = vmatmul.bf16.gmra.mxu3 %v786_v15 }
  0xa9   : > { %v432_v16 = vpop.f32.mrf.mxu0  ;;  %v442_v17 = vpop.f32.mrf.mxu1 }
  0xaa   : > { %v527_v19 = vadd.f32 %v890_v18, %v432_v16  ;;  %v531_v20 = vadd.f32 %v890_v18, %v442_v17 }
  0xac   : > { %v543_v27 = vmax.f32 %v527_v19, 0.0  ;;  %v547_v28 = vmax.f32 %v531_v20, 0.0 }
  0xb0   : > { %v452_v21 = vpop.f32.mrf.mxu2  ;;  %v462_v22 = vpop.f32.mrf.mxu3 }
  0xb1   : > { %v434_v23 = vpop.f32.mrf.mxu0  ;;  %v444_v24 = vpop.f32.mrf.mxu1  ;;  %v535_v33 = vadd.f32 %v890_v18, %v452_v21  ;;  %v539_v34 = vadd.f32 %v890_v18, %v462_v22 }
  0xb2   : > { %v528_v25 = vadd.f32 %v890_v18, %v434_v23  ;;  %v532_v26 = vadd.f32 %v890_v18, %v444_v24 }
  0xb3   : > { %v551_v41 = vmax.f32 %v535_v33, 0.0  ;;  %v555_v42 = vmax.f32 %v539_v34, 0.0 }
  0xb4   : > { %v544_v29 = vmax.f32 %v528_v25, 0.0  ;;  %v548_v30 = vmax.f32 %v532_v26, 0.0 }
  0xb6   : > { %v798_v31 = vpack.c.bf16 %v544_v29, %v543_v27  ;;  %v808_v32 = vpack.c.bf16 %v548_v30, %v547_v28 }
  0xb8   : > { %799 = vst [vmem:[%s996_s17] sm:$0xff] %v798_v31   ;;  %v454_v35 = vpop.f32.mrf.mxu2  ;;  %v464_v36 = vpop.f32.mrf.mxu3 }
  0xb9   : > { %836 = vst [vmem:[%s996_s17 + $0x10] sm:$0xff] %v808_v32   ;;  %v536_v37 = vadd.f32 %v890_v18, %v454_v35  ;;  %v540_v38 = vadd.f32 %v890_v18, %v464_v36  ;;  %v437_v39 = vpop.f32.mrf.mxu0  ;;  %v447_v40 = vpop.f32.mrf.mxu1 }
  0xba   : > { %v529_v47 = vadd.f32 %v890_v18, %v437_v39  ;;  %v533_v48 = vadd.f32 %v890_v18, %v447_v40 }
  0xbb   : > { %v552_v43 = vmax.f32 %v536_v37, 0.0  ;;  %v556_v44 = vmax.f32 %v540_v38, 0.0 }
  0xbc   : > { %v545_v55 = vmax.f32 %v529_v47, 0.0  ;;  %v549_v56 = vmax.f32 %v533_v48, 0.0 }
  0xbd   : > { %v818_v45 = vpack.c.bf16 %v552_v43, %v551_v41  ;;  %v828_v46 = vpack.c.bf16 %v556_v44, %v555_v42 }
  0xbf   : > { %838 = vst [vmem:[%s996_s17 + $0x20] sm:$0xff] %v818_v45  }
  0xc0   : > { %840 = vst [vmem:[%s996_s17 + $0x30] sm:$0xff] %v828_v46   ;;  %v457_v49 = vpop.f32.mrf.mxu2  ;;  %v467_v50 = vpop.f32.mrf.mxu3 }
  0xc1   : > { %v439_v51 = vpop.f32.mrf.mxu0  ;;  %v449_v52 = vpop.f32.mrf.mxu1  ;;  %v537_v61 = vadd.f32 %v890_v18, %v457_v49  ;;  %v541_v62 = vadd.f32 %v890_v18, %v467_v50 }
  0xc2   : > { %v530_v53 = vadd.f32 %v890_v18, %v439_v51  ;;  %v534_v54 = vadd.f32 %v890_v18, %v449_v52 }
  0xc3   : > { %v553_v3 = vmax.f32 %v537_v61, 0.0  ;;  %v557_v4 = vmax.f32 %v541_v62, 0.0 }
  0xc4   : > { %v546_v57 = vmax.f32 %v530_v53, 0.0  ;;  %v550_v58 = vmax.f32 %v534_v54, 0.0 }
  0xc6   : > { %v803_v59 = vpack.c.bf16 %v546_v57, %v545_v55  ;;  %v813_v60 = vpack.c.bf16 %v550_v58, %v549_v56 }
  0xc8   : > { %835 = vst [vmem:[%s996_s17 + $0x8] sm:$0xff] %v803_v59   ;;  %v459_v63 = vpop.f32.mrf.mxu2  ;;  %v469_v0 = vpop.f32.mrf.mxu3 }
  0xc9   : > { %837 = vst [vmem:[%s996_s17 + $0x18] sm:$0xff] %v813_v60   ;;  %v538_v1 = vadd.f32 %v890_v18, %v459_v63  ;;  %v542_v2 = vadd.f32 %v890_v18, %v469_v0 }
  0xcb   : > { %v554_v5 = vmax.f32 %v538_v1, 0.0  ;;  %v558_v6 = vmax.f32 %v542_v2, 0.0 }
  0xcd   : > { %v823_v7 = vpack.c.bf16 %v554_v5, %v553_v3  ;;  %v833_v8 = vpack.c.bf16 %v558_v6, %v557_v4 }
  0xcf   : > { %839 = vst [vmem:[%s996_s17 + $0x28] sm:$0xff] %v823_v7  }
  0xd0   : > { %841 = vst [vmem:[%s996_s17 + $0x38] sm:$0xff] %v833_v8  }
  0xd1 PF: > { %s13_s14 = sadd.s32 1, %s913_s14   ;;  %s1019_s12 = smov %s909_s13 }
  0xd2   : > { %p10_p5 = scmp.ge.s32.totalorder %s13_s14, 22   ;;  %s1020_s13 = smov %s1022_s15 }
  0xd4   :  { %12 = sbr.rel (!%p10_p5) target bundleno = 2 (0x2), region = 76 }

// kernel: generalized_rcnn_forward.9
= control target key start
LH: loop header
LB: loop body
LE: loop exit
PB: predicated region body
PF: predicated region fallthrough
CT: control target
= control target key end

     0   :  { %s919_s12 = smov 0   ;;  %s921_s13 = smov 0   ;;  %s999_s0 = inlined_call_operand.vmem [shape: bf16[512,128], index: 0, kind: input, shape index: {}]   ;;  %s1000_s1 = inlined_call_operand.vmem [shape: bf16[128,128], index: 1, kind: input, shape index: {}]   ;;  %s1001_s2 = inlined_call_operand.vmem [shape: f32[1,128], index: 2, kind: input, shape index: {}]   ;;  %s1002_s3 = inlined_call_operand.vmem [shape: bf16[512,128], index: 3, kind: output, shape index: {}]  }
   0x1   :  { %s923_s14 = smov 0  }
   0x2 LB: > { %s32_s15 = sadd.s32 1, %s893_s13  ;;  %p692_p0 = scmp.ge.s32.totalorder %s897_s14, 1  ;;  %s897_s14 = sphi %s923_s14, %s13_s14   ;;  %s893_s13 = sphi %s921_s13, %s1004_s13   ;;  %s889_s12 = sphi %s919_s12, %s1003_s12  }
   0x3   : > { %p34_p1 = scmp.ge.s32.totalorder %s32_s15, 4  ;;  %p188_p2 = scmp.lt.s32.totalorder %s897_s14, 5 }
   0x5   : > { %s1006_s15 = smov (%p34_p1, %s32_s15), 0  ;;  %p189_p3 = pnand %p692_p0, %p188_p2 }
   0x6   : > { %s693_s24 = sshll.u32 (!%p189_p3), %s889_s12, 4 }
   0x7   : > { %192 = sbr.rel (%p189_p3) target bundleno = 207 (0xcf), region = 32  ;;  %p230_p4 = scmp.lt.s32.totalorder (!%p189_p3), %s693_s24, 63 }
   0xc   : > { %v778_v0 = vld [vmem:[%s1000_s1 + $0x38] sm:$0xff]  ;;  %v777_v1 = vld [vmem:[%s1000_s1 + $0x30] sm:$0xff]  ;;  %v776_v2 = vld [vmem:[%s1000_s1 + $0x28] sm:$0xff]  ;;  %s1008_s24 = smov (!%p230_p4, %s693_s24), 63 }
   0xd   : > { %423 = vmatpush.bf16.msra.mxu0 %v778_v0  ;;  %826 = vmatpush.bf16.msra.mxu1 %v778_v0  ;;  %v775_v3 = vld [vmem:[%s1000_s1 + $0x20] sm:$0xff]  ;;  %v774_v4 = vld [vmem:[%s1000_s1 + $0x18] sm:$0xff]  ;;  %v773_v5 = vld [vmem:[%s1000_s1 + $0x10] sm:$0xff]  ;;  %s694_s4 = sshll.u32 %s1008_s24, 2 }
   0xe   : > { %827 = vmatpush.bf16.msra.mxu2 %v778_v0  ;;  %828 = vmatpush.bf16.msra.mxu3 %v778_v0  ;;  %v772_v6 = vld [vmem:[%s1000_s1 + $0x8] sm:$0xff]  ;;  %v771_v7 = vld [vmem:[%s1000_s1] sm:$0xff]  ;;  %s236_s9 = scalar_lea.vmem %s999_s0, %s694_s4  ;;  %s980_s17 = scalar_lea.vmem %s1002_s3, %s694_s4 }
   0xf   : > { %v763_v8 = vld [vmem:[%s236_s9] sm:$0xff]  ;;  %v765_v9 = vld [vmem:[%s236_s9 + $0x10] sm:$0xff]  ;;  %v764_v12 = vld [vmem:[%s236_s9 + $0x8] sm:$0xff] }
  0x10   : > { %v767_v10 = vld [vmem:[%s236_s9 + $0x20] sm:$0xff]  ;;  %v769_v11 = vld [vmem:[%s236_s9 + $0x30] sm:$0xff]  ;;  %v766_v13 = vld [vmem:[%s236_s9 + $0x18] sm:$0xff] }
  0x11   : > { %424 = vmatpush.bf16.msra.mxu0 %v777_v1  ;;  %829 = vmatpush.bf16.msra.mxu1 %v777_v1  ;;  %v768_v14 = vld [vmem:[%s236_s9 + $0x28] sm:$0xff]  ;;  %v770_v15 = vld [vmem:[%s236_s9 + $0x38] sm:$0xff]  ;;  %v874_v18 = vld [vmem:[%s1001_s2] ss:$0 sm:$0xff] }
  0x12   : > { %830 = vmatpush.bf16.msra.mxu2 %v777_v1  ;;  %831 = vmatpush.bf16.msra.mxu3 %v777_v1 }
  0x15   : > { %425 = vmatpush.bf16.msra.mxu0 %v776_v2  ;;  %832 = vmatpush.bf16.msra.mxu1 %v776_v2 }
  0x16   : > { %833 = vmatpush.bf16.msra.mxu2 %v776_v2  ;;  %834 = vmatpush.bf16.msra.mxu3 %v776_v2 }
  0x19   : > { %426 = vmatpush.bf16.msra.mxu0 %v775_v3  ;;  %835 = vmatpush.bf16.msra.mxu1 %v775_v3 }
  0x1a   : > { %836 = vmatpush.bf16.msra.mxu2 %v775_v3  ;;  %837 = vmatpush.bf16.msra.mxu3 %v775_v3 }
  0x1d   : > { %427 = vmatpush.bf16.msra.mxu0 %v774_v4  ;;  %838 = vmatpush.bf16.msra.mxu1 %v774_v4 }
  0x1e   : > { %839 = vmatpush.bf16.msra.mxu2 %v774_v4  ;;  %840 = vmatpush.bf16.msra.mxu3 %v774_v4 }
  0x21   : > { %428 = vmatpush.bf16.msra.mxu0 %v773_v5  ;;  %841 = vmatpush.bf16.msra.mxu1 %v773_v5 }
  0x22   : > { %842 = vmatpush.bf16.msra.mxu2 %v773_v5  ;;  %843 = vmatpush.bf16.msra.mxu3 %v773_v5 }
  0x25   : > { %429 = vmatpush.bf16.msra.mxu0 %v772_v6  ;;  %844 = vmatpush.bf16.msra.mxu1 %v772_v6 }
  0x26   : > { %845 = vmatpush.bf16.msra.mxu2 %v772_v6  ;;  %846 = vmatpush.bf16.msra.mxu3 %v772_v6 }
  0x29   : > { %430 = vmatpush.bf16.msra.mxu0 %v771_v7  ;;  %847 = vmatpush.bf16.msra.mxu1 %v771_v7 }
  0x2a   : > { %848 = vmatpush.bf16.msra.mxu2 %v771_v7  ;;  %849 = vmatpush.bf16.msra.mxu3 %v771_v7 }
  0x2c   : > { %431 = vmatmul.bf16.vlgmr.msra.gmra.mxu0 %v763_v8  ;;  %441 = vmatmul.bf16.vlgmr.msra.gmra.mxu1 %v765_v9 }
  0x2d   : > { %451 = vmatmul.bf16.vlgmr.msra.gmra.mxu2 %v767_v10  ;;  %461 = vmatmul.bf16.vlgmr.msra.gmra.mxu3 %v769_v11 }
  0x3c   : > { %436 = vmatmul.bf16.gmra.mxu0 %v764_v12  ;;  %446 = vmatmul.bf16.gmra.mxu1 %v766_v13 }
  0x3d   : > { %456 = vmatmul.bf16.gmra.mxu2 %v768_v14  ;;  %466 = vmatmul.bf16.gmra.mxu3 %v770_v15 }
  0xa9   : > { %v432_v16 = vpop.f32.mrf.mxu0  ;;  %v442_v17 = vpop.f32.mrf.mxu1 }
  0xaa   : > { %v527_v23 = vadd.f32 %v874_v18, %v432_v16  ;;  %v531_v24 = vadd.f32 %v874_v18, %v442_v17 }
  0xb0   : > { %v452_v19 = vpop.f32.mrf.mxu2  ;;  %v462_v20 = vpop.f32.mrf.mxu3 }
  0xb1   : > { %v434_v21 = vpop.f32.mrf.mxu0  ;;  %v444_v22 = vpop.f32.mrf.mxu1  ;;  %v535_v31 = vadd.f32 %v874_v18, %v452_v19  ;;  %v539_v32 = vadd.f32 %v874_v18, %v462_v20 }
  0xb2   : > { %v528_v25 = vadd.f32 %v874_v18, %v434_v21  ;;  %v532_v26 = vadd.f32 %v874_v18, %v444_v22 }
  0xb4   : > { %v782_v27 = vpack.c.bf16 %v528_v25, %v527_v23  ;;  %v792_v28 = vpack.c.bf16 %v532_v26, %v531_v24 }
  0xb6   : > { %783 = vst [vmem:[%s980_s17] sm:$0xff] %v782_v27  }
  0xb7   : > { %820 = vst [vmem:[%s980_s17 + $0x10] sm:$0xff] %v792_v28  }
  0xb8   : > { %v454_v29 = vpop.f32.mrf.mxu2  ;;  %v464_v30 = vpop.f32.mrf.mxu3 }
  0xb9   : > { %v536_v33 = vadd.f32 %v874_v18, %v454_v29  ;;  %v540_v34 = vadd.f32 %v874_v18, %v464_v30  ;;  %v437_v35 = vpop.f32.mrf.mxu0  ;;  %v447_v36 = vpop.f32.mrf.mxu1 }
  0xba   : > { %v529_v43 = vadd.f32 %v874_v18, %v437_v35  ;;  %v533_v44 = vadd.f32 %v874_v18, %v447_v36 }
  0xbb   : > { %v802_v37 = vpack.c.bf16 %v536_v33, %v535_v31  ;;  %v812_v38 = vpack.c.bf16 %v540_v34, %v539_v32 }
  0xbd   : > { %822 = vst [vmem:[%s980_s17 + $0x20] sm:$0xff] %v802_v37  }
  0xbe   : > { %824 = vst [vmem:[%s980_s17 + $0x30] sm:$0xff] %v812_v38  }
  0xc0   : > { %v457_v39 = vpop.f32.mrf.mxu2  ;;  %v467_v40 = vpop.f32.mrf.mxu3 }
  0xc1   : > { %v439_v41 = vpop.f32.mrf.mxu0  ;;  %v449_v42 = vpop.f32.mrf.mxu1  ;;  %v537_v51 = vadd.f32 %v874_v18, %v457_v39  ;;  %v541_v52 = vadd.f32 %v874_v18, %v467_v40 }
  0xc2   : > { %v530_v45 = vadd.f32 %v874_v18, %v439_v41  ;;  %v534_v46 = vadd.f32 %v874_v18, %v449_v42 }
  0xc4   : > { %v787_v47 = vpack.c.bf16 %v530_v45, %v529_v43  ;;  %v797_v48 = vpack.c.bf16 %v534_v46, %v533_v44 }
  0xc6   : > { %819 = vst [vmem:[%s980_s17 + $0x8] sm:$0xff] %v787_v47  }
  0xc7   : > { %821 = vst [vmem:[%s980_s17 + $0x18] sm:$0xff] %v797_v48  }
  0xc8   : > { %v459_v49 = vpop.f32.mrf.mxu2  ;;  %v469_v50 = vpop.f32.mrf.mxu3 }
  0xc9   : > { %v538_v53 = vadd.f32 %v874_v18, %v459_v49  ;;  %v542_v54 = vadd.f32 %v874_v18, %v469_v50 }
  0xcb   : > { %v807_v55 = vpack.c.bf16 %v538_v53, %v537_v51  ;;  %v817_v56 = vpack.c.bf16 %v542_v54, %v541_v52 }
  0xcd   : > { %823 = vst [vmem:[%s980_s17 + $0x28] sm:$0xff] %v807_v55  }
  0xce   : > { %825 = vst [vmem:[%s980_s17 + $0x38] sm:$0xff] %v817_v56  }
  0xcf PF: > { %s13_s14 = sadd.s32 1, %s897_s14   ;;  %s1003_s12 = smov %s893_s13 }
  0xd0   : > { %p10_p5 = scmp.ge.s32.totalorder %s13_s14, 6   ;;  %s1004_s13 = smov %s1006_s15 }
  0xd2   :  { %12 = sbr.rel (!%p10_p5) target bundleno = 2 (0x2), region = 76 }

// kernel: generalized_rcnn_forward.7
= control target key start
LH: loop header
LB: loop body
LE: loop exit
PB: predicated region body
PF: predicated region fallthrough
CT: control target
= control target key end

     0   :  { %s5235_s12 = smov 0   ;;  %s6336_s0 = inlined_call_operand.vmem [shape: bf16[2,4,432,128], index: 0, kind: input, shape index: {}]   ;;  %s6337_s1 = inlined_call_operand.vmem [shape: bf16[1152,128], index: 1, kind: input, shape index: {}]   ;;  %s6338_s2 = inlined_call_operand.vmem [shape: f32[1,128], index: 2, kind: input, shape index: {}]   ;;  %s6339_s3 = inlined_call_operand.vmem [shape: bf16[2,384,128], index: 3, kind: output, shape index: {}]  }
   0x1 LB: > { %s3669_s13 = sadd.s32 4294967295, %s5213_s12   ;;  %p3673_p0 = scmp.ge.s32.totalorder %s5213_s12, 1  ;;  %s5213_s12 = sphi %s5235_s12, %s13_s12  }
   0x2   : > { %p137_p1 = scmp.lt.s32.totalorder %s5213_s12, 3 }
   0x4   : > { %p138_p2 = pnand %p3673_p0, %p137_p1 }
   0x6   : > { %141 = sbr.rel (%p138_p2) target bundleno = 1042 (0x412), region = 32 }
   0xb   : > { %v4381_v0 = vld [vmem:[%s6337_s1 + $0x38] sm:$0xff]  ;;  %v4380_v1 = vld [vmem:[%s6337_s1 + $0x30] sm:$0xff]  ;;  %v4379_v2 = vld [vmem:[%s6337_s1 + $0x28] sm:$0xff]  ;;  %p161_p3 = scmp.lt.s32.totalorder %s3669_s13, 1  ;;  %vm666_vm0 = vsmask.f32 7424 }
   0xc   : > { %5141 = vmatpush.bf16.msra.mxu1 %v4381_v0  ;;  %5142 = vmatpush.bf16.msra.mxu2 %v4381_v0  ;;  %v4378_v3 = vld [vmem:[%s6337_s1 + $0x20] sm:$0xff]  ;;  %v4377_v4 = vld [vmem:[%s6337_s1 + $0x18] sm:$0xff]  ;;  %v4376_v5 = vld [vmem:[%s6337_s1 + $0x10] sm:$0xff] }
   0xd   : > { %5143 = vmatpush.bf16.msra.mxu3 %v4381_v0  ;;  %2309 = vmatpush.bf16.msra.mxu0 %v4381_v0  ;;  %s6391_s13 = smov (!%p161_p3, %s3669_s13), 1  ;;  %v4375_v6 = vld [vmem:[%s6337_s1 + $0x8] sm:$0xff]  ;;  %v4374_v7 = vld [vmem:[%s6337_s1] sm:$0xff]  ;;  %v4397_v8 = vld [vmem:[%s6337_s1 + $0xb8] sm:$0xff] }
   0xe   : > { %s5165_s28 = smul.u32 864, %s6391_s13  ;;  %v4405_v9 = vld [vmem:[%s6337_s1 + $0xf8] sm:$0xff]  ;;  %v4396_v16 = vld [vmem:[%s6337_s1 + $0xb0] sm:$0xff]  ;;  %v4395_v20 = vld [vmem:[%s6337_s1 + $0xa8] sm:$0xff] }
   0xf   : > { %v4389_v14 = vld [vmem:[%s6337_s1 + $0x78] sm:$0xff]  ;;  %v4404_v17 = vld [vmem:[%s6337_s1 + $0xf0] sm:$0xff]  ;;  %v4403_v21 = vld [vmem:[%s6337_s1 + $0xe8] sm:$0xff]  ;;  %s5166_s21 = smul.u32 192, %s6391_s13 }
  0x10   : > { %5144 = vmatpush.bf16.msra.mxu1 %v4380_v1  ;;  %5145 = vmatpush.bf16.msra.mxu2 %v4380_v1  ;;  %s5277_s6 = scalar_lea.vmem %s6336_s0, %s5165_s28  ;;  %v4413_v15 = vld [vmem:[%s6337_s1 + $0x138] sm:$0xff]  ;;  %v4388_v18 = vld [vmem:[%s6337_s1 + $0x70] sm:$0xff]  ;;  %v4387_v22 = vld [vmem:[%s6337_s1 + $0x68] sm:$0xff] }
  0x11   : > { %5146 = vmatpush.bf16.msra.mxu3 %v4380_v1  ;;  %2310 = vmatpush.bf16.msra.mxu0 %v4380_v1  ;;  %v5286_v10 = vld [vmem:[%s5277_s6 + $0x30] sm:$0xff]   ;;  %v5289_v11 = vld [vmem:[%s5277_s6 + $0x60] sm:$0xff]   ;;  %v4411_v23 = vld [vmem:[%s6337_s1 + $0x128] sm:$0xff]  ;;  %s6127_s24 = scalar_lea.vmem %s6339_s3, %s5166_s21 }
  0x12   : > { %v5292_v12 = vld [vmem:[%s5277_s6] sm:$0xff]  ;;  %v4767_v13 = vld [vmem:[%s5277_s6 + $0x90] sm:$0xff]   ;;  %v5341_v28 = vld [vmem:[%s5277_s6 + $0x38] sm:$0xff]  }
  0x13   : > { %v4412_v19 = vld [vmem:[%s6337_s1 + $0x130] sm:$0xff]  ;;  %v4394_v24 = vld [vmem:[%s6337_s1 + $0xa0] sm:$0xff]  ;;  %v5344_v29 = vld [vmem:[%s5277_s6 + $0x68] sm:$0xff]  }
  0x14   : > { %5147 = vmatpush.bf16.msra.mxu1 %v4379_v2  ;;  %5148 = vmatpush.bf16.msra.mxu2 %v4379_v2  ;;  %v4402_v25 = vld [vmem:[%s6337_s1 + $0xe0] sm:$0xff]  ;;  %v4768_v30 = vld [vmem:[%s5277_s6 + $0x98] sm:$0xff]   ;;  %v5348_v31 = vld [vmem:[%s5277_s6 + $0x8] sm:$0xff]  }
  0x15   : > { %5149 = vmatpush.bf16.msra.mxu3 %v4379_v2  ;;  %2311 = vmatpush.bf16.msra.mxu0 %v4379_v2  ;;  %v4386_v26 = vld [vmem:[%s6337_s1 + $0x60] sm:$0xff]  ;;  %v4393_v32 = vld [vmem:[%s6337_s1 + $0x98] sm:$0xff]  ;;  %v4392_v36 = vld [vmem:[%s6337_s1 + $0x90] sm:$0xff]  ;;  %v675_v0 = vshll.u32 %v5348_v31, 16  ;;  %v679_v2 = vshrl.u32 %v5348_v31, 16 }
  0x16   : > { %v4410_v27 = vld [vmem:[%s6337_s1 + $0x120] sm:$0xff]  ;;  %v4401_v33 = vld [vmem:[%s6337_s1 + $0xd8] sm:$0xff]  ;;  %v4400_v37 = vld [vmem:[%s6337_s1 + $0xd0] sm:$0xff] }
  0x17   : > { %v4385_v34 = vld [vmem:[%s6337_s1 + $0x58] sm:$0xff]  ;;  %v5372_v38 = vld [vmem:[%s5277_s6 + $0x40] sm:$0xff]   ;;  %v5375_v39 = vld [vmem:[%s5277_s6 + $0x70] sm:$0xff]  }
  0x18   : > { %5150 = vmatpush.bf16.msra.mxu1 %v4378_v3  ;;  %5151 = vmatpush.bf16.msra.mxu2 %v4378_v3  ;;  %v4409_v35 = vld [vmem:[%s6337_s1 + $0x118] sm:$0xff]  ;;  %v4769_v40 = vld [vmem:[%s5277_s6 + $0xa0] sm:$0xff]   ;;  %v5379_v41 = vld [vmem:[%s5277_s6 + $0x10] sm:$0xff]  }
  0x19   : > { %5152 = vmatpush.bf16.msra.mxu3 %v4378_v3  ;;  %2312 = vmatpush.bf16.msra.mxu0 %v4378_v3  ;;  %v4384_v42 = vld [vmem:[%s6337_s1 + $0x50] sm:$0xff]  ;;  %v4391_v44 = vld [vmem:[%s6337_s1 + $0x88] sm:$0xff]  ;;  %v5403_v48 = vld [vmem:[%s5277_s6 + $0x78] sm:$0xff]   ;;  %v683_v1 = vshll.u32 %v5379_v41, 16  ;;  %v677_v3 = vrot.slane %v675_v0, 1 }
  0x1a   : > { %v4408_v43 = vld [vmem:[%s6337_s1 + $0x110] sm:$0xff]  ;;  %v4399_v45 = vld [vmem:[%s6337_s1 + $0xc8] sm:$0xff]  ;;  %v5407_v50 = vld [vmem:[%s5277_s6 + $0x18] sm:$0xff]  }
  0x1b   : > { %v4383_v46 = vld [vmem:[%s6337_s1 + $0x48] sm:$0xff]  ;;  %v4390_v52 = vld [vmem:[%s6337_s1 + $0x80] sm:$0xff]  ;;  %v5428_v56 = vld [vmem:[%s5277_s6 + $0x50] sm:$0xff]  }
  0x1c   : > { %5153 = vmatpush.bf16.msra.mxu1 %v4377_v4  ;;  %5154 = vmatpush.bf16.msra.mxu2 %v4377_v4  ;;  %v5400_v47 = vld [vmem:[%s5277_s6 + $0x48] sm:$0xff]   ;;  %v4398_v53 = vld [vmem:[%s6337_s1 + $0xc0] sm:$0xff]  ;;  %v4771_v58 = vld [vmem:[%s5277_s6 + $0xb0] sm:$0xff]  }
  0x1d   : > { %5155 = vmatpush.bf16.msra.mxu3 %v4377_v4  ;;  %2313 = vmatpush.bf16.msra.mxu0 %v4377_v4  ;;  %v4770_v49 = vld [vmem:[%s5277_s6 + $0xa8] sm:$0xff]   ;;  %v4382_v54 = vld [vmem:[%s6337_s1 + $0x40] sm:$0xff]  ;;  %v4429_v60 = vld [vmem:[%s6337_s1 + $0x1b8] sm:$0xff]  ;;  %v685_v4 = vrot.slane %v683_v1, 1 }
  0x1e   : > { %v4407_v51 = vld [vmem:[%s6337_s1 + $0x108] sm:$0xff]  ;;  %v4406_v55 = vld [vmem:[%s6337_s1 + $0x100] sm:$0xff]  ;;  %v4437_v61 = vld [vmem:[%s6337_s1 + $0x1f8] sm:$0xff] }
  0x1f   : > { %v5431_v57 = vld [vmem:[%s5277_s6 + $0x80] sm:$0xff]   ;;  %v4421_v62 = vld [vmem:[%s6337_s1 + $0x178] sm:$0xff] }
  0x20   : > { %5156 = vmatpush.bf16.msra.mxu1 %v4376_v5  ;;  %5157 = vmatpush.bf16.msra.mxu2 %v4376_v5  ;;  %v5435_v59 = vld [vmem:[%s5277_s6 + $0x20] sm:$0xff]   ;;  %v4445_v63 = vld [vmem:[%s6337_s1 + $0x238] sm:$0xff] }
  0x21   : > { %5158 = vmatpush.bf16.msra.mxu3 %v4376_v5  ;;  %2314 = vmatpush.bf16.msra.mxu0 %v4376_v5  ;;  %v5456_v5 = vld [vmem:[%s5277_s6 + $0x58] sm:$0xff]  }
  0x24   : > { %5159 = vmatpush.bf16.msra.mxu1 %v4375_v6  ;;  %5160 = vmatpush.bf16.msra.mxu2 %v4375_v6 }
  0x25   : > { %5161 = vmatpush.bf16.msra.mxu3 %v4375_v6  ;;  %2315 = vmatpush.bf16.msra.mxu0 %v4375_v6  ;;  %v5459_v6 = vld [vmem:[%s5277_s6 + $0x88] sm:$0xff]  }
  0x28   : > { %5162 = vmatpush.bf16.msra.mxu1 %v4374_v7  ;;  %5163 = vmatpush.bf16.msra.mxu2 %v4374_v7 }
  0x29   : > { %5164 = vmatpush.bf16.msra.mxu3 %v4374_v7  ;;  %2316 = vmatpush.bf16.msra.mxu0 %v4374_v7  ;;  %v4772_v7 = vld [vmem:[%s5277_s6 + $0xb8] sm:$0xff]  }
  0x2b   : > { %2347 = vmatmul.bf16.vlgmr.msra.gmra.mxu1 %v5286_v10  ;;  %2377 = vmatmul.bf16.vlgmr.msra.gmra.mxu2 %v5289_v11 }
  0x2c   : > { %2567 = vmatpush.bf16.msrb.mxu2 %v4397_v8  ;;  %2407 = vmatmul.bf16.vlgmr.msra.gmra.mxu3 %v4767_v13  ;;  %v5463_v8 = vld [vmem:[%s5277_s6 + $0x28] sm:$0xff]  }
  0x2d   : > { %2696 = vmatpush.bf16.msrb.mxu3 %v4405_v9  ;;  %2317 = vmatmul.bf16.vlgmr.msra.gmra.mxu0 %v5292_v12  ;;  %v681_v9 = vor.u32 %v679_v2, %v677_v3  ;;  %v4775_v2 = vld [vmem:[%s5277_s6 + $0xf0] sm:$0xff]  }
  0x2e   : > { %2438 = vmatpush.bf16.msrb.mxu1 %v4389_v14  ;;  %2825 = vmatpush.bf16.msrb.mxu0 %v4413_v15  ;;  %v670_v14 = vshll.u32 %v5292_v12, 16  ;;  %v668_v15 = vshrl.u32 %v5292_v12, 16 }
  0x2f   : > { %v686_v13 = vsel %vm666_vm0, %v681_v9, %v685_v4 }
  0x30   : > { %2568 = vmatpush.bf16.msrb.mxu2 %v4396_v16  ;;  %v672_v16 = vrot.slane %v670_v14, 1 }
  0x31   : > { %2697 = vmatpush.bf16.msrb.mxu3 %v4404_v17  ;;  %v691_v17 = vshll.u32 %v5407_v50, 16 }
  0x32   : > { %2439 = vmatpush.bf16.msrb.mxu1 %v4388_v18  ;;  %2826 = vmatpush.bf16.msrb.mxu0 %v4412_v19  ;;  %v673_v18 = vor.u32 %v672_v16, %v668_v15  ;;  %v687_v19 = vshrl.u32 %v5379_v41, 16 }
  0x34   : > { %2569 = vmatpush.bf16.msrb.mxu2 %v4395_v20  ;;  %v693_v20 = vrot.slane %v691_v17, 1  ;;  %v719_v17 = vshrl.u32 %v5286_v10, 16 }
  0x35   : > { %2698 = vmatpush.bf16.msrb.mxu3 %v4403_v21  ;;  %v4323_v21 = vld [vmem:[%s5277_s6 + $0xd8] sm:$0xff] }
  0x36   : > { %2440 = vmatpush.bf16.msrb.mxu1 %v4387_v22  ;;  %2827 = vmatpush.bf16.msrb.mxu0 %v4411_v23  ;;  %v678_v22 = vsel %vm666_vm0, %v673_v18, %v677_v3  ;;  %v4324_v23 = vld [vmem:[%s5277_s6 + $0x1b0] sm:$0xff]  ;;  %v4327_v3 = vld [vmem:[%s5277_s6 + $0x1c8] sm:$0xff]  ;;  %v723_v18 = vshll.u32 %v5341_v28, 16 }
  0x38   : > { %2570 = vmatpush.bf16.msrb.mxu2 %v4394_v24  ;;  %v4348_v24 = vld [vmem:[%s5277_s6 + $0x288] sm:$0xff] }
  0x39   : > { %2699 = vmatpush.bf16.msrb.mxu3 %v4402_v25  ;;  %v689_v25 = vor.u32 %v687_v19, %v685_v4  ;;  %v4351_v4 = vld [vmem:[%s5277_s6 + $0x2a0] sm:$0xff] }
  0x3a   : > { %2441 = vmatpush.bf16.msrb.mxu1 %v4386_v26  ;;  %2828 = vmatpush.bf16.msrb.mxu0 %v4410_v27  ;;  %v699_v26 = vshll.u32 %v5435_v59, 16  ;;  %v695_v27 = vshrl.u32 %v5407_v50, 16 }
  0x3b   : > { %2352 = vmatmul.bf16.gmra.mxu1 %v5341_v28  ;;  %2382 = vmatmul.bf16.gmra.mxu2 %v5344_v29  ;;  %v694_v12 = vsel %vm666_vm0, %v689_v25, %v693_v20  ;;  %v4328_v25 = vld [vmem:[%s5277_s6 + $0x1d0] sm:$0xff] }
  0x3c   : > { %2412 = vmatmul.bf16.gmra.mxu3 %v4768_v30  ;;  %2571 = vmatpush.bf16.msrb.mxu2 %v4393_v32  ;;  %v701_v30 = vrot.slane %v699_v26, 1  ;;  %v4325_v32 = vld [vmem:[%s5277_s6 + $0x1b8] sm:$0xff] }
  0x3d   : > { %2322 = vmatmul.bf16.gmra.mxu0 %v5348_v31  ;;  %2700 = vmatpush.bf16.msrb.mxu3 %v4401_v33  ;;  %v4773_v31 = vld [vmem:[%s5277_s6 + $0xe0] sm:$0xff]   ;;  %v4349_v33 = vld [vmem:[%s5277_s6 + $0x290] sm:$0xff] }
  0x3e   : > { %2442 = vmatpush.bf16.msrb.mxu1 %v4385_v34  ;;  %2829 = vmatpush.bf16.msrb.mxu0 %v4409_v35  ;;  %v697_v34 = vor.u32 %v695_v27, %v693_v20 }
  0x40   : > { %2572 = vmatpush.bf16.msrb.mxu2 %v4392_v36  ;;  %v702_v35 = vsel %vm666_vm0, %v697_v34, %v701_v30  ;;  %v4428_v36 = vld [vmem:[%s6337_s1 + $0x1b0] sm:$0xff]  ;;  %v4419_v34 = vld [vmem:[%s6337_s1 + $0x168] sm:$0xff] }
  0x41   : > { %2701 = vmatpush.bf16.msrb.mxu3 %v4400_v37  ;;  %v4436_v37 = vld [vmem:[%s6337_s1 + $0x1f0] sm:$0xff] }
  0x42   : > { %2443 = vmatpush.bf16.msrb.mxu1 %v4384_v42  ;;  %2830 = vmatpush.bf16.msrb.mxu0 %v4408_v43  ;;  %v707_v42 = vshll.u32 %v5463_v8, 16  ;;  %v703_v43 = vshrl.u32 %v5435_v59, 16 }
  0x44   : > { %2573 = vmatpush.bf16.msrb.mxu2 %v4391_v44  ;;  %v709_v44 = vrot.slane %v707_v42, 1 }
  0x45   : > { %2702 = vmatpush.bf16.msrb.mxu3 %v4399_v45 }
  0x46   : > { %2444 = vmatpush.bf16.msrb.mxu1 %v4383_v46  ;;  %2831 = vmatpush.bf16.msrb.mxu0 %v4407_v51  ;;  %v4774_v46 = vld [vmem:[%s5277_s6 + $0xe8] sm:$0xff]  }
  0x48   : > { %2574 = vmatpush.bf16.msrb.mxu2 %v4390_v52  ;;  %v705_v52 = vor.u32 %v703_v43, %v701_v30  ;;  %v4435_v30 = vld [vmem:[%s6337_s1 + $0x1e8] sm:$0xff] }
  0x49   : > { %2703 = vmatpush.bf16.msrb.mxu3 %v4398_v53 }
  0x4a   : > { %2445 = vmatpush.bf16.msrb.mxu1 %v4382_v54  ;;  %2832 = vmatpush.bf16.msrb.mxu0 %v4406_v55  ;;  %v710_v53 = vsel %vm666_vm0, %v705_v52, %v709_v44  ;;  %v4353_v52 = vld [vmem:[%s5277_s6 + $0x2b0] sm:$0xff] }
  0x4b   : > { %2357 = vmatmul.bf16.gmra.mxu1 %v5372_v38  ;;  %2387 = vmatmul.bf16.gmra.mxu2 %v5375_v39 }
  0x4c   : > { %2417 = vmatmul.bf16.gmra.mxu3 %v4769_v40  ;;  %3083 = vmatpush.bf16.msra.mxu2 %v4429_v60  ;;  %v4420_v40 = vld [vmem:[%s6337_s1 + $0x170] sm:$0xff]  ;;  %v715_v60 = vshll.u32 %v5286_v10, 16  ;;  %v4427_v10 = vld [vmem:[%s6337_s1 + $0x1a8] sm:$0xff] }
  0x4d   : > { %2327 = vmatmul.bf16.gmra.mxu0 %v5379_v41  ;;  %3212 = vmatpush.bf16.msra.mxu3 %v4437_v61  ;;  %v4444_v41 = vld [vmem:[%s6337_s1 + $0x230] sm:$0xff]  ;;  %v711_v61 = vshrl.u32 %v5463_v8, 16 }
  0x4e   : > { %2954 = vmatpush.bf16.msra.mxu1 %v4421_v62  ;;  %3341 = vmatpush.bf16.msra.mxu0 %v4445_v63  ;;  %v717_v63 = vrot.slane %v715_v60, 1 }
  0x4f   : > { %v713_v9 = vor.u32 %v711_v61, %v709_v44 }
  0x50   : > { %3084 = vmatpush.bf16.msra.mxu2 %v4428_v36  ;;  %v721_v20 = vor.u32 %v719_v17, %v717_v63  ;;  %v4443_v36 = vld [vmem:[%s6337_s1 + $0x228] sm:$0xff] }
  0x51   : > { %3213 = vmatpush.bf16.msra.mxu3 %v4436_v37  ;;  %v727_v37 = vshrl.u32 %v5341_v28, 16 }
  0x52   : > { %2955 = vmatpush.bf16.msra.mxu1 %v4420_v40  ;;  %3342 = vmatpush.bf16.msra.mxu0 %v4444_v41  ;;  %v731_v40 = vshll.u32 %v5372_v38, 16 }
  0x54   : > { %3085 = vmatpush.bf16.msra.mxu2 %v4427_v10  ;;  %v733_v43 = vrot.slane %v731_v40, 1  ;;  %v747_v40 = vshll.u32 %v5428_v56, 16 }
  0x55   : > { %3214 = vmatpush.bf16.msra.mxu3 %v4435_v30 }
  0x56   : > { %2956 = vmatpush.bf16.msra.mxu1 %v4419_v34  ;;  %3343 = vmatpush.bf16.msra.mxu0 %v4443_v36 }
  0x5b   : > { %2362 = vmatmul.bf16.gmra.mxu1 %v5400_v47  ;;  %2392 = vmatmul.bf16.gmra.mxu2 %v5403_v48 }
  0x5c   : > { %2422 = vmatmul.bf16.gmra.mxu3 %v4770_v49  ;;  %v4326_v49 = vld [vmem:[%s5277_s6 + $0x1c0] sm:$0xff] }
  0x5d   : > { %2332 = vmatmul.bf16.gmra.mxu0 %v5407_v50  ;;  %v4350_v50 = vld [vmem:[%s5277_s6 + $0x298] sm:$0xff] }
  0x6b   : > { %2367 = vmatmul.bf16.gmra.mxu1 %v5428_v56  ;;  %2397 = vmatmul.bf16.gmra.mxu2 %v5431_v57 }
  0x6c   : > { %2427 = vmatmul.bf16.gmra.mxu3 %v4771_v58 }
  0x6d   : > { %2337 = vmatmul.bf16.gmra.mxu0 %v5435_v59 }
  0x7b   : > { %2372 = vmatmul.bf16.gmra.mxu1 %v5456_v5  ;;  %2402 = vmatmul.bf16.gmra.mxu2 %v5459_v6 }
  0x7c   : > { %2432 = vmatmul.bf16.gmra.mxu3 %v4772_v7 }
  0x7d   : > { %2342 = vmatmul.bf16.gmra.mxu0 %v5463_v8 }
  0x8b   : > { %2446 = vmatmul.bf16.vlgmr.msrb.gmra.mxu1 %v4323_v21  ;;  %2575 = vmatmul.bf16.vlgmr.msrb.gmra.mxu2 %v678_v22  ;;  %v725_v21 = vrot.slane %v723_v18, 1 }
  0x8c   : > { %2704 = vmatmul.bf16.vlgmr.msrb.gmra.mxu3 %v4324_v23 }
  0x8d   : > { %2833 = vmatmul.bf16.vlgmr.msrb.gmra.mxu0 %v4348_v24  ;;  %v4776_v24 = vld [vmem:[%s5277_s6 + $0xf8] sm:$0xff]   ;;  %v726_v27 = vsel %vm666_vm0, %v721_v20, %v725_v21  ;;  %v729_v42 = vor.u32 %v727_v37, %v725_v21  ;;  %v4778_v21 = vld [vmem:[%s5277_s6 + $0x108] sm:$0xff]   ;;  %v743_v37 = vshrl.u32 %v5400_v47, 16 }
  0x8f   : > { %v734_v28 = vsel %vm666_vm0, %v729_v42, %v733_v43 }
  0x9b   : > { %2451 = vmatmul.bf16.gmra.mxu1 %v4773_v31  ;;  %2580 = vmatmul.bf16.gmra.mxu2 %v686_v13  ;;  %v718_v13 = vsel %vm666_vm0, %v713_v9, %v717_v63 }
  0x9c   : > { %2709 = vmatmul.bf16.gmra.mxu3 %v4325_v32 }
  0x9d   : > { %2838 = vmatmul.bf16.gmra.mxu0 %v4349_v33 }
  0xa8   : > { %v5498_v45 = vpop.f32.mrf.mxu1 }
  0xaa   : > { %v5503_v51 = vpop.f32.mrf.mxu0 }
  0xab   : > { %2456 = vmatmul.bf16.gmra.mxu1 %v4774_v46  ;;  %2585 = vmatmul.bf16.gmra.mxu2 %v694_v12  ;;  %v4352_v12 = vld [vmem:[%s5277_s6 + $0x2a8] sm:$0xff] }
  0xac   : > { %2714 = vmatmul.bf16.gmra.mxu3 %v4326_v49  ;;  %v4777_v49 = vld [vmem:[%s5277_s6 + $0x100] sm:$0xff]  }
  0xad   : > { %2843 = vmatmul.bf16.gmra.mxu0 %v4350_v50  ;;  %v4329_v50 = vld [vmem:[%s5277_s6 + $0x1d8] sm:$0xff] }
  0xae   : > { %v5506_v54 = vpop.f32.mrf.mxu2 }
  0xaf   : > { %v5508_v55 = vpop.f32.mrf.mxu3 }
  0xb0   : > { %6340 = vst [vmem:[#allocation2_spill] sm:$0xff] %v5508_v55  ;;  %v5510_v58 = vpop.f32.mrf.mxu1  ;;  %v4781_v55 = vld [vmem:[%s5277_s6 + $0x120] sm:$0xff]  }
  0xb2   : > { %v5512_v59 = vpop.f32.mrf.mxu0 }
  0xb6   : > { %v5516_v62 = vpop.f32.mrf.mxu2 }
  0xb7   : > { %v5518_v0 = vpop.f32.mrf.mxu3 }
  0xb8   : > { %6341 = vst [vmem:[#allocation3_spill] sm:$0xff] %v5518_v0  ;;  %v5520_v1 = vpop.f32.mrf.mxu1 }
  0xba   : > { %v5525_v7 = vpop.f32.mrf.mxu0 }
  0xbb   : > { %2461 = vmatmul.bf16.gmra.mxu1 %v4775_v2  ;;  %2590 = vmatmul.bf16.gmra.mxu2 %v702_v35 }
  0xbc   : > { %2719 = vmatmul.bf16.gmra.mxu3 %v4327_v3  ;;  %v735_v3 = vshrl.u32 %v5372_v38, 16 }
  0xbd   : > { %2848 = vmatmul.bf16.gmra.mxu0 %v4351_v4  ;;  %v739_v4 = vshll.u32 %v5400_v47, 16  ;;  %v4426_v47 = vld [vmem:[%s6337_s1 + $0x1a0] sm:$0xff] }
  0xbe   : > { %v5528_v8 = vpop.f32.mrf.mxu2  ;;  %3086 = vmatpush.bf16.msra.mxu2 %v4426_v47 }
  0xbf   : > { %v5530_v14 = vpop.f32.mrf.mxu3  ;;  %v741_v17 = vrot.slane %v739_v4, 1  ;;  %v4355_v4 = vld [vmem:[%s5277_s6 + $0x2c0] sm:$0xff] }
  0xc0   : > { %6342 = vst [vmem:[#allocation4_spill] sm:$0xff] %v5530_v14  ;;  %v5532_v15 = vpop.f32.mrf.mxu1 }
  0xc2   : > { %v5534_v16 = vpop.f32.mrf.mxu0 }
  0xc6   : > { %v5538_v19 = vpop.f32.mrf.mxu2 }
  0xc7   : > { %v5540_v22 = vpop.f32.mrf.mxu3 }
  0xc8   : > { %6343 = vst [vmem:[#allocation5_spill] sm:$0xff] %v5540_v22  ;;  %v5542_v23 = vpop.f32.mrf.mxu1 }
  0xca   : > { %v5547_v26 = vpop.f32.mrf.mxu0 }
  0xcb   : > { %2466 = vmatmul.bf16.gmra.mxu1 %v4776_v24  ;;  %2595 = vmatmul.bf16.gmra.mxu2 %v710_v53  ;;  %v4330_v24 = vld [vmem:[%s5277_s6 + $0x1e0] sm:$0xff] }
  0xcc   : > { %2724 = vmatmul.bf16.gmra.mxu3 %v4328_v25  ;;  %v4354_v25 = vld [vmem:[%s5277_s6 + $0x2b8] sm:$0xff] }
  0xcd   : > { %2853 = vmatmul.bf16.gmra.mxu0 %v4352_v12 }
  0xce   : > { %v5556_v31 = vpop.f32.mrf.mxu2 }
  0xcf   : > { %v5558_v32 = vpop.f32.mrf.mxu3 }
  0xd0   : > { %6344 = vst [vmem:[#allocation6_spill] sm:$0xff] %v5558_v32  ;;  %v5560_v33 = vpop.f32.mrf.mxu1 }
  0xd2   : > { %v5565_v35 = vpop.f32.mrf.mxu0 }
  0xd6   : > { %v5572_v41 = vpop.f32.mrf.mxu2 }
  0xd7   : > { %v5574_v44 = vpop.f32.mrf.mxu3 }
  0xd8   : > { %6345 = vst [vmem:[#allocation7_spill] sm:$0xff] %v5574_v44  ;;  %v5576_v46 = vpop.f32.mrf.mxu1  ;;  %v4356_v44 = vld [vmem:[%s5277_s6 + $0x2c8] sm:$0xff] }
  0xda   : > { %v5581_v53 = vpop.f32.mrf.mxu0 }
  0xdb   : > { %2471 = vmatmul.bf16.gmra.mxu1 %v4777_v49  ;;  %2600 = vmatmul.bf16.gmra.mxu2 %v718_v13  ;;  %v737_v13 = vor.u32 %v735_v3, %v733_v43  ;;  %v749_v43 = vrot.slane %v747_v40, 1  ;;  %v4331_v3 = vld [vmem:[%s5277_s6 + $0x1e8] sm:$0xff]  ;;  %v4418_v40 = vld [vmem:[%s6337_s1 + $0x160] sm:$0xff] }
  0xdc   : > { %2729 = vmatmul.bf16.gmra.mxu3 %v4329_v50  ;;  %2957 = vmatpush.bf16.msra.mxu1 %v4418_v40 }
  0xdd   : > { %2858 = vmatmul.bf16.gmra.mxu0 %v4353_v52  ;;  %v742_v38 = vsel %vm666_vm0, %v737_v13, %v741_v17  ;;  %v4779_v52 = vld [vmem:[%s5277_s6 + $0x110] sm:$0xff]  }
  0xde   : > { %v5584_v60 = vpop.f32.mrf.mxu2 }
  0xdf   : > { %v5586_v61 = vpop.f32.mrf.mxu3 }
  0xe0   : > { %6346 = vst [vmem:[#allocation8_spill] sm:$0xff] %v5586_v61  ;;  %v5588_v63 = vpop.f32.mrf.mxu1  ;;  %v4332_v61 = vld [vmem:[%s5277_s6 + $0x1f0] sm:$0xff] }
  0xe2   : > { %v5590_v2 = vpop.f32.mrf.mxu0 }
  0xe6   : > { %v5594_v9 = vpop.f32.mrf.mxu2 }
  0xe7   : > { %v5596_v18 = vpop.f32.mrf.mxu3 }
  0xe8   : > { %6347 = vst [vmem:[#allocation9_spill] sm:$0xff] %v5596_v18  ;;  %v5598_v20 = vpop.f32.mrf.mxu1 }
  0xea   : > { %v5603_v12 = vpop.f32.mrf.mxu0 }
  0xeb   : > { %2476 = vmatmul.bf16.gmra.mxu1 %v4778_v21  ;;  %2605 = vmatmul.bf16.gmra.mxu2 %v726_v27  ;;  %v745_v27 = vor.u32 %v743_v37, %v741_v17  ;;  %v4434_v17 = vld [vmem:[%s6337_s1 + $0x1e0] sm:$0xff] }
  0xec   : > { %2734 = vmatmul.bf16.gmra.mxu3 %v4330_v24 }
  0xed   : > { %2863 = vmatmul.bf16.gmra.mxu0 %v4354_v25  ;;  %v750_v21 = vsel %vm666_vm0, %v745_v27, %v749_v43  ;;  %3215 = vmatpush.bf16.msra.mxu3 %v4434_v17  ;;  %v4442_v27 = vld [vmem:[%s6337_s1 + $0x220] sm:$0xff] }
  0xee   : > { %v5606_v10 = vpop.f32.mrf.mxu2  ;;  %3344 = vmatpush.bf16.msra.mxu0 %v4442_v27 }
  0xef   : > { %v5608_v30 = vpop.f32.mrf.mxu3 }
  0xf0   : > { %6348 = vst [vmem:[#allocation10_spill] sm:$0xff] %v5608_v30  ;;  %v5610_v34 = vpop.f32.mrf.mxu1 }
  0xf2   : > { %v5612_v36 = vpop.f32.mrf.mxu0 }
  0xf6   : > { %v5616_v42 = vpop.f32.mrf.mxu2 }
  0xf7   : > { %v5618_v49 = vpop.f32.mrf.mxu3 }
  0xf8   : > { %6349 = vst [vmem:[#allocation11_spill] sm:$0xff] %v5618_v49  ;;  %v5620_v50 = vpop.f32.mrf.mxu1 }
  0xfa   : > { %v5625_v13 = vpop.f32.mrf.mxu0 }
  0xfb   : > { %2481 = vmatmul.bf16.gmra.mxu1 %v4779_v52  ;;  %2610 = vmatmul.bf16.gmra.mxu2 %v734_v28  ;;  %v751_v52 = vshrl.u32 %v5428_v56, 16  ;;  %v4780_v56 = vld [vmem:[%s5277_s6 + $0x118] sm:$0xff]  }
  0xfc   : > { %2739 = vmatmul.bf16.gmra.mxu3 %v4331_v3  ;;  %v755_v3 = vshll.u32 %v5456_v5, 16 }
  0xfd   : > { %2868 = vmatmul.bf16.gmra.mxu0 %v4355_v4  ;;  %v5653_v4 = vld [vmem:[%s6338_s2] ss:$0 sm:$0xff]  ;;  %v753_v17 = vor.u32 %v751_v52, %v749_v43 }
  0xfe   : > { %v5634_v24 = vpop.f32.mrf.mxu2  ;;  %v2319_v49 = vadd.f32 %v5653_v4, %v5503_v51  ;;  %v2321_v43 = vadd.f32 %v5653_v4, %v5512_v59  ;;  %v2324_v59 = vadd.f32 %v5653_v4, %v5525_v7  ;;  %v2326_v7 = vadd.f32 %v5653_v4, %v5534_v16 }
  0xff   : > { %v5636_v25 = vpop.f32.mrf.mxu3  ;;  %v2329_v16 = vadd.f32 %v5653_v4, %v5547_v26  ;;  %v4425_v26 = vld [vmem:[%s6337_s1 + $0x198] sm:$0xff] }
 0x100   : > { %6350 = vst [vmem:[#allocation12_spill] sm:$0xff] %v5636_v25  ;;  %v5638_v28 = vpop.f32.mrf.mxu1  ;;  %v757_v25 = vrot.slane %v755_v3, 1  ;;  %3087 = vmatpush.bf16.msra.mxu2 %v4425_v26 }
 0x102   : > { %v5640_v37 = vpop.f32.mrf.mxu0  ;;  %v758_v32 = vsel %vm666_vm0, %v753_v17, %v757_v25 }
 0x106   : > { %v5655_v47 = vpop.f32.mrf.mxu2 }
 0x107   : > { %6351 = vst [vmem:[#allocation13_spill] sm:$0xff] %v5655_v47  ;;  %v5659_v30 = vpop.f32.mrf.mxu3  ;;  %v4333_v47 = vld [vmem:[%s5277_s6 + $0x1f8] sm:$0xff] }
 0x108   : > { %6352 = vst [vmem:[#allocation14_spill] sm:$0xff] %v5659_v30  ;;  %v2447_v18 = vpop.f32.mrf.mxu1 }
 0x109   : > { %v2448_v40 = vadd.f32 %v2447_v18, %v2319_v49  ;;  %v763_v49 = vshll.u32 %v5289_v11, 16 }
 0x10a   : > { %v2834_v27 = vpop.f32.mrf.mxu0 }
 0x10b   : > { %2486 = vmatmul.bf16.gmra.mxu1 %v4780_v56  ;;  %2615 = vmatmul.bf16.gmra.mxu2 %v742_v38  ;;  %v759_v38 = vshrl.u32 %v5456_v5, 16 }
 0x10c   : > { %2744 = vmatmul.bf16.gmra.mxu3 %v4332_v61  ;;  %v765_v61 = vrot.slane %v763_v49, 1 }
 0x10d   : > { %2873 = vmatmul.bf16.gmra.mxu0 %v4356_v44  ;;  %v761_v56 = vor.u32 %v759_v38, %v757_v25  ;;  %v767_v38 = vshrl.u32 %v5289_v11, 16 }
 0x10e   : > { %v2576_v22 = vpop.f32.mrf.mxu2 }
 0x10f   : > { %v2577_v52 = vadd.f32 %v2576_v22, %v2448_v40  ;;  %v2705_v51 = vpop.f32.mrf.mxu3  ;;  %v5677_v5 = vsel %vm666_vm0, %v761_v56, %v765_v61  ;;  %v769_v56 = vor.u32 %v767_v38, %v765_v61  ;;  %v4433_v61 = vld [vmem:[%s6337_s1 + $0x1d8] sm:$0xff] }
 0x110   : > { %v2449_v3 = vpop.f32.mrf.mxu1  ;;  %3216 = vmatpush.bf16.msra.mxu3 %v4433_v61  ;;  %v4783_v61 = vld [vmem:[%s5277_s6 + $0x130] sm:$0xff]  }
 0x111   : > { %v2706_v30 = vadd.f32 %v2705_v51, %v2577_v52  ;;  %v2450_v14 = vadd.f32 %v2449_v3, %v2321_v43  ;;  %v4357_v52 = vld [vmem:[%s5277_s6 + $0x2d0] sm:$0xff] }
 0x112   : > { %v2836_v18 = vpop.f32.mrf.mxu0 }
 0x113   : > { %v5669_v17 = vadd.f32 %v2834_v27, %v2706_v30 }
 0x116   : > { %v2578_v44 = vpop.f32.mrf.mxu2 }
 0x117   : > { %v2579_v22 = vadd.f32 %v2578_v44, %v2450_v14  ;;  %v2707_v40 = vpop.f32.mrf.mxu3 }
 0x118   : > { %v2452_v0 = vpop.f32.mrf.mxu1 }
 0x119   : > { %v2708_v43 = vadd.f32 %v2707_v40, %v2579_v22  ;;  %v2453_v51 = vadd.f32 %v2452_v0, %v2324_v59 }
 0x11a   : > { %v2839_v3 = vpop.f32.mrf.mxu0 }
 0x11b   : > { %2491 = vmatmul.bf16.gmra.mxu1 %v4781_v55  ;;  %2620 = vmatmul.bf16.gmra.mxu2 %v750_v21  ;;  %v5679_v30 = vadd.f32 %v2836_v18, %v2708_v43  ;;  %v771_v18 = vshll.u32 %v5344_v29, 16  ;;  %v4782_v43 = vld [vmem:[%s5277_s6 + $0x128] sm:$0xff]  }
 0x11c   : > { %2749 = vmatmul.bf16.gmra.mxu3 %v4333_v47 }
 0x11d   : > { %2878 = vmatmul.bf16.gmra.mxu0 %v4357_v52  ;;  %v773_v59 = vrot.slane %v771_v18, 1 }
 0x11e   : > { %v2581_v25 = vpop.f32.mrf.mxu2 }
 0x11f   : > { %v2582_v14 = vadd.f32 %v2581_v25, %v2453_v51  ;;  %v2710_v27 = vpop.f32.mrf.mxu3  ;;  %v4334_v51 = vld [vmem:[%s5277_s6 + $0x200] sm:$0xff]  ;;  %v4358_v25 = vld [vmem:[%s5277_s6 + $0x2d8] sm:$0xff]  ;;  %v5693_v11 = vsel %vm666_vm0, %v769_v56, %v773_v59 }
 0x120   : > { %v2454_v49 = vpop.f32.mrf.mxu1  ;;  %v4417_v56 = vld [vmem:[%s6337_s1 + $0x158] sm:$0xff] }
 0x121   : > { %v2711_v0 = vadd.f32 %v2710_v27, %v2582_v14  ;;  %v2455_v55 = vadd.f32 %v2454_v49, %v2326_v7  ;;  %2958 = vmatpush.bf16.msra.mxu1 %v4417_v56 }
 0x122   : > { %v2841_v21 = vpop.f32.mrf.mxu0 }
 0x123   : > { %v5685_v44 = vadd.f32 %v2839_v3, %v2711_v0 }
 0x126   : > { %v2583_v47 = vpop.f32.mrf.mxu2 }
 0x127   : > { %v2584_v22 = vadd.f32 %v2583_v47, %v2455_v55  ;;  %v2712_v40 = vpop.f32.mrf.mxu3 }
 0x128   : > { %v2457_v52 = vpop.f32.mrf.mxu1 }
 0x129   : > { %v2713_v7 = vadd.f32 %v2712_v40, %v2584_v22  ;;  %v2458_v14 = vadd.f32 %v2457_v52, %v2329_v16  ;;  %v4441_v16 = vld [vmem:[%s6337_s1 + $0x218] sm:$0xff]  ;;  %v775_v22 = vshrl.u32 %v5344_v29, 16 }
 0x12a   : > { %v2844_v27 = vpop.f32.mrf.mxu0  ;;  %3345 = vmatpush.bf16.msra.mxu0 %v4441_v16 }
 0x12b   : > { %2496 = vmatmul.bf16.gmra.mxu1 %v4782_v43  ;;  %2625 = vmatmul.bf16.gmra.mxu2 %v758_v32  ;;  %v5695_v3 = vadd.f32 %v2841_v21, %v2713_v7  ;;  %v2331_v32 = vadd.f32 %v5653_v4, %v5565_v35  ;;  %v779_v35 = vshll.u32 %v5375_v39, 16  ;;  %v777_v43 = vor.u32 %v775_v22, %v773_v59 }
 0x12c   : > { %2754 = vmatmul.bf16.gmra.mxu3 %v4334_v51 }
 0x12d   : > { %2883 = vmatmul.bf16.gmra.mxu0 %v4358_v25  ;;  %v781_v51 = vrot.slane %v779_v35, 1  ;;  %v2334_v25 = vadd.f32 %v5653_v4, %v5581_v53  ;;  %v2336_v53 = vadd.f32 %v5653_v4, %v5590_v2  ;;  %v2339_v2 = vadd.f32 %v5653_v4, %v5603_v12 }
 0x12e   : > { %v2586_v49 = vpop.f32.mrf.mxu2 }
 0x12f   : > { %v2587_v0 = vadd.f32 %v2586_v49, %v2458_v14  ;;  %v2715_v55 = vpop.f32.mrf.mxu3  ;;  %v4335_v49 = vld [vmem:[%s5277_s6 + $0x208] sm:$0xff] }
 0x130   : > { %v2459_v21 = vpop.f32.mrf.mxu1 }
 0x131   : > { %v2716_v38 = vadd.f32 %v2715_v55, %v2587_v0  ;;  %v2460_v18 = vadd.f32 %v2459_v21, %v2331_v32  ;;  %v4359_v32 = vld [vmem:[%s5277_s6 + $0x2e0] sm:$0xff] }
 0x132   : > { %v2846_v47 = vpop.f32.mrf.mxu0 }
 0x133   : > { %v5713_v40 = vadd.f32 %v2844_v27, %v2716_v38  ;;  %v782_v27 = vsel %vm666_vm0, %v777_v43, %v781_v51 }
 0x136   : > { %v2588_v52 = vpop.f32.mrf.mxu2 }
 0x137   : > { %v2589_v7 = vadd.f32 %v2588_v52, %v2460_v18  ;;  %v2717_v14 = vpop.f32.mrf.mxu3 }
 0x138   : > { %v2462_v26 = vpop.f32.mrf.mxu1 }
 0x139   : > { %v2718_v0 = vadd.f32 %v2717_v14, %v2589_v7  ;;  %v2463_v29 = vadd.f32 %v2462_v26, %v2334_v25 }
 0x13a   : > { %v2849_v55 = vpop.f32.mrf.mxu0 }
 0x13b   : > { %2501 = vmatmul.bf16.gmra.mxu1 %v4783_v61  ;;  %2630 = vmatmul.bf16.gmra.mxu2 %v5677_v5  ;;  %v5722_v21 = vadd.f32 %v2846_v47, %v2718_v0  ;;  %v783_v5 = vshrl.u32 %v5375_v39, 16  ;;  %v787_v47 = vshll.u32 %v5403_v48, 16  ;;  %v4360_v0 = vld [vmem:[%s5277_s6 + $0x2e8] sm:$0xff] }
 0x13c   : > { %2759 = vmatmul.bf16.gmra.mxu3 %v4335_v49  ;;  %v4784_v49 = vld [vmem:[%s5277_s6 + $0x138] sm:$0xff]  }
 0x13d   : > { %2888 = vmatmul.bf16.gmra.mxu0 %v4359_v32  ;;  %v785_v25 = vor.u32 %v783_v5, %v781_v51  ;;  %v789_v7 = vrot.slane %v787_v47, 1  ;;  %v4336_v32 = vld [vmem:[%s5277_s6 + $0x210] sm:$0xff]  ;;  %v791_v5 = vshrl.u32 %v5403_v48, 16 }
 0x13e   : > { %v2591_v59 = vpop.f32.mrf.mxu2 }
 0x13f   : > { %v2592_v38 = vadd.f32 %v2591_v59, %v2463_v29  ;;  %v2720_v18 = vpop.f32.mrf.mxu3  ;;  %v5737_v39 = vsel %vm666_vm0, %v785_v25, %v789_v7  ;;  %v793_v25 = vor.u32 %v791_v5, %v789_v7  ;;  %v4432_v7 = vld [vmem:[%s6337_s1 + $0x1d0] sm:$0xff] }
 0x140   : > { %v2464_v56 = vpop.f32.mrf.mxu1  ;;  %3217 = vmatpush.bf16.msra.mxu3 %v4432_v7  ;;  %v4416_v5 = vld [vmem:[%s6337_s1 + $0x150] sm:$0xff] }
 0x141   : > { %v2721_v16 = vadd.f32 %v2720_v18, %v2592_v38  ;;  %v2465_v22 = vadd.f32 %v2464_v56, %v2336_v53  ;;  %2959 = vmatpush.bf16.msra.mxu1 %v4416_v5 }
 0x142   : > { %v2851_v35 = vpop.f32.mrf.mxu0 }
 0x143   : > { %v5728_v52 = vadd.f32 %v2849_v55, %v2721_v16  ;;  %v2341_v55 = vadd.f32 %v5653_v4, %v5612_v36  ;;  %v2344_v36 = vadd.f32 %v5653_v4, %v5625_v13  ;;  %v4424_v13 = vld [vmem:[%s6337_s1 + $0x190] sm:$0xff] }
 0x144   : > { %3088 = vmatpush.bf16.msra.mxu2 %v4424_v13  ;;  %v4362_v13 = vld [vmem:[%s5277_s6 + $0x2f8] sm:$0xff] }
 0x146   : > { %v2593_v43 = vpop.f32.mrf.mxu2 }
 0x147   : > { %v2594_v14 = vadd.f32 %v2593_v43, %v2465_v22  ;;  %v2722_v26 = vpop.f32.mrf.mxu3 }
 0x148   : > { %v2467_v61 = vpop.f32.mrf.mxu1 }
 0x149   : > { %v2723_v29 = vadd.f32 %v2722_v26, %v2594_v14  ;;  %v2468_v59 = vadd.f32 %v2467_v61, %v2339_v2 }
 0x14a   : > { %v2854_v53 = vpop.f32.mrf.mxu0 }
 0x14b   : > { %2506 = vmatmul.bf16.gmra.mxu1 %v4784_v49  ;;  %2635 = vmatmul.bf16.gmra.mxu2 %v5693_v11  ;;  %v5739_v51 = vadd.f32 %v2851_v35, %v2723_v29  ;;  %v795_v35 = vshll.u32 %v5431_v57, 16  ;;  %v4785_v49 = vld [vmem:[%s5277_s6 + $0x140] sm:$0xff]  }
 0x14c   : > { %2764 = vmatmul.bf16.gmra.mxu3 %v4336_v32  ;;  %v4337_v32 = vld [vmem:[%s5277_s6 + $0x218] sm:$0xff] }
 0x14d   : > { %2893 = vmatmul.bf16.gmra.mxu0 %v4360_v0  ;;  %v797_v2 = vrot.slane %v795_v35, 1  ;;  %v4361_v0 = vld [vmem:[%s5277_s6 + $0x2f0] sm:$0xff] }
 0x14e   : > { %v2596_v12 = vpop.f32.mrf.mxu2  ;;  %v4440_v35 = vld [vmem:[%s6337_s1 + $0x210] sm:$0xff] }
 0x14f   : > { %v2597_v38 = vadd.f32 %v2596_v12, %v2468_v59  ;;  %v2725_v18 = vpop.f32.mrf.mxu3  ;;  %v5753_v48 = vsel %vm666_vm0, %v793_v25, %v797_v2  ;;  %3346 = vmatpush.bf16.msra.mxu0 %v4440_v35 }
 0x150   : > { %v2469_v56 = vpop.f32.mrf.mxu1 }
 0x151   : > { %v2726_v16 = vadd.f32 %v2725_v18, %v2597_v38  ;;  %v2470_v22 = vadd.f32 %v2469_v56, %v2341_v55 }
 0x152   : > { %v2856_v11 = vpop.f32.mrf.mxu0 }
 0x153   : > { %v5745_v47 = vadd.f32 %v2854_v53, %v2726_v16 }
 0x156   : > { %v2598_v43 = vpop.f32.mrf.mxu2 }
 0x157   : > { %v2599_v14 = vadd.f32 %v2598_v43, %v2470_v22  ;;  %v2727_v26 = vpop.f32.mrf.mxu3  ;;  %v799_v43 = vshrl.u32 %v5431_v57, 16 }
 0x158   : > { %v2472_v61 = vpop.f32.mrf.mxu1 }
 0x159   : > { %v2728_v29 = vadd.f32 %v2727_v26, %v2599_v14  ;;  %v2473_v59 = vadd.f32 %v2472_v61, %v2344_v36  ;;  %v801_v14 = vor.u32 %v799_v43, %v797_v2  ;;  %v2349_v61 = vadd.f32 %v5653_v4, %v5498_v45 }
 0x15a   : > { %v2859_v12 = vpop.f32.mrf.mxu0 }
 0x15b   : > { %2511 = vmatmul.bf16.gmra.mxu1 %v4785_v49  ;;  %2640 = vmatmul.bf16.gmra.mxu2 %v782_v27  ;;  %v5755_v53 = vadd.f32 %v2856_v11, %v2728_v29  ;;  %v2346_v27 = vadd.f32 %v5653_v4, %v5640_v37  ;;  %v803_v37 = vshll.u32 %v5459_v6, 16  ;;  %v4786_v29 = vld [vmem:[%s5277_s6 + $0x148] sm:$0xff]  }
 0x15c   : > { %2769 = vmatmul.bf16.gmra.mxu3 %v4337_v32 }
 0x15d   : > { %2898 = vmatmul.bf16.gmra.mxu0 %v4361_v0  ;;  %v805_v26 = vrot.slane %v803_v37, 1 }
 0x15e   : > { %v2601_v55 = vpop.f32.mrf.mxu2 }
 0x15f   : > { %v2602_v38 = vadd.f32 %v2601_v55, %v2473_v59  ;;  %v2730_v18 = vpop.f32.mrf.mxu3  ;;  %v4338_v59 = vld [vmem:[%s5277_s6 + $0x220] sm:$0xff] }
 0x160   : > { %v2474_v56 = vpop.f32.mrf.mxu1 }
 0x161   : > { %v2731_v16 = vadd.f32 %v2730_v18, %v2602_v38  ;;  %v2475_v22 = vadd.f32 %v2474_v56, %v2346_v27  ;;  %v2351_v27 = vadd.f32 %v5653_v4, %v5510_v58  ;;  %v2354_v58 = vadd.f32 %v5653_v4, %v5520_v1 }
 0x162   : > { %v2861_v11 = vpop.f32.mrf.mxu0 }
 0x163   : > { %v5773_v25 = vadd.f32 %v2859_v12, %v2731_v16  ;;  %v806_v12 = vsel %vm666_vm0, %v801_v14, %v805_v26 }
 0x166   : > { %v2603_v36 = vpop.f32.mrf.mxu2 }
 0x167   : > { %v2604_v49 = vadd.f32 %v2603_v36, %v2475_v22  ;;  %v2732_v32 = vpop.f32.mrf.mxu3 }
 0x168   : > { %v2477_v0 = vpop.f32.mrf.mxu1 }
 0x169   : > { %v2733_v7 = vadd.f32 %v2732_v32, %v2604_v49  ;;  %v2478_v57 = vadd.f32 %v2477_v0, %v2349_v61  ;;  %v4787_v0 = vld [vmem:[%s5277_s6 + $0x150] sm:$0xff]  }
 0x16a   : > { %v2864_v55 = vpop.f32.mrf.mxu0 }
 0x16b   : > { %2516 = vmatmul.bf16.gmra.mxu1 %v4786_v29  ;;  %2645 = vmatmul.bf16.gmra.mxu2 %v5737_v39  ;;  %v5782_v2 = vadd.f32 %v2861_v11, %v2733_v7  ;;  %v5176_v39 = vld [vmem:[%s5277_s6 + $0x90] sm:$0xff]   ;;  %v807_v11 = vshrl.u32 %v5459_v6, 16  ;;  %v4339_v29 = vld [vmem:[%s5277_s6 + $0x228] sm:$0xff] }
 0x16c   : > { %2774 = vmatmul.bf16.gmra.mxu3 %v4338_v59  ;;  %v811_v35 = vshll.u32 %v5176_v39, 16  ;;  %v4363_v59 = vld [vmem:[%s5277_s6 + $0x300] sm:$0xff] }
 0x16d   : > { %2903 = vmatmul.bf16.gmra.mxu0 %v4362_v13  ;;  %v809_v14 = vor.u32 %v807_v11, %v805_v26 }
 0x16e   : > { %v2606_v45 = vpop.f32.mrf.mxu2  ;;  %v813_v36 = vrot.slane %v811_v35, 1 }
 0x16f   : > { %v2607_v38 = vadd.f32 %v2606_v45, %v2478_v57  ;;  %v2735_v18 = vpop.f32.mrf.mxu3 }
 0x170   : > { %v2479_v56 = vpop.f32.mrf.mxu1  ;;  %v5797_v6 = vsel %vm666_vm0, %v809_v14, %v813_v36 }
 0x171   : > { %v2736_v16 = vadd.f32 %v2735_v18, %v2607_v38  ;;  %v2480_v22 = vadd.f32 %v2479_v56, %v2351_v27 }
 0x172   : > { %v2866_v5 = vpop.f32.mrf.mxu0 }
 0x173   : > { %v5788_v43 = vadd.f32 %v2864_v55, %v2736_v16  ;;  %v2356_v55 = vadd.f32 %v5653_v4, %v5532_v15  ;;  %v815_v16 = vshrl.u32 %v5176_v39, 16  ;;  %v2359_v15 = vadd.f32 %v5653_v4, %v5542_v23  ;;  %v4423_v23 = vld [vmem:[%s6337_s1 + $0x188] sm:$0xff] }
 0x174   : > { %3089 = vmatpush.bf16.msra.mxu2 %v4423_v23  ;;  %v4365_v23 = vld [vmem:[%s5277_s6 + $0x310] sm:$0xff] }
 0x176   : > { %v2608_v37 = vpop.f32.mrf.mxu2 }
 0x177   : > { %v2609_v61 = vadd.f32 %v2608_v37, %v2480_v22  ;;  %v2737_v49 = vpop.f32.mrf.mxu3  ;;  %v5177_v22 = vld [vmem:[%s5277_s6 + $0x98] sm:$0xff]   ;;  %v817_v37 = vor.u32 %v815_v16, %v813_v36  ;;  %v4431_v36 = vld [vmem:[%s6337_s1 + $0x1c8] sm:$0xff] }
 0x178   : > { %v2482_v32 = vpop.f32.mrf.mxu1  ;;  %v819_v35 = vshll.u32 %v5177_v22, 16  ;;  %3218 = vmatpush.bf16.msra.mxu3 %v4431_v36  ;;  %v4439_v16 = vld [vmem:[%s6337_s1 + $0x208] sm:$0xff] }
 0x179   : > { %v2738_v13 = vadd.f32 %v2737_v49, %v2609_v61  ;;  %v2483_v7 = vadd.f32 %v2482_v32, %v2354_v58  ;;  %v4788_v32 = vld [vmem:[%s5277_s6 + $0x158] sm:$0xff]   ;;  %3347 = vmatpush.bf16.msra.mxu0 %v4439_v16  ;;  %v5179_v16 = vld [vmem:[%s5277_s6 + $0xa8] sm:$0xff]  }
 0x17a   : > { %v2869_v57 = vpop.f32.mrf.mxu0  ;;  %v821_v14 = vrot.slane %v819_v35, 1  ;;  %v823_v35 = vshrl.u32 %v5177_v22, 16 }
 0x17b   : > { %2521 = vmatmul.bf16.gmra.mxu1 %v4787_v0  ;;  %2650 = vmatmul.bf16.gmra.mxu2 %v5753_v48  ;;  %v5799_v26 = vadd.f32 %v2866_v5, %v2738_v13  ;;  %v4340_v0 = vld [vmem:[%s5277_s6 + $0x230] sm:$0xff] }
 0x17c   : > { %2779 = vmatmul.bf16.gmra.mxu3 %v4339_v29  ;;  %v4364_v29 = vld [vmem:[%s5277_s6 + $0x308] sm:$0xff]  ;;  %v5812_v39 = vsel %vm666_vm0, %v817_v37, %v821_v14 }
 0x17d   : > { %2908 = vmatmul.bf16.gmra.mxu0 %v4363_v59 }
 0x17e   : > { %v2611_v1 = vpop.f32.mrf.mxu2 }
 0x17f   : > { %v2612_v45 = vadd.f32 %v2611_v1, %v2483_v7  ;;  %v2740_v27 = vpop.f32.mrf.mxu3 }
 0x180   : > { %v2484_v38 = vpop.f32.mrf.mxu1 }
 0x181   : > { %v2741_v18 = vadd.f32 %v2740_v27, %v2612_v45  ;;  %v2485_v56 = vadd.f32 %v2484_v38, %v2356_v55 }
 0x182   : > { %v2871_v48 = vpop.f32.mrf.mxu0 }
 0x183   : > { %v5804_v5 = vadd.f32 %v2869_v57, %v2741_v18 }
 0x186   : > { %v2613_v11 = vpop.f32.mrf.mxu2 }
 0x187   : > { %v2614_v58 = vadd.f32 %v2613_v11, %v2485_v56  ;;  %v2742_v61 = vpop.f32.mrf.mxu3  ;;  %v5178_v11 = vld [vmem:[%s5277_s6 + $0xa0] sm:$0xff]  }
 0x188   : > { %v2487_v49 = vpop.f32.mrf.mxu1 }
 0x189   : > { %v2743_v59 = vadd.f32 %v2742_v61, %v2614_v58  ;;  %v2488_v13 = vadd.f32 %v2487_v49, %v2359_v15  ;;  %v825_v58 = vor.u32 %v823_v35, %v821_v14  ;;  %v2364_v49 = vadd.f32 %v5653_v4, %v5576_v46 }
 0x18a   : > { %v2874_v7 = vpop.f32.mrf.mxu0  ;;  %v835_v35 = vshll.u32 %v5179_v16, 16 }
 0x18b   : > { %2526 = vmatmul.bf16.gmra.mxu1 %v4788_v32  ;;  %2655 = vmatmul.bf16.gmra.mxu2 %v806_v12  ;;  %v5814_v57 = vadd.f32 %v2871_v48, %v2743_v59  ;;  %v2361_v12 = vadd.f32 %v5653_v4, %v5560_v33  ;;  %v4415_v48 = vld [vmem:[%s6337_s1 + $0x148] sm:$0xff]  ;;  %v827_v33 = vshll.u32 %v5178_v11, 16  ;;  %v4789_v59 = vld [vmem:[%s5277_s6 + $0x160] sm:$0xff]  }
 0x18c   : > { %2784 = vmatmul.bf16.gmra.mxu3 %v4340_v0  ;;  %2960 = vmatpush.bf16.msra.mxu1 %v4415_v48 }
 0x18d   : > { %2913 = vmatmul.bf16.gmra.mxu0 %v4364_v29  ;;  %v829_v61 = vrot.slane %v827_v33, 1 }
 0x18e   : > { %v2616_v1 = vpop.f32.mrf.mxu2 }
 0x18f   : > { %v2617_v55 = vadd.f32 %v2616_v1, %v2488_v13  ;;  %v2745_v45 = vpop.f32.mrf.mxu3  ;;  %v4341_v13 = vld [vmem:[%s5277_s6 + $0x238] sm:$0xff] }
 0x190   : > { %v2489_v27 = vpop.f32.mrf.mxu1 }
 0x191   : > { %v2746_v38 = vadd.f32 %v2745_v45, %v2617_v55  ;;  %v2490_v18 = vadd.f32 %v2489_v27, %v2361_v12  ;;  %v2366_v12 = vadd.f32 %v5653_v4, %v5588_v63  ;;  %v2369_v63 = vadd.f32 %v5653_v4, %v5598_v20 }
 0x192   : > { %v2876_v56 = vpop.f32.mrf.mxu0 }
 0x193   : > { %v5831_v37 = vadd.f32 %v2874_v7, %v2746_v38  ;;  %v830_v7 = vsel %vm666_vm0, %v825_v58, %v829_v61  ;;  %v837_v58 = vrot.slane %v835_v35, 1 }
 0x196   : > { %v2618_v15 = vpop.f32.mrf.mxu2 }
 0x197   : > { %v2619_v32 = vadd.f32 %v2618_v15, %v2490_v18  ;;  %v2747_v0 = vpop.f32.mrf.mxu3 }
 0x198   : > { %v2492_v29 = vpop.f32.mrf.mxu1 }
 0x199   : > { %v2748_v36 = vadd.f32 %v2747_v0, %v2619_v32  ;;  %v2493_v22 = vadd.f32 %v2492_v29, %v2364_v49  ;;  %v4790_v29 = vld [vmem:[%s5277_s6 + $0x168] sm:$0xff]  }
 0x19a   : > { %v2879_v1 = vpop.f32.mrf.mxu0 }
 0x19b   : > { %2531 = vmatmul.bf16.gmra.mxu1 %v4789_v59  ;;  %2660 = vmatmul.bf16.gmra.mxu2 %v5797_v6  ;;  %v5840_v14 = vadd.f32 %v2876_v56, %v2748_v36  ;;  %v831_v6 = vshrl.u32 %v5178_v11, 16  ;;  %v4342_v59 = vld [vmem:[%s5277_s6 + $0x240] sm:$0xff] }
 0x19c   : > { %2789 = vmatmul.bf16.gmra.mxu3 %v4341_v13  ;;  %v4366_v13 = vld [vmem:[%s5277_s6 + $0x318] sm:$0xff] }
 0x19d   : > { %2918 = vmatmul.bf16.gmra.mxu0 %v4365_v23  ;;  %v833_v15 = vor.u32 %v831_v6, %v829_v61 }
 0x19e   : > { %v2621_v46 = vpop.f32.mrf.mxu2 }
 0x19f   : > { %v2622_v55 = vadd.f32 %v2621_v46, %v2493_v22  ;;  %v2750_v45 = vpop.f32.mrf.mxu3  ;;  %v5854_v11 = vsel %vm666_vm0, %v833_v15, %v837_v58 }
 0x1a0   : > { %v2494_v27 = vpop.f32.mrf.mxu1 }
 0x1a1   : > { %v2751_v38 = vadd.f32 %v2750_v45, %v2622_v55  ;;  %v2495_v18 = vadd.f32 %v2494_v27, %v2366_v12 }
 0x1a2   : > { %v2881_v48 = vpop.f32.mrf.mxu0 }
 0x1a3   : > { %v5845_v56 = vadd.f32 %v2879_v1, %v2751_v38  ;;  %v2371_v1 = vadd.f32 %v5653_v4, %v5610_v34  ;;  %v839_v38 = vshrl.u32 %v5179_v16, 16  ;;  %v2374_v34 = vadd.f32 %v5653_v4, %v5620_v50  ;;  %v4422_v50 = vld [vmem:[%s6337_s1 + $0x180] sm:$0xff] }
 0x1a4   : > { %3090 = vmatpush.bf16.msra.mxu2 %v4422_v50 }
 0x1a6   : > { %v2623_v33 = vpop.f32.mrf.mxu2 }
 0x1a7   : > { %v2624_v49 = vadd.f32 %v2623_v33, %v2495_v18  ;;  %v2752_v32 = vpop.f32.mrf.mxu3  ;;  %v5180_v18 = vld [vmem:[%s5277_s6 + $0xb0] sm:$0xff]   ;;  %v841_v33 = vor.u32 %v839_v38, %v837_v58  ;;  %v4430_v58 = vld [vmem:[%s6337_s1 + $0x1c0] sm:$0xff] }
 0x1a8   : > { %v2497_v0 = vpop.f32.mrf.mxu1  ;;  %v843_v6 = vshll.u32 %v5180_v18, 16  ;;  %3219 = vmatpush.bf16.msra.mxu3 %v4430_v58  ;;  %v4438_v38 = vld [vmem:[%s6337_s1 + $0x200] sm:$0xff] }
 0x1a9   : > { %v2753_v23 = vadd.f32 %v2752_v32, %v2624_v49  ;;  %v2498_v36 = vadd.f32 %v2497_v0, %v2369_v63  ;;  %v4791_v0 = vld [vmem:[%s5277_s6 + $0x170] sm:$0xff]   ;;  %3348 = vmatpush.bf16.msra.mxu0 %v4438_v38 }
 0x1aa   : > { %v2884_v22 = vpop.f32.mrf.mxu0  ;;  %v845_v15 = vrot.slane %v843_v6, 1  ;;  %v847_v6 = vshrl.u32 %v5180_v18, 16  ;;  %v4344_v18 = vld [vmem:[%s5277_s6 + $0x250] sm:$0xff] }
 0x1ab   : > { %2536 = vmatmul.bf16.gmra.mxu1 %v4790_v29  ;;  %2665 = vmatmul.bf16.gmra.mxu2 %v5812_v39  ;;  %v5856_v61 = vadd.f32 %v2881_v48, %v2753_v23  ;;  %v4343_v29 = vld [vmem:[%s5277_s6 + $0x248] sm:$0xff] }
 0x1ac   : > { %2794 = vmatmul.bf16.gmra.mxu3 %v4342_v59  ;;  %v4367_v59 = vld [vmem:[%s5277_s6 + $0x320] sm:$0xff]  ;;  %v5869_v16 = vsel %vm666_vm0, %v841_v33, %v845_v15 }
 0x1ad   : > { %2923 = vmatmul.bf16.gmra.mxu0 %v4366_v13 }
 0x1ae   : > { %v2626_v20 = vpop.f32.mrf.mxu2 }
 0x1af   : > { %v2627_v46 = vadd.f32 %v2626_v20, %v2498_v36  ;;  %v2755_v12 = vpop.f32.mrf.mxu3 }
 0x1b0   : > { %v2499_v55 = vpop.f32.mrf.mxu1 }
 0x1b1   : > { %v2756_v45 = vadd.f32 %v2755_v12, %v2627_v46  ;;  %v2500_v27 = vadd.f32 %v2499_v55, %v2371_v1 }
 0x1b2   : > { %v2886_v39 = vpop.f32.mrf.mxu0 }
 0x1b3   : > { %v5861_v48 = vadd.f32 %v2884_v22, %v2756_v45 }
 0x1b6   : > { %v2628_v35 = vpop.f32.mrf.mxu2 }
 0x1b7   : > { %v2629_v63 = vadd.f32 %v2628_v35, %v2500_v27  ;;  %v2757_v49 = vpop.f32.mrf.mxu3  ;;  %v5888_v35 = vld [vmem:[%s5277_s6 + $0xb8] sm:$0xff]  }
 0x1b8   : > { %v2502_v32 = vpop.f32.mrf.mxu1 }
 0x1b9   : > { %v2758_v13 = vadd.f32 %v2757_v49, %v2629_v63  ;;  %v2503_v23 = vadd.f32 %v2502_v32, %v2374_v34  ;;  %v849_v63 = vor.u32 %v847_v6, %v845_v15  ;;  %v2379_v32 = vadd.f32 %v5653_v4, %v5506_v54 }
 0x1ba   : > { %v2889_v36 = vpop.f32.mrf.mxu0 }
 0x1bb   : > { %2541 = vmatmul.bf16.gmra.mxu1 %v4791_v0  ;;  %2670 = vmatmul.bf16.gmra.mxu2 %v830_v7  ;;  %v5871_v22 = vadd.f32 %v2886_v39, %v2758_v13  ;;  %v2376_v7 = vadd.f32 %v5653_v4, %v5638_v28  ;;  %v4414_v39 = vld [vmem:[%s6337_s1 + $0x140] sm:$0xff]  ;;  %v851_v28 = vshll.u32 %v5888_v35, 16  ;;  %v4792_v13 = vld [vmem:[%s5277_s6 + $0x178] sm:$0xff]  }
 0x1bc   : > { %2799 = vmatmul.bf16.gmra.mxu3 %v4343_v29  ;;  %2961 = vmatpush.bf16.msra.mxu1 %v4414_v39 }
 0x1bd   : > { %2928 = vmatmul.bf16.gmra.mxu0 %v4367_v59  ;;  %v5893_v49 = vrot.slane %v851_v28, 1 }
 0x1be   : > { %v2631_v20 = vpop.f32.mrf.mxu2 }
 0x1bf   : > { %v2632_v1 = vadd.f32 %v2631_v20, %v2503_v23  ;;  %v2760_v46 = vpop.f32.mrf.mxu3  ;;  %v4368_v23 = vld [vmem:[%s5277_s6 + $0x328] sm:$0xff]  ;;  %v854_v15 = vsel %vm666_vm0, %v849_v63, %v5893_v49  ;;  %v4793_v63 = vld [vmem:[%s5277_s6 + $0x180] sm:$0xff]  }
 0x1c0   : > { %v2504_v12 = vpop.f32.mrf.mxu1 }
 0x1c1   : > { %v2761_v55 = vadd.f32 %v2760_v46, %v2632_v1  ;;  %v2505_v45 = vadd.f32 %v2504_v12, %v2376_v7  ;;  %v2381_v7 = vadd.f32 %v5653_v4, %v5516_v62 }
 0x1c2   : > { %v2891_v27 = vpop.f32.mrf.mxu0 }
 0x1c3   : > { %v5891_v33 = vadd.f32 %v2889_v36, %v2761_v55 }
 0x1c6   : > { %v2633_v34 = vpop.f32.mrf.mxu2 }
 0x1c7   : > { %v2634_v0 = vadd.f32 %v2633_v34, %v2505_v45  ;;  %v2762_v29 = vpop.f32.mrf.mxu3 }
 0x1c8   : > { %v2507_v59 = vpop.f32.mrf.mxu1 }
 0x1c9   : > { %v2763_v50 = vadd.f32 %v2762_v29, %v2634_v0  ;;  %v2508_v58 = vadd.f32 %v2507_v59, %v2379_v32  ;;  %v4345_v32 = vld [vmem:[%s5277_s6 + $0x258] sm:$0xff]  ;;  %v4369_v0 = vld [vmem:[%s5277_s6 + $0x330] sm:$0xff] }
 0x1ca   : > { %v2894_v20 = vpop.f32.mrf.mxu0 }
 0x1cb   : > { %2546 = vmatmul.bf16.gmra.mxu1 %v4792_v13  ;;  %2675 = vmatmul.bf16.gmra.mxu2 %v5854_v11  ;;  %v5903_v36 = vadd.f32 %v2891_v27, %v2763_v50  ;;  %v2384_v27 = vadd.f32 %v5653_v4, %v5528_v8  ;;  %v2386_v8 = vadd.f32 %v5653_v4, %v5538_v19  ;;  %v4370_v19 = vld [vmem:[%s5277_s6 + $0x338] sm:$0xff] }
 0x1cc   : > { %2804 = vmatmul.bf16.gmra.mxu3 %v4344_v18 }
 0x1cd   : > { %2933 = vmatmul.bf16.gmra.mxu0 %v4368_v23 }
 0x1ce   : > { %v2636_v54 = vpop.f32.mrf.mxu2 }
 0x1cf   : > { %v2637_v1 = vadd.f32 %v2636_v54, %v2508_v58  ;;  %v2765_v46 = vpop.f32.mrf.mxu3 }
 0x1d0   : > { %v2509_v12 = vpop.f32.mrf.mxu1 }
 0x1d1   : > { %v2766_v55 = vadd.f32 %v2765_v46, %v2637_v1  ;;  %v2510_v45 = vadd.f32 %v2509_v12, %v2381_v7  ;;  %v2389_v12 = vadd.f32 %v5653_v4, %v5556_v31  ;;  %v2391_v31 = vadd.f32 %v5653_v4, %v5572_v41 }
 0x1d2   : > { %v2896_v11 = vpop.f32.mrf.mxu0  ;;  %v2394_v41 = vadd.f32 %v5653_v4, %v5584_v60 }
 0x1d3   : > { %v5907_v39 = vadd.f32 %v2894_v20, %v2766_v55 }
 0x1d6   : > { %v2638_v38 = vpop.f32.mrf.mxu2 }
 0x1d7   : > { %v2639_v6 = vadd.f32 %v2638_v38, %v2510_v45  ;;  %v2767_v28 = vpop.f32.mrf.mxu3  ;;  %v4794_v38 = vld [vmem:[%s5277_s6 + $0x188] sm:$0xff]  }
 0x1d8   : > { %v2512_v34 = vpop.f32.mrf.mxu1 }
 0x1d9   : > { %v2768_v29 = vadd.f32 %v2767_v28, %v2639_v6  ;;  %v2513_v62 = vadd.f32 %v2512_v34, %v2384_v27  ;;  %v4346_v27 = vld [vmem:[%s5277_s6 + $0x260] sm:$0xff] }
 0x1da   : > { %v2899_v59 = vpop.f32.mrf.mxu0 }
 0x1db   : > { %2551 = vmatmul.bf16.gmra.mxu1 %v4793_v63  ;;  %2680 = vmatmul.bf16.gmra.mxu2 %v5869_v16  ;;  %v5915_v13 = vadd.f32 %v2896_v11, %v2768_v29  ;;  %v268_v16 = vld [vmem:[%s5277_s6 + $0xc0] sm:$0x1] }
 0x1dc   : > { %2809 = vmatmul.bf16.gmra.mxu3 %v4345_v32  ;;  %v664_v6 = vunpack.c.l.b16 %v268_v16 }
 0x1dd   : > { %2938 = vmatmul.bf16.gmra.mxu0 %v4369_v0 }
 0x1de   : > { %v2641_v18 = vpop.f32.mrf.mxu2  ;;  %v665_v0 = vpack.c.b16 %v664_v6, %v664_v6 }
 0x1df   : > { %v2642_v23 = vadd.f32 %v2641_v18, %v2513_v62  ;;  %v2770_v50 = vpop.f32.mrf.mxu3  ;;  %v855_v18 = vshrl.u32 %v5888_v35, 16 }
 0x1e0   : > { %v2514_v58 = vpop.f32.mrf.mxu1 }
 0x1e1   : > { %v2771_v20 = vadd.f32 %v2770_v50, %v2642_v23  ;;  %v2515_v54 = vadd.f32 %v2514_v58, %v2386_v8  ;;  %v859_v23 = vshll.u32 %v665_v0, 16 }
 0x1e2   : > { %v2901_v7 = vpop.f32.mrf.mxu0 }
 0x1e3   : > { %v5919_v1 = vadd.f32 %v2899_v59, %v2771_v20 }
 0x1e6   : > { %v2643_v46 = vpop.f32.mrf.mxu2 }
 0x1e7   : > { %v2644_v55 = vadd.f32 %v2643_v46, %v2515_v54  ;;  %v2772_v45 = vpop.f32.mrf.mxu3  ;;  %v857_v54 = vor.u32 %v855_v18, %v5893_v49 }
 0x1e8   : > { %v2517_v11 = vpop.f32.mrf.mxu1 }
 0x1e9   : > { %v2773_v28 = vadd.f32 %v2772_v45, %v2644_v55  ;;  %v2518_v34 = vadd.f32 %v2517_v11, %v2389_v12  ;;  %v4795_v55 = vld [vmem:[%s5277_s6 + $0x190] sm:$0xff]   ;;  %v4347_v11 = vld [vmem:[%s5277_s6 + $0x268] sm:$0xff] }
 0x1ea   : > { %v2904_v63 = vpop.f32.mrf.mxu0 }
 0x1eb   : > { %2556 = vmatmul.bf16.gmra.mxu1 %v4794_v38  ;;  %2685 = vmatmul.bf16.gmra.mxu2 %v854_v15  ;;  %v5927_v32 = vadd.f32 %v2901_v7, %v2773_v28  ;;  %v861_v7 = vrot.slane %v859_v23, 1  ;;  %v4371_v38 = vld [vmem:[%s5277_s6 + $0x340] sm:$0xff]  ;;  %v5051_v28 = vld [vmem:[%s5277_s6 + $0xc] sm:$0xff]   ;;  %v5183_v23 = vld [vmem:[%s5277_s6 + $0x1b8] sm:$0xff] }
 0x1ec   : > { %2814 = vmatmul.bf16.gmra.mxu3 %v4346_v27  ;;  %v1512_v0 = vshll.u32 %v5051_v28, 16 }
 0x1ed   : > { %2943 = vmatmul.bf16.gmra.mxu0 %v4370_v19  ;;  %v862_v45 = vsel %vm666_vm0, %v857_v54, %v861_v7 }
 0x1ee   : > { %v2646_v29 = vpop.f32.mrf.mxu2 }
 0x1ef   : > { %v2647_v62 = vadd.f32 %v2646_v29, %v2518_v34  ;;  %v2775_v59 = vpop.f32.mrf.mxu3  ;;  %v5182_v34 = vld [vmem:[%s5277_s6 + $0x1b0] sm:$0xff] }
 0x1f0   : > { %v2519_v8 = vpop.f32.mrf.mxu1  ;;  %v1181_v60 = vshll.u32 %v5182_v34, 16  ;;  %v1179_v18 = vshrl.u32 %v5182_v34, 16 }
 0x1f1   : > { %v2776_v50 = vadd.f32 %v2775_v59, %v2647_v62  ;;  %v2520_v15 = vadd.f32 %v2519_v8, %v2391_v31  ;;  %v2396_v31 = vadd.f32 %v5653_v4, %v5594_v9 }
 0x1f2   : > { %v2906_v58 = vpop.f32.mrf.mxu0  ;;  %v1183_v8 = vrot.slane %v1181_v60, 1  ;;  %v5096_v60 = vld [vmem:[%s5277_s6 + $0xe4] sm:$0xff]  }
 0x1f3   : > { %v5932_v20 = vadd.f32 %v2904_v63, %v2776_v50  ;;  %v5946_v63 = vld [vmem:[%s5277_s6 + $0x14] sm:$0xff]   ;;  %v1186_v50 = vshll.u32 %v5183_v23, 16 }
 0x1f6   : > { %v2648_v16 = vpop.f32.mrf.mxu2 }
 0x1f7   : > { %v2649_v46 = vadd.f32 %v2648_v16, %v2520_v15  ;;  %v2777_v35 = vpop.f32.mrf.mxu3 }
 0x1f8   : > { %v2522_v12 = vpop.f32.mrf.mxu1 }
 0x1f9   : > { %v2778_v27 = vadd.f32 %v2777_v35, %v2649_v46  ;;  %v2523_v19 = vadd.f32 %v2522_v12, %v2394_v41  ;;  %v1514_v41 = vrot.slane %v1512_v0, 1  ;;  %v1517_v46 = vshll.u32 %v5946_v63, 16 }
 0x1fa   : > { %v2909_v6 = vpop.f32.mrf.mxu0  ;;  %v1188_v12 = vrot.slane %v1186_v50, 1 }
 0x1fb   : > { %2561 = vmatmul.bf16.gmra.mxu1 %v4795_v55  ;;  %2690 = vmatmul.bf16.gmra.mxu2 %v862_v45  ;;  %v5942_v49 = vadd.f32 %v2906_v58, %v2778_v27  ;;  %v1510_v58 = vshrl.u32 %v5051_v28, 16  ;;  %v1184_v55 = vor.u32 %v1183_v8, %v1179_v18  ;;  %v1519_v4 = vrot.slane %v1517_v46, 1  ;;  %v5967_v18 = vld [vmem:[%s5277_s6 + $0x1c] sm:$0xff]  }
 0x1fc   : > { %2819 = vmatmul.bf16.gmra.mxu3 %v4347_v11  ;;  %v5957_v11 = vld [vmem:[%s6338_s2] ss:$0 sm:$0xff] }
 0x1fd   : > { %2948 = vmatmul.bf16.gmra.mxu0 %v4371_v38  ;;  %v1515_v9 = vor.u32 %v1514_v41, %v1510_v58  ;;  %v2399_v38 = vadd.f32 %v5957_v11, %v5606_v10  ;;  %v2401_v8 = vadd.f32 %v5957_v11, %v5616_v42 }
 0x1fe   : > { %v2651_v29 = vpop.f32.mrf.mxu2 }
 0x1ff   : > { %v2652_v62 = vadd.f32 %v2651_v29, %v2523_v19  ;;  %v2780_v59 = vpop.f32.mrf.mxu3 }
 0x200   : > { %v2524_v15 = vpop.f32.mrf.mxu1 }
 0x201   : > { %v2781_v54 = vadd.f32 %v2780_v59, %v2652_v62  ;;  %v2525_v7 = vadd.f32 %v2524_v15, %v2396_v31  ;;  %v1520_v62 = vsel %vm666_vm0, %v1515_v9, %v1519_v4  ;;  %v1525_v9 = vshll.u32 %v5967_v18, 16 }
 0x202   : > { %v2911_v16 = vpop.f32.mrf.mxu0 }
 0x203   : > { %v5952_v35 = vadd.f32 %v2909_v6, %v2781_v54  ;;  %v1189_v6 = vsel %vm666_vm0, %v1184_v55, %v1188_v12  ;;  %v1190_v54 = vshrl.u32 %v5183_v23, 16  ;;  %v1527_v42 = vrot.slane %v1525_v9, 1 }
 0x204   : > { %v2404_v23 = vadd.f32 %v5957_v11, %v5634_v24  ;;  %v5985_v24 = vld [vmem:[%s5277_s6 + $0x24] sm:$0xff]  }
 0x206   : > { %v2653_v45 = vpop.f32.mrf.mxu2 }
 0x207   : > { %v2654_v27 = vadd.f32 %v2653_v45, %v2525_v7  ;;  %v2782_v19 = vpop.f32.mrf.mxu3  ;;  %v5185_v7 = vld [vmem:[%s5277_s6 + $0x1c0] sm:$0xff] }
 0x208   : > { %v2527_v34 = vpop.f32.mrf.mxu1  ;;  %v1194_v41 = vshll.u32 %v5185_v7, 16 }
 0x209   : > { %v2783_v0 = vadd.f32 %v2782_v19, %v2654_v27  ;;  %v2528_v29 = vadd.f32 %v2527_v34, %v2399_v38  ;;  %v1192_v38 = vor.u32 %v1190_v54, %v1188_v12 }
 0x20a   : > { %v2914_v31 = vpop.f32.mrf.mxu0  ;;  %v1196_v27 = vrot.slane %v1194_v41, 1 }
 0x20b   : > { %2962 = vmatmul.bf16.vlgmr.msra.gmra.mxu1 %v1189_v6  ;;  %3091 = vmatmul.bf16.vlgmr.msra.gmra.mxu2 %v5051_v28  ;;  %v5964_v59 = vadd.f32 %v2911_v16, %v2783_v0  ;;  %v1521_v16 = vshrl.u32 %v5946_v63, 16 }
 0x20c   : > { %3220 = vmatmul.bf16.vlgmr.msra.gmra.mxu3 %v5096_v60 }
 0x20d   : > { %3349 = vmatmul.bf16.vlgmr.msra.gmra.mxu0 %v1520_v62  ;;  %v1523_v19 = vor.u32 %v1521_v16, %v1519_v4  ;;  %v5098_v62 = vld [vmem:[%s5277_s6 + $0xec] sm:$0xff]  }
 0x20e   : > { %v2656_v10 = vpop.f32.mrf.mxu2  ;;  %v5186_v16 = vld [vmem:[%s5277_s6 + $0x1c8] sm:$0xff] }
 0x20f   : > { %v2657_v50 = vadd.f32 %v2656_v10, %v2528_v29  ;;  %v2785_v15 = vpop.f32.mrf.mxu3  ;;  %v1197_v29 = vsel %vm666_vm0, %v1192_v38, %v1196_v27  ;;  %v1528_v12 = vsel %vm666_vm0, %v1523_v19, %v1527_v42  ;;  %v1202_v9 = vshll.u32 %v5186_v16, 16 }
 0x210   : > { %v2529_v58 = vpop.f32.mrf.mxu1 }
 0x211   : > { %v2786_v46 = vadd.f32 %v2785_v15, %v2657_v50  ;;  %v2530_v55 = vadd.f32 %v2529_v58, %v2401_v8  ;;  %v6353_v15 = vld [vmem:[#allocation13_spill] sm:$0xff] }
 0x212   : > { %v2916_v28 = vpop.f32.mrf.mxu0  ;;  %v2406_v58 = vadd.f32 %v5957_v11, %v6353_v15 }
 0x213   : > { %v5974_v45 = vadd.f32 %v2914_v31, %v2786_v46 }
 0x216   : > { %v2658_v34 = vpop.f32.mrf.mxu2 }
 0x217   : > { %v2659_v6 = vadd.f32 %v2658_v34, %v2530_v55  ;;  %v2787_v60 = vpop.f32.mrf.mxu3  ;;  %v1198_v55 = vshrl.u32 %v5185_v7, 16  ;;  %v1533_v34 = vshll.u32 %v5985_v24, 16 }
 0x218   : > { %v2532_v0 = vpop.f32.mrf.mxu1 }
 0x219   : > { %v2788_v10 = vadd.f32 %v2787_v60, %v2659_v6  ;;  %v2533_v8 = vadd.f32 %v2532_v0, %v2404_v23  ;;  %v1200_v6 = vor.u32 %v1198_v55, %v1196_v27  ;;  %v1204_v60 = vrot.slane %v1202_v9, 1  ;;  %v6356_v9 = vld [vmem:[#allocation3_spill] sm:$0xff] }
 0x21a   : > { %v2919_v31 = vpop.f32.mrf.mxu0 }
 0x21b   : > { %2967 = vmatmul.bf16.gmra.mxu1 %v1197_v29  ;;  %3096 = vmatmul.bf16.gmra.mxu2 %v5946_v63  ;;  %v5982_v4 = vadd.f32 %v2916_v28, %v2788_v10  ;;  %v1529_v28 = vshrl.u32 %v5967_v18, 16  ;;  %v1535_v29 = vrot.slane %v1533_v34, 1  ;;  %v6354_v10 = vld [vmem:[#allocation2_spill] sm:$0xff]  ;;  %v1205_v15 = vsel %vm666_vm0, %v1200_v6, %v1204_v60 }
 0x21c   : > { %3225 = vmatmul.bf16.gmra.mxu3 %v5098_v62  ;;  %v2409_v7 = vadd.f32 %v5957_v11, %v6354_v10  ;;  %v1206_v6 = vshrl.u32 %v5186_v16, 16 }
 0x21d   : > { %3354 = vmatmul.bf16.gmra.mxu0 %v1528_v12  ;;  %v1531_v0 = vor.u32 %v1529_v28, %v1527_v42 }
 0x21e   : > { %v2661_v50 = vpop.f32.mrf.mxu2 }
 0x21f   : > { %v2662_v54 = vadd.f32 %v2661_v50, %v2533_v8  ;;  %v2790_v41 = vpop.f32.mrf.mxu3  ;;  %v1536_v27 = vsel %vm666_vm0, %v1531_v0, %v1535_v29 }
 0x220   : > { %v2534_v46 = vpop.f32.mrf.mxu1 }
 0x221   : > { %v2791_v38 = vadd.f32 %v2790_v41, %v2662_v54  ;;  %v2535_v19 = vadd.f32 %v2534_v46, %v2406_v58  ;;  %v5100_v58 = vld [vmem:[%s5277_s6 + $0xf4] sm:$0xff]   ;;  %v6003_v46 = vld [vmem:[%s5277_s6 + $0x2c] sm:$0xff]  }
 0x222   : > { %v2921_v63 = vpop.f32.mrf.mxu0 }
 0x223   : > { %v5992_v23 = vadd.f32 %v2919_v31, %v2791_v38  ;;  %v2411_v38 = vadd.f32 %v5957_v11, %v6356_v9 }
 0x226   : > { %v2663_v62 = vpop.f32.mrf.mxu2 }
 0x227   : > { %v2664_v8 = vadd.f32 %v2663_v62, %v2535_v19  ;;  %v2792_v12 = vpop.f32.mrf.mxu3  ;;  %v5187_v62 = vld [vmem:[%s5277_s6 + $0x1d0] sm:$0xff] }
 0x228   : > { %v2537_v50 = vpop.f32.mrf.mxu1  ;;  %v1210_v10 = vshll.u32 %v5187_v62, 16 }
 0x229   : > { %v2793_v54 = vadd.f32 %v2792_v12, %v2664_v8  ;;  %v2538_v41 = vadd.f32 %v2537_v50, %v2409_v7  ;;  %v1541_v8 = vshll.u32 %v6003_v46, 16  ;;  %v1208_v50 = vor.u32 %v1206_v6, %v1204_v60  ;;  %v6021_v6 = vld [vmem:[%s5277_s6 + $0x34] sm:$0xff]  }
 0x22a   : > { %v2924_v31 = vpop.f32.mrf.mxu0 }
 0x22b   : > { %2972 = vmatmul.bf16.gmra.mxu1 %v1205_v15  ;;  %3101 = vmatmul.bf16.gmra.mxu2 %v5967_v18  ;;  %v6000_v42 = vadd.f32 %v2921_v63, %v2793_v54  ;;  %v1537_v63 = vshrl.u32 %v5985_v24, 16  ;;  %v1212_v15 = vrot.slane %v1210_v10, 1  ;;  %v1543_v54 = vrot.slane %v1541_v8, 1 }
 0x22c   : > { %3230 = vmatmul.bf16.gmra.mxu3 %v5100_v58 }
 0x22d   : > { %6355 = vst [vmem:[#allocation13_spill] sm:$0xff] %v6000_v42  ;;  %3359 = vmatmul.bf16.gmra.mxu0 %v1536_v27  ;;  %v1539_v58 = vor.u32 %v1537_v63, %v1535_v29  ;;  %v6358_v27 = vld [vmem:[#allocation4_spill] sm:$0xff] }
 0x22e   : > { %v2666_v55 = vpop.f32.mrf.mxu2  ;;  %v2414_v16 = vadd.f32 %v5957_v11, %v6358_v27  ;;  %v5188_v27 = vld [vmem:[%s5277_s6 + $0x1d8] sm:$0xff] }
 0x22f   : > { %v2667_v19 = vadd.f32 %v2666_v55, %v2538_v41  ;;  %v2795_v28 = vpop.f32.mrf.mxu3  ;;  %v1544_v60 = vsel %vm666_vm0, %v1539_v58, %v1543_v54 }
 0x230   : > { %v2539_v34 = vpop.f32.mrf.mxu1 }
 0x231   : > { %v2796_v0 = vadd.f32 %v2795_v28, %v2667_v19  ;;  %v2540_v7 = vadd.f32 %v2539_v34, %v2411_v38  ;;  %v1213_v38 = vsel %vm666_vm0, %v1208_v50, %v1212_v15  ;;  %v5102_v28 = vld [vmem:[%s5277_s6 + $0xfc] sm:$0xff]  }
 0x232   : > { %v2926_v18 = vpop.f32.mrf.mxu0 }
 0x233   : > { %v6010_v12 = vadd.f32 %v2924_v31, %v2796_v0  ;;  %v6360_v0 = vld [vmem:[#allocation5_spill] sm:$0xff] }
 0x235   : > { %6357 = vst [vmem:[#allocation2_spill] sm:$0xff] %v6010_v12 }
 0x236   : > { %v2668_v41 = vpop.f32.mrf.mxu2 }
 0x237   : > { %v2669_v55 = vadd.f32 %v2668_v41, %v2540_v7  ;;  %v2797_v9 = vpop.f32.mrf.mxu3  ;;  %v2416_v7 = vadd.f32 %v5957_v11, %v6360_v0  ;;  %v1214_v41 = vshrl.u32 %v5187_v62, 16 }
 0x238   : > { %v2542_v19 = vpop.f32.mrf.mxu1 }
 0x239   : > { %v2798_v34 = vadd.f32 %v2797_v9, %v2669_v55  ;;  %v2543_v42 = vadd.f32 %v2542_v19, %v2414_v16  ;;  %v1218_v16 = vshll.u32 %v5188_v27, 16  ;;  %v1549_v9 = vshll.u32 %v6021_v6, 16 }
 0x23a   : > { %v2929_v31 = vpop.f32.mrf.mxu0 }
 0x23b   : > { %2977 = vmatmul.bf16.gmra.mxu1 %v1213_v38  ;;  %3106 = vmatmul.bf16.gmra.mxu2 %v5985_v24  ;;  %v6018_v29 = vadd.f32 %v2926_v18, %v2798_v34  ;;  %v1545_v18 = vshrl.u32 %v6003_v46, 16  ;;  %v1216_v38 = vor.u32 %v1214_v41, %v1212_v15  ;;  %v6039_v41 = vld [vmem:[%s5277_s6 + $0x3c] sm:$0xff]  }
 0x23c   : > { %3235 = vmatmul.bf16.gmra.mxu3 %v5102_v28  ;;  %v1220_v28 = vrot.slane %v1218_v16, 1 }
 0x23d   : > { %6359 = vst [vmem:[#allocation3_spill] sm:$0xff] %v6018_v29  ;;  %3364 = vmatmul.bf16.gmra.mxu0 %v1544_v60  ;;  %v1547_v34 = vor.u32 %v1545_v18, %v1543_v54  ;;  %v1551_v60 = vrot.slane %v1549_v9, 1 }
 0x23e   : > { %v2671_v10 = vpop.f32.mrf.mxu2 }
 0x23f   : > { %v2672_v63 = vadd.f32 %v2671_v10, %v2543_v42  ;;  %v2800_v8 = vpop.f32.mrf.mxu3  ;;  %v6362_v10 = vld [vmem:[#allocation6_spill] sm:$0xff]  ;;  %v1552_v15 = vsel %vm666_vm0, %v1547_v34, %v1551_v60 }
 0x240   : > { %v2544_v50 = vpop.f32.mrf.mxu1  ;;  %v2419_v62 = vadd.f32 %v5957_v11, %v6362_v10  ;;  %v5189_v10 = vld [vmem:[%s5277_s6 + $0x1e0] sm:$0xff] }
 0x241   : > { %v2801_v58 = vadd.f32 %v2800_v8, %v2672_v63  ;;  %v2545_v55 = vadd.f32 %v2544_v50, %v2416_v7  ;;  %v1221_v7 = vsel %vm666_vm0, %v1216_v38, %v1220_v28  ;;  %v5104_v50 = vld [vmem:[%s5277_s6 + $0x104] sm:$0xff]  }
 0x242   : > { %v2931_v24 = vpop.f32.mrf.mxu0 }
 0x243   : > { %v6028_v19 = vadd.f32 %v2929_v31, %v2801_v58  ;;  %v6364_v58 = vld [vmem:[#allocation7_spill] sm:$0xff] }
 0x245   : > { %6361 = vst [vmem:[#allocation4_spill] sm:$0xff] %v6028_v19 }
 0x246   : > { %v2673_v42 = vpop.f32.mrf.mxu2 }
 0x247   : > { %v2674_v0 = vadd.f32 %v2673_v42, %v2545_v55  ;;  %v2802_v63 = vpop.f32.mrf.mxu3  ;;  %v2421_v55 = vadd.f32 %v5957_v11, %v6364_v58  ;;  %v1222_v42 = vshrl.u32 %v5188_v27, 16 }
 0x248   : > { %v2547_v8 = vpop.f32.mrf.mxu1 }
 0x249   : > { %v2803_v29 = vadd.f32 %v2802_v63, %v2674_v0  ;;  %v2548_v12 = vadd.f32 %v2547_v8, %v2419_v62  ;;  %v1226_v62 = vshll.u32 %v5189_v10, 16  ;;  %v1224_v8 = vor.u32 %v1222_v42, %v1220_v28  ;;  %v6057_v42 = vld [vmem:[%s5277_s6 + $0x44] sm:$0xff]  }
 0x24a   : > { %v2934_v31 = vpop.f32.mrf.mxu0 }
 0x24b   : > { %2982 = vmatmul.bf16.gmra.mxu1 %v1221_v7  ;;  %3111 = vmatmul.bf16.gmra.mxu2 %v6003_v46  ;;  %v6036_v54 = vadd.f32 %v2931_v24, %v2803_v29  ;;  %v1553_v29 = vshrl.u32 %v6021_v6, 16  ;;  %v1557_v24 = vshll.u32 %v6039_v41, 16  ;;  %v1228_v7 = vrot.slane %v1226_v62, 1 }
 0x24c   : > { %3240 = vmatmul.bf16.gmra.mxu3 %v5104_v50 }
 0x24d   : > { %6363 = vst [vmem:[#allocation5_spill] sm:$0xff] %v6036_v54  ;;  %3369 = vmatmul.bf16.gmra.mxu0 %v1552_v15  ;;  %v1555_v50 = vor.u32 %v1553_v29, %v1551_v60  ;;  %v1559_v15 = vrot.slane %v1557_v24, 1 }
 0x24e   : > { %v2676_v16 = vpop.f32.mrf.mxu2 }
 0x24f   : > { %v2677_v18 = vadd.f32 %v2676_v16, %v2548_v12  ;;  %v2805_v9 = vpop.f32.mrf.mxu3  ;;  %v6366_v16 = vld [vmem:[#allocation8_spill] sm:$0xff]  ;;  %v1560_v28 = vsel %vm666_vm0, %v1555_v50, %v1559_v15 }
 0x250   : > { %v2549_v38 = vpop.f32.mrf.mxu1  ;;  %v2424_v27 = vadd.f32 %v5957_v11, %v6366_v16  ;;  %v5190_v16 = vld [vmem:[%s5277_s6 + $0x1e8] sm:$0xff] }
 0x251   : > { %v2806_v34 = vadd.f32 %v2805_v9, %v2677_v18  ;;  %v2550_v0 = vadd.f32 %v2549_v38, %v2421_v55  ;;  %v1229_v55 = vsel %vm666_vm0, %v1224_v8, %v1228_v7  ;;  %v5106_v38 = vld [vmem:[%s5277_s6 + $0x10c] sm:$0xff]  }
 0x252   : > { %v2936_v46 = vpop.f32.mrf.mxu0 }
 0x253   : > { %v6046_v63 = vadd.f32 %v2934_v31, %v2806_v34  ;;  %v6368_v34 = vld [vmem:[#allocation9_spill] sm:$0xff] }
 0x255   : > { %6365 = vst [vmem:[#allocation6_spill] sm:$0xff] %v6046_v63 }
 0x256   : > { %v2678_v12 = vpop.f32.mrf.mxu2 }
 0x257   : > { %v2679_v58 = vadd.f32 %v2678_v12, %v2550_v0  ;;  %v2807_v18 = vpop.f32.mrf.mxu3  ;;  %v2426_v0 = vadd.f32 %v5957_v11, %v6368_v34  ;;  %v1230_v12 = vshrl.u32 %v5189_v10, 16 }
 0x258   : > { %v2552_v9 = vpop.f32.mrf.mxu1 }
 0x259   : > { %v2808_v54 = vadd.f32 %v2807_v18, %v2679_v58  ;;  %v2553_v19 = vadd.f32 %v2552_v9, %v2424_v27  ;;  %v1234_v27 = vshll.u32 %v5190_v16, 16  ;;  %v1232_v9 = vor.u32 %v1230_v12, %v1228_v7  ;;  %v6075_v12 = vld [vmem:[%s5277_s6 + $0x4c] sm:$0xff]  }
 0x25a   : > { %v2939_v31 = vpop.f32.mrf.mxu0 }
 0x25b   : > { %2987 = vmatmul.bf16.gmra.mxu1 %v1229_v55  ;;  %3116 = vmatmul.bf16.gmra.mxu2 %v6021_v6  ;;  %v6054_v60 = vadd.f32 %v2936_v46, %v2808_v54  ;;  %v1561_v54 = vshrl.u32 %v6039_v41, 16  ;;  %v1565_v46 = vshll.u32 %v6057_v42, 16  ;;  %v1236_v55 = vrot.slane %v1234_v27, 1 }
 0x25c   : > { %3245 = vmatmul.bf16.gmra.mxu3 %v5106_v38 }
 0x25d   : > { %6367 = vst [vmem:[#allocation7_spill] sm:$0xff] %v6054_v60  ;;  %3374 = vmatmul.bf16.gmra.mxu0 %v1560_v28  ;;  %v1563_v38 = vor.u32 %v1561_v54, %v1559_v15  ;;  %v1567_v28 = vrot.slane %v1565_v46, 1 }
 0x25e   : > { %v2681_v62 = vpop.f32.mrf.mxu2 }
 0x25f   : > { %v2682_v29 = vadd.f32 %v2681_v62, %v2553_v19  ;;  %v2810_v24 = vpop.f32.mrf.mxu3  ;;  %v6370_v62 = vld [vmem:[#allocation10_spill] sm:$0xff]  ;;  %v1568_v7 = vsel %vm666_vm0, %v1563_v38, %v1567_v28 }
 0x260   : > { %v2554_v8 = vpop.f32.mrf.mxu1  ;;  %v2429_v10 = vadd.f32 %v5957_v11, %v6370_v62  ;;  %v5191_v62 = vld [vmem:[%s5277_s6 + $0x1f0] sm:$0xff] }
 0x261   : > { %v2811_v50 = vadd.f32 %v2810_v24, %v2682_v29  ;;  %v2555_v58 = vadd.f32 %v2554_v8, %v2426_v0  ;;  %v1237_v0 = vsel %vm666_vm0, %v1232_v9, %v1236_v55  ;;  %v5108_v8 = vld [vmem:[%s5277_s6 + $0x114] sm:$0xff]  }
 0x262   : > { %v2941_v6 = vpop.f32.mrf.mxu0 }
 0x263   : > { %v6064_v18 = vadd.f32 %v2939_v31, %v2811_v50  ;;  %v6372_v50 = vld [vmem:[#allocation11_spill] sm:$0xff] }
 0x265   : > { %6369 = vst [vmem:[#allocation8_spill] sm:$0xff] %v6064_v18 }
 0x266   : > { %v2683_v19 = vpop.f32.mrf.mxu2 }
 0x267   : > { %v2684_v34 = vadd.f32 %v2683_v19, %v2555_v58  ;;  %v2812_v29 = vpop.f32.mrf.mxu3  ;;  %v2431_v58 = vadd.f32 %v5957_v11, %v6372_v50  ;;  %v1238_v19 = vshrl.u32 %v5190_v16, 16 }
 0x268   : > { %v2557_v24 = vpop.f32.mrf.mxu1 }
 0x269   : > { %v2813_v60 = vadd.f32 %v2812_v29, %v2684_v34  ;;  %v2558_v63 = vadd.f32 %v2557_v24, %v2429_v10  ;;  %v1242_v10 = vshll.u32 %v5191_v62, 16  ;;  %v1240_v24 = vor.u32 %v1238_v19, %v1236_v55  ;;  %v6093_v19 = vld [vmem:[%s5277_s6 + $0x54] sm:$0xff]  }
 0x26a   : > { %v2944_v31 = vpop.f32.mrf.mxu0 }
 0x26b   : > { %2992 = vmatmul.bf16.gmra.mxu1 %v1237_v0  ;;  %3121 = vmatmul.bf16.gmra.mxu2 %v6039_v41  ;;  %v6072_v15 = vadd.f32 %v2941_v6, %v2813_v60  ;;  %v1569_v60 = vshrl.u32 %v6057_v42, 16  ;;  %v1573_v6 = vshll.u32 %v6075_v12, 16  ;;  %v1244_v0 = vrot.slane %v1242_v10, 1 }
 0x26c   : > { %3250 = vmatmul.bf16.gmra.mxu3 %v5108_v8 }
 0x26d   : > { %6371 = vst [vmem:[#allocation9_spill] sm:$0xff] %v6072_v15  ;;  %3379 = vmatmul.bf16.gmra.mxu0 %v1568_v7  ;;  %v1571_v8 = vor.u32 %v1569_v60, %v1567_v28  ;;  %v1575_v7 = vrot.slane %v1573_v6, 1 }
 0x26e   : > { %v2686_v27 = vpop.f32.mrf.mxu2 }
 0x26f   : > { %v2687_v54 = vadd.f32 %v2686_v27, %v2558_v63  ;;  %v2815_v46 = vpop.f32.mrf.mxu3  ;;  %v6373_v27 = vld [vmem:[#allocation12_spill] sm:$0xff]  ;;  %v1576_v55 = vsel %vm666_vm0, %v1571_v8, %v1575_v7 }
 0x270   : > { %v2559_v9 = vpop.f32.mrf.mxu1  ;;  %v2434_v16 = vadd.f32 %v5957_v11, %v6373_v27  ;;  %v5192_v27 = vld [vmem:[%s5277_s6 + $0x1f8] sm:$0xff] }
 0x271   : > { %v2816_v38 = vadd.f32 %v2815_v46, %v2687_v54  ;;  %v2560_v34 = vadd.f32 %v2559_v9, %v2431_v58  ;;  %v1245_v58 = vsel %vm666_vm0, %v1240_v24, %v1244_v0  ;;  %v5110_v9 = vld [vmem:[%s5277_s6 + $0x11c] sm:$0xff]  }
 0x272   : > { %v2946_v41 = vpop.f32.mrf.mxu0 }
 0x273   : > { %v6082_v29 = vadd.f32 %v2944_v31, %v2816_v38  ;;  %v6375_v38 = vld [vmem:[#allocation14_spill] sm:$0xff] }
 0x276   : > { %v2688_v63 = vpop.f32.mrf.mxu2 }
 0x277   : > { %v2689_v50 = vadd.f32 %v2688_v63, %v2560_v34  ;;  %v2817_v54 = vpop.f32.mrf.mxu3  ;;  %v2436_v34 = vadd.f32 %v5957_v11, %v6375_v38  ;;  %v1246_v63 = vshrl.u32 %v5191_v62, 16 }
 0x278   : > { %v2562_v46 = vpop.f32.mrf.mxu1 }
 0x279   : > { %v2818_v15 = vadd.f32 %v2817_v54, %v2689_v50  ;;  %v2563_v18 = vadd.f32 %v2562_v46, %v2434_v16  ;;  %v1250_v16 = vshll.u32 %v5192_v27, 16  ;;  %v1248_v46 = vor.u32 %v1246_v63, %v1244_v0 }
 0x27a   : > { %v2949_v31 = vpop.f32.mrf.mxu0 }
 0x27b   : > { %2997 = vmatmul.bf16.gmra.mxu1 %v1245_v58  ;;  %3126 = vmatmul.bf16.gmra.mxu2 %v6057_v42  ;;  %v6090_v28 = vadd.f32 %v2946_v41, %v2818_v15  ;;  %v1577_v15 = vshrl.u32 %v6075_v12, 16  ;;  %v1581_v41 = vshll.u32 %v6093_v19, 16  ;;  %v1252_v58 = vrot.slane %v1250_v16, 1 }
 0x27c   : > { %3255 = vmatmul.bf16.gmra.mxu3 %v5110_v9 }
 0x27d   : > { %6374 = vst [vmem:[#allocation10_spill] sm:$0xff] %v6090_v28  ;;  %3384 = vmatmul.bf16.gmra.mxu0 %v1576_v55  ;;  %v1579_v9 = vor.u32 %v1577_v15, %v1575_v7  ;;  %v1583_v11 = vrot.slane %v1581_v41, 1  ;;  %v1253_v38 = vsel %vm666_vm0, %v1248_v46, %v1252_v58  ;;  %v6109_v7 = vld [vmem:[%s5277_s6 + $0x5c] sm:$0xff]  }
 0x27e   : > { %v2691_v10 = vpop.f32.mrf.mxu2  ;;  %v5193_v15 = vld [vmem:[%s5277_s6 + $0x200] sm:$0xff] }
 0x27f   : > { %v2692_v60 = vadd.f32 %v2691_v10, %v2563_v18  ;;  %v2820_v6 = vpop.f32.mrf.mxu3  ;;  %v1258_v41 = vshll.u32 %v5193_v15, 16 }
 0x280   : > { %v2564_v24 = vpop.f32.mrf.mxu1 }
 0x281   : > { %v2821_v8 = vadd.f32 %v2820_v6, %v2692_v60  ;;  %v2565_v50 = vadd.f32 %v2564_v24, %v2436_v34  ;;  %v5112_v34 = vld [vmem:[%s5277_s6 + $0x124] sm:$0xff]   ;;  %v1584_v24 = vsel %vm666_vm0, %v1579_v9, %v1583_v11 }
 0x282   : > { %v2951_v42 = vpop.f32.mrf.mxu0 }
 0x283   : > { %v6100_v54 = vadd.f32 %v2949_v31, %v2821_v8 }
 0x285   : > { %6376 = vst [vmem:[#allocation11_spill] sm:$0xff] %v6100_v54 }
 0x286   : > { %v2693_v18 = vpop.f32.mrf.mxu2 }
 0x287   : > { %v2694_v55 = vadd.f32 %v2693_v18, %v2565_v50  ;;  %v2822_v62 = vpop.f32.mrf.mxu3  ;;  %v1254_v50 = vshrl.u32 %v5192_v27, 16  ;;  %v1585_v18 = vshrl.u32 %v6093_v19, 16 }
 0x288   : > { %v2963_v10 = vpop.f32.mrf.mxu1 }
 0x289   : > { %v2823_v60 = vadd.f32 %v2822_v62, %v2694_v55  ;;  %v2964_v63 = vadd.f32 %v2963_v10, %v5669_v17  ;;  %v1260_v55 = vrot.slane %v1258_v41, 1 }
 0x28a   : > { %v3350_v6 = vpop.f32.mrf.mxu0 }
 0x28b   : > { %3002 = vmatmul.bf16.gmra.mxu1 %v1253_v38  ;;  %3131 = vmatmul.bf16.gmra.mxu2 %v6075_v12  ;;  %v6106_v0 = vadd.f32 %v2951_v42, %v2823_v60  ;;  %v1589_v12 = vshll.u32 %v6109_v7, 16  ;;  %v1256_v42 = vor.u32 %v1254_v50, %v1252_v58 }
 0x28c   : > { %3260 = vmatmul.bf16.gmra.mxu3 %v5112_v34  ;;  %v1587_v34 = vor.u32 %v1585_v18, %v1583_v11 }
 0x28d   : > { %6377 = vst [vmem:[#allocation12_spill] sm:$0xff] %v6106_v0  ;;  %3389 = vmatmul.bf16.gmra.mxu0 %v1584_v24  ;;  %v1591_v17 = vrot.slane %v1589_v12, 1 }
 0x28e   : > { %v3092_v31 = vpop.f32.mrf.mxu2 }
 0x28f   : > { %v3221_v16 = vpop.f32.mrf.mxu3  ;;  %v3093_v46 = vadd.f32 %v3092_v31, %v2964_v63  ;;  %v1261_v31 = vsel %vm666_vm0, %v1256_v42, %v1260_v55  ;;  %v5114_v63 = vld [vmem:[%s5277_s6 + $0x12c] sm:$0xff]   ;;  %v1592_v58 = vsel %vm666_vm0, %v1587_v34, %v1591_v17  ;;  %v1593_v42 = vshrl.u32 %v6109_v7, 16 }
 0x290   : > { %v2965_v8 = vpop.f32.mrf.mxu1 }
 0x291   : > { %v3222_v62 = vadd.f32 %v3221_v16, %v3093_v46  ;;  %v2966_v38 = vadd.f32 %v2965_v8, %v5679_v30  ;;  %v6122_v8 = vld [vmem:[%s5277_s6 + $0x64] sm:$0xff]  }
 0x292   : > { %v3352_v9 = vpop.f32.mrf.mxu0 }
 0x293   : > { %v3351_v0 = vadd.f32 %v3350_v6, %v3222_v62  ;;  %v1597_v62 = vshll.u32 %v6122_v8, 16 }
 0x295   : > { %v3470_v30 = vmax.f32 %v3351_v0, 0.0 }
 0x296   : > { %v3094_v10 = vpop.f32.mrf.mxu2 }
 0x297   : > { %v3095_v60 = vadd.f32 %v3094_v10, %v2966_v38  ;;  %v3223_v27 = vpop.f32.mrf.mxu3 }
 0x298   : > { %v2968_v24 = vpop.f32.mrf.mxu1 }
 0x299   : > { %v3224_v54 = vadd.f32 %v3223_v27, %v3095_v60  ;;  %v2969_v41 = vadd.f32 %v2968_v24, %v5685_v44  ;;  %v1595_v27 = vor.u32 %v1593_v42, %v1591_v17  ;;  %v1599_v44 = vrot.slane %v1597_v62, 1  ;;  %v5195_v42 = vld [vmem:[%s5277_s6 + $0x210] sm:$0xff] }
 0x29a   : > { %v3355_v28 = vpop.f32.mrf.mxu0  ;;  %v1274_v62 = vshll.u32 %v5195_v42, 16 }
 0x29b   : > { %v3353_v16 = vadd.f32 %v3352_v9, %v3224_v54  ;;  %3007 = vmatmul.bf16.gmra.mxu1 %v1261_v31  ;;  %3136 = vmatmul.bf16.gmra.mxu2 %v6093_v19  ;;  %v1262_v9 = vshrl.u32 %v5193_v15, 16  ;;  %v5194_v19 = vld [vmem:[%s5277_s6 + $0x208] sm:$0xff] }
 0x29c   : > { %3265 = vmatmul.bf16.gmra.mxu3 %v5114_v63  ;;  %v1266_v18 = vshll.u32 %v5194_v19, 16 }
 0x29d   : > { %3394 = vmatmul.bf16.gmra.mxu0 %v1592_v58  ;;  %v3471_v11 = vmax.f32 %v3353_v16, 0.0  ;;  %v1264_v38 = vor.u32 %v1262_v9, %v1260_v55  ;;  %v5116_v16 = vld [vmem:[%s5277_s6 + $0x134] sm:$0xff]   ;;  %v1600_v55 = vsel %vm666_vm0, %v1595_v27, %v1599_v44  ;;  %v1276_v27 = vrot.slane %v1274_v62, 1 }
 0x29e   : > { %v3097_v6 = vpop.f32.mrf.mxu2  ;;  %v1268_v34 = vrot.slane %v1266_v18, 1  ;;  %v5196_v62 = vld [vmem:[%s5277_s6 + $0x218] sm:$0xff] }
 0x29f   : > { %v4633_v50 = vpack.c.bf16 %v3471_v11, %v3470_v30  ;;  %v3226_v54 = vpop.f32.mrf.mxu3  ;;  %v3098_v0 = vadd.f32 %v3097_v6, %v2969_v41  ;;  %v6140_v41 = vld [vmem:[%s5277_s6 + $0x6c] sm:$0xff]  }
 0x2a0   : > { %v2970_v46 = vpop.f32.mrf.mxu1  ;;  %v1269_v58 = vsel %vm666_vm0, %v1264_v38, %v1268_v34 }
 0x2a1   : > { %4634 = vst [vmem:[%s6127_s24] sm:$0xff] %v4633_v50   ;;  %v3227_v10 = vadd.f32 %v3226_v54, %v3098_v0  ;;  %v2971_v60 = vadd.f32 %v2970_v46, %v5695_v3  ;;  %v1270_v0 = vshrl.u32 %v5194_v19, 16 }
 0x2a2   : > { %v3357_v12 = vpop.f32.mrf.mxu0 }
 0x2a3   : > { %v3356_v30 = vadd.f32 %v3355_v28, %v3227_v10  ;;  %v1605_v10 = vshll.u32 %v6140_v41, 16 }
 0x2a5   : > { %v3472_v3 = vmax.f32 %v3356_v30, 0.0 }
 0x2a6   : > { %v3099_v24 = vpop.f32.mrf.mxu2 }
 0x2a7   : > { %v3100_v31 = vadd.f32 %v3099_v24, %v2971_v60  ;;  %v3228_v15 = vpop.f32.mrf.mxu3  ;;  %v1272_v60 = vor.u32 %v1270_v0, %v1268_v34  ;;  %v1278_v0 = vshrl.u32 %v5195_v42, 16 }
 0x2a8   : > { %v2973_v63 = vpop.f32.mrf.mxu1 }
 0x2a9   : > { %v3229_v11 = vadd.f32 %v3228_v15, %v3100_v31  ;;  %v2974_v28 = vadd.f32 %v2973_v63, %v5713_v40  ;;  %v1607_v40 = vrot.slane %v1605_v10, 1  ;;  %v1277_v30 = vsel %vm666_vm0, %v1272_v60, %v1276_v27 }
 0x2aa   : > { %v3360_v6 = vpop.f32.mrf.mxu0  ;;  %v1280_v60 = vor.u32 %v1278_v0, %v1276_v27 }
 0x2ab   : > { %v3358_v50 = vadd.f32 %v3357_v12, %v3229_v11  ;;  %3012 = vmatmul.bf16.gmra.mxu1 %v1269_v58  ;;  %3141 = vmatmul.bf16.gmra.mxu2 %v6109_v7  ;;  %v1601_v7 = vshrl.u32 %v6122_v8, 16  ;;  %v5118_v11 = vld [vmem:[%s5277_s6 + $0x13c] sm:$0xff]  }
 0x2ac   : > { %3270 = vmatmul.bf16.gmra.mxu3 %v5116_v16 }
 0x2ad   : > { %3399 = vmatmul.bf16.gmra.mxu0 %v1600_v55  ;;  %v3473_v17 = vmax.f32 %v3358_v50, 0.0  ;;  %v1603_v15 = vor.u32 %v1601_v7, %v1599_v44 }
 0x2ae   : > { %v3102_v54 = vpop.f32.mrf.mxu2 }
 0x2af   : > { %v4638_v46 = vpack.c.bf16 %v3473_v17, %v3472_v3  ;;  %v3231_v9 = vpop.f32.mrf.mxu3  ;;  %v3103_v12 = vadd.f32 %v3102_v54, %v2974_v28  ;;  %v1608_v34 = vsel %vm666_vm0, %v1603_v15, %v1607_v40  ;;  %v6153_v54 = vld [vmem:[%s5277_s6 + $0x74] sm:$0xff]  }
 0x2b0   : > { %v2975_v18 = vpop.f32.mrf.mxu1  ;;  %v1613_v10 = vshll.u32 %v6153_v54, 16 }
 0x2b1   : > { %5026 = vst [vmem:[%s6127_s24 + $0x8] sm:$0xff] %v4638_v46   ;;  %v3232_v24 = vadd.f32 %v3231_v9, %v3103_v12  ;;  %v2976_v31 = vadd.f32 %v2975_v18, %v5722_v21  ;;  %v1282_v12 = vshll.u32 %v5196_v62, 16 }
 0x2b2   : > { %v3362_v38 = vpop.f32.mrf.mxu0 }
 0x2b3   : > { %v3361_v55 = vadd.f32 %v3360_v6, %v3232_v24  ;;  %v1284_v24 = vrot.slane %v1282_v12, 1 }
 0x2b5   : > { %v3474_v21 = vmax.f32 %v3361_v55, 0.0 }
 0x2b6   : > { %v3104_v63 = vpop.f32.mrf.mxu2 }
 0x2b7   : > { %v3105_v58 = vadd.f32 %v3104_v63, %v2976_v31  ;;  %v3233_v19 = vpop.f32.mrf.mxu3 }
 0x2b8   : > { %v2978_v16 = vpop.f32.mrf.mxu1 }
 0x2b9   : > { %v3234_v50 = vadd.f32 %v3233_v19, %v3105_v58  ;;  %v2979_v6 = vadd.f32 %v2978_v16, %v5728_v52  ;;  %v1615_v52 = vrot.slane %v1613_v10, 1 }
 0x2ba   : > { %v3365_v3 = vpop.f32.mrf.mxu0 }
 0x2bb   : > { %v3363_v17 = vadd.f32 %v3362_v38, %v3234_v50  ;;  %3017 = vmatmul.bf16.gmra.mxu1 %v1277_v30  ;;  %3146 = vmatmul.bf16.gmra.mxu2 %v6122_v8  ;;  %v1609_v8 = vshrl.u32 %v6140_v41, 16  ;;  %v1285_v30 = vsel %vm666_vm0, %v1280_v60, %v1284_v24 }
 0x2bc   : > { %3275 = vmatmul.bf16.gmra.mxu3 %v5118_v11  ;;  %v5120_v11 = vld [vmem:[%s5277_s6 + $0x144] sm:$0xff]  }
 0x2bd   : > { %3404 = vmatmul.bf16.gmra.mxu0 %v1608_v34  ;;  %v3475_v44 = vmax.f32 %v3363_v17, 0.0  ;;  %v1611_v63 = vor.u32 %v1609_v8, %v1607_v40 }
 0x2be   : > { %v3107_v46 = vpop.f32.mrf.mxu2 }
 0x2bf   : > { %v4643_v28 = vpack.c.bf16 %v3475_v44, %v3474_v21  ;;  %v3236_v9 = vpop.f32.mrf.mxu3  ;;  %v3108_v38 = vadd.f32 %v3107_v46, %v2979_v6  ;;  %v1616_v27 = vsel %vm666_vm0, %v1611_v63, %v1615_v52  ;;  %v6166_v21 = vld [vmem:[%s5277_s6 + $0x7c] sm:$0xff]  }
 0x2c0   : > { %v2980_v18 = vpop.f32.mrf.mxu1 }
 0x2c1   : > { %5027 = vst [vmem:[%s6127_s24 + $0x10] sm:$0xff] %v4643_v28   ;;  %v3237_v31 = vadd.f32 %v3236_v9, %v3108_v38  ;;  %v2981_v15 = vadd.f32 %v2980_v18, %v5739_v51  ;;  %v1286_v9 = vshrl.u32 %v5196_v62, 16  ;;  %v5197_v18 = vld [vmem:[%s5277_s6 + $0x220] sm:$0xff] }
 0x2c2   : > { %v3367_v7 = vpop.f32.mrf.mxu0  ;;  %v1290_v0 = vshll.u32 %v5197_v18, 16 }
 0x2c3   : > { %v3366_v55 = vadd.f32 %v3365_v3, %v3237_v31  ;;  %v1288_v8 = vor.u32 %v1286_v9, %v1284_v24 }
 0x2c4   : > { %v1292_v10 = vrot.slane %v1290_v0, 1 }
 0x2c5   : > { %v3476_v51 = vmax.f32 %v3366_v55, 0.0 }
 0x2c6   : > { %v3109_v58 = vpop.f32.mrf.mxu2 }
 0x2c7   : > { %v3110_v19 = vadd.f32 %v3109_v58, %v2981_v15  ;;  %v3238_v42 = vpop.f32.mrf.mxu3 }
 0x2c8   : > { %v2983_v16 = vpop.f32.mrf.mxu1 }
 0x2c9   : > { %v3239_v50 = vadd.f32 %v3238_v42, %v3110_v19  ;;  %v2984_v3 = vadd.f32 %v2983_v16, %v5745_v47  ;;  %v1293_v42 = vsel %vm666_vm0, %v1288_v8, %v1292_v10  ;;  %v5122_v16 = vld [vmem:[%s5277_s6 + $0x14c] sm:$0xff]  }
 0x2ca   : > { %v3370_v34 = vpop.f32.mrf.mxu0 }
 0x2cb   : > { %v3368_v17 = vadd.f32 %v3367_v7, %v3239_v50  ;;  %3022 = vmatmul.bf16.gmra.mxu1 %v1285_v30  ;;  %3151 = vmatmul.bf16.gmra.mxu2 %v6140_v41  ;;  %v1617_v41 = vshrl.u32 %v6153_v54, 16  ;;  %v1621_v7 = vshll.u32 %v6166_v21, 16 }
 0x2cc   : > { %3280 = vmatmul.bf16.gmra.mxu3 %v5120_v11 }
 0x2cd   : > { %3409 = vmatmul.bf16.gmra.mxu0 %v1616_v27  ;;  %v3477_v40 = vmax.f32 %v3368_v17, 0.0  ;;  %v1619_v15 = vor.u32 %v1617_v41, %v1615_v52  ;;  %v1623_v47 = vrot.slane %v1621_v7, 1  ;;  %v6179_v27 = vld [vmem:[%s5277_s6 + $0x84] sm:$0xff]  }
 0x2ce   : > { %v3112_v44 = vpop.f32.mrf.mxu2  ;;  %v1629_v0 = vshll.u32 %v6179_v27, 16 }
 0x2cf   : > { %v4648_v46 = vpack.c.bf16 %v3477_v40, %v3476_v51  ;;  %v3241_v28 = vpop.f32.mrf.mxu3  ;;  %v3113_v12 = vadd.f32 %v3112_v44, %v2984_v3  ;;  %v1624_v24 = vsel %vm666_vm0, %v1619_v15, %v1623_v47  ;;  %v5198_v3 = vld [vmem:[%s5277_s6 + $0x228] sm:$0xff] }
 0x2d0   : > { %v2985_v6 = vpop.f32.mrf.mxu1 }
 0x2d1   : > { %5028 = vst [vmem:[%s6127_s24 + $0x18] sm:$0xff] %v4648_v46   ;;  %v3242_v60 = vadd.f32 %v3241_v28, %v3113_v12  ;;  %v2986_v31 = vadd.f32 %v2985_v6, %v5755_v53  ;;  %v1294_v46 = vshrl.u32 %v5197_v18, 16  ;;  %v1298_v28 = vshll.u32 %v5198_v3, 16 }
 0x2d2   : > { %v3372_v38 = vpop.f32.mrf.mxu0 }
 0x2d3   : > { %v3371_v30 = vadd.f32 %v3370_v34, %v3242_v60  ;;  %v1296_v12 = vor.u32 %v1294_v46, %v1292_v10 }
 0x2d5   : > { %v3478_v53 = vmax.f32 %v3371_v30, 0.0  ;;  %v6192_v30 = vld [vmem:[%s5277_s6 + $0x8c] sm:$0xff]  }
 0x2d6   : > { %v3114_v63 = vpop.f32.mrf.mxu2 }
 0x2d7   : > { %v3115_v58 = vadd.f32 %v3114_v63, %v2986_v31  ;;  %v3243_v62 = vpop.f32.mrf.mxu3 }
 0x2d8   : > { %v2988_v19 = vpop.f32.mrf.mxu1 }
 0x2d9   : > { %v3244_v11 = vadd.f32 %v3243_v62, %v3115_v58  ;;  %v2989_v34 = vadd.f32 %v2988_v19, %v5773_v25  ;;  %v1631_v25 = vrot.slane %v1629_v0, 1  ;;  %v5124_v58 = vld [vmem:[%s5277_s6 + $0x154] sm:$0xff]  }
 0x2da   : > { %v3375_v55 = vpop.f32.mrf.mxu0 }
 0x2db   : > { %v3373_v50 = vadd.f32 %v3372_v38, %v3244_v11  ;;  %3027 = vmatmul.bf16.gmra.mxu1 %v1293_v42  ;;  %3156 = vmatmul.bf16.gmra.mxu2 %v6153_v54  ;;  %v1625_v54 = vshrl.u32 %v6166_v21, 16  ;;  %v1300_v38 = vrot.slane %v1298_v28, 1 }
 0x2dc   : > { %3285 = vmatmul.bf16.gmra.mxu3 %v5122_v16 }
 0x2dd   : > { %3414 = vmatmul.bf16.gmra.mxu0 %v1624_v24  ;;  %v3479_v52 = vmax.f32 %v3373_v50, 0.0  ;;  %v1627_v8 = vor.u32 %v1625_v54, %v1623_v47  ;;  %v1301_v63 = vsel %vm666_vm0, %v1296_v12, %v1300_v38 }
 0x2de   : > { %v3117_v17 = vpop.f32.mrf.mxu2 }
 0x2df   : > { %v4653_v51 = vpack.c.bf16 %v3479_v52, %v3478_v53  ;;  %v3246_v40 = vpop.f32.mrf.mxu3  ;;  %v3118_v6 = vadd.f32 %v3117_v17, %v2989_v34  ;;  %v1632_v10 = vsel %vm666_vm0, %v1627_v8, %v1631_v25  ;;  %v1302_v52 = vshrl.u32 %v5198_v3, 16  ;;  %v5199_v17 = vld [vmem:[%s5277_s6 + $0x230] sm:$0xff]  ;;  %v5126_v8 = vld [vmem:[%s5277_s6 + $0x15c] sm:$0xff]  }
 0x2e0   : > { %v2990_v44 = vpop.f32.mrf.mxu1 }
 0x2e1   : > { %5029 = vst [vmem:[%s6127_s24 + $0x20] sm:$0xff] %v4653_v51   ;;  %v3247_v41 = vadd.f32 %v3246_v40, %v3118_v6  ;;  %v2991_v7 = vadd.f32 %v2990_v44, %v5782_v2  ;;  %v1306_v51 = vshll.u32 %v5199_v17, 16  ;;  %v1637_v44 = vshll.u32 %v6192_v30, 16 }
 0x2e2   : > { %v3377_v9 = vpop.f32.mrf.mxu0  ;;  %v1304_v46 = vor.u32 %v1302_v52, %v1300_v38 }
 0x2e3   : > { %v3376_v62 = vadd.f32 %v3375_v55, %v3247_v41  ;;  %v1308_v28 = vrot.slane %v1306_v51, 1 }
 0x2e5   : > { %v3480_v2 = vmax.f32 %v3376_v62, 0.0 }
 0x2e6   : > { %v3119_v60 = vpop.f32.mrf.mxu2 }
 0x2e7   : > { %v3120_v31 = vadd.f32 %v3119_v60, %v2991_v7  ;;  %v3248_v18 = vpop.f32.mrf.mxu3  ;;  %v1309_v7 = vsel %vm666_vm0, %v1304_v46, %v1308_v28 }
 0x2e8   : > { %v2993_v15 = vpop.f32.mrf.mxu1 }
 0x2e9   : > { %v3249_v19 = vadd.f32 %v3248_v18, %v3120_v31  ;;  %v2994_v55 = vadd.f32 %v2993_v15, %v5788_v43  ;;  %v1639_v43 = vrot.slane %v1637_v44, 1 }
 0x2ea   : > { %v3380_v42 = vpop.f32.mrf.mxu0 }
 0x2eb   : > { %v3378_v16 = vadd.f32 %v3377_v9, %v3249_v19  ;;  %3032 = vmatmul.bf16.gmra.mxu1 %v1301_v63  ;;  %3161 = vmatmul.bf16.gmra.mxu2 %v6166_v21  ;;  %v1633_v21 = vshrl.u32 %v6179_v27, 16  ;;  %v6205_v63 = vld [vmem:[%s5277_s6 + $0x94] sm:$0xff]  }
 0x2ec   : > { %3290 = vmatmul.bf16.gmra.mxu3 %v5124_v58 }
 0x2ed   : > { %3419 = vmatmul.bf16.gmra.mxu0 %v1632_v10  ;;  %v3481_v47 = vmax.f32 %v3378_v16, 0.0  ;;  %v1635_v54 = vor.u32 %v1633_v21, %v1631_v25  ;;  %v1310_v16 = vshrl.u32 %v5199_v17, 16 }
 0x2ee   : > { %v3122_v11 = vpop.f32.mrf.mxu2 }
 0x2ef   : > { %v4658_v24 = vpack.c.bf16 %v3481_v47, %v3480_v2  ;;  %v3251_v50 = vpop.f32.mrf.mxu3  ;;  %v3123_v34 = vadd.f32 %v3122_v11, %v2994_v55  ;;  %v1640_v38 = vsel %vm666_vm0, %v1635_v54, %v1639_v43  ;;  %v5200_v2 = vld [vmem:[%s5277_s6 + $0x238] sm:$0xff]  ;;  %v1645_v55 = vshll.u32 %v6205_v63, 16 }
 0x2f0   : > { %v2995_v53 = vpop.f32.mrf.mxu1  ;;  %v1314_v47 = vshll.u32 %v5200_v2, 16 }
 0x2f1   : > { %5030 = vst [vmem:[%s6127_s24 + $0x28] sm:$0xff] %v4658_v24   ;;  %v3252_v6 = vadd.f32 %v3251_v50, %v3123_v34  ;;  %v2996_v9 = vadd.f32 %v2995_v53, %v5799_v26  ;;  %v1312_v50 = vor.u32 %v1310_v16, %v1308_v28 }
 0x2f2   : > { %v3382_v40 = vpop.f32.mrf.mxu0  ;;  %v1316_v53 = vrot.slane %v1314_v47, 1 }
 0x2f3   : > { %v3381_v60 = vadd.f32 %v3380_v42, %v3252_v6  ;;  %v5128_v6 = vld [vmem:[%s5277_s6 + $0x164] sm:$0xff]  }
 0x2f4   : > { %v1317_v46 = vsel %vm666_vm0, %v1312_v50, %v1316_v53 }
 0x2f5   : > { %v3482_v26 = vmax.f32 %v3381_v60, 0.0 }
 0x2f6   : > { %v3124_v0 = vpop.f32.mrf.mxu2 }
 0x2f7   : > { %v3125_v12 = vadd.f32 %v3124_v0, %v2996_v9  ;;  %v3253_v3 = vpop.f32.mrf.mxu3 }
 0x2f8   : > { %v2998_v41 = vpop.f32.mrf.mxu1 }
 0x2f9   : > { %v3254_v31 = vadd.f32 %v3253_v3, %v3125_v12  ;;  %v2999_v19 = vadd.f32 %v2998_v41, %v5804_v5  ;;  %v1647_v5 = vrot.slane %v1645_v55, 1  ;;  %v6218_v3 = vld [vmem:[%s5277_s6 + $0x9c] sm:$0xff]   ;;  %v5130_v55 = vld [vmem:[%s5277_s6 + $0x16c] sm:$0xff]  }
 0x2fa   : > { %v3385_v18 = vpop.f32.mrf.mxu0 }
 0x2fb   : > { %v3383_v15 = vadd.f32 %v3382_v40, %v3254_v31  ;;  %3037 = vmatmul.bf16.gmra.mxu1 %v1309_v7  ;;  %3166 = vmatmul.bf16.gmra.mxu2 %v6179_v27  ;;  %v1641_v27 = vshrl.u32 %v6192_v30, 16 }
 0x2fc   : > { %3295 = vmatmul.bf16.gmra.mxu3 %v5126_v8 }
 0x2fd   : > { %3424 = vmatmul.bf16.gmra.mxu0 %v1640_v38  ;;  %v3483_v25 = vmax.f32 %v3383_v15, 0.0  ;;  %v1643_v34 = vor.u32 %v1641_v27, %v1639_v43  ;;  %v5201_v38 = vld [vmem:[%s5277_s6 + $0x240] sm:$0xff] }
 0x2fe   : > { %v3127_v58 = vpop.f32.mrf.mxu2  ;;  %v1322_v15 = vshll.u32 %v5201_v38, 16 }
 0x2ff   : > { %v4663_v62 = vpack.c.bf16 %v3483_v25, %v3482_v26  ;;  %v3256_v42 = vpop.f32.mrf.mxu3  ;;  %v3128_v11 = vadd.f32 %v3127_v58, %v2999_v19  ;;  %v1648_v28 = vsel %vm666_vm0, %v1643_v34, %v1647_v5  ;;  %v1653_v58 = vshll.u32 %v6218_v3, 16 }
 0x300   : > { %v3000_v10 = vpop.f32.mrf.mxu1  ;;  %v1324_v19 = vrot.slane %v1322_v15, 1 }
 0x301   : > { %5031 = vst [vmem:[%s6127_s24 + $0x30] sm:$0xff] %v4663_v62   ;;  %v3257_v52 = vadd.f32 %v3256_v42, %v3128_v11  ;;  %v3001_v51 = vadd.f32 %v3000_v10, %v5814_v57 }
 0x302   : > { %v3387_v24 = vpop.f32.mrf.mxu0 }
 0x303   : > { %v3386_v9 = vadd.f32 %v3385_v18, %v3257_v52  ;;  %v1318_v18 = vshrl.u32 %v5200_v2, 16 }
 0x305   : > { %v3484_v57 = vmax.f32 %v3386_v9, 0.0  ;;  %v1320_v62 = vor.u32 %v1318_v18, %v1316_v53  ;;  %v1326_v9 = vshrl.u32 %v5201_v38, 16 }
 0x306   : > { %v3129_v40 = vpop.f32.mrf.mxu2 }
 0x307   : > { %v3130_v21 = vadd.f32 %v3129_v40, %v3001_v51  ;;  %v3258_v17 = vpop.f32.mrf.mxu3  ;;  %v1325_v27 = vsel %vm666_vm0, %v1320_v62, %v1324_v19  ;;  %v6231_v40 = vld [vmem:[%s5277_s6 + $0xa4] sm:$0xff]  }
 0x308   : > { %v3003_v44 = vpop.f32.mrf.mxu1 }
 0x309   : > { %v3259_v54 = vadd.f32 %v3258_v17, %v3130_v21  ;;  %v3004_v8 = vadd.f32 %v3003_v44, %v5831_v37  ;;  %v1655_v37 = vrot.slane %v1653_v58, 1 }
 0x30a   : > { %v3390_v0 = vpop.f32.mrf.mxu0 }
 0x30b   : > { %v3388_v12 = vadd.f32 %v3387_v24, %v3259_v54  ;;  %3042 = vmatmul.bf16.gmra.mxu1 %v1317_v46  ;;  %3171 = vmatmul.bf16.gmra.mxu2 %v6192_v30  ;;  %v1649_v30 = vshrl.u32 %v6205_v63, 16  ;;  %v5202_v54 = vld [vmem:[%s5277_s6 + $0x248] sm:$0xff] }
 0x30c   : > { %3300 = vmatmul.bf16.gmra.mxu3 %v5128_v6 }
 0x30d   : > { %3429 = vmatmul.bf16.gmra.mxu0 %v1648_v28  ;;  %v3485_v43 = vmax.f32 %v3388_v12, 0.0  ;;  %v1651_v16 = vor.u32 %v1649_v30, %v1647_v5 }
 0x30e   : > { %v3132_v41 = vpop.f32.mrf.mxu2 }
 0x30f   : > { %v4668_v7 = vpack.c.bf16 %v3485_v43, %v3484_v57  ;;  %v3261_v60 = vpop.f32.mrf.mxu3  ;;  %v3133_v26 = vadd.f32 %v3132_v41, %v3004_v8  ;;  %v1656_v53 = vsel %vm666_vm0, %v1651_v16, %v1655_v37  ;;  %v1661_v57 = vshll.u32 %v6231_v40, 16  ;;  %v6244_v16 = vld [vmem:[%s5277_s6 + $0xac] sm:$0xff]  }
 0x310   : > { %v3005_v31 = vpop.f32.mrf.mxu1  ;;  %v1328_v43 = vor.u32 %v1326_v9, %v1324_v19 }
 0x311   : > { %5032 = vst [vmem:[%s6127_s24 + $0x38] sm:$0xff] %v4668_v7   ;;  %v3262_v42 = vadd.f32 %v3261_v60, %v3133_v26  ;;  %v3006_v10 = vadd.f32 %v3005_v31, %v5840_v14 }
 0x312   : > { %v3392_v25 = vpop.f32.mrf.mxu0 }
 0x313   : > { %v3391_v50 = vadd.f32 %v3390_v0, %v3262_v42  ;;  %v1330_v0 = vshll.u32 %v5202_v54, 16 }
 0x315   : > { %v3486_v14 = vmax.f32 %v3391_v50, 0.0  ;;  %v1332_v41 = vrot.slane %v1330_v0, 1  ;;  %v5134_v0 = vld [vmem:[%s5277_s6 + $0x17c] sm:$0xff]  }
 0x316   : > { %v3134_v47 = vpop.f32.mrf.mxu2 }
 0x317   : > { %v3135_v11 = vadd.f32 %v3134_v47, %v3006_v10  ;;  %v3263_v2 = vpop.f32.mrf.mxu3  ;;  %v1333_v26 = vsel %vm666_vm0, %v1328_v43, %v1332_v41 }
 0x318   : > { %v3008_v24 = vpop.f32.mrf.mxu1 }
 0x319   : > { %v3264_v52 = vadd.f32 %v3263_v2, %v3135_v11  ;;  %v3009_v44 = vadd.f32 %v3008_v24, %v5845_v56  ;;  %v1663_v56 = vrot.slane %v1661_v57, 1 }
 0x31a   : > { %v3395_v51 = vpop.f32.mrf.mxu0 }
 0x31b   : > { %v3393_v34 = vadd.f32 %v3392_v25, %v3264_v52  ;;  %3047 = vmatmul.bf16.gmra.mxu1 %v1325_v27  ;;  %3176 = vmatmul.bf16.gmra.mxu2 %v6205_v63  ;;  %v1657_v63 = vshrl.u32 %v6218_v3, 16  ;;  %v5132_v25 = vld [vmem:[%s5277_s6 + $0x174] sm:$0xff]   ;;  %v1334_v27 = vshrl.u32 %v5202_v54, 16 }
 0x31c   : > { %3305 = vmatmul.bf16.gmra.mxu3 %v5130_v55  ;;  %v5203_v55 = vld [vmem:[%s5277_s6 + $0x250] sm:$0xff] }
 0x31d   : > { %3434 = vmatmul.bf16.gmra.mxu0 %v1656_v53  ;;  %v3487_v5 = vmax.f32 %v3393_v34, 0.0  ;;  %v1659_v60 = vor.u32 %v1657_v63, %v1655_v37  ;;  %v1338_v50 = vshll.u32 %v5203_v55, 16  ;;  %v1669_v53 = vshll.u32 %v6244_v16, 16 }
 0x31e   : > { %v3137_v21 = vpop.f32.mrf.mxu2  ;;  %v1336_v34 = vor.u32 %v1334_v27, %v1332_v41  ;;  %v5136_v27 = vld [vmem:[%s5277_s6 + $0x184] sm:$0xff]  }
 0x31f   : > { %v4673_v17 = vpack.c.bf16 %v3487_v5, %v3486_v14  ;;  %v3266_v46 = vpop.f32.mrf.mxu3  ;;  %v3138_v28 = vadd.f32 %v3137_v21, %v3009_v44  ;;  %v1664_v19 = vsel %vm666_vm0, %v1659_v60, %v1663_v56  ;;  %v1340_v14 = vrot.slane %v1338_v50, 1 }
 0x320   : > { %v3010_v6 = vpop.f32.mrf.mxu1 }
 0x321   : > { %5033 = vst [vmem:[%s6127_s24 + $0x40] sm:$0xff] %v4673_v17   ;;  %v3267_v7 = vadd.f32 %v3266_v46, %v3138_v28  ;;  %v3011_v8 = vadd.f32 %v3010_v6, %v5856_v61  ;;  %v1341_v54 = vsel %vm666_vm0, %v1336_v34, %v1340_v14  ;;  %v6270_v34 = vld [vmem:[%s5277_s6 + $0xbc] sm:$0xff] }
 0x322   : > { %v3397_v12 = vpop.f32.mrf.mxu0 }
 0x323   : > { %v3396_v30 = vadd.f32 %v3395_v51, %v3267_v7  ;;  %v6257_v7 = vld [vmem:[%s5277_s6 + $0xb4] sm:$0xff]  }
 0x325   : > { %v3488_v61 = vmax.f32 %v3396_v30, 0.0 }
 0x326   : > { %v3139_v31 = vpop.f32.mrf.mxu2 }
 0x327   : > { %v3140_v18 = vadd.f32 %v3139_v31, %v3011_v8  ;;  %v3268_v38 = vpop.f32.mrf.mxu3 }
 0x328   : > { %v3013_v15 = vpop.f32.mrf.mxu1 }
 0x329   : > { %v3269_v58 = vadd.f32 %v3268_v38, %v3140_v18  ;;  %v3014_v11 = vadd.f32 %v3013_v15, %v5861_v48  ;;  %v1671_v48 = vrot.slane %v1669_v53, 1  ;;  %v1342_v38 = vshrl.u32 %v5203_v55, 16  ;;  %v5204_v15 = vld [vmem:[%s5277_s6 + $0x258] sm:$0xff] }
 0x32a   : > { %v3400_v62 = vpop.f32.mrf.mxu0 }
 0x32b   : > { %v3398_v42 = vadd.f32 %v3397_v12, %v3269_v58  ;;  %3052 = vmatmul.bf16.gmra.mxu1 %v1333_v26  ;;  %3181 = vmatmul.bf16.gmra.mxu2 %v6218_v3  ;;  %v1665_v3 = vshrl.u32 %v6231_v40, 16  ;;  %v1346_v26 = vshll.u32 %v5204_v15, 16  ;;  %v1677_v58 = vshll.u32 %v6257_v7, 16 }
 0x32c   : > { %3310 = vmatmul.bf16.gmra.mxu3 %v5132_v25 }
 0x32d   : > { %3439 = vmatmul.bf16.gmra.mxu0 %v1664_v19  ;;  %v3489_v10 = vmax.f32 %v3398_v42, 0.0  ;;  %v1667_v17 = vor.u32 %v1665_v3, %v1663_v56  ;;  %v1348_v19 = vrot.slane %v1346_v26, 1 }
 0x32e   : > { %v3142_v37 = vpop.f32.mrf.mxu2 }
 0x32f   : > { %v4678_v47 = vpack.c.bf16 %v3489_v10, %v3488_v61  ;;  %v3271_v2 = vpop.f32.mrf.mxu3  ;;  %v3143_v52 = vadd.f32 %v3142_v37, %v3014_v11  ;;  %v1672_v57 = vsel %vm666_vm0, %v1667_v17, %v1671_v48 }
 0x330   : > { %v3015_v24 = vpop.f32.mrf.mxu1 }
 0x331   : > { %5034 = vst [vmem:[%s6127_s24 + $0x48] sm:$0xff] %v4678_v47   ;;  %v3272_v5 = vadd.f32 %v3271_v2, %v3143_v52  ;;  %v3016_v21 = vadd.f32 %v3015_v24, %v5871_v22 }
 0x332   : > { %v3402_v51 = vpop.f32.mrf.mxu0 }
 0x333   : > { %v3401_v28 = vadd.f32 %v3400_v62, %v3272_v5  ;;  %v1344_v62 = vor.u32 %v1342_v38, %v1340_v14 }
 0x335   : > { %v3490_v22 = vmax.f32 %v3401_v28, 0.0  ;;  %v1349_v24 = vsel %vm666_vm0, %v1344_v62, %v1348_v19 }
 0x336   : > { %v3144_v44 = vpop.f32.mrf.mxu2 }
 0x337   : > { %v3145_v46 = vadd.f32 %v3144_v44, %v3016_v21  ;;  %v3273_v6 = vpop.f32.mrf.mxu3  ;;  %v1350_v44 = vshrl.u32 %v5204_v15, 16 }
 0x338   : > { %v3018_v9 = vpop.f32.mrf.mxu1 }
 0x339   : > { %v3274_v12 = vadd.f32 %v3273_v6, %v3145_v46  ;;  %v3019_v56 = vadd.f32 %v3018_v9, %v5891_v33  ;;  %v1679_v33 = vrot.slane %v1677_v58, 1  ;;  %v5205_v46 = vld [vmem:[%s5277_s6 + $0x260] sm:$0xff]  ;;  %v1352_v28 = vor.u32 %v1350_v44, %v1348_v19 }
 0x33a   : > { %v3405_v63 = vpop.f32.mrf.mxu0  ;;  %v1354_v6 = vshll.u32 %v5205_v46, 16 }
 0x33b   : > { %v3403_v43 = vadd.f32 %v3402_v51, %v3274_v12  ;;  %3057 = vmatmul.bf16.gmra.mxu1 %v1341_v54  ;;  %3186 = vmatmul.bf16.gmra.mxu2 %v6231_v40  ;;  %v1673_v40 = vshrl.u32 %v6244_v16, 16 }
 0x33c   : > { %3315 = vmatmul.bf16.gmra.mxu3 %v5134_v0  ;;  %v1685_v0 = vshll.u32 %v6270_v34, 16  ;;  %v1356_v12 = vrot.slane %v1354_v6, 1 }
 0x33d   : > { %3444 = vmatmul.bf16.gmra.mxu0 %v1672_v57  ;;  %v3491_v41 = vmax.f32 %v3403_v43, 0.0  ;;  %v1675_v10 = vor.u32 %v1673_v40, %v1671_v48  ;;  %v6283_v40 = vld [vmem:[%s5277_s6 + $0xc4] sm:$0xff] }
 0x33e   : > { %v3147_v8 = vpop.f32.mrf.mxu2 }
 0x33f   : > { %v4683_v60 = vpack.c.bf16 %v3491_v41, %v3490_v22  ;;  %v3276_v31 = vpop.f32.mrf.mxu3  ;;  %v3148_v25 = vadd.f32 %v3147_v8, %v3019_v56  ;;  %v1680_v51 = vsel %vm666_vm0, %v1675_v10, %v1679_v33  ;;  %v1357_v56 = vsel %vm666_vm0, %v1352_v28, %v1356_v12 }
 0x340   : > { %v3020_v18 = vpop.f32.mrf.mxu1  ;;  %v1358_v10 = vshrl.u32 %v5205_v46, 16 }
 0x341   : > { %5035 = vst [vmem:[%s6127_s24 + $0x50] sm:$0xff] %v4683_v60   ;;  %v3277_v42 = vadd.f32 %v3276_v31, %v3148_v25  ;;  %v3021_v61 = vadd.f32 %v3020_v18, %v5903_v36  ;;  %v5138_v31 = vld [vmem:[%s5277_s6 + $0x18c] sm:$0xff]  }
 0x342   : > { %v3407_v30 = vpop.f32.mrf.mxu0 }
 0x343   : > { %v3406_v55 = vadd.f32 %v3405_v63, %v3277_v42 }
 0x345   : > { %v3492_v36 = vmax.f32 %v3406_v55, 0.0 }
 0x346   : > { %v3149_v37 = vpop.f32.mrf.mxu2 }
 0x347   : > { %v3150_v47 = vadd.f32 %v3149_v37, %v3021_v61  ;;  %v3278_v11 = vpop.f32.mrf.mxu3 }
 0x348   : > { %v3023_v2 = vpop.f32.mrf.mxu1 }
 0x349   : > { %v3279_v50 = vadd.f32 %v3278_v11, %v3150_v47  ;;  %v3024_v21 = vadd.f32 %v3023_v2, %v5907_v39  ;;  %v1687_v39 = vrot.slane %v1685_v0, 1  ;;  %v1689_v11 = vshrl.u32 %v6270_v34, 16 }
 0x34a   : > { %v3410_v52 = vpop.f32.mrf.mxu0  ;;  %v1693_v2 = vshll.u32 %v6283_v40, 16 }
 0x34b   : > { %v3408_v3 = vadd.f32 %v3407_v30, %v3279_v50  ;;  %3062 = vmatmul.bf16.gmra.mxu1 %v1349_v24  ;;  %3191 = vmatmul.bf16.gmra.mxu2 %v6244_v16  ;;  %v1681_v16 = vshrl.u32 %v6257_v7, 16  ;;  %v1360_v24 = vor.u32 %v1358_v10, %v1356_v12  ;;  %v1691_v50 = vor.u32 %v1689_v11, %v1687_v39 }
 0x34c   : > { %3320 = vmatmul.bf16.gmra.mxu3 %v5136_v27 }
 0x34d   : > { %3449 = vmatmul.bf16.gmra.mxu0 %v1680_v51  ;;  %v3493_v53 = vmax.f32 %v3408_v3, 0.0  ;;  %v1683_v43 = vor.u32 %v1681_v16, %v1679_v33  ;;  %v5206_v33 = vld [vmem:[%s5277_s6 + $0x268] sm:$0xff]  ;;  %v3820_v51 = vld [vmem:[%s5277_s6 + $0x270] sm:$0x1] }
 0x34e   : > { %v3152_v14 = vpop.f32.mrf.mxu2  ;;  %v1362_v37 = vshll.u32 %v5206_v33, 16 }
 0x34f   : > { %v4688_v5 = vpack.c.bf16 %v3493_v53, %v3492_v36  ;;  %v3281_v17 = vpop.f32.mrf.mxu3  ;;  %v3153_v9 = vadd.f32 %v3152_v14, %v3024_v21  ;;  %v1688_v26 = vsel %vm666_vm0, %v1683_v43, %v1687_v39  ;;  %v374_v36 = vld [vmem:[%s5277_s6 + $0xcc] sm:$0x1] }
 0x350   : > { %v3025_v48 = vpop.f32.mrf.mxu1  ;;  %v1364_v27 = vrot.slane %v1362_v37, 1 }
 0x351   : > { %5036 = vst [vmem:[%s6127_s24 + $0x58] sm:$0xff] %v4688_v5   ;;  %v3282_v63 = vadd.f32 %v3281_v17, %v3153_v9  ;;  %v3026_v57 = vadd.f32 %v3025_v48, %v5915_v13  ;;  %v5140_v17 = vld [vmem:[%s5277_s6 + $0x194] sm:$0xff]  ;;  %v1176_v48 = vunpack.c.l.b16 %v3820_v51 }
 0x352   : > { %v3412_v54 = vpop.f32.mrf.mxu0  ;;  %v1365_v21 = vsel %vm666_vm0, %v1360_v24, %v1364_v27 }
 0x353   : > { %v3411_v18 = vadd.f32 %v3410_v52, %v3282_v63  ;;  %v1695_v52 = vrot.slane %v1693_v2, 1 }
 0x355   : > { %v3494_v13 = vmax.f32 %v3411_v18, 0.0  ;;  %v1696_v9 = vsel %vm666_vm0, %v1691_v50, %v1695_v52 }
 0x356   : > { %v3154_v22 = vpop.f32.mrf.mxu2 }
 0x357   : > { %v3155_v41 = vadd.f32 %v3154_v22, %v3026_v57  ;;  %v3283_v8 = vpop.f32.mrf.mxu3 }
 0x358   : > { %v3028_v60 = vpop.f32.mrf.mxu1 }
 0x359   : > { %v3284_v38 = vadd.f32 %v3283_v8, %v3155_v41  ;;  %v3029_v19 = vadd.f32 %v3028_v60, %v5919_v1  ;;  %v1366_v41 = vshrl.u32 %v5206_v33, 16 }
 0x35a   : > { %v3415_v15 = vpop.f32.mrf.mxu0 }
 0x35b   : > { %v3413_v25 = vadd.f32 %v3412_v54, %v3284_v38  ;;  %3067 = vmatmul.bf16.gmra.mxu1 %v1357_v56  ;;  %3196 = vmatmul.bf16.gmra.mxu2 %v6257_v7  ;;  %v1507_v54 = vunpack.c.l.b16 %v374_v36  ;;  %v1368_v18 = vor.u32 %v1366_v41, %v1364_v27 }
 0x35c   : > { %3325 = vmatmul.bf16.gmra.mxu3 %v5138_v31 }
 0x35d   : > { %3454 = vmatmul.bf16.gmra.mxu0 %v1688_v26  ;;  %v3495_v30 = vmax.f32 %v3413_v25, 0.0  ;;  %v1508_v12 = vpack.c.b16 %v1507_v54, %v1507_v54 }
 0x35e   : > { %v3157_v58 = vpop.f32.mrf.mxu2 }
 0x35f   : > { %v4693_v62 = vpack.c.bf16 %v3495_v30, %v3494_v13  ;;  %v3286_v42 = vpop.f32.mrf.mxu3  ;;  %v3158_v47 = vadd.f32 %v3157_v58, %v3029_v19  ;;  %v1701_v31 = vshll.u32 %v1508_v12, 16 }
 0x360   : > { %v3030_v61 = vpop.f32.mrf.mxu1 }
 0x361   : > { %5037 = vst [vmem:[%s6127_s24 + $0x60] sm:$0xff] %v4693_v62   ;;  %v3287_v55 = vadd.f32 %v3286_v42, %v3158_v47  ;;  %v3031_v1 = vadd.f32 %v3030_v61, %v5927_v32  ;;  %v1177_v32 = vpack.c.b16 %v1176_v48, %v1176_v48  ;;  %v1703_v13 = vrot.slane %v1701_v31, 1  ;;  %v4373_v42 = vld [vmem:[%s5277_s6 + $0x19c] sm:$0xff] }
 0x362   : > { %v3417_v7 = vpop.f32.mrf.mxu0 }
 0x363   : > { %v3416_v44 = vadd.f32 %v3415_v15, %v3287_v55  ;;  %v1370_v8 = vshll.u32 %v1177_v32, 16 }
 0x365   : > { %v3496_v0 = vmax.f32 %v3416_v44, 0.0  ;;  %v1372_v38 = vrot.slane %v1370_v8, 1 }
 0x366   : > { %v3159_v3 = vpop.f32.mrf.mxu2 }
 0x367   : > { %v3160_v53 = vadd.f32 %v3159_v3, %v3031_v1  ;;  %v3288_v14 = vpop.f32.mrf.mxu3  ;;  %v1373_v19 = vsel %vm666_vm0, %v1368_v18, %v1372_v38 }
 0x368   : > { %v3033_v5 = vpop.f32.mrf.mxu1 }
 0x369   : > { %v3289_v46 = vadd.f32 %v3288_v14, %v3160_v53  ;;  %v3034_v43 = vadd.f32 %v3033_v5, %v5932_v20 }
 0x36a   : > { %v3420_v6 = vpop.f32.mrf.mxu0 }
 0x36b   : > { %v3418_v16 = vadd.f32 %v3417_v7, %v3289_v46  ;;  %3072 = vmatmul.bf16.gmra.mxu1 %v1365_v21  ;;  %3201 = vmatmul.bf16.gmra.mxu2 %v6270_v34  ;;  %v1697_v34 = vshrl.u32 %v6283_v40, 16 }
 0x36c   : > { %3330 = vmatmul.bf16.gmra.mxu3 %v5140_v17 }
 0x36d   : > { %3459 = vmatmul.bf16.gmra.mxu0 %v1696_v9  ;;  %v3497_v28 = vmax.f32 %v3418_v16, 0.0  ;;  %v1699_v25 = vor.u32 %v1697_v34, %v1695_v52 }
 0x36e   : > { %v3162_v63 = vpop.f32.mrf.mxu2 }
 0x36f   : > { %v4698_v57 = vpack.c.bf16 %v3497_v28, %v3496_v0  ;;  %v3291_v39 = vpop.f32.mrf.mxu3  ;;  %v3163_v60 = vadd.f32 %v3162_v63, %v3034_v43  ;;  %v1704_v37 = vsel %vm666_vm0, %v1699_v25, %v1703_v13 }
 0x370   : > { %v3035_v22 = vpop.f32.mrf.mxu1 }
 0x371   : > { %5038 = vst [vmem:[%s6127_s24 + $0x68] sm:$0xff] %v4698_v57   ;;  %v3292_v15 = vadd.f32 %v3291_v39, %v3163_v60  ;;  %v3036_v26 = vadd.f32 %v3035_v22, %v5942_v49 }
 0x372   : > { %v3422_v56 = vpop.f32.mrf.mxu0 }
 0x373   : > { %v3421_v61 = vadd.f32 %v3420_v6, %v3292_v15 }
 0x375   : > { %v3498_v49 = vmax.f32 %v3421_v61, 0.0 }
 0x376   : > { %v3164_v30 = vpop.f32.mrf.mxu2 }
 0x377   : > { %v3165_v20 = vadd.f32 %v3164_v30, %v3036_v26  ;;  %v3293_v58 = vpop.f32.mrf.mxu3  ;;  %v6378_v26 = vld [vmem:[#allocation13_spill] sm:$0xff] }
 0x378   : > { %v3038_v62 = vpop.f32.mrf.mxu1 }
 0x379   : > { %v3294_v10 = vadd.f32 %v3293_v58, %v3165_v20  ;;  %v3039_v24 = vadd.f32 %v3038_v62, %v5952_v35 }
 0x37a   : > { %v3425_v33 = vpop.f32.mrf.mxu0 }
 0x37b   : > { %v3423_v47 = vadd.f32 %v3422_v56, %v3294_v10  ;;  %3077 = vmatmul.bf16.gmra.mxu1 %v1373_v19  ;;  %3206 = vmatmul.bf16.gmra.mxu2 %v6283_v40 }
 0x37c   : > { %3335 = vmatmul.bf16.gmra.mxu3 %v4373_v42 }
 0x37d   : > { %3464 = vmatmul.bf16.gmra.mxu0 %v1704_v37  ;;  %v3499_v7 = vmax.f32 %v3423_v47, 0.0  ;;  %v6379_v47 = vld [vmem:[#allocation2_spill] sm:$0xff] }
 0x37e   : > { %v3167_v11 = vpop.f32.mrf.mxu2 }
 0x37f   : > { %v4703_v2 = vpack.c.bf16 %v3499_v7, %v3498_v49  ;;  %v3296_v27 = vpop.f32.mrf.mxu3  ;;  %v3168_v1 = vadd.f32 %v3167_v11, %v3039_v24 }
 0x380   : > { %v3040_v55 = vpop.f32.mrf.mxu1 }
 0x381   : > { %5039 = vst [vmem:[%s6127_s24 + $0x70] sm:$0xff] %v4703_v2   ;;  %v3297_v52 = vadd.f32 %v3296_v27, %v3168_v1  ;;  %v3041_v51 = vadd.f32 %v3040_v55, %v5964_v59  ;;  %v6380_v55 = vld [vmem:[#allocation3_spill] sm:$0xff] }
 0x382   : > { %v3427_v50 = vpop.f32.mrf.mxu0 }
 0x383   : > { %v3426_v14 = vadd.f32 %v3425_v33, %v3297_v52 }
 0x385   : > { %v3500_v48 = vmax.f32 %v3426_v14, 0.0 }
 0x386   : > { %v3169_v3 = vpop.f32.mrf.mxu2 }
 0x387   : > { %v3170_v36 = vadd.f32 %v3169_v3, %v3041_v51  ;;  %v3298_v40 = vpop.f32.mrf.mxu3 }
 0x388   : > { %v3043_v53 = vpop.f32.mrf.mxu1 }
 0x389   : > { %v3299_v5 = vadd.f32 %v3298_v40, %v3170_v36  ;;  %v3044_v6 = vadd.f32 %v3043_v53, %v5974_v45 }
 0x38a   : > { %v3430_v21 = vpop.f32.mrf.mxu0 }
 0x38b   : > { %v3428_v17 = vadd.f32 %v3427_v50, %v3299_v5 }
 0x38d   : > { %v3501_v44 = vmax.f32 %v3428_v17, 0.0 }
 0x38e   : > { %v3172_v35 = vpop.f32.mrf.mxu2 }
 0x38f   : > { %v4708_v46 = vpack.c.bf16 %v3501_v44, %v3500_v48  ;;  %v3301_v9 = vpop.f32.mrf.mxu3  ;;  %v3173_v16 = vadd.f32 %v3172_v35, %v3044_v6  ;;  %v6381_v44 = vld [vmem:[#allocation4_spill] sm:$0xff] }
 0x390   : > { %v3045_v54 = vpop.f32.mrf.mxu1 }
 0x391   : > { %5040 = vst [vmem:[%s6127_s24 + $0x78] sm:$0xff] %v4708_v46   ;;  %v3302_v32 = vadd.f32 %v3301_v9, %v3173_v16  ;;  %v3046_v0 = vadd.f32 %v3045_v54, %v5982_v4 }
 0x392   : > { %v3432_v59 = vpop.f32.mrf.mxu0 }
 0x393   : > { %v3431_v43 = vadd.f32 %v3430_v21, %v3302_v32 }
 0x395   : > { %v3502_v8 = vmax.f32 %v3431_v43, 0.0 }
 0x396   : > { %v3174_v28 = vpop.f32.mrf.mxu2 }
 0x397   : > { %v3175_v12 = vadd.f32 %v3174_v28, %v3046_v0  ;;  %v3303_v63 = vpop.f32.mrf.mxu3 }
 0x398   : > { %v3048_v57 = vpop.f32.mrf.mxu1 }
 0x399   : > { %v3304_v39 = vadd.f32 %v3303_v63, %v3175_v12  ;;  %v3049_v34 = vadd.f32 %v3048_v57, %v5992_v23 }
 0x39a   : > { %v3435_v22 = vpop.f32.mrf.mxu0 }
 0x39b   : > { %v3433_v41 = vadd.f32 %v3432_v59, %v3304_v39  ;;  %v6382_v59 = vld [vmem:[#allocation5_spill] sm:$0xff] }
 0x39d   : > { %v3503_v60 = vmax.f32 %v3433_v41, 0.0 }
 0x39e   : > { %v3177_v45 = vpop.f32.mrf.mxu2 }
 0x39f   : > { %v4713_v56 = vpack.c.bf16 %v3503_v60, %v3502_v8  ;;  %v3306_v31 = vpop.f32.mrf.mxu3  ;;  %v3178_v38 = vadd.f32 %v3177_v45, %v3049_v34 }
 0x3a0   : > { %v3050_v18 = vpop.f32.mrf.mxu1 }
 0x3a1   : > { %5041 = vst [vmem:[%s6127_s24 + $0x80] sm:$0xff] %v4713_v56   ;;  %v3307_v15 = vadd.f32 %v3306_v31, %v3178_v38  ;;  %v3051_v25 = vadd.f32 %v3050_v18, %v6378_v26  ;;  %v6383_v56 = vld [vmem:[#allocation6_spill] sm:$0xff]  ;;  %v6384_v26 = vld [vmem:[#allocation7_spill] sm:$0xff] }
 0x3a2   : > { %v3437_v4 = vpop.f32.mrf.mxu0 }
 0x3a3   : > { %v3436_v62 = vadd.f32 %v3435_v22, %v3307_v15 }
 0x3a5   : > { %v3504_v10 = vmax.f32 %v3436_v62, 0.0 }
 0x3a6   : > { %v3179_v13 = vpop.f32.mrf.mxu2 }
 0x3a7   : > { %v3180_v30 = vadd.f32 %v3179_v13, %v3051_v25  ;;  %v3308_v20 = vpop.f32.mrf.mxu3 }
 0x3a8   : > { %v3053_v58 = vpop.f32.mrf.mxu1 }
 0x3a9   : > { %v3309_v19 = vadd.f32 %v3308_v20, %v3180_v30  ;;  %v3054_v49 = vadd.f32 %v3053_v58, %v6379_v47  ;;  %v6385_v47 = vld [vmem:[#allocation8_spill] sm:$0xff] }
 0x3aa   : > { %v3440_v42 = vpop.f32.mrf.mxu0 }
 0x3ab   : > { %v3438_v61 = vadd.f32 %v3437_v4, %v3309_v19 }
 0x3ad   : > { %v3505_v33 = vmax.f32 %v3438_v61, 0.0 }
 0x3ae   : > { %v3182_v23 = vpop.f32.mrf.mxu2 }
 0x3af   : > { %v4718_v37 = vpack.c.bf16 %v3505_v33, %v3504_v10  ;;  %v3311_v7 = vpop.f32.mrf.mxu3  ;;  %v3183_v2 = vadd.f32 %v3182_v23, %v3054_v49 }
 0x3b0   : > { %v3055_v11 = vpop.f32.mrf.mxu1 }
 0x3b1   : > { %5042 = vst [vmem:[%s6127_s24 + $0x88] sm:$0xff] %v4718_v37   ;;  %v3312_v27 = vadd.f32 %v3311_v7, %v3183_v2  ;;  %v3056_v1 = vadd.f32 %v3055_v11, %v6380_v55  ;;  %v6386_v55 = vld [vmem:[#allocation9_spill] sm:$0xff] }
 0x3b2   : > { %v3442_v24 = vpop.f32.mrf.mxu0 }
 0x3b3   : > { %v3441_v36 = vadd.f32 %v3440_v42, %v3312_v27 }
 0x3b5   : > { %v3506_v5 = vmax.f32 %v3441_v36, 0.0 }
 0x3b6   : > { %v3184_v50 = vpop.f32.mrf.mxu2 }
 0x3b7   : > { %v3185_v52 = vadd.f32 %v3184_v50, %v3056_v1  ;;  %v3313_v51 = vpop.f32.mrf.mxu3 }
 0x3b8   : > { %v3058_v3 = vpop.f32.mrf.mxu1 }
 0x3b9   : > { %v3314_v40 = vadd.f32 %v3313_v51, %v3185_v52  ;;  %v3059_v35 = vadd.f32 %v3058_v3, %v6381_v44 }
 0x3ba   : > { %v3445_v53 = vpop.f32.mrf.mxu0 }
 0x3bb   : > { %v3443_v14 = vadd.f32 %v3442_v24, %v3314_v40 }
 0x3bd   : > { %v3507_v21 = vmax.f32 %v3443_v14, 0.0 }
 0x3be   : > { %v3187_v17 = vpop.f32.mrf.mxu2 }
 0x3bf   : > { %v4723_v48 = vpack.c.bf16 %v3507_v21, %v3506_v5  ;;  %v3316_v46 = vpop.f32.mrf.mxu3  ;;  %v3188_v9 = vadd.f32 %v3187_v17, %v3059_v35 }
 0x3c0   : > { %v3060_v6 = vpop.f32.mrf.mxu1 }
 0x3c1   : > { %5043 = vst [vmem:[%s6127_s24 + $0x90] sm:$0xff] %v4723_v48   ;;  %v3317_v16 = vadd.f32 %v3316_v46, %v3188_v9  ;;  %v3061_v32 = vadd.f32 %v3060_v6, %v6382_v59 }
 0x3c2   : > { %v3447_v54 = vpop.f32.mrf.mxu0 }
 0x3c3   : > { %v3446_v57 = vadd.f32 %v3445_v53, %v3317_v16 }
 0x3c5   : > { %v3508_v41 = vmax.f32 %v3446_v57, 0.0 }
 0x3c6   : > { %v3189_v0 = vpop.f32.mrf.mxu2 }
 0x3c7   : > { %v3190_v28 = vadd.f32 %v3189_v0, %v3061_v32  ;;  %v3318_v12 = vpop.f32.mrf.mxu3 }
 0x3c8   : > { %v3063_v63 = vpop.f32.mrf.mxu1 }
 0x3c9   : > { %v3319_v43 = vadd.f32 %v3318_v12, %v3190_v28  ;;  %v3064_v34 = vadd.f32 %v3063_v63, %v6383_v56 }
 0x3ca   : > { %v3450_v39 = vpop.f32.mrf.mxu0 }
 0x3cb   : > { %v3448_v22 = vadd.f32 %v3447_v54, %v3319_v43  ;;  %v6387_v54 = vld [vmem:[#allocation10_spill] sm:$0xff] }
 0x3cd   : > { %v3509_v8 = vmax.f32 %v3448_v22, 0.0 }
 0x3ce   : > { %v3192_v60 = vpop.f32.mrf.mxu2 }
 0x3cf   : > { %v4728_v45 = vpack.c.bf16 %v3509_v8, %v3508_v41  ;;  %v3321_v31 = vpop.f32.mrf.mxu3  ;;  %v3193_v38 = vadd.f32 %v3192_v60, %v3064_v34  ;;  %v6388_v8 = vld [vmem:[#allocation11_spill] sm:$0xff] }
 0x3d0   : > { %v3065_v18 = vpop.f32.mrf.mxu1 }
 0x3d1   : > { %5044 = vst [vmem:[%s6127_s24 + $0x98] sm:$0xff] %v4728_v45   ;;  %v3322_v15 = vadd.f32 %v3321_v31, %v3193_v38  ;;  %v3066_v25 = vadd.f32 %v3065_v18, %v6384_v26  ;;  %v6389_v38 = vld [vmem:[#allocation12_spill] sm:$0xff] }
 0x3d2   : > { %v3452_v4 = vpop.f32.mrf.mxu0 }
 0x3d3   : > { %v3451_v62 = vadd.f32 %v3450_v39, %v3322_v15 }
 0x3d5   : > { %v3510_v10 = vmax.f32 %v3451_v62, 0.0 }
 0x3d6   : > { %v3194_v13 = vpop.f32.mrf.mxu2 }
 0x3d7   : > { %v3195_v30 = vadd.f32 %v3194_v13, %v3066_v25  ;;  %v3323_v20 = vpop.f32.mrf.mxu3 }
 0x3d8   : > { %v3068_v58 = vpop.f32.mrf.mxu1 }
 0x3d9   : > { %v3324_v19 = vadd.f32 %v3323_v20, %v3195_v30  ;;  %v3069_v49 = vadd.f32 %v3068_v58, %v6385_v47 }
 0x3da   : > { %v3455_v42 = vpop.f32.mrf.mxu0 }
 0x3db   : > { %v3453_v61 = vadd.f32 %v3452_v4, %v3324_v19 }
 0x3dd   : > { %v3511_v33 = vmax.f32 %v3453_v61, 0.0 }
 0x3de   : > { %v3197_v23 = vpop.f32.mrf.mxu2 }
 0x3df   : > { %v4733_v37 = vpack.c.bf16 %v3511_v33, %v3510_v10  ;;  %v3326_v7 = vpop.f32.mrf.mxu3  ;;  %v3198_v2 = vadd.f32 %v3197_v23, %v3069_v49 }
 0x3e0   : > { %v3070_v11 = vpop.f32.mrf.mxu1 }
 0x3e1   : > { %5045 = vst [vmem:[%s6127_s24 + $0xa0] sm:$0xff] %v4733_v37   ;;  %v3327_v27 = vadd.f32 %v3326_v7, %v3198_v2  ;;  %v3071_v1 = vadd.f32 %v3070_v11, %v6386_v55 }
 0x3e2   : > { %v3457_v24 = vpop.f32.mrf.mxu0 }
 0x3e3   : > { %v3456_v36 = vadd.f32 %v3455_v42, %v3327_v27 }
 0x3e5   : > { %v3512_v5 = vmax.f32 %v3456_v36, 0.0 }
 0x3e6   : > { %v3199_v50 = vpop.f32.mrf.mxu2 }
 0x3e7   : > { %v3200_v52 = vadd.f32 %v3199_v50, %v3071_v1  ;;  %v3328_v51 = vpop.f32.mrf.mxu3 }
 0x3e8   : > { %v3073_v3 = vpop.f32.mrf.mxu1 }
 0x3e9   : > { %v3329_v40 = vadd.f32 %v3328_v51, %v3200_v52  ;;  %v3074_v44 = vadd.f32 %v3073_v3, %v6082_v29 }
 0x3ea   : > { %v3460_v14 = vpop.f32.mrf.mxu0 }
 0x3eb   : > { %v3458_v53 = vadd.f32 %v3457_v24, %v3329_v40 }
 0x3ed   : > { %v3513_v21 = vmax.f32 %v3458_v53, 0.0 }
 0x3ee   : > { %v3202_v17 = vpop.f32.mrf.mxu2 }
 0x3ef   : > { %v4738_v48 = vpack.c.bf16 %v3513_v21, %v3512_v5  ;;  %v3331_v35 = vpop.f32.mrf.mxu3  ;;  %v3203_v6 = vadd.f32 %v3202_v17, %v3074_v44 }
 0x3f0   : > { %v3075_v46 = vpop.f32.mrf.mxu1 }
 0x3f1   : > { %5046 = vst [vmem:[%s6127_s24 + $0xa8] sm:$0xff] %v4738_v48   ;;  %v3332_v9 = vadd.f32 %v3331_v35, %v3203_v6  ;;  %v3076_v16 = vadd.f32 %v3075_v46, %v6387_v54 }
 0x3f2   : > { %v3462_v59 = vpop.f32.mrf.mxu0 }
 0x3f3   : > { %v3461_v63 = vadd.f32 %v3460_v14, %v3332_v9 }
 0x3f5   : > { %v3514_v39 = vmax.f32 %v3461_v63, 0.0 }
 0x3f6   : > { %v3204_v32 = vpop.f32.mrf.mxu2 }
 0x3f7   : > { %v3205_v0 = vadd.f32 %v3204_v32, %v3076_v16  ;;  %v3333_v28 = vpop.f32.mrf.mxu3 }
 0x3f8   : > { %v3078_v12 = vpop.f32.mrf.mxu1 }
 0x3f9   : > { %v3334_v57 = vadd.f32 %v3333_v28, %v3205_v0  ;;  %v3079_v60 = vadd.f32 %v3078_v12, %v6388_v8 }
 0x3fa   : > { %v3465_v56 = vpop.f32.mrf.mxu0 }
 0x3fb   : > { %v3463_v43 = vadd.f32 %v3462_v59, %v3334_v57 }
 0x3fd   : > { %v3515_v22 = vmax.f32 %v3463_v43, 0.0 }
 0x3fe   : > { %v3207_v41 = vpop.f32.mrf.mxu2 }
 0x3ff   : > { %v4743_v29 = vpack.c.bf16 %v3515_v22, %v3514_v39  ;;  %v3336_v45 = vpop.f32.mrf.mxu3  ;;  %v3208_v34 = vadd.f32 %v3207_v41, %v3079_v60 }
 0x400   : > { %v3080_v31 = vpop.f32.mrf.mxu1 }
 0x401   : > { %5047 = vst [vmem:[%s6127_s24 + $0xb0] sm:$0xff] %v4743_v29   ;;  %v3337_v18 = vadd.f32 %v3336_v45, %v3208_v34  ;;  %v3081_v4 = vadd.f32 %v3080_v31, %v6389_v38 }
 0x402   : > { %v3467_v20 = vpop.f32.mrf.mxu0 }
 0x403   : > { %v3466_v13 = vadd.f32 %v3465_v56, %v3337_v18 }
 0x405   : > { %v3516_v62 = vmax.f32 %v3466_v13, 0.0 }
 0x406   : > { %v3209_v15 = vpop.f32.mrf.mxu2 }
 0x407   : > { %v3210_v26 = vadd.f32 %v3209_v15, %v3081_v4  ;;  %v3338_v25 = vpop.f32.mrf.mxu3 }
 0x409   : > { %v3339_v30 = vadd.f32 %v3338_v25, %v3210_v26 }
 0x40b   : > { %v3468_v58 = vadd.f32 %v3467_v20, %v3339_v30 }
 0x40d   : > { %v3517_v19 = vmax.f32 %v3468_v58, 0.0 }
 0x40f   : > { %v4748_v42 = vpack.c.bf16 %v3517_v19, %v3516_v62 }
 0x411   : > { %5048 = vst [vmem:[%s6127_s24 + $0xb8] sm:$0xff] %v4748_v42  }
 0x412 PF: > { %s13_s12 = sadd.s32 1, %s5213_s12  }
 0x413   : > { %p10_p4 = scmp.ge.s32.totalorder %s13_s12, 4  }
 0x415   :  { %12 = sbr.rel (!%p10_p4) target bundleno = 1 (0x1), region = 65 }

// kernel: generalized_rcnn_forward.8
= control target key start
LH: loop header
LB: loop body
LE: loop exit
PB: predicated region body
PF: predicated region fallthrough
CT: control target
= control target key end

     0   :  { %s3954_s12 = smov 0   ;;  %s5169_s0 = inlined_call_operand.vmem [shape: bf16[2,1,456,128], index: 0, kind: input, shape index: {}]   ;;  %s5170_s1 = inlined_call_operand.vmem [shape: bf16[1152,128], index: 1, kind: input, shape index: {}]   ;;  %s5171_s2 = inlined_call_operand.vmem [shape: f32[1,128], index: 2, kind: input, shape index: {}]   ;;  %s5172_s3 = inlined_call_operand.vmem [shape: bf16[2,384,128], index: 3, kind: output, shape index: {}]  }
   0x1 LB: > { %s3035_s13 = sadd.s32 4294967295, %s3932_s12   ;;  %p3039_p0 = scmp.ge.s32.totalorder %s3932_s12, 1  ;;  %s3932_s12 = sphi %s3954_s12, %s13_s12  }
   0x2   : > { %p137_p1 = scmp.lt.s32.totalorder %s3932_s12, 3 }
   0x4   : > { %p138_p2 = pnand %p3039_p0, %p137_p1 }
   0x6   : > { %141 = sbr.rel (%p138_p2) target bundleno = 1042 (0x412), region = 32 }
   0xb   : > { %v3344_v0 = vld [vmem:[%s5170_s1 + $0x38] sm:$0xff]  ;;  %v3343_v1 = vld [vmem:[%s5170_s1 + $0x30] sm:$0xff]  ;;  %v3342_v2 = vld [vmem:[%s5170_s1 + $0x28] sm:$0xff]  ;;  %p161_p3 = scmp.lt.s32.totalorder %s3035_s13, 1  ;;  %vm378_vm0 = vsmask.f32 7424 }
   0xc   : > { %3834 = vmatpush.bf16.msra.mxu1 %v3344_v0  ;;  %3835 = vmatpush.bf16.msra.mxu2 %v3344_v0  ;;  %v3341_v3 = vld [vmem:[%s5170_s1 + $0x20] sm:$0xff]  ;;  %v3340_v4 = vld [vmem:[%s5170_s1 + $0x18] sm:$0xff]  ;;  %v3339_v5 = vld [vmem:[%s5170_s1 + $0x10] sm:$0xff]  ;;  %vm602_vm1 = vcmask 1046528  }
   0xd   : > { %3836 = vmatpush.bf16.msra.mxu3 %v3344_v0  ;;  %1675 = vmatpush.bf16.msra.mxu0 %v3344_v0  ;;  %s5319_s13 = smov (!%p161_p3, %s3035_s13), 1  ;;  %v3338_v6 = vld [vmem:[%s5170_s1 + $0x8] sm:$0xff]  ;;  %v3337_v7 = vld [vmem:[%s5170_s1] sm:$0xff]  ;;  %v3360_v8 = vld [vmem:[%s5170_s1 + $0xb8] sm:$0xff] }
   0xe   : > { %s3862_s28 = smul.u32 228, %s5319_s13  ;;  %v3368_v9 = vld [vmem:[%s5170_s1 + $0xf8] sm:$0xff]  ;;  %v3359_v16 = vld [vmem:[%s5170_s1 + $0xb0] sm:$0xff]  ;;  %v3358_v20 = vld [vmem:[%s5170_s1 + $0xa8] sm:$0xff] }
   0xf   : > { %v3352_v12 = vld [vmem:[%s5170_s1 + $0x78] sm:$0xff]  ;;  %v3367_v17 = vld [vmem:[%s5170_s1 + $0xf0] sm:$0xff]  ;;  %v3366_v21 = vld [vmem:[%s5170_s1 + $0xe8] sm:$0xff]  ;;  %s3863_s21 = smul.u32 192, %s5319_s13 }
  0x10   : > { %3837 = vmatpush.bf16.msra.mxu1 %v3343_v1  ;;  %3838 = vmatpush.bf16.msra.mxu2 %v3343_v1  ;;  %s3996_s6 = scalar_lea.vmem %s5169_s0, %s3862_s28  ;;  %v3376_v15 = vld [vmem:[%s5170_s1 + $0x138] sm:$0xff]  ;;  %v3351_v18 = vld [vmem:[%s5170_s1 + $0x70] sm:$0xff]  ;;  %v3350_v22 = vld [vmem:[%s5170_s1 + $0x68] sm:$0xff] }
  0x11   : > { %3839 = vmatpush.bf16.msra.mxu3 %v3343_v1  ;;  %1676 = vmatpush.bf16.msra.mxu0 %v3343_v1  ;;  %v4005_v10 = vld [vmem:[%s3996_s6 + $0x30] sm:$0xff]   ;;  %v4008_v11 = vld [vmem:[%s3996_s6 + $0x60] sm:$0xff]   ;;  %v3374_v23 = vld [vmem:[%s5170_s1 + $0x128] sm:$0xff]  ;;  %s5009_s24 = scalar_lea.vmem %s5172_s3, %s3863_s21 }
  0x12   : > { %v3650_v13 = vld [vmem:[%s3996_s6 + $0x90] sm:$0xff]   ;;  %v4015_v14 = vld [vmem:[%s3996_s6] sm:$0xff]   ;;  %v4060_v28 = vld [vmem:[%s3996_s6 + $0x38] sm:$0xff]  }
  0x13   : > { %v3375_v19 = vld [vmem:[%s5170_s1 + $0x130] sm:$0xff]  ;;  %v3357_v24 = vld [vmem:[%s5170_s1 + $0xa0] sm:$0xff]  ;;  %v4063_v29 = vld [vmem:[%s3996_s6 + $0x68] sm:$0xff]   ;;  %v382_v47 = vshll.u32 %v4015_v14, 16  ;;  %v380_v48 = vshrl.u32 %v4015_v14, 16 }
  0x14   : > { %3840 = vmatpush.bf16.msra.mxu1 %v3342_v2  ;;  %3841 = vmatpush.bf16.msra.mxu2 %v3342_v2  ;;  %v3365_v25 = vld [vmem:[%s5170_s1 + $0xe0] sm:$0xff]  ;;  %v3651_v30 = vld [vmem:[%s3996_s6 + $0x98] sm:$0xff]   ;;  %v4067_v31 = vld [vmem:[%s3996_s6 + $0x8] sm:$0xff]  }
  0x15   : > { %3842 = vmatpush.bf16.msra.mxu3 %v3342_v2  ;;  %1677 = vmatpush.bf16.msra.mxu0 %v3342_v2  ;;  %v3349_v26 = vld [vmem:[%s5170_s1 + $0x60] sm:$0xff]  ;;  %v3356_v32 = vld [vmem:[%s5170_s1 + $0x98] sm:$0xff]  ;;  %v3355_v36 = vld [vmem:[%s5170_s1 + $0x90] sm:$0xff]  ;;  %v384_v49 = vrot.slane %v382_v47, 1  ;;  %v387_v57 = vshll.u32 %v4067_v31, 16 }
  0x16   : > { %v3373_v27 = vld [vmem:[%s5170_s1 + $0x120] sm:$0xff]  ;;  %v3364_v33 = vld [vmem:[%s5170_s1 + $0xd8] sm:$0xff]  ;;  %v3363_v37 = vld [vmem:[%s5170_s1 + $0xd0] sm:$0xff] }
  0x17   : > { %v3348_v34 = vld [vmem:[%s5170_s1 + $0x58] sm:$0xff]  ;;  %v4091_v38 = vld [vmem:[%s3996_s6 + $0x40] sm:$0xff]   ;;  %v4094_v39 = vld [vmem:[%s3996_s6 + $0x70] sm:$0xff]   ;;  %v385_v54 = vor.u32 %v384_v49, %v380_v48  ;;  %v389_v61 = vrot.slane %v387_v57, 1 }
  0x18   : > { %3843 = vmatpush.bf16.msra.mxu1 %v3341_v3  ;;  %3844 = vmatpush.bf16.msra.mxu2 %v3341_v3  ;;  %v3372_v35 = vld [vmem:[%s5170_s1 + $0x118] sm:$0xff]  ;;  %v3652_v40 = vld [vmem:[%s3996_s6 + $0xa0] sm:$0xff]   ;;  %v4098_v41 = vld [vmem:[%s3996_s6 + $0x10] sm:$0xff]  }
  0x19   : > { %3845 = vmatpush.bf16.msra.mxu3 %v3341_v3  ;;  %1678 = vmatpush.bf16.msra.mxu0 %v3341_v3  ;;  %5190 = vst [vmem:[#allocation2_spill] sm:$0xff] %v4098_v41  ;;  %v3347_v42 = vld [vmem:[%s5170_s1 + $0x50] sm:$0xff]  ;;  %v3354_v44 = vld [vmem:[%s5170_s1 + $0x88] sm:$0xff]  ;;  %v4124_v51 = vld [vmem:[%s3996_s6 + $0x78] sm:$0xff]   ;;  %v390_v62 = vsel %vm378_vm0, %v385_v54, %v389_v61 }
  0x1a   : > { %v3371_v43 = vld [vmem:[%s5170_s1 + $0x110] sm:$0xff]  ;;  %v3362_v45 = vld [vmem:[%s5170_s1 + $0xc8] sm:$0xff]  ;;  %v4128_v53 = vld [vmem:[%s3996_s6 + $0x18] sm:$0xff]  }
  0x1b   : > { %v3346_v46 = vld [vmem:[%s5170_s1 + $0x48] sm:$0xff]  ;;  %5191 = vst [vmem:[#allocation3_spill] sm:$0xff] %v4128_v53  ;;  %v3353_v56 = vld [vmem:[%s5170_s1 + $0x80] sm:$0xff]  ;;  %v4151_v63 = vld [vmem:[%s3996_s6 + $0x50] sm:$0xff]   ;;  %v403_v57 = vshll.u32 %v4128_v53, 16 }
  0x1c   : > { %3846 = vmatpush.bf16.msra.mxu1 %v3340_v4  ;;  %3847 = vmatpush.bf16.msra.mxu2 %v3340_v4  ;;  %v4121_v50 = vld [vmem:[%s3996_s6 + $0x48] sm:$0xff]   ;;  %v3361_v58 = vld [vmem:[%s5170_s1 + $0xc0] sm:$0xff]  ;;  %v3654_v1 = vld [vmem:[%s3996_s6 + $0xb0] sm:$0xff]  }
  0x1d   : > { %3848 = vmatpush.bf16.msra.mxu3 %v3340_v4  ;;  %1679 = vmatpush.bf16.msra.mxu0 %v3340_v4  ;;  %v3653_v52 = vld [vmem:[%s3996_s6 + $0xa8] sm:$0xff]   ;;  %v3345_v59 = vld [vmem:[%s5170_s1 + $0x40] sm:$0xff]  ;;  %v3392_v3 = vld [vmem:[%s5170_s1 + $0x1b8] sm:$0xff] }
  0x1e   : > { %v3370_v55 = vld [vmem:[%s5170_s1 + $0x108] sm:$0xff]  ;;  %v3369_v60 = vld [vmem:[%s5170_s1 + $0x100] sm:$0xff]  ;;  %v3400_v4 = vld [vmem:[%s5170_s1 + $0x1f8] sm:$0xff] }
  0x1f   : > { %v4154_v0 = vld [vmem:[%s3996_s6 + $0x80] sm:$0xff]   ;;  %v3399_v54 = vld [vmem:[%s5170_s1 + $0x1f0] sm:$0xff] }
  0x20   : > { %3849 = vmatpush.bf16.msra.mxu1 %v3339_v5  ;;  %3850 = vmatpush.bf16.msra.mxu2 %v3339_v5  ;;  %v4158_v2 = vld [vmem:[%s3996_s6 + $0x20] sm:$0xff]  }
  0x21   : > { %3851 = vmatpush.bf16.msra.mxu3 %v3339_v5  ;;  %1680 = vmatpush.bf16.msra.mxu0 %v3339_v5  ;;  %v3384_v5 = vld [vmem:[%s5170_s1 + $0x178] sm:$0xff] }
  0x24   : > { %3852 = vmatpush.bf16.msra.mxu1 %v3338_v6  ;;  %3853 = vmatpush.bf16.msra.mxu2 %v3338_v6 }
  0x25   : > { %3854 = vmatpush.bf16.msra.mxu3 %v3338_v6  ;;  %1681 = vmatpush.bf16.msra.mxu0 %v3338_v6  ;;  %v391_v6 = vshrl.u32 %v4067_v31, 16 }
  0x28   : > { %3855 = vmatpush.bf16.msra.mxu1 %v3337_v7  ;;  %3856 = vmatpush.bf16.msra.mxu2 %v3337_v7 }
  0x29   : > { %3857 = vmatpush.bf16.msra.mxu3 %v3337_v7  ;;  %1682 = vmatpush.bf16.msra.mxu0 %v3337_v7  ;;  %v395_v7 = vshll.u32 %v4098_v41, 16 }
  0x2b   : > { %1713 = vmatmul.bf16.vlgmr.msra.gmra.mxu1 %v4005_v10  ;;  %1743 = vmatmul.bf16.vlgmr.msra.gmra.mxu2 %v4008_v11 }
  0x2c   : > { %1933 = vmatpush.bf16.msrb.mxu2 %v3360_v8  ;;  %1773 = vmatmul.bf16.vlgmr.msra.gmra.mxu3 %v3650_v13  ;;  %v3408_v8 = vld [vmem:[%s5170_s1 + $0x238] sm:$0xff] }
  0x2d   : > { %2062 = vmatpush.bf16.msrb.mxu3 %v3368_v9  ;;  %1683 = vmatmul.bf16.vlgmr.msra.gmra.mxu0 %v4015_v14  ;;  %v393_v9 = vor.u32 %v391_v6, %v389_v61  ;;  %v3416_v14 = vunpack.c.h.b16 %v4067_v31  ;;  %v3407_v61 = vld [vmem:[%s5170_s1 + $0x230] sm:$0xff] }
  0x2e   : > { %1804 = vmatpush.bf16.msrb.mxu1 %v3352_v12  ;;  %2191 = vmatpush.bf16.msrb.mxu0 %v3376_v15  ;;  %v397_v12 = vrot.slane %v395_v7, 1  ;;  %v5174_v15 = vunpack.c.l.b16 %v4098_v41 }
  0x30   : > { %1934 = vmatpush.bf16.msrb.mxu2 %v3359_v16  ;;  %v398_v13 = vsel %vm378_vm0, %v393_v9, %v397_v12  ;;  %v4181_v16 = vld [vmem:[%s3996_s6 + $0x58] sm:$0xff]  }
  0x31   : > { %2063 = vmatpush.bf16.msrb.mxu3 %v3367_v17  ;;  %v4184_v17 = vld [vmem:[%s3996_s6 + $0x88] sm:$0xff]  }
  0x32   : > { %1805 = vmatpush.bf16.msrb.mxu1 %v3351_v18  ;;  %2192 = vmatpush.bf16.msrb.mxu0 %v3375_v19  ;;  %v3655_v18 = vld [vmem:[%s3996_s6 + $0xb8] sm:$0xff]   ;;  %v4188_v19 = vld [vmem:[%s3996_s6 + $0x28] sm:$0xff]  }
  0x34   : > { %1935 = vmatpush.bf16.msrb.mxu2 %v3358_v20  ;;  %v604_v20 = vrot.slane %v4067_v31, 1 }
  0x35   : > { %2064 = vmatpush.bf16.msrb.mxu3 %v3366_v21  ;;  %v682_v21 = vpack.c.b16 %v5174_v15, %v3416_v14 }
  0x36   : > { %1806 = vmatpush.bf16.msrb.mxu1 %v3350_v22  ;;  %2193 = vmatpush.bf16.msrb.mxu0 %v3374_v23  ;;  %v606_v22 = vrot.slane %v4098_v41, 1 }
  0x38   : > { %1936 = vmatpush.bf16.msrb.mxu2 %v3357_v24  ;;  %v607_v23 = vsel %vm602_vm1, %v604_v20, %v606_v22  ;;  %v3658_v24 = vld [vmem:[%s3996_s6] sm:$0xf0] }
  0x39   : > { %2065 = vmatpush.bf16.msrb.mxu3 %v3365_v25  ;;  %v3659_v25 = vld [vmem:[%s3996_s6] sm:$0xe] }
  0x3a   : > { %1807 = vmatpush.bf16.msrb.mxu1 %v3349_v26  ;;  %2194 = vmatpush.bf16.msrb.mxu0 %v3373_v27  ;;  %v736_v26 = vshll.u32 %v682_v21, 16  ;;  %v3785_v27 = vld [vmem:[%s3996_s6 + $0x14] sm:$0xff]  }
  0x3b   : > { %1718 = vmatmul.bf16.gmra.mxu1 %v4060_v28  ;;  %1748 = vmatmul.bf16.gmra.mxu2 %v4063_v29 }
  0x3c   : > { %1778 = vmatmul.bf16.gmra.mxu3 %v3651_v30  ;;  %1937 = vmatpush.bf16.msrb.mxu2 %v3356_v32  ;;  %v3660_v30 = vor.u32 %v3659_v25, %v3658_v24  ;;  %v738_v32 = vrot.slane %v736_v26, 1 }
  0x3d   : > { %1688 = vmatmul.bf16.gmra.mxu0 %v4067_v31  ;;  %2066 = vmatpush.bf16.msrb.mxu3 %v3364_v33  ;;  %v734_v31 = vshrl.u32 %v682_v21, 16  ;;  %v741_v33 = vshll.u32 %v3785_v27, 16 }
  0x3e   : > { %1808 = vmatpush.bf16.msrb.mxu1 %v3348_v34  ;;  %2195 = vmatpush.bf16.msrb.mxu0 %v3372_v35  ;;  %v603_v34 = vrot.slane %v3660_v30, 1  ;;  %v4248_v30 = vrot.slane %v4158_v2, 1 }
  0x3f   : > { %v739_v35 = vor.u32 %v738_v32, %v734_v31 }
  0x40   : > { %1938 = vmatpush.bf16.msrb.mxu2 %v3355_v36  ;;  %v743_v36 = vrot.slane %v741_v33, 1  ;;  %5194 = vst [vmem:[#allocation6_spill] sm:$0xff] %v4248_v30 }
  0x41   : > { %2067 = vmatpush.bf16.msrb.mxu3 %v3363_v37  ;;  %v605_v37 = vsel %vm602_vm1, %v603_v34, %v604_v20 }
  0x42   : > { %1809 = vmatpush.bf16.msrb.mxu1 %v3347_v42  ;;  %2196 = vmatpush.bf16.msrb.mxu0 %v3371_v43  ;;  %v5173_v42 = vunpack.c.h.b16 %v4128_v53  ;;  %v3427_v43 = vunpack.c.l.b16 %v4158_v2 }
  0x44   : > { %1939 = vmatpush.bf16.msrb.mxu2 %v3354_v44  ;;  %v4207_v44 = vpack.c.b16 %v3427_v43, %v5173_v42 }
  0x45   : > { %2068 = vmatpush.bf16.msrb.mxu3 %v3362_v45  ;;  %v745_v45 = vshrl.u32 %v3785_v27, 16 }
  0x46   : > { %1810 = vmatpush.bf16.msrb.mxu1 %v3346_v46  ;;  %2197 = vmatpush.bf16.msrb.mxu0 %v3370_v55  ;;  %5192 = vst [vmem:[#allocation4_spill] sm:$0xff] %v4207_v44  ;;  %v749_v46 = vshll.u32 %v4207_v44, 16  ;;  %v3788_v55 = vld [vmem:[%s3996_s6 + $0x24] sm:$0xff]  }
  0x47   : > { %v747_v47 = vor.u32 %v745_v45, %v743_v36  ;;  %v761_v24 = vshrl.u32 %v3788_v55, 16  ;;  %v3792_v45 = vld [vmem:[%s3996_s6 + $0x34] sm:$0xff]  }
  0x48   : > { %1940 = vmatpush.bf16.msrb.mxu2 %v3353_v56  ;;  %v751_v48 = vrot.slane %v749_v46, 1  ;;  %v399_v56 = vshrl.u32 %v4098_v41, 16 }
  0x49   : > { %2069 = vmatpush.bf16.msrb.mxu3 %v3361_v58  ;;  %v3383_v58 = vld [vmem:[%s5170_s1 + $0x170] sm:$0xff] }
  0x4a   : > { %1811 = vmatpush.bf16.msrb.mxu1 %v3345_v59  ;;  %2198 = vmatpush.bf16.msrb.mxu0 %v3369_v60  ;;  %v752_v49 = vsel %vm378_vm0, %v747_v47, %v751_v48  ;;  %v753_v59 = vshrl.u32 %v4207_v44, 16  ;;  %v757_v60 = vshll.u32 %v3788_v55, 16 }
  0x4b   : > { %1723 = vmatmul.bf16.gmra.mxu1 %v4091_v38  ;;  %1753 = vmatmul.bf16.gmra.mxu2 %v4094_v39 }
  0x4c   : > { %1783 = vmatmul.bf16.gmra.mxu3 %v3652_v40  ;;  %2449 = vmatpush.bf16.msra.mxu2 %v3392_v3  ;;  %v744_v40 = vsel %vm378_vm0, %v739_v35, %v743_v36  ;;  %v608_v3 = vrot.slane %v4128_v53, 1 }
  0x4d   : > { %1693 = vmatmul.bf16.gmra.mxu0 %v4098_v41  ;;  %2578 = vmatpush.bf16.msra.mxu3 %v3400_v4  ;;  %v755_v4 = vor.u32 %v753_v59, %v751_v48 }
  0x4e   : > { %2320 = vmatpush.bf16.msra.mxu1 %v3384_v5  ;;  %2707 = vmatpush.bf16.msra.mxu0 %v3408_v8  ;;  %v759_v5 = vrot.slane %v757_v60, 1  ;;  %v609_v8 = vsel %vm602_vm1, %v606_v22, %v608_v3  ;;  %v411_v22 = vshll.u32 %v4158_v2, 16 }
  0x50   : > { %v763_v31 = vor.u32 %v761_v24, %v759_v5 }
  0x51   : > { %2579 = vmatpush.bf16.msra.mxu3 %v3399_v54 }
  0x52   : > { %2321 = vmatpush.bf16.msra.mxu1 %v3383_v58  ;;  %2708 = vmatpush.bf16.msra.mxu0 %v3407_v61 }
  0x5b   : > { %1728 = vmatmul.bf16.gmra.mxu1 %v4121_v50  ;;  %1758 = vmatmul.bf16.gmra.mxu2 %v4124_v51 }
  0x5c   : > { %1788 = vmatmul.bf16.gmra.mxu3 %v3653_v52  ;;  %v3391_v52 = vld [vmem:[%s5170_s1 + $0x1b0] sm:$0xff] }
  0x5d   : > { %1698 = vmatmul.bf16.gmra.mxu0 %v4128_v53  ;;  %2450 = vmatpush.bf16.msra.mxu2 %v3391_v52  ;;  %v419_v52 = vshll.u32 %v4188_v19, 16 }
  0x5f   : > { %v421_v59 = vrot.slane %v419_v52, 1 }
  0x6b   : > { %1733 = vmatmul.bf16.gmra.mxu1 %v4151_v63  ;;  %1763 = vmatmul.bf16.gmra.mxu2 %v4154_v0 }
  0x6c   : > { %1793 = vmatmul.bf16.gmra.mxu3 %v3654_v1  ;;  %v405_v1 = vrot.slane %v403_v57, 1  ;;  %v773_v57 = vshll.u32 %v3792_v45, 16 }
  0x6d   : > { %1703 = vmatmul.bf16.gmra.mxu0 %v4158_v2 }
  0x6e   : > { %v775_v61 = vrot.slane %v773_v57, 1 }
  0x7b   : > { %1738 = vmatmul.bf16.gmra.mxu1 %v4181_v16  ;;  %1768 = vmatmul.bf16.gmra.mxu2 %v4184_v17 }
  0x7c   : > { %1798 = vmatmul.bf16.gmra.mxu3 %v3655_v18 }
  0x7d   : > { %1708 = vmatmul.bf16.gmra.mxu0 %v4188_v19 }
  0x8b   : > { %1812 = vmatmul.bf16.vlgmr.msrb.gmra.mxu1 %v390_v62  ;;  %1941 = vmatmul.bf16.vlgmr.msrb.gmra.mxu2 %v605_v37  ;;  %v401_v62 = vor.u32 %v399_v56, %v397_v12  ;;  %v3790_v12 = vld [vmem:[%s3996_s6 + $0x2c] sm:$0xff]   ;;  %v611_v37 = vsel %vm602_vm1, %v608_v3, %v4248_v30 }
  0x8c   : > { %2070 = vmatmul.bf16.vlgmr.msrb.gmra.mxu3 %v682_v21  ;;  %v407_v21 = vshrl.u32 %v4128_v53, 16  ;;  %v765_v25 = vshll.u32 %v3790_v12, 16  ;;  %v769_v56 = vshrl.u32 %v3790_v12, 16 }
  0x8d   : > { %2199 = vmatmul.bf16.vlgmr.msrb.gmra.mxu0 %v744_v40  ;;  %v406_v7 = vsel %vm378_vm0, %v401_v62, %v405_v1 }
  0x8e   : > { %v409_v26 = vor.u32 %v407_v21, %v405_v1  ;;  %v767_v32 = vrot.slane %v765_v25, 1  ;;  %v3794_v21 = vld [vmem:[%s3996_s6 + $0x3c] sm:$0xff]  }
  0x90   : > { %v768_v43 = vsel %vm378_vm0, %v763_v31, %v767_v32  ;;  %v771_v60 = vor.u32 %v769_v56, %v767_v32  ;;  %v777_v32 = vshrl.u32 %v3792_v45, 16 }
  0x92   : > { %v779_v56 = vor.u32 %v777_v32, %v775_v61 }
  0x9b   : > { %1817 = vmatmul.bf16.gmra.mxu1 %v398_v13  ;;  %1946 = vmatmul.bf16.gmra.mxu2 %v607_v23  ;;  %v760_v13 = vsel %vm378_vm0, %v755_v4, %v759_v5 }
  0x9c   : > { %2075 = vmatmul.bf16.gmra.mxu3 %v3785_v27  ;;  %v413_v27 = vrot.slane %v411_v22, 1 }
  0x9d   : > { %2204 = vmatmul.bf16.gmra.mxu0 %v752_v49  ;;  %v415_v49 = vshrl.u32 %v4158_v2, 16 }
  0x9e   : > { %v4257_v36 = vsel %vm378_vm0, %v409_v26, %v413_v27  ;;  %v427_v26 = vshll.u32 %v4005_v10, 16 }
  0x9f   : > { %5196 = vst [vmem:[#allocation8_spill] sm:$0xff] %v4257_v36  ;;  %v417_v58 = vor.u32 %v415_v49, %v413_v27  ;;  %v3382_v27 = vld [vmem:[%s5170_s1 + $0x168] sm:$0xff] }
  0xa0   : > { %2322 = vmatpush.bf16.msra.mxu1 %v3382_v27  ;;  %v429_v52 = vrot.slane %v427_v26, 1 }
  0xa1   : > { %v4284_v2 = vsel %vm378_vm0, %v417_v58, %v421_v59 }
  0xa2   : > { %5199 = vst [vmem:[#allocation11_spill] sm:$0xff] %v4284_v2 }
  0xa8   : > { %v4228_v6 = vpop.f32.mrf.mxu1 }
  0xaa   : > { %v4232_v9 = vpop.f32.mrf.mxu0 }
  0xab   : > { %1822 = vmatmul.bf16.gmra.mxu1 %v406_v7  ;;  %1951 = vmatmul.bf16.gmra.mxu2 %v609_v8  ;;  %v776_v7 = vsel %vm378_vm0, %v771_v60, %v775_v61  ;;  %v3390_v8 = vld [vmem:[%s5170_s1 + $0x1a8] sm:$0xff] }
  0xac   : > { %2080 = vmatmul.bf16.gmra.mxu3 %v4207_v44  ;;  %2451 = vmatpush.bf16.msra.mxu2 %v3390_v8  ;;  %v3796_v61 = vld [vmem:[%s3996_s6 + $0x44] sm:$0xff]  }
  0xad   : > { %2209 = vmatmul.bf16.gmra.mxu0 %v760_v13  ;;  %v3398_v13 = vld [vmem:[%s5170_s1 + $0x1e8] sm:$0xff] }
  0xae   : > { %v4237_v14 = vpop.f32.mrf.mxu2  ;;  %2580 = vmatpush.bf16.msra.mxu3 %v3398_v13 }
  0xaf   : > { %v4239_v18 = vpop.f32.mrf.mxu3 }
  0xb0   : > { %5193 = vst [vmem:[#allocation5_spill] sm:$0xff] %v4239_v18  ;;  %v4241_v20 = vpop.f32.mrf.mxu1 }
  0xb2   : > { %v4245_v23 = vpop.f32.mrf.mxu0 }
  0xb6   : > { %v4250_v33 = vpop.f32.mrf.mxu2 }
  0xb7   : > { %v4252_v34 = vpop.f32.mrf.mxu3 }
  0xb8   : > { %5195 = vst [vmem:[#allocation7_spill] sm:$0xff] %v4252_v34  ;;  %v4254_v35 = vpop.f32.mrf.mxu1 }
  0xba   : > { %v4261_v40 = vpop.f32.mrf.mxu0 }
  0xbb   : > { %1827 = vmatmul.bf16.gmra.mxu1 %v4257_v36  ;;  %1956 = vmatmul.bf16.gmra.mxu2 %v611_v37  ;;  %v781_v37 = vshll.u32 %v3794_v21, 16 }
  0xbc   : > { %2085 = vmatmul.bf16.gmra.mxu3 %v3788_v55  ;;  %v612_v55 = vrot.slane %v4188_v19, 1 }
  0xbd   : > { %2214 = vmatmul.bf16.gmra.mxu0 %v768_v43  ;;  %v3406_v43 = vld [vmem:[%s5170_s1 + $0x228] sm:$0xff]  ;;  %v783_v57 = vrot.slane %v781_v37, 1  ;;  %v435_v37 = vshll.u32 %v4060_v28, 16 }
  0xbe   : > { %v4266_v46 = vpop.f32.mrf.mxu2  ;;  %v4288_v4 = vsel %vm602_vm1, %v4248_v30, %v612_v55  ;;  %2709 = vmatpush.bf16.msra.mxu0 %v3406_v43 }
  0xbf   : > { %v4268_v47 = vpop.f32.mrf.mxu3  ;;  %5200 = vst [vmem:[#allocation12_spill] sm:$0xff] %v4288_v4  ;;  %v437_v15 = vrot.slane %v435_v37, 1 }
  0xc0   : > { %5197 = vst [vmem:[#allocation9_spill] sm:$0xff] %v4268_v47  ;;  %v4270_v48 = vpop.f32.mrf.mxu1 }
  0xc2   : > { %v4274_v54 = vpop.f32.mrf.mxu0 }
  0xc6   : > { %v4277_v62 = vpop.f32.mrf.mxu2 }
  0xc7   : > { %v4279_v1 = vpop.f32.mrf.mxu3 }
  0xc8   : > { %5198 = vst [vmem:[#allocation10_spill] sm:$0xff] %v4279_v1  ;;  %v4281_v3 = vpop.f32.mrf.mxu1 }
  0xca   : > { %v4290_v5 = vpop.f32.mrf.mxu0 }
  0xcb   : > { %1832 = vmatmul.bf16.gmra.mxu1 %v4284_v2  ;;  %1961 = vmatmul.bf16.gmra.mxu2 %v4288_v4 }
  0xcc   : > { %2090 = vmatmul.bf16.gmra.mxu3 %v3790_v12  ;;  %v423_v12 = vshrl.u32 %v4188_v19, 16  ;;  %v614_v19 = vrot.slane %v4005_v10, 1 }
  0xcd   : > { %2219 = vmatmul.bf16.gmra.mxu0 %v776_v7 }
  0xce   : > { %v4302_v22 = vpop.f32.mrf.mxu2  ;;  %v425_v49 = vor.u32 %v423_v12, %v421_v59  ;;  %v4329_v13 = vsel %vm602_vm1, %v612_v55, %v614_v19  ;;  %v784_v12 = vsel %vm378_vm0, %v779_v56, %v783_v57  ;;  %v431_v55 = vshrl.u32 %v4005_v10, 16 }
  0xcf   : > { %v4304_v24 = vpop.f32.mrf.mxu3  ;;  %5204 = vst [vmem:[#allocation16_spill] sm:$0xff] %v4329_v13  ;;  %v789_v56 = vshll.u32 %v3796_v61, 16 }
  0xd0   : > { %5201 = vst [vmem:[#allocation13_spill] sm:$0xff] %v4304_v24  ;;  %v4306_v25 = vpop.f32.mrf.mxu1  ;;  %v4326_v8 = vsel %vm378_vm0, %v425_v49, %v429_v52  ;;  %v785_v49 = vshrl.u32 %v3794_v21, 16  ;;  %v433_v42 = vor.u32 %v431_v55, %v429_v52 }
  0xd1   : > { %5203 = vst [vmem:[#allocation15_spill] sm:$0xff] %v4326_v8 }
  0xd2   : > { %v4313_v31 = vpop.f32.mrf.mxu0  ;;  %v4355_v10 = vsel %vm378_vm0, %v433_v42, %v437_v15 }
  0xd3   : > { %5207 = vst [vmem:[#allocation19_spill] sm:$0xff] %v4355_v10 }
  0xd6   : > { %v4319_v58 = vpop.f32.mrf.mxu2 }
  0xd7   : > { %v4321_v60 = vpop.f32.mrf.mxu3 }
  0xd8   : > { %5202 = vst [vmem:[#allocation14_spill] sm:$0xff] %v4321_v60  ;;  %v4323_v7 = vpop.f32.mrf.mxu1  ;;  %v791_v60 = vrot.slane %v789_v56, 1 }
  0xda   : > { %v4331_v59 = vpop.f32.mrf.mxu0 }
  0xdb   : > { %1837 = vmatmul.bf16.gmra.mxu1 %v4326_v8  ;;  %1966 = vmatmul.bf16.gmra.mxu2 %v4329_v13 }
  0xdc   : > { %2095 = vmatmul.bf16.gmra.mxu3 %v3792_v45  ;;  %v616_v45 = vrot.slane %v4060_v28, 1 }
  0xdd   : > { %2224 = vmatmul.bf16.gmra.mxu0 %v784_v12  ;;  %v787_v12 = vor.u32 %v785_v49, %v783_v57  ;;  %v3798_v57 = vld [vmem:[%s3996_s6 + $0x4c] sm:$0xff]   ;;  %v443_v49 = vshll.u32 %v4091_v38, 16 }
  0xde   : > { %v4337_v26 = vpop.f32.mrf.mxu2  ;;  %v4358_v47 = vsel %vm602_vm1, %v614_v19, %v616_v45  ;;  %v439_v19 = vshrl.u32 %v4060_v28, 16 }
  0xdf   : > { %v4339_v27 = vpop.f32.mrf.mxu3  ;;  %5208 = vst [vmem:[#allocation20_spill] sm:$0xff] %v4358_v47  ;;  %v792_v52 = vsel %vm378_vm0, %v787_v12, %v791_v60  ;;  %v793_v12 = vshrl.u32 %v3796_v61, 16  ;;  %v445_v13 = vrot.slane %v443_v49, 1 }
  0xe0   : > { %5205 = vst [vmem:[#allocation17_spill] sm:$0xff] %v4339_v27  ;;  %v4341_v32 = vpop.f32.mrf.mxu1 }
  0xe2   : > { %v4345_v43 = vpop.f32.mrf.mxu0 }
  0xe6   : > { %v4348_v24 = vpop.f32.mrf.mxu2 }
  0xe7   : > { %v4350_v27 = vpop.f32.mrf.mxu3 }
  0xe8   : > { %5206 = vst [vmem:[#allocation18_spill] sm:$0xff] %v4350_v27  ;;  %v4352_v1 = vpop.f32.mrf.mxu1  ;;  %v797_v27 = vshll.u32 %v3798_v57, 16 }
  0xea   : > { %v4360_v34 = vpop.f32.mrf.mxu0 }
  0xeb   : > { %1842 = vmatmul.bf16.gmra.mxu1 %v4355_v10  ;;  %1971 = vmatmul.bf16.gmra.mxu2 %v4358_v47  ;;  %v441_v10 = vor.u32 %v439_v19, %v437_v15  ;;  %v799_v47 = vrot.slane %v797_v27, 1  ;;  %v3397_v27 = vld [vmem:[%s5170_s1 + $0x1e0] sm:$0xff] }
  0xec   : > { %2100 = vmatmul.bf16.gmra.mxu3 %v3794_v21  ;;  %v618_v21 = vrot.slane %v4091_v38, 1 }
  0xed   : > { %2229 = vmatmul.bf16.gmra.mxu0 %v792_v52  ;;  %v795_v52 = vor.u32 %v793_v12, %v791_v60  ;;  %v4384_v28 = vsel %vm378_vm0, %v441_v10, %v445_v13  ;;  %v3389_v60 = vld [vmem:[%s5170_s1 + $0x1a0] sm:$0xff]  ;;  %2581 = vmatpush.bf16.msra.mxu3 %v3397_v27  ;;  %v451_v12 = vshll.u32 %v4121_v50, 16 }
  0xee   : > { %v4366_v55 = vpop.f32.mrf.mxu2  ;;  %5213 = vst [vmem:[#allocation25_spill] sm:$0xff] %v4384_v28  ;;  %v4387_v4 = vsel %vm602_vm1, %v616_v45, %v618_v21  ;;  %v4401_v45 = vld [vmem:[%s3996_s6 + $0x54] sm:$0xff]   ;;  %2452 = vmatpush.bf16.msra.mxu2 %v3389_v60  ;;  %v3405_v60 = vld [vmem:[%s5170_s1 + $0x220] sm:$0xff] }
  0xef   : > { %5209 = vst [vmem:[#allocation21_spill] sm:$0xff] %v4366_v55  ;;  %v4368_v37 = vpop.f32.mrf.mxu3  ;;  %v800_v15 = vsel %vm378_vm0, %v795_v52, %v799_v47  ;;  %2710 = vmatpush.bf16.msra.mxu0 %v3405_v60 }
  0xf0   : > { %5210 = vst [vmem:[#allocation22_spill] sm:$0xff] %v4368_v37  ;;  %v4370_v42 = vpop.f32.mrf.mxu1 }
  0xf1   : > { %5214 = vst [vmem:[#allocation26_spill] sm:$0xff] %v4387_v4 }
  0xf2   : > { %v4374_v56 = vpop.f32.mrf.mxu0 }
  0xf6   : > { %v4377_v8 = vpop.f32.mrf.mxu2 }
  0xf7   : > { %5211 = vst [vmem:[#allocation23_spill] sm:$0xff] %v4377_v8  ;;  %v4379_v37 = vpop.f32.mrf.mxu3 }
  0xf8   : > { %5212 = vst [vmem:[#allocation24_spill] sm:$0xff] %v4379_v37  ;;  %v4381_v18 = vpop.f32.mrf.mxu1  ;;  %v805_v37 = vshll.u32 %v4401_v45, 16 }
  0xfa   : > { %v4389_v2 = vpop.f32.mrf.mxu0  ;;  %v807_v44 = vrot.slane %v805_v37, 1 }
  0xfb   : > { %1847 = vmatmul.bf16.gmra.mxu1 %v4384_v28  ;;  %1976 = vmatmul.bf16.gmra.mxu2 %v4387_v4  ;;  %v3381_v4 = vld [vmem:[%s5170_s1 + $0x160] sm:$0xff] }
  0xfc   : > { %2105 = vmatmul.bf16.gmra.mxu3 %v3796_v61  ;;  %v447_v61 = vshrl.u32 %v4091_v38, 16  ;;  %2323 = vmatpush.bf16.msra.mxu1 %v3381_v4  ;;  %v620_v38 = vrot.slane %v4121_v50, 1  ;;  %v4424_v28 = vld [vmem:[%s5171_s2] ss:$0 sm:$0xff] }
  0xfd   : > { %2234 = vmatmul.bf16.gmra.mxu0 %v800_v15  ;;  %v801_v15 = vshrl.u32 %v3798_v57, 16  ;;  %v1685_v36 = vadd.f32 %v4424_v28, %v4232_v9  ;;  %v4442_v9 = vld [vmem:[%s3996_s6 + $0x5c] sm:$0xff]   ;;  %v1687_v37 = vadd.f32 %v4424_v28, %v4245_v23  ;;  %v622_v23 = vrot.slane %v4151_v63, 1 }
  0xfe   : > { %v4403_v10 = vpop.f32.mrf.mxu2  ;;  %v449_v27 = vor.u32 %v447_v61, %v445_v13  ;;  %v4436_v61 = vsel %vm602_vm1, %v618_v21, %v620_v38 }
  0xff   : > { %5215 = vst [vmem:[#allocation27_spill] sm:$0xff] %v4403_v10  ;;  %v4405_v19 = vpop.f32.mrf.mxu3  ;;  %v803_v10 = vor.u32 %v801_v15, %v799_v47 }
 0x100   : > { %5216 = vst [vmem:[#allocation28_spill] sm:$0xff] %v4405_v19  ;;  %v4407_v49 = vpop.f32.mrf.mxu1  ;;  %v453_v19 = vrot.slane %v451_v12, 1 }
 0x101   : > { %5220 = vst [vmem:[#allocation32_spill] sm:$0xff] %v4436_v61  ;;  %v808_v55 = vsel %vm378_vm0, %v803_v10, %v807_v44 }
 0x102   : > { %v4411_v52 = vpop.f32.mrf.mxu0  ;;  %v4433_v13 = vsel %vm378_vm0, %v449_v27, %v453_v19 }
 0x103   : > { %5219 = vst [vmem:[#allocation31_spill] sm:$0xff] %v4433_v13 }
 0x106   : > { %v4426_v8 = vpop.f32.mrf.mxu2 }
 0x107   : > { %5217 = vst [vmem:[#allocation29_spill] sm:$0xff] %v4426_v8  ;;  %v4430_v30 = vpop.f32.mrf.mxu3 }
 0x108   : > { %5218 = vst [vmem:[#allocation30_spill] sm:$0xff] %v4430_v30  ;;  %v1813_v4 = vpop.f32.mrf.mxu1 }
 0x109   : > { %v1814_v12 = vadd.f32 %v1813_v4, %v1685_v36  ;;  %v455_v36 = vshrl.u32 %v4121_v50, 16  ;;  %v459_v4 = vshll.u32 %v4151_v63, 16  ;;  %v1690_v50 = vadd.f32 %v4424_v28, %v4261_v40 }
 0x10a   : > { %v2200_v60 = vpop.f32.mrf.mxu0  ;;  %v1692_v40 = vadd.f32 %v4424_v28, %v4274_v54  ;;  %v624_v54 = vrot.slane %v4181_v16, 1 }
 0x10b   : > { %1852 = vmatmul.bf16.gmra.mxu1 %v4433_v13  ;;  %1981 = vmatmul.bf16.gmra.mxu2 %v4436_v61  ;;  %v809_v61 = vshrl.u32 %v4401_v45, 16  ;;  %v457_v8 = vor.u32 %v455_v36, %v453_v19  ;;  %v461_v53 = vrot.slane %v459_v4, 1 }
 0x10c   : > { %2110 = vmatmul.bf16.gmra.mxu3 %v3798_v57  ;;  %v813_v57 = vshll.u32 %v4442_v9, 16 }
 0x10d   : > { %2239 = vmatmul.bf16.gmra.mxu0 %v808_v55 }
 0x10e   : > { %v1942_v47 = vpop.f32.mrf.mxu2 }
 0x10f   : > { %v1943_v15 = vadd.f32 %v1942_v47, %v1814_v12  ;;  %v2071_v27 = vpop.f32.mrf.mxu3  ;;  %v811_v12 = vor.u32 %v809_v61, %v807_v44  ;;  %v815_v47 = vrot.slane %v813_v57, 1  ;;  %v463_v57 = vshrl.u32 %v4151_v63, 16 }
 0x110   : > { %v1815_v21 = vpop.f32.mrf.mxu1  ;;  %v1695_v63 = vadd.f32 %v4424_v28, %v4290_v5 }
 0x111   : > { %v2072_v10 = vadd.f32 %v2071_v27, %v1943_v15  ;;  %v1816_v30 = vadd.f32 %v1815_v21, %v1687_v37  ;;  %v4456_v21 = vsel %vm378_vm0, %v457_v8, %v461_v53  ;;  %v816_v44 = vsel %vm378_vm0, %v811_v12, %v815_v47 }
 0x112   : > { %v2202_v13 = vpop.f32.mrf.mxu0  ;;  %v467_v12 = vshll.u32 %v4181_v16, 16 }
 0x113   : > { %v4450_v55 = vadd.f32 %v2200_v60, %v2072_v10  ;;  %v4459_v60 = vsel %vm602_vm1, %v620_v38, %v622_v23 }
 0x115   : > { %5221 = vst [vmem:[#allocation33_spill] sm:$0xff] %v4450_v55 }
 0x116   : > { %v1944_v41 = vpop.f32.mrf.mxu2 }
 0x117   : > { %v1945_v15 = vadd.f32 %v1944_v41, %v1816_v30  ;;  %v2073_v37 = vpop.f32.mrf.mxu3  ;;  %v4468_v41 = vld [vmem:[%s3996_s6 + $0x64] sm:$0xff]  }
 0x118   : > { %v1818_v27 = vpop.f32.mrf.mxu1 }
 0x119   : > { %v2074_v19 = vadd.f32 %v2073_v37, %v1945_v15  ;;  %v1819_v36 = vadd.f32 %v1818_v27, %v1690_v50  ;;  %v817_v37 = vshrl.u32 %v4442_v9, 16 }
 0x11a   : > { %v2205_v4 = vpop.f32.mrf.mxu0 }
 0x11b   : > { %1857 = vmatmul.bf16.gmra.mxu1 %v4456_v21  ;;  %1986 = vmatmul.bf16.gmra.mxu2 %v4459_v60  ;;  %v4464_v61 = vadd.f32 %v2202_v13, %v2074_v19  ;;  %v465_v19 = vor.u32 %v463_v57, %v461_v53 }
 0x11c   : > { %2115 = vmatmul.bf16.gmra.mxu3 %v4401_v45  ;;  %v821_v45 = vshll.u32 %v4468_v41, 16 }
 0x11d   : > { %5222 = vst [vmem:[#allocation34_spill] sm:$0xff] %v4464_v61  ;;  %2244 = vmatmul.bf16.gmra.mxu0 %v816_v44  ;;  %v469_v44 = vrot.slane %v467_v12, 1 }
 0x11e   : > { %v1947_v30 = vpop.f32.mrf.mxu2 }
 0x11f   : > { %v1948_v8 = vadd.f32 %v1947_v30, %v1819_v36  ;;  %v2076_v38 = vpop.f32.mrf.mxu3  ;;  %v819_v36 = vor.u32 %v817_v37, %v815_v47  ;;  %v823_v30 = vrot.slane %v821_v45, 1  ;;  %v471_v37 = vshrl.u32 %v4181_v16, 16 }
 0x120   : > { %v1820_v10 = vpop.f32.mrf.mxu1  ;;  %v475_v45 = vshll.u32 %v4008_v11, 16 }
 0x121   : > { %v2077_v50 = vadd.f32 %v2076_v38, %v1948_v8  ;;  %v1821_v15 = vadd.f32 %v1820_v10, %v1692_v40  ;;  %v4482_v38 = vsel %vm378_vm0, %v465_v19, %v469_v44  ;;  %v824_v47 = vsel %vm378_vm0, %v819_v36, %v823_v30 }
 0x122   : > { %v2207_v13 = vpop.f32.mrf.mxu0 }
 0x123   : > { %v4476_v27 = vadd.f32 %v2205_v4, %v2077_v50  ;;  %v4485_v4 = vsel %vm602_vm1, %v622_v23, %v624_v54  ;;  %v4500_v23 = vld [vmem:[%s3996_s6 + $0x6c] sm:$0xff]   ;;  %v1697_v50 = vadd.f32 %v4424_v28, %v4313_v31  ;;  %v3404_v31 = vld [vmem:[%s5170_s1 + $0x218] sm:$0xff] }
 0x124   : > { %2711 = vmatpush.bf16.msra.mxu0 %v3404_v31  ;;  %v483_v31 = vshll.u32 %v4063_v29, 16 }
 0x125   : > { %5223 = vst [vmem:[#allocation35_spill] sm:$0xff] %v4476_v27 }
 0x126   : > { %v1949_v61 = vpop.f32.mrf.mxu2 }
 0x127   : > { %v1950_v55 = vadd.f32 %v1949_v61, %v1821_v15  ;;  %v2078_v40 = vpop.f32.mrf.mxu3  ;;  %v3388_v61 = vld [vmem:[%s5170_s1 + $0x198] sm:$0xff] }
 0x128   : > { %v1823_v8 = vpop.f32.mrf.mxu1  ;;  %2453 = vmatpush.bf16.msra.mxu2 %v3388_v61  ;;  %v626_v61 = vrot.slane %v4008_v11, 1 }
 0x129   : > { %v2079_v53 = vadd.f32 %v2078_v40, %v1950_v55  ;;  %v1824_v10 = vadd.f32 %v1823_v8, %v1695_v63  ;;  %v3396_v55 = vld [vmem:[%s5170_s1 + $0x1d8] sm:$0xff]  ;;  %v825_v40 = vshrl.u32 %v4468_v41, 16  ;;  %v829_v8 = vshll.u32 %v4500_v23, 16 }
 0x12a   : > { %v2210_v57 = vpop.f32.mrf.mxu0  ;;  %2582 = vmatpush.bf16.msra.mxu3 %v3396_v55 }
 0x12b   : > { %1862 = vmatmul.bf16.gmra.mxu1 %v4482_v38  ;;  %1991 = vmatmul.bf16.gmra.mxu2 %v4485_v4  ;;  %v4490_v5 = vadd.f32 %v2207_v13, %v2079_v53  ;;  %v3380_v53 = vld [vmem:[%s5170_s1 + $0x158] sm:$0xff]  ;;  %v827_v55 = vor.u32 %v825_v40, %v823_v30 }
 0x12c   : > { %2120 = vmatmul.bf16.gmra.mxu3 %v4442_v9  ;;  %2324 = vmatpush.bf16.msra.mxu1 %v3380_v53  ;;  %v479_v53 = vshrl.u32 %v4008_v11, 16  ;;  %v1705_v11 = vadd.f32 %v4424_v28, %v4360_v34  ;;  %v4558_v34 = vld [vmem:[%s3996_s6 + $0x7c] sm:$0xff]  }
 0x12d   : > { %5224 = vst [vmem:[#allocation36_spill] sm:$0xff] %v4490_v5  ;;  %2249 = vmatmul.bf16.gmra.mxu0 %v824_v47  ;;  %v477_v47 = vrot.slane %v475_v45, 1 }
 0x12e   : > { %v1952_v12 = vpop.f32.mrf.mxu2 }
 0x12f   : > { %v1953_v15 = vadd.f32 %v1952_v12, %v1824_v10  ;;  %v2081_v13 = vpop.f32.mrf.mxu3  ;;  %v473_v10 = vor.u32 %v471_v37, %v469_v44  ;;  %v831_v12 = vrot.slane %v829_v8, 1 }
 0x130   : > { %v1825_v9 = vpop.f32.mrf.mxu1 }
 0x131   : > { %v2082_v19 = vadd.f32 %v2081_v13, %v1953_v15  ;;  %v1826_v36 = vadd.f32 %v1825_v9, %v1697_v50  ;;  %v1700_v15 = vadd.f32 %v4424_v28, %v4331_v59  ;;  %v4520_v27 = vsel %vm378_vm0, %v473_v10, %v477_v47  ;;  %v4532_v59 = vld [vmem:[%s3996_s6 + $0x74] sm:$0xff]  }
 0x132   : > { %v2212_v63 = vpop.f32.mrf.mxu0  ;;  %v832_v30 = vsel %vm378_vm0, %v827_v55, %v831_v12 }
 0x133   : > { %v4514_v16 = vadd.f32 %v2210_v57, %v2082_v19  ;;  %v4523_v57 = vsel %vm602_vm1, %v624_v54, %v626_v61  ;;  %v1702_v54 = vadd.f32 %v4424_v28, %v4345_v43  ;;  %v628_v43 = vrot.slane %v4063_v29, 1 }
 0x136   : > { %v1954_v50 = vpop.f32.mrf.mxu2 }
 0x137   : > { %v1955_v13 = vadd.f32 %v1954_v50, %v1826_v36  ;;  %v2083_v9 = vpop.f32.mrf.mxu3  ;;  %v833_v50 = vshrl.u32 %v4500_v23, 16 }
 0x138   : > { %v1828_v5 = vpop.f32.mrf.mxu1 }
 0x139   : > { %v2084_v44 = vadd.f32 %v2083_v9, %v1955_v13  ;;  %v1829_v37 = vadd.f32 %v1828_v5, %v1700_v15  ;;  %v481_v13 = vor.u32 %v479_v53, %v477_v47  ;;  %v485_v9 = vrot.slane %v483_v31, 1 }
 0x13a   : > { %v2215_v45 = vpop.f32.mrf.mxu0 }
 0x13b   : > { %1867 = vmatmul.bf16.gmra.mxu1 %v4520_v27  ;;  %1996 = vmatmul.bf16.gmra.mxu2 %v4523_v57  ;;  %v4528_v19 = vadd.f32 %v2212_v63, %v2084_v44  ;;  %v835_v44 = vor.u32 %v833_v50, %v831_v12 }
 0x13c   : > { %2125 = vmatmul.bf16.gmra.mxu3 %v4468_v41  ;;  %v837_v41 = vshll.u32 %v4532_v59, 16 }
 0x13d   : > { %2254 = vmatmul.bf16.gmra.mxu0 %v832_v30 }
 0x13e   : > { %v1957_v36 = vpop.f32.mrf.mxu2 }
 0x13f   : > { %v1958_v40 = vadd.f32 %v1957_v36, %v1829_v37  ;;  %v2086_v5 = vpop.f32.mrf.mxu3  ;;  %v839_v37 = vrot.slane %v837_v41, 1 }
 0x140   : > { %v1830_v8 = vpop.f32.mrf.mxu1 }
 0x141   : > { %v2087_v10 = vadd.f32 %v2086_v5, %v1958_v40  ;;  %v1831_v55 = vadd.f32 %v1830_v8, %v1702_v54  ;;  %v4546_v5 = vsel %vm378_vm0, %v481_v13, %v485_v9  ;;  %v840_v12 = vsel %vm378_vm0, %v835_v44, %v839_v37 }
 0x142   : > { %v2217_v63 = vpop.f32.mrf.mxu0  ;;  %v487_v13 = vshrl.u32 %v4063_v29, 16  ;;  %v491_v44 = vshll.u32 %v4094_v39, 16  ;;  %v1710_v29 = vadd.f32 %v4424_v28, %v4389_v2 }
 0x143   : > { %v4540_v15 = vadd.f32 %v2215_v45, %v2087_v10  ;;  %v4549_v45 = vsel %vm602_vm1, %v626_v61, %v628_v43  ;;  %v1707_v61 = vadd.f32 %v4424_v28, %v4374_v56  ;;  %v630_v56 = vrot.slane %v4094_v39, 1 }
 0x146   : > { %v1959_v30 = vpop.f32.mrf.mxu2 }
 0x147   : > { %v1960_v36 = vadd.f32 %v1959_v30, %v1831_v55  ;;  %v2088_v54 = vpop.f32.mrf.mxu3 }
 0x148   : > { %v1833_v40 = vpop.f32.mrf.mxu1 }
 0x149   : > { %v2089_v47 = vadd.f32 %v2088_v54, %v1960_v36  ;;  %v1834_v8 = vadd.f32 %v1833_v40, %v1705_v11  ;;  %v841_v36 = vshrl.u32 %v4532_v59, 16  ;;  %v489_v40 = vor.u32 %v487_v13, %v485_v9 }
 0x14a   : > { %v2220_v53 = vpop.f32.mrf.mxu0 }
 0x14b   : > { %1872 = vmatmul.bf16.gmra.mxu1 %v4546_v5  ;;  %2001 = vmatmul.bf16.gmra.mxu2 %v4549_v45  ;;  %v4554_v31 = vadd.f32 %v2217_v63, %v2089_v47  ;;  %v493_v47 = vrot.slane %v491_v44, 1  ;;  %v3387_v44 = vld [vmem:[%s5170_s1 + $0x190] sm:$0xff] }
 0x14c   : > { %2130 = vmatmul.bf16.gmra.mxu3 %v4500_v23  ;;  %v845_v23 = vshll.u32 %v4558_v34, 16  ;;  %2454 = vmatpush.bf16.msra.mxu2 %v3387_v44  ;;  %v632_v44 = vrot.slane %v4124_v51, 1 }
 0x14d   : > { %5225 = vst [vmem:[#allocation37_spill] sm:$0xff] %v4554_v31  ;;  %2259 = vmatmul.bf16.gmra.mxu0 %v840_v12 }
 0x14e   : > { %v1962_v10 = vpop.f32.mrf.mxu2  ;;  %v847_v12 = vrot.slane %v845_v23, 1  ;;  %v495_v23 = vshrl.u32 %v4094_v39, 16 }
 0x14f   : > { %v1963_v55 = vadd.f32 %v1962_v10, %v1834_v8  ;;  %v2091_v50 = vpop.f32.mrf.mxu3  ;;  %v843_v8 = vor.u32 %v841_v36, %v839_v37 }
 0x150   : > { %v1835_v41 = vpop.f32.mrf.mxu1 }
 0x151   : > { %v2092_v30 = vadd.f32 %v2091_v50, %v1963_v55  ;;  %v1836_v11 = vadd.f32 %v1835_v41, %v1707_v61  ;;  %v4572_v50 = vsel %vm378_vm0, %v489_v40, %v493_v47  ;;  %v848_v37 = vsel %vm378_vm0, %v843_v8, %v847_v12 }
 0x152   : > { %v2222_v63 = vpop.f32.mrf.mxu0  ;;  %v499_v40 = vshll.u32 %v4124_v51, 16 }
 0x153   : > { %v4566_v54 = vadd.f32 %v2220_v53, %v2092_v30  ;;  %v4575_v53 = vsel %vm602_vm1, %v628_v43, %v630_v56  ;;  %v3395_v43 = vld [vmem:[%s5170_s1 + $0x1d0] sm:$0xff] }
 0x154   : > { %2583 = vmatpush.bf16.msra.mxu3 %v3395_v43 }
 0x155   : > { %5226 = vst [vmem:[#allocation38_spill] sm:$0xff] %v4566_v54 }
 0x156   : > { %v1964_v10 = vpop.f32.mrf.mxu2 }
 0x157   : > { %v1965_v31 = vadd.f32 %v1964_v10, %v1836_v11  ;;  %v2093_v61 = vpop.f32.mrf.mxu3  ;;  %v1712_v11 = vadd.f32 %v4424_v28, %v4411_v52  ;;  %v3403_v52 = vld [vmem:[%s5170_s1 + $0x210] sm:$0xff] }
 0x158   : > { %v1838_v55 = vpop.f32.mrf.mxu1  ;;  %2712 = vmatpush.bf16.msra.mxu0 %v3403_v52  ;;  %v507_v52 = vshll.u32 %v4154_v0, 16 }
 0x159   : > { %v2094_v9 = vadd.f32 %v2093_v61, %v1965_v31  ;;  %v1839_v41 = vadd.f32 %v1838_v55, %v1710_v29  ;;  %v4590_v31 = vld [vmem:[%s3996_s6 + $0x84] sm:$0xff]   ;;  %v849_v61 = vshrl.u32 %v4558_v34, 16 }
 0x15a   : > { %v2225_v13 = vpop.f32.mrf.mxu0  ;;  %v853_v55 = vshll.u32 %v4590_v31, 16 }
 0x15b   : > { %1877 = vmatmul.bf16.gmra.mxu1 %v4572_v50  ;;  %2006 = vmatmul.bf16.gmra.mxu2 %v4575_v53  ;;  %v4580_v2 = vadd.f32 %v2222_v63, %v2094_v9  ;;  %v3379_v9 = vld [vmem:[%s5170_s1 + $0x150] sm:$0xff]  ;;  %v851_v43 = vor.u32 %v849_v61, %v847_v12 }
 0x15c   : > { %2135 = vmatmul.bf16.gmra.mxu3 %v4532_v59  ;;  %2325 = vmatpush.bf16.msra.mxu1 %v3379_v9 }
 0x15d   : > { %5227 = vst [vmem:[#allocation39_spill] sm:$0xff] %v4580_v2  ;;  %2264 = vmatmul.bf16.gmra.mxu0 %v848_v37  ;;  %v501_v37 = vrot.slane %v499_v40, 1  ;;  %v4622_v40 = vld [vmem:[%s3996_s6 + $0x8c] sm:$0xff]  }
 0x15e   : > { %v1967_v30 = vpop.f32.mrf.mxu2 }
 0x15f   : > { %v1968_v63 = vadd.f32 %v1967_v30, %v1839_v41  ;;  %v2096_v36 = vpop.f32.mrf.mxu3  ;;  %v497_v41 = vor.u32 %v495_v23, %v493_v47  ;;  %v855_v30 = vrot.slane %v853_v55, 1  ;;  %v3873_v55 = vld [vmem:[%s3996_s6 + $0x78] sm:$0xff]  }
 0x160   : > { %v1840_v59 = vpop.f32.mrf.mxu1  ;;  %v503_v9 = vshrl.u32 %v3873_v55, 16 }
 0x161   : > { %v2097_v8 = vadd.f32 %v2096_v36, %v1968_v63  ;;  %v1841_v10 = vadd.f32 %v1840_v59, %v1712_v11  ;;  %v1715_v63 = vadd.f32 %v4424_v28, %v4228_v6  ;;  %v4610_v54 = vsel %vm378_vm0, %v497_v41, %v501_v37 }
 0x162   : > { %v2227_v29 = vpop.f32.mrf.mxu0  ;;  %v856_v12 = vsel %vm378_vm0, %v851_v43, %v855_v30 }
 0x163   : > { %v4604_v39 = vadd.f32 %v2225_v13, %v2097_v8  ;;  %v4613_v13 = vsel %vm602_vm1, %v630_v56, %v632_v44  ;;  %v1717_v56 = vadd.f32 %v4424_v28, %v4241_v20  ;;  %v634_v20 = vrot.slane %v4154_v0, 1 }
 0x166   : > { %v1969_v11 = vpop.f32.mrf.mxu2 }
 0x167   : > { %v1970_v36 = vadd.f32 %v1969_v11, %v1841_v10  ;;  %v2098_v59 = vpop.f32.mrf.mxu3  ;;  %v857_v11 = vshrl.u32 %v4590_v31, 16 }
 0x168   : > { %v1843_v2 = vpop.f32.mrf.mxu1 }
 0x169   : > { %v2099_v47 = vadd.f32 %v2098_v59, %v1970_v36  ;;  %v1844_v23 = vadd.f32 %v1843_v2, %v1715_v63  ;;  %v505_v36 = vor.u32 %v503_v9, %v501_v37  ;;  %v509_v59 = vrot.slane %v507_v52, 1  ;;  %v4648_v9 = vld [vmem:[%s3996_s6 + $0x94] sm:$0xff]  }
 0x16a   : > { %v2230_v51 = vpop.f32.mrf.mxu0 }
 0x16b   : > { %1882 = vmatmul.bf16.gmra.mxu1 %v4610_v54  ;;  %2011 = vmatmul.bf16.gmra.mxu2 %v4613_v13  ;;  %v4618_v6 = vadd.f32 %v2227_v29, %v2099_v47  ;;  %v859_v47 = vor.u32 %v857_v11, %v855_v30 }
 0x16c   : > { %2140 = vmatmul.bf16.gmra.mxu3 %v4558_v34  ;;  %v861_v34 = vshll.u32 %v4622_v40, 16 }
 0x16d   : > { %2269 = vmatmul.bf16.gmra.mxu0 %v856_v12 }
 0x16e   : > { %v1972_v8 = vpop.f32.mrf.mxu2 }
 0x16f   : > { %v1973_v10 = vadd.f32 %v1972_v8, %v1844_v23  ;;  %v2101_v2 = vpop.f32.mrf.mxu3  ;;  %v863_v23 = vrot.slane %v861_v34, 1  ;;  %v1720_v8 = vadd.f32 %v4424_v28, %v4254_v35  ;;  %v3874_v34 = vld [vmem:[%s3996_s6 + $0x80] sm:$0xff]  }
 0x170   : > { %v1845_v61 = vpop.f32.mrf.mxu1 }
 0x171   : > { %v2102_v41 = vadd.f32 %v2101_v2, %v1973_v10  ;;  %v1846_v43 = vadd.f32 %v1845_v61, %v1717_v56  ;;  %v4636_v61 = vsel %vm378_vm0, %v505_v36, %v509_v59  ;;  %v864_v30 = vsel %vm378_vm0, %v859_v47, %v863_v23 }
 0x172   : > { %v2232_v29 = vpop.f32.mrf.mxu0  ;;  %v511_v36 = vshrl.u32 %v3874_v34, 16  ;;  %v515_v47 = vshll.u32 %v4184_v17, 16  ;;  %v1725_v34 = vadd.f32 %v4424_v28, %v4281_v3 }
 0x173   : > { %v4630_v63 = vadd.f32 %v2230_v51, %v2102_v41  ;;  %v4639_v51 = vsel %vm602_vm1, %v632_v44, %v634_v20  ;;  %v1722_v44 = vadd.f32 %v4424_v28, %v4270_v48 }
 0x175   : > { %5228 = vst [vmem:[#allocation40_spill] sm:$0xff] %v4630_v63 }
 0x176   : > { %v1974_v12 = vpop.f32.mrf.mxu2 }
 0x177   : > { %v1975_v10 = vadd.f32 %v1974_v12, %v1846_v43  ;;  %v2103_v56 = vpop.f32.mrf.mxu3 }
 0x178   : > { %v1848_v2 = vpop.f32.mrf.mxu1 }
 0x179   : > { %v2104_v37 = vadd.f32 %v2103_v56, %v1975_v10  ;;  %v1849_v55 = vadd.f32 %v1848_v2, %v1720_v8  ;;  %v869_v10 = vshll.u32 %v4648_v9, 16  ;;  %v513_v2 = vor.u32 %v511_v36, %v509_v59 }
 0x17a   : > { %v2235_v0 = vpop.f32.mrf.mxu0 }
 0x17b   : > { %1887 = vmatmul.bf16.gmra.mxu1 %v4636_v61  ;;  %2016 = vmatmul.bf16.gmra.mxu2 %v4639_v51  ;;  %v4644_v35 = vadd.f32 %v2232_v29, %v2104_v37  ;;  %v517_v37 = vrot.slane %v515_v47, 1  ;;  %v4680_v47 = vld [vmem:[%s3996_s6 + $0x9c] sm:$0xff]  }
 0x17c   : > { %2145 = vmatmul.bf16.gmra.mxu3 %v4590_v31  ;;  %v865_v31 = vshrl.u32 %v4622_v40, 16 }
 0x17d   : > { %5229 = vst [vmem:[#allocation41_spill] sm:$0xff] %v4644_v35  ;;  %2274 = vmatmul.bf16.gmra.mxu0 %v864_v30  ;;  %v3875_v30 = vld [vmem:[%s3996_s6 + $0x88] sm:$0xff]  }
 0x17e   : > { %v1977_v52 = vpop.f32.mrf.mxu2  ;;  %v636_v48 = vrot.slane %v3875_v30, 1 }
 0x17f   : > { %v1978_v41 = vadd.f32 %v1977_v52, %v1849_v55  ;;  %v2106_v43 = vpop.f32.mrf.mxu3  ;;  %v867_v55 = vor.u32 %v865_v31, %v863_v23  ;;  %v871_v52 = vrot.slane %v869_v10, 1  ;;  %v519_v10 = vshrl.u32 %v3875_v30, 16 }
 0x180   : > { %v1850_v11 = vpop.f32.mrf.mxu1 }
 0x181   : > { %v2107_v12 = vadd.f32 %v2106_v43, %v1978_v41  ;;  %v1851_v29 = vadd.f32 %v1850_v11, %v1722_v44  ;;  %v4662_v43 = vsel %vm378_vm0, %v513_v2, %v517_v37  ;;  %v872_v23 = vsel %vm378_vm0, %v867_v55, %v871_v52  ;;  %v3876_v2 = vld [vmem:[%s3996_s6 + $0x90] sm:$0xff]  }
 0x182   : > { %v2237_v8 = vpop.f32.mrf.mxu0  ;;  %v523_v55 = vshll.u32 %v3876_v2, 16 }
 0x183   : > { %v4656_v56 = vadd.f32 %v2235_v0, %v2107_v12  ;;  %v4665_v0 = vsel %vm602_vm1, %v634_v20, %v636_v48  ;;  %v3386_v20 = vld [vmem:[%s5170_s1 + $0x188] sm:$0xff] }
 0x184   : > { %2455 = vmatpush.bf16.msra.mxu2 %v3386_v20  ;;  %v525_v20 = vrot.slane %v523_v55, 1  ;;  %v4710_v55 = vld [vmem:[%s3996_s6 + $0xa4] sm:$0xff]  }
 0x185   : > { %5230 = vst [vmem:[#allocation42_spill] sm:$0xff] %v4656_v56 }
 0x186   : > { %v1979_v35 = vpop.f32.mrf.mxu2 }
 0x187   : > { %v1980_v17 = vadd.f32 %v1979_v35, %v1851_v29  ;;  %v2108_v44 = vpop.f32.mrf.mxu3  ;;  %v3394_v35 = vld [vmem:[%s5170_s1 + $0x1c8] sm:$0xff]  ;;  %v1727_v29 = vadd.f32 %v4424_v28, %v4306_v25 }
 0x188   : > { %v1853_v41 = vpop.f32.mrf.mxu1  ;;  %2584 = vmatpush.bf16.msra.mxu3 %v3394_v35  ;;  %v3402_v25 = vld [vmem:[%s5170_s1 + $0x208] sm:$0xff]  ;;  %v638_v35 = vrot.slane %v3876_v2, 1 }
 0x189   : > { %v2109_v59 = vadd.f32 %v2108_v44, %v1980_v17  ;;  %v1854_v11 = vadd.f32 %v1853_v41, %v1725_v34  ;;  %v873_v41 = vshrl.u32 %v4648_v9, 16  ;;  %2713 = vmatpush.bf16.msra.mxu0 %v3402_v25 }
 0x18a   : > { %v2240_v36 = vpop.f32.mrf.mxu0 }
 0x18b   : > { %1892 = vmatmul.bf16.gmra.mxu1 %v4662_v43  ;;  %2021 = vmatmul.bf16.gmra.mxu2 %v4665_v0  ;;  %v4670_v3 = vadd.f32 %v2237_v8, %v2109_v59  ;;  %v877_v59 = vshll.u32 %v4680_v47, 16 }
 0x18c   : > { %2150 = vmatmul.bf16.gmra.mxu3 %v4622_v40 }
 0x18d   : > { %5231 = vst [vmem:[#allocation43_spill] sm:$0xff] %v4670_v3  ;;  %2279 = vmatmul.bf16.gmra.mxu0 %v872_v23  ;;  %v3378_v23 = vld [vmem:[%s5170_s1 + $0x148] sm:$0xff] }
 0x18e   : > { %v1982_v12 = vpop.f32.mrf.mxu2  ;;  %2326 = vmatpush.bf16.msra.mxu1 %v3378_v23  ;;  %v4701_v23 = vsel %vm602_vm1, %v636_v48, %v638_v35  ;;  %v1732_v48 = vadd.f32 %v4424_v28, %v4341_v32 }
 0x18f   : > { %v1983_v8 = vadd.f32 %v1982_v12, %v1854_v11  ;;  %v2111_v31 = vpop.f32.mrf.mxu3  ;;  %v521_v11 = vor.u32 %v519_v10, %v517_v37  ;;  %v875_v12 = vor.u32 %v873_v41, %v871_v52  ;;  %v527_v41 = vshrl.u32 %v3876_v2, 16 }
 0x190   : > { %v1855_v40 = vpop.f32.mrf.mxu1  ;;  %v1735_v2 = vadd.f32 %v4424_v28, %v4352_v1 }
 0x191   : > { %v2112_v34 = vadd.f32 %v2111_v31, %v1983_v8  ;;  %v1856_v17 = vadd.f32 %v1855_v40, %v1727_v29  ;;  %v879_v29 = vrot.slane %v877_v59, 1  ;;  %v1730_v31 = vadd.f32 %v4424_v28, %v4323_v7  ;;  %v3877_v59 = vld [vmem:[%s3996_s6 + $0x98] sm:$0xff]  }
 0x192   : > { %v2242_v44 = vpop.f32.mrf.mxu0  ;;  %v4698_v63 = vsel %vm378_vm0, %v521_v11, %v525_v20  ;;  %v531_v25 = vshll.u32 %v3877_v59, 16 }
 0x193   : > { %v4693_v30 = vadd.f32 %v2240_v36, %v2112_v34  ;;  %v880_v52 = vsel %vm378_vm0, %v875_v12, %v879_v29 }
 0x195   : > { %5232 = vst [vmem:[#allocation44_spill] sm:$0xff] %v4693_v30 }
 0x196   : > { %v1984_v8 = vpop.f32.mrf.mxu2 }
 0x197   : > { %v1985_v40 = vadd.f32 %v1984_v8, %v1856_v17  ;;  %v2113_v3 = vpop.f32.mrf.mxu3 }
 0x198   : > { %v1858_v56 = vpop.f32.mrf.mxu1 }
 0x199   : > { %v2114_v36 = vadd.f32 %v2113_v3, %v1985_v40  ;;  %v1859_v37 = vadd.f32 %v1858_v56, %v1730_v31  ;;  %v529_v40 = vor.u32 %v527_v41, %v525_v20 }
 0x19a   : > { %v2245_v10 = vpop.f32.mrf.mxu0 }
 0x19b   : > { %1897 = vmatmul.bf16.gmra.mxu1 %v4698_v63  ;;  %2026 = vmatmul.bf16.gmra.mxu2 %v4701_v23  ;;  %v4706_v7 = vadd.f32 %v2242_v44, %v2114_v36  ;;  %v881_v44 = vshrl.u32 %v4680_v47, 16  ;;  %v533_v36 = vrot.slane %v531_v25, 1  ;;  %v4734_v25 = vld [vmem:[%s3996_s6 + $0xac] sm:$0xff]  }
 0x19c   : > { %2155 = vmatmul.bf16.gmra.mxu3 %v4648_v9  ;;  %v885_v9 = vshll.u32 %v4710_v55, 16 }
 0x19d   : > { %5233 = vst [vmem:[#allocation45_spill] sm:$0xff] %v4706_v7  ;;  %2284 = vmatmul.bf16.gmra.mxu0 %v880_v52  ;;  %v640_v52 = vrot.slane %v3877_v59, 1  ;;  %v883_v7 = vor.u32 %v881_v44, %v879_v29 }
 0x19e   : > { %v1987_v34 = vpop.f32.mrf.mxu2  ;;  %v887_v32 = vrot.slane %v885_v9, 1 }
 0x19f   : > { %v1988_v3 = vadd.f32 %v1987_v34, %v1859_v37  ;;  %v2116_v56 = vpop.f32.mrf.mxu3 }
 0x1a0   : > { %v1860_v17 = vpop.f32.mrf.mxu1  ;;  %v888_v29 = vsel %vm378_vm0, %v883_v7, %v887_v32  ;;  %v4739_v7 = vld [vmem:[%s3996_s6 + $0xa0] sm:$0xff]  }
 0x1a1   : > { %v2117_v11 = vadd.f32 %v2116_v56, %v1988_v3  ;;  %v1861_v12 = vadd.f32 %v1860_v17, %v1732_v48  ;;  %v4722_v56 = vsel %vm378_vm0, %v529_v40, %v533_v36  ;;  %v4725_v17 = vsel %vm602_vm1, %v638_v35, %v640_v52 }
 0x1a2   : > { %v2247_v8 = vpop.f32.mrf.mxu0  ;;  %v1737_v35 = vadd.f32 %v4424_v28, %v4370_v42  ;;  %v535_v40 = vshrl.u32 %v3877_v59, 16  ;;  %v642_v42 = vrot.slane %v4739_v7, 1 }
 0x1a3   : > { %v4717_v31 = vadd.f32 %v2245_v10, %v2117_v11 }
 0x1a5   : > { %5234 = vst [vmem:[#allocation46_spill] sm:$0xff] %v4717_v31 }
 0x1a6   : > { %v1989_v37 = vpop.f32.mrf.mxu2 }
 0x1a7   : > { %v1990_v34 = vadd.f32 %v1989_v37, %v1861_v12  ;;  %v2118_v3 = vpop.f32.mrf.mxu3  ;;  %v539_v37 = vshll.u32 %v4739_v7, 16 }
 0x1a8   : > { %v1863_v48 = vpop.f32.mrf.mxu1 }
 0x1a9   : > { %v2119_v10 = vadd.f32 %v2118_v3, %v1990_v34  ;;  %v1864_v20 = vadd.f32 %v1863_v48, %v1735_v2  ;;  %v893_v3 = vshll.u32 %v4734_v25, 16 }
 0x1aa   : > { %v2250_v41 = vpop.f32.mrf.mxu0 }
 0x1ab   : > { %1902 = vmatmul.bf16.gmra.mxu1 %v4722_v56  ;;  %2031 = vmatmul.bf16.gmra.mxu2 %v4725_v17  ;;  %v4730_v1 = vadd.f32 %v2247_v8, %v2119_v10  ;;  %v537_v10 = vor.u32 %v535_v40, %v533_v36 }
 0x1ac   : > { %2160 = vmatmul.bf16.gmra.mxu3 %v4680_v47  ;;  %v889_v47 = vshrl.u32 %v4710_v55, 16 }
 0x1ad   : > { %5235 = vst [vmem:[#allocation47_spill] sm:$0xff] %v4730_v1  ;;  %2289 = vmatmul.bf16.gmra.mxu0 %v888_v29  ;;  %v541_v29 = vrot.slane %v539_v37, 1  ;;  %v1740_v1 = vadd.f32 %v4424_v28, %v4381_v18 }
 0x1ae   : > { %v1992_v11 = vpop.f32.mrf.mxu2 }
 0x1af   : > { %v1993_v12 = vadd.f32 %v1992_v11, %v1864_v20  ;;  %v2121_v44 = vpop.f32.mrf.mxu3  ;;  %v891_v20 = vor.u32 %v889_v47, %v887_v32  ;;  %v895_v11 = vrot.slane %v893_v3, 1  ;;  %v543_v47 = vshrl.u32 %v4739_v7, 16  ;;  %v3879_v3 = vld [vmem:[%s3996_s6 + $0xa8] sm:$0xff]  }
 0x1b0   : > { %v1865_v9 = vpop.f32.mrf.mxu1 }
 0x1b1   : > { %v2122_v2 = vadd.f32 %v2121_v44, %v1993_v12  ;;  %v1866_v8 = vadd.f32 %v1865_v9, %v1737_v35  ;;  %v4750_v44 = vsel %vm378_vm0, %v537_v10, %v541_v29  ;;  %v896_v32 = vsel %vm378_vm0, %v891_v20, %v895_v11 }
 0x1b2   : > { %v2252_v34 = vpop.f32.mrf.mxu0  ;;  %v547_v10 = vshll.u32 %v3879_v3, 16 }
 0x1b3   : > { %v4744_v48 = vadd.f32 %v2250_v41, %v2122_v2  ;;  %v4753_v41 = vsel %vm602_vm1, %v640_v52, %v642_v42  ;;  %v3385_v52 = vld [vmem:[%s5170_s1 + $0x180] sm:$0xff]  ;;  %v1742_v2 = vadd.f32 %v4424_v28, %v4407_v49 }
 0x1b4   : > { %2456 = vmatpush.bf16.msra.mxu2 %v3385_v52  ;;  %v3401_v49 = vld [vmem:[%s5170_s1 + $0x200] sm:$0xff]  ;;  %v549_v52 = vrot.slane %v547_v10, 1 }
 0x1b5   : > { %5236 = vst [vmem:[#allocation48_spill] sm:$0xff] %v4744_v48  ;;  %2714 = vmatpush.bf16.msra.mxu0 %v3401_v49  ;;  %v4799_v10 = vld [vmem:[%s3996_s6 + $0xbc] sm:$0xff]  }
 0x1b6   : > { %v1994_v59 = vpop.f32.mrf.mxu2 }
 0x1b7   : > { %v1995_v31 = vadd.f32 %v1994_v59, %v1866_v8  ;;  %v2123_v35 = vpop.f32.mrf.mxu3 }
 0x1b8   : > { %v1868_v12 = vpop.f32.mrf.mxu1 }
 0x1b9   : > { %v2124_v36 = vadd.f32 %v2123_v35, %v1995_v31  ;;  %v1869_v9 = vadd.f32 %v1868_v12, %v1740_v1  ;;  %v3393_v31 = vld [vmem:[%s5170_s1 + $0x1c0] sm:$0xff]  ;;  %v4768_v1 = vld [vmem:[%s3996_s6 + $0xb4] sm:$0xff]   ;;  %v897_v12 = vshrl.u32 %v4734_v25, 16 }
 0x1ba   : > { %v2255_v40 = vpop.f32.mrf.mxu0  ;;  %2585 = vmatpush.bf16.msra.mxu3 %v3393_v31  ;;  %v644_v31 = vrot.slane %v3879_v3, 1 }
 0x1bb   : > { %1907 = vmatmul.bf16.gmra.mxu1 %v4750_v44  ;;  %2036 = vmatmul.bf16.gmra.mxu2 %v4753_v41  ;;  %v4758_v18 = vadd.f32 %v2252_v34, %v2124_v36  ;;  %v901_v36 = vshll.u32 %v4768_v1, 16 }
 0x1bc   : > { %2165 = vmatmul.bf16.gmra.mxu3 %v4710_v55 }
 0x1bd   : > { %5237 = vst [vmem:[#allocation49_spill] sm:$0xff] %v4758_v18  ;;  %2294 = vmatmul.bf16.gmra.mxu0 %v896_v32  ;;  %v3377_v32 = vld [vmem:[%s5170_s1 + $0x140] sm:$0xff] }
 0x1be   : > { %v1997_v37 = vpop.f32.mrf.mxu2  ;;  %2327 = vmatpush.bf16.msra.mxu1 %v3377_v32  ;;  %v4790_v32 = vsel %vm602_vm1, %v642_v42, %v644_v31  ;;  %v1747_v42 = vadd.f32 %v4424_v28, %v4250_v33 }
 0x1bf   : > { %v1998_v8 = vadd.f32 %v1997_v37, %v1869_v9  ;;  %v2126_v34 = vpop.f32.mrf.mxu3  ;;  %v545_v9 = vor.u32 %v543_v47, %v541_v29  ;;  %v899_v37 = vor.u32 %v897_v12, %v895_v11  ;;  %v551_v12 = vshrl.u32 %v3879_v3, 16 }
 0x1c0   : > { %v1870_v55 = vpop.f32.mrf.mxu1  ;;  %v1750_v3 = vadd.f32 %v4424_v28, %v4266_v46 }
 0x1c1   : > { %v2127_v20 = vadd.f32 %v2126_v34, %v1998_v8  ;;  %v1871_v59 = vadd.f32 %v1870_v55, %v1742_v2  ;;  %v903_v2 = vrot.slane %v901_v36, 1  ;;  %v1745_v34 = vadd.f32 %v4424_v28, %v4237_v14  ;;  %v3880_v36 = vld [vmem:[%s3996_s6 + $0xb0] sm:$0xff]  }
 0x1c2   : > { %v2257_v35 = vpop.f32.mrf.mxu0  ;;  %v4787_v30 = vsel %vm378_vm0, %v545_v9, %v549_v52  ;;  %v555_v49 = vshll.u32 %v3880_v36, 16 }
 0x1c3   : > { %v4782_v7 = vadd.f32 %v2255_v40, %v2127_v20  ;;  %v904_v11 = vsel %vm378_vm0, %v899_v37, %v903_v2 }
 0x1c6   : > { %v1999_v8 = vpop.f32.mrf.mxu2 }
 0x1c7   : > { %v2000_v55 = vadd.f32 %v1999_v8, %v1871_v59  ;;  %v2128_v18 = vpop.f32.mrf.mxu3 }
 0x1c8   : > { %v1873_v48 = vpop.f32.mrf.mxu1 }
 0x1c9   : > { %v2129_v40 = vadd.f32 %v2128_v18, %v2000_v55  ;;  %v1874_v29 = vadd.f32 %v1873_v48, %v1745_v34  ;;  %v553_v55 = vor.u32 %v551_v12, %v549_v52 }
 0x1ca   : > { %v2260_v47 = vpop.f32.mrf.mxu0 }
 0x1cb   : > { %1912 = vmatmul.bf16.gmra.mxu1 %v4787_v30  ;;  %2041 = vmatmul.bf16.gmra.mxu2 %v4790_v32  ;;  %v4795_v14 = vadd.f32 %v2257_v35, %v2129_v40  ;;  %v905_v35 = vshrl.u32 %v4768_v1, 16  ;;  %v557_v40 = vrot.slane %v555_v49, 1  ;;  %v4823_v49 = vld [vmem:[%s3996_s6 + $0xc4] sm:$0xff]  }
 0x1cc   : > { %2170 = vmatmul.bf16.gmra.mxu3 %v4734_v25  ;;  %v909_v25 = vshll.u32 %v4799_v10, 16 }
 0x1cd   : > { %5238 = vst [vmem:[#allocation50_spill] sm:$0xff] %v4795_v14  ;;  %2299 = vmatmul.bf16.gmra.mxu0 %v904_v11  ;;  %v646_v11 = vrot.slane %v3880_v36, 1  ;;  %v907_v14 = vor.u32 %v905_v35, %v903_v2 }
 0x1ce   : > { %v2002_v20 = vpop.f32.mrf.mxu2  ;;  %v911_v33 = vrot.slane %v909_v25, 1 }
 0x1cf   : > { %v2003_v18 = vadd.f32 %v2002_v20, %v1874_v29  ;;  %v2131_v48 = vpop.f32.mrf.mxu3 }
 0x1d0   : > { %v1875_v59 = vpop.f32.mrf.mxu1  ;;  %v912_v2 = vsel %vm378_vm0, %v907_v14, %v911_v33  ;;  %v559_v14 = vshrl.u32 %v3880_v36, 16 }
 0x1d1   : > { %v2132_v9 = vadd.f32 %v2131_v48, %v2003_v18  ;;  %v1876_v37 = vadd.f32 %v1875_v59, %v1747_v42  ;;  %v4811_v48 = vsel %vm378_vm0, %v553_v55, %v557_v40  ;;  %v4814_v59 = vsel %vm602_vm1, %v644_v31, %v646_v11  ;;  %v3881_v55 = vld [vmem:[%s3996_s6 + $0xb8] sm:$0xff]  }
 0x1d2   : > { %v2262_v8 = vpop.f32.mrf.mxu0  ;;  %v1752_v31 = vadd.f32 %v4424_v28, %v4277_v62  ;;  %v4832_v62 = vrot.slane %v3881_v55, 1 }
 0x1d3   : > { %v4806_v34 = vadd.f32 %v2260_v47, %v2132_v9 }
 0x1d5   : > { %5239 = vst [vmem:[#allocation51_spill] sm:$0xff] %v4806_v34 }
 0x1d6   : > { %v2004_v29 = vpop.f32.mrf.mxu2 }
 0x1d7   : > { %v2005_v20 = vadd.f32 %v2004_v29, %v1876_v37  ;;  %v2133_v18 = vpop.f32.mrf.mxu3  ;;  %v563_v29 = vshll.u32 %v3881_v55, 16 }
 0x1d8   : > { %v1878_v42 = vpop.f32.mrf.mxu1 }
 0x1d9   : > { %v2134_v47 = vadd.f32 %v2133_v18, %v2005_v20  ;;  %v1879_v52 = vadd.f32 %v1878_v42, %v1750_v3  ;;  %v917_v18 = vshll.u32 %v4823_v49, 16 }
 0x1da   : > { %v2265_v12 = vpop.f32.mrf.mxu0 }
 0x1db   : > { %1917 = vmatmul.bf16.gmra.mxu1 %v4811_v48  ;;  %2046 = vmatmul.bf16.gmra.mxu2 %v4814_v59  ;;  %v4819_v46 = vadd.f32 %v2262_v8, %v2134_v47  ;;  %v561_v47 = vor.u32 %v559_v14, %v557_v40 }
 0x1dc   : > { %2175 = vmatmul.bf16.gmra.mxu3 %v4768_v1  ;;  %v913_v1 = vshrl.u32 %v4799_v10, 16 }
 0x1dd   : > { %5240 = vst [vmem:[#allocation52_spill] sm:$0xff] %v4819_v46  ;;  %2304 = vmatmul.bf16.gmra.mxu0 %v912_v2  ;;  %v565_v2 = vrot.slane %v563_v29, 1  ;;  %v224_v46 = vld [vmem:[%s3996_s6 + $0xcc] sm:$0x1] }
 0x1de   : > { %v2007_v9 = vpop.f32.mrf.mxu2  ;;  %v915_v28 = vor.u32 %v913_v1, %v911_v33  ;;  %v4848_v33 = vsel %vm602_vm1, %v646_v11, %v4832_v62 }
 0x1df   : > { %v2008_v37 = vadd.f32 %v2007_v9, %v1879_v52  ;;  %v2136_v35 = vpop.f32.mrf.mxu3  ;;  %v919_v52 = vrot.slane %v917_v18, 1  ;;  %v219_v9 = vld [vmem:[%s3996_s6 + $0xc0] sm:$0x1]  ;;  %v4844_v40 = vsel %vm378_vm0, %v561_v47, %v565_v2 }
 0x1e0   : > { %v1880_v25 = vpop.f32.mrf.mxu1  ;;  %v376_v14 = vunpack.c.l.b16 %v219_v9 }
 0x1e1   : > { %v2137_v3 = vadd.f32 %v2136_v35, %v2008_v37  ;;  %v1881_v8 = vadd.f32 %v1880_v25, %v1752_v31  ;;  %v4839_v31 = vld [vmem:[%s5171_s2] ss:$0 sm:$0xff]  ;;  %v920_v18 = vsel %vm378_vm0, %v915_v28, %v919_v52 }
 0x1e2   : > { %v2267_v20 = vpop.f32.mrf.mxu0  ;;  %v1755_v37 = vadd.f32 %v4839_v31, %v4302_v22  ;;  %v1757_v9 = vadd.f32 %v4839_v31, %v4319_v58 }
 0x1e3   : > { %v4830_v42 = vadd.f32 %v2265_v12, %v2137_v3 }
 0x1e5   : > { %5241 = vst [vmem:[#allocation53_spill] sm:$0xff] %v4830_v42  ;;  %v731_v42 = vunpack.c.l.b16 %v224_v46  ;;  %v567_v46 = vshrl.u32 %v3881_v55, 16  ;;  %v1760_v55 = vadd.f32 %v4839_v31, %v4337_v26 }
 0x1e6   : > { %v2009_v36 = vpop.f32.mrf.mxu2 }
 0x1e7   : > { %v2010_v35 = vadd.f32 %v2009_v36, %v1881_v8  ;;  %v2138_v12 = vpop.f32.mrf.mxu3  ;;  %v377_v8 = vpack.c.b16 %v376_v14, %v376_v14  ;;  %v4856_v47 = vpack.c.b16 %v731_v42, %v731_v42  ;;  %v4864_v42 = vor.u32 %v567_v46, %v565_v2  ;;  %v225_v2 = vld [vmem:[%s3996_s6 + $0xc] sm:$0xe] }
 0x1e8   : > { %v1883_v25 = vpop.f32.mrf.mxu1  ;;  %v954_v26 = vunpack.c.l.b16 %v225_v2 }
 0x1e9   : > { %v2139_v29 = vadd.f32 %v2138_v12, %v2010_v35  ;;  %v1884_v3 = vadd.f32 %v1883_v25, %v1755_v37  ;;  %v571_v35 = vshll.u32 %v377_v8, 16  ;;  %v650_v58 = vrot.slane %v377_v8, 1  ;;  %v230_v8 = vld [vmem:[%s3996_s6 + $0x18] sm:$0xe] }
 0x1ea   : > { %v2270_v1 = vpop.f32.mrf.mxu0 }
 0x1eb   : > { %1922 = vmatmul.bf16.gmra.mxu1 %v4844_v40  ;;  %2051 = vmatmul.bf16.gmra.mxu2 %v4848_v33  ;;  %v4853_v22 = vadd.f32 %v2267_v20, %v2139_v29  ;;  %v921_v20 = vshrl.u32 %v4823_v49, 16  ;;  %v573_v29 = vrot.slane %v571_v35, 1 }
 0x1ec   : > { %2180 = vmatmul.bf16.gmra.mxu3 %v4799_v10  ;;  %v925_v10 = vshll.u32 %v4856_v47, 16 }
 0x1ed   : > { %2309 = vmatmul.bf16.gmra.mxu0 %v920_v18 }
 0x1ee   : > { %v2012_v11 = vpop.f32.mrf.mxu2  ;;  %v927_v18 = vrot.slane %v925_v10, 1 }
 0x1ef   : > { %v2013_v36 = vadd.f32 %v2012_v11, %v1884_v3  ;;  %v2141_v37 = vpop.f32.mrf.mxu3  ;;  %v923_v3 = vor.u32 %v921_v20, %v919_v52 }
 0x1f0   : > { %v1885_v28 = vpop.f32.mrf.mxu1 }
 0x1f1   : > { %v2142_v12 = vadd.f32 %v2141_v37, %v2013_v36  ;;  %v1886_v25 = vadd.f32 %v1885_v28, %v1757_v9  ;;  %v574_v28 = vsel %vm378_vm0, %v4864_v42, %v573_v29  ;;  %v928_v52 = vsel %vm378_vm0, %v923_v3, %v927_v18 }
 0x1f2   : > { %v2272_v34 = vpop.f32.mrf.mxu0  ;;  %v1762_v29 = vadd.f32 %v4839_v31, %v4348_v24 }
 0x1f3   : > { %v4862_v14 = vadd.f32 %v2270_v1, %v2142_v12  ;;  %v651_v1 = vsel %vm602_vm1, %v4832_v62, %v650_v58 }
 0x1f6   : > { %v2014_v11 = vpop.f32.mrf.mxu2 }
 0x1f7   : > { %v2015_v9 = vadd.f32 %v2014_v11, %v1886_v25  ;;  %v2143_v36 = vpop.f32.mrf.mxu3  ;;  %v1078_v25 = vunpack.c.l.b16 %v230_v8 }
 0x1f8   : > { %v1888_v37 = vpop.f32.mrf.mxu1 }
 0x1f9   : > { %v2144_v46 = vadd.f32 %v2143_v36, %v2015_v9  ;;  %v1889_v35 = vadd.f32 %v1888_v37, %v1760_v55  ;;  %v5243_v55 = vld [vmem:[#allocation2_spill] sm:$0xff] }
 0x1fa   : > { %v2275_v12 = vpop.f32.mrf.mxu0  ;;  %v5244_v9 = vunpack.c.l.b16 %v5243_v55 }
 0x1fb   : > { %1927 = vmatmul.bf16.gmra.mxu1 %v574_v28  ;;  %2056 = vmatmul.bf16.gmra.mxu2 %v651_v1  ;;  %v4875_v20 = vadd.f32 %v2272_v34, %v2144_v46  ;;  %v5245_v28 = vld [vmem:[#allocation3_spill] sm:$0xff] }
 0x1fc   : > { %2185 = vmatmul.bf16.gmra.mxu3 %v4823_v49  ;;  %v955_v3 = vpack.c.b16 %v5244_v9, %v954_v26  ;;  %v5246_v1 = vunpack.c.h.b16 %v5245_v28  ;;  %v5249_v28 = vld [vmem:[#allocation8_spill] sm:$0xff] }
 0x1fd   : > { %5242 = vst [vmem:[#allocation54_spill] sm:$0xff] %v4875_v20  ;;  %2314 = vmatmul.bf16.gmra.mxu0 %v928_v52  ;;  %v3883_v52 = vld [vmem:[%s3996_s6 + $0x14] sm:$0xff]  }
 0x1fe   : > { %v2017_v10 = vpop.f32.mrf.mxu2  ;;  %v1079_v2 = vpack.c.b16 %v5246_v1, %v1078_v25  ;;  %v956_v49 = vrot.slane %v955_v3, 1  ;;  %v957_v8 = vrot.slane %v3883_v52, 1  ;;  %v5248_v25 = vld [vmem:[#allocation6_spill] sm:$0xff]  ;;  %v3884_v3 = vld [vmem:[%s3996_s6 + $0x18] sm:$0xff]  }
 0x1ff   : > { %v2018_v58 = vadd.f32 %v2017_v10, %v1889_v35  ;;  %v2146_v11 = vpop.f32.mrf.mxu3  ;;  %v5247_v35 = vld [vmem:[#allocation21_spill] sm:$0xff] }
 0x200   : > { %v1890_v18 = vpop.f32.mrf.mxu1  ;;  %v1080_v20 = vrot.slane %v1079_v2, 1  ;;  %v1765_v10 = vadd.f32 %v4839_v31, %v5247_v35 }
 0x201   : > { %v2147_v36 = vadd.f32 %v2146_v11, %v2018_v58  ;;  %v1891_v37 = vadd.f32 %v1890_v18, %v1762_v29  ;;  %v958_v29 = vsel %vm602_vm1, %v956_v49, %v957_v8 }
 0x202   : > { %v2277_v34 = vpop.f32.mrf.mxu0 }
 0x203   : > { %v4884_v46 = vadd.f32 %v2275_v12, %v2147_v36  ;;  %v1081_v12 = vsel %vm602_vm1, %v1080_v20, %v5248_v25 }
 0x206   : > { %v2019_v24 = vpop.f32.mrf.mxu2 }
 0x207   : > { %v2020_v55 = vadd.f32 %v2019_v24, %v1891_v37  ;;  %v2148_v26 = vpop.f32.mrf.mxu3  ;;  %v5250_v37 = vld [vmem:[#allocation23_spill] sm:$0xff] }
 0x208   : > { %v1893_v9 = vpop.f32.mrf.mxu1  ;;  %v1767_v2 = vadd.f32 %v4839_v31, %v5250_v37 }
 0x209   : > { %v2149_v58 = vadd.f32 %v2148_v26, %v2020_v55  ;;  %v1894_v11 = vadd.f32 %v1893_v9, %v1765_v10  ;;  %v5252_v26 = vld [vmem:[#allocation4_spill] sm:$0xff] }
 0x20a   : > { %v2280_v18 = vpop.f32.mrf.mxu0  ;;  %v959_v9 = vrot.slane %v5252_v26, 1 }
 0x20b   : > { %2328 = vmatmul.bf16.vlgmr.msra.gmra.mxu1 %v958_v29  ;;  %2457 = vmatmul.bf16.vlgmr.msra.gmra.mxu2 %v3884_v3  ;;  %v4893_v36 = vadd.f32 %v2277_v34, %v2149_v58  ;;  %v5253_v29 = vld [vmem:[#allocation27_spill] sm:$0xff] }
 0x20c   : > { %2586 = vmatmul.bf16.vlgmr.msra.gmra.mxu3 %v5249_v28  ;;  %v1770_v58 = vadd.f32 %v4839_v31, %v5253_v29  ;;  %v960_v28 = vsel %vm602_vm1, %v957_v8, %v959_v9 }
 0x20d   : > { %2715 = vmatmul.bf16.vlgmr.msra.gmra.mxu0 %v1081_v12 }
 0x20e   : > { %v2022_v1 = vpop.f32.mrf.mxu2 }
 0x20f   : > { %v2023_v52 = vadd.f32 %v2022_v1, %v1894_v11  ;;  %v2151_v49 = vpop.f32.mrf.mxu3 }
 0x210   : > { %v1895_v24 = vpop.f32.mrf.mxu1 }
 0x211   : > { %v2152_v35 = vadd.f32 %v2151_v49, %v2023_v52  ;;  %v1896_v10 = vadd.f32 %v1895_v24, %v1767_v2  ;;  %v3885_v2 = vld [vmem:[%s3996_s6 + $0x20] sm:$0xff]   ;;  %v5255_v52 = vld [vmem:[#allocation11_spill] sm:$0xff]  ;;  %v5256_v49 = vld [vmem:[#allocation12_spill] sm:$0xff] }
 0x212   : > { %v2282_v55 = vpop.f32.mrf.mxu0 }
 0x213   : > { %v4898_v20 = vadd.f32 %v2280_v18, %v2152_v35  ;;  %v5257_v35 = vld [vmem:[#allocation29_spill] sm:$0xff] }
 0x215   : > { %5251 = vst [vmem:[#allocation2_spill] sm:$0xff] %v4898_v20 }
 0x216   : > { %v2024_v34 = vpop.f32.mrf.mxu2 }
 0x217   : > { %v2025_v25 = vadd.f32 %v2024_v34, %v1896_v10  ;;  %v2153_v12 = vpop.f32.mrf.mxu3  ;;  %v1772_v10 = vadd.f32 %v4839_v31, %v5257_v35 }
 0x218   : > { %v1898_v3 = vpop.f32.mrf.mxu1 }
 0x219   : > { %v2154_v11 = vadd.f32 %v2153_v12, %v2025_v25  ;;  %v1899_v1 = vadd.f32 %v1898_v3, %v1770_v58  ;;  %v3886_v3 = vld [vmem:[%s3996_s6 + $0x24] sm:$0xff]  }
 0x21a   : > { %v2285_v37 = vpop.f32.mrf.mxu0 }
 0x21b   : > { %2333 = vmatmul.bf16.gmra.mxu1 %v960_v28  ;;  %2462 = vmatmul.bf16.gmra.mxu2 %v3885_v2  ;;  %v4905_v18 = vadd.f32 %v2282_v55, %v2154_v11  ;;  %v961_v55 = vrot.slane %v3886_v3, 1  ;;  %v5259_v11 = vld [vmem:[#allocation5_spill] sm:$0xff] }
 0x21c   : > { %2591 = vmatmul.bf16.gmra.mxu3 %v5255_v52  ;;  %v1775_v2 = vadd.f32 %v4839_v31, %v5259_v11 }
 0x21d   : > { %5254 = vst [vmem:[#allocation3_spill] sm:$0xff] %v4905_v18  ;;  %2720 = vmatmul.bf16.gmra.mxu0 %v5256_v49  ;;  %v962_v35 = vsel %vm602_vm1, %v959_v9, %v961_v55 }
 0x21e   : > { %v2027_v24 = vpop.f32.mrf.mxu2 }
 0x21f   : > { %v2028_v26 = vadd.f32 %v2027_v24, %v1899_v1  ;;  %v2156_v34 = vpop.f32.mrf.mxu3 }
 0x220   : > { %v1900_v8 = vpop.f32.mrf.mxu1 }
 0x221   : > { %v2157_v29 = vadd.f32 %v2156_v34, %v2028_v26  ;;  %v1901_v58 = vadd.f32 %v1900_v8, %v1772_v10  ;;  %v3887_v10 = vld [vmem:[%s3996_s6 + $0x28] sm:$0xff]   ;;  %v5262_v34 = vld [vmem:[#allocation16_spill] sm:$0xff] }
 0x222   : > { %v2287_v25 = vpop.f32.mrf.mxu0  ;;  %v5261_v26 = vld [vmem:[#allocation15_spill] sm:$0xff] }
 0x223   : > { %v4911_v12 = vadd.f32 %v2285_v37, %v2157_v29  ;;  %v5263_v29 = vld [vmem:[#allocation7_spill] sm:$0xff] }
 0x225   : > { %5258 = vst [vmem:[#allocation21_spill] sm:$0xff] %v4911_v12 }
 0x226   : > { %v2029_v28 = vpop.f32.mrf.mxu2 }
 0x227   : > { %v2030_v52 = vadd.f32 %v2029_v28, %v1901_v58  ;;  %v2158_v49 = vpop.f32.mrf.mxu3  ;;  %v1777_v58 = vadd.f32 %v4839_v31, %v5263_v29 }
 0x228   : > { %v1903_v18 = vpop.f32.mrf.mxu1 }
 0x229   : > { %v2159_v1 = vadd.f32 %v2158_v49, %v2030_v52  ;;  %v1904_v24 = vadd.f32 %v1903_v18, %v1775_v2  ;;  %v3888_v49 = vld [vmem:[%s3996_s6 + $0x2c] sm:$0xff]  }
 0x22a   : > { %v2290_v20 = vpop.f32.mrf.mxu0 }
 0x22b   : > { %2338 = vmatmul.bf16.gmra.mxu1 %v962_v35  ;;  %2467 = vmatmul.bf16.gmra.mxu2 %v3887_v10  ;;  %v4918_v37 = vadd.f32 %v2287_v25, %v2159_v1  ;;  %v963_v25 = vrot.slane %v3888_v49, 1  ;;  %v5265_v1 = vld [vmem:[#allocation9_spill] sm:$0xff] }
 0x22c   : > { %2596 = vmatmul.bf16.gmra.mxu3 %v5261_v26  ;;  %v1780_v10 = vadd.f32 %v4839_v31, %v5265_v1 }
 0x22d   : > { %5260 = vst [vmem:[#allocation6_spill] sm:$0xff] %v4918_v37  ;;  %2725 = vmatmul.bf16.gmra.mxu0 %v5262_v34  ;;  %v964_v29 = vsel %vm602_vm1, %v961_v55, %v963_v25 }
 0x22e   : > { %v2032_v8 = vpop.f32.mrf.mxu2 }
 0x22f   : > { %v2033_v3 = vadd.f32 %v2032_v8, %v1904_v24  ;;  %v2161_v28 = vpop.f32.mrf.mxu3 }
 0x230   : > { %v1905_v9 = vpop.f32.mrf.mxu1 }
 0x231   : > { %v2162_v11 = vadd.f32 %v2161_v28, %v2033_v3  ;;  %v1906_v18 = vadd.f32 %v1905_v9, %v1777_v58  ;;  %v3889_v58 = vld [vmem:[%s3996_s6 + $0x30] sm:$0xff]   ;;  %v5267_v3 = vld [vmem:[#allocation19_spill] sm:$0xff] }
 0x232   : > { %v2292_v2 = vpop.f32.mrf.mxu0  ;;  %v5268_v28 = vld [vmem:[#allocation20_spill] sm:$0xff] }
 0x233   : > { %v4924_v52 = vadd.f32 %v2290_v20, %v2162_v11  ;;  %v5269_v11 = vld [vmem:[#allocation10_spill] sm:$0xff] }
 0x235   : > { %5264 = vst [vmem:[#allocation8_spill] sm:$0xff] %v4924_v52 }
 0x236   : > { %v2034_v35 = vpop.f32.mrf.mxu2 }
 0x237   : > { %v2035_v26 = vadd.f32 %v2034_v35, %v1906_v18  ;;  %v2163_v34 = vpop.f32.mrf.mxu3  ;;  %v1782_v18 = vadd.f32 %v4839_v31, %v5269_v11 }
 0x238   : > { %v1908_v37 = vpop.f32.mrf.mxu1 }
 0x239   : > { %v2164_v24 = vadd.f32 %v2163_v34, %v2035_v26  ;;  %v1909_v8 = vadd.f32 %v1908_v37, %v1780_v10  ;;  %v3890_v34 = vld [vmem:[%s3996_s6 + $0x34] sm:$0xff]  }
 0x23a   : > { %v2295_v12 = vpop.f32.mrf.mxu0 }
 0x23b   : > { %2343 = vmatmul.bf16.gmra.mxu1 %v964_v29  ;;  %2472 = vmatmul.bf16.gmra.mxu2 %v3889_v58  ;;  %v4931_v20 = vadd.f32 %v2292_v2, %v2164_v24  ;;  %v965_v2 = vrot.slane %v3890_v34, 1  ;;  %v5271_v24 = vld [vmem:[#allocation13_spill] sm:$0xff] }
 0x23c   : > { %2601 = vmatmul.bf16.gmra.mxu3 %v5267_v3  ;;  %v1785_v58 = vadd.f32 %v4839_v31, %v5271_v24 }
 0x23d   : > { %5266 = vst [vmem:[#allocation23_spill] sm:$0xff] %v4931_v20  ;;  %2730 = vmatmul.bf16.gmra.mxu0 %v5268_v28  ;;  %v966_v11 = vsel %vm602_vm1, %v963_v25, %v965_v2 }
 0x23e   : > { %v2037_v9 = vpop.f32.mrf.mxu2 }
 0x23f   : > { %v2038_v49 = vadd.f32 %v2037_v9, %v1909_v8  ;;  %v2166_v35 = vpop.f32.mrf.mxu3 }
 0x240   : > { %v1910_v55 = vpop.f32.mrf.mxu1 }
 0x241   : > { %v2167_v1 = vadd.f32 %v2166_v35, %v2038_v49  ;;  %v1911_v37 = vadd.f32 %v1910_v55, %v1782_v18  ;;  %v3891_v18 = vld [vmem:[%s3996_s6 + $0x38] sm:$0xff]   ;;  %v5274_v35 = vld [vmem:[#allocation26_spill] sm:$0xff] }
 0x242   : > { %v2297_v10 = vpop.f32.mrf.mxu0  ;;  %v5273_v49 = vld [vmem:[#allocation25_spill] sm:$0xff] }
 0x243   : > { %v4937_v26 = vadd.f32 %v2295_v12, %v2167_v1  ;;  %v5275_v1 = vld [vmem:[#allocation14_spill] sm:$0xff] }
 0x245   : > { %5270 = vst [vmem:[#allocation4_spill] sm:$0xff] %v4937_v26 }
 0x246   : > { %v2039_v29 = vpop.f32.mrf.mxu2 }
 0x247   : > { %v2040_v3 = vadd.f32 %v2039_v29, %v1911_v37  ;;  %v2168_v28 = vpop.f32.mrf.mxu3  ;;  %v1787_v37 = vadd.f32 %v4839_v31, %v5275_v1 }
 0x248   : > { %v1913_v20 = vpop.f32.mrf.mxu1 }
 0x249   : > { %v2169_v8 = vadd.f32 %v2168_v28, %v2040_v3  ;;  %v1914_v9 = vadd.f32 %v1913_v20, %v1785_v58  ;;  %v3892_v28 = vld [vmem:[%s3996_s6 + $0x3c] sm:$0xff]  }
 0x24a   : > { %v2300_v52 = vpop.f32.mrf.mxu0 }
 0x24b   : > { %2348 = vmatmul.bf16.gmra.mxu1 %v966_v11  ;;  %2477 = vmatmul.bf16.gmra.mxu2 %v3891_v18  ;;  %v4944_v12 = vadd.f32 %v2297_v10, %v2169_v8  ;;  %v967_v10 = vrot.slane %v3892_v28, 1  ;;  %v5277_v8 = vld [vmem:[#allocation17_spill] sm:$0xff] }
 0x24c   : > { %2606 = vmatmul.bf16.gmra.mxu3 %v5273_v49  ;;  %v1790_v18 = vadd.f32 %v4839_v31, %v5277_v8 }
 0x24d   : > { %5272 = vst [vmem:[#allocation27_spill] sm:$0xff] %v4944_v12  ;;  %2735 = vmatmul.bf16.gmra.mxu0 %v5274_v35  ;;  %v968_v1 = vsel %vm602_vm1, %v965_v2, %v967_v10 }
 0x24e   : > { %v2042_v55 = vpop.f32.mrf.mxu2 }
 0x24f   : > { %v2043_v34 = vadd.f32 %v2042_v55, %v1914_v9  ;;  %v2171_v29 = vpop.f32.mrf.mxu3 }
 0x250   : > { %v1915_v25 = vpop.f32.mrf.mxu1 }
 0x251   : > { %v2172_v24 = vadd.f32 %v2171_v29, %v2043_v34  ;;  %v1916_v20 = vadd.f32 %v1915_v25, %v1787_v37  ;;  %v3893_v37 = vld [vmem:[%s3996_s6 + $0x40] sm:$0xff]   ;;  %v5279_v34 = vld [vmem:[#allocation31_spill] sm:$0xff]  ;;  %v5280_v29 = vld [vmem:[#allocation32_spill] sm:$0xff] }
 0x252   : > { %v2302_v58 = vpop.f32.mrf.mxu0 }
 0x253   : > { %v4950_v3 = vadd.f32 %v2300_v52, %v2172_v24  ;;  %v5281_v24 = vld [vmem:[#allocation18_spill] sm:$0xff] }
 0x255   : > { %5276 = vst [vmem:[#allocation11_spill] sm:$0xff] %v4950_v3 }
 0x256   : > { %v2044_v11 = vpop.f32.mrf.mxu2 }
 0x257   : > { %v2045_v49 = vadd.f32 %v2044_v11, %v1916_v20  ;;  %v2173_v35 = vpop.f32.mrf.mxu3  ;;  %v1792_v20 = vadd.f32 %v4839_v31, %v5281_v24 }
 0x258   : > { %v1918_v12 = vpop.f32.mrf.mxu1 }
 0x259   : > { %v2174_v9 = vadd.f32 %v2173_v35, %v2045_v49  ;;  %v1919_v55 = vadd.f32 %v1918_v12, %v1790_v18  ;;  %v3894_v35 = vld [vmem:[%s3996_s6 + $0x44] sm:$0xff]  }
 0x25a   : > { %v2305_v26 = vpop.f32.mrf.mxu0 }
 0x25b   : > { %2353 = vmatmul.bf16.gmra.mxu1 %v968_v1  ;;  %2482 = vmatmul.bf16.gmra.mxu2 %v3893_v37  ;;  %v4957_v52 = vadd.f32 %v2302_v58, %v2174_v9  ;;  %v969_v58 = vrot.slane %v3894_v35, 1  ;;  %v5282_v9 = vld [vmem:[#allocation22_spill] sm:$0xff] }
 0x25c   : > { %2611 = vmatmul.bf16.gmra.mxu3 %v5279_v34  ;;  %v1795_v37 = vadd.f32 %v4839_v31, %v5282_v9 }
 0x25d   : > { %5278 = vst [vmem:[#allocation12_spill] sm:$0xff] %v4957_v52  ;;  %2740 = vmatmul.bf16.gmra.mxu0 %v5280_v29  ;;  %v970_v24 = vsel %vm602_vm1, %v967_v10, %v969_v58 }
 0x25e   : > { %v2047_v25 = vpop.f32.mrf.mxu2 }
 0x25f   : > { %v2048_v28 = vadd.f32 %v2047_v25, %v1919_v55  ;;  %v2176_v11 = vpop.f32.mrf.mxu3 }
 0x260   : > { %v1920_v2 = vpop.f32.mrf.mxu1 }
 0x261   : > { %v2177_v8 = vadd.f32 %v2176_v11, %v2048_v28  ;;  %v1921_v12 = vadd.f32 %v1920_v2, %v1792_v20  ;;  %v3895_v20 = vld [vmem:[%s3996_s6 + $0x48] sm:$0xff]   ;;  %v5283_v11 = vld [vmem:[#allocation24_spill] sm:$0xff] }
 0x262   : > { %v2307_v18 = vpop.f32.mrf.mxu0  ;;  %v1797_v2 = vadd.f32 %v4839_v31, %v5283_v11 }
 0x263   : > { %v4963_v49 = vadd.f32 %v2305_v26, %v2177_v8 }
 0x266   : > { %v2049_v1 = vpop.f32.mrf.mxu2 }
 0x267   : > { %v2050_v34 = vadd.f32 %v2049_v1, %v1921_v12  ;;  %v2178_v29 = vpop.f32.mrf.mxu3 }
 0x268   : > { %v1923_v52 = vpop.f32.mrf.mxu1 }
 0x269   : > { %v2179_v55 = vadd.f32 %v2178_v29, %v2050_v34  ;;  %v1924_v25 = vadd.f32 %v1923_v52, %v1795_v37  ;;  %v3896_v37 = vld [vmem:[%s3996_s6 + $0x4c] sm:$0xff]  }
 0x26a   : > { %v2310_v3 = vpop.f32.mrf.mxu0  ;;  %v5284_v29 = vld [vmem:[#allocation28_spill] sm:$0xff] }
 0x26b   : > { %2358 = vmatmul.bf16.gmra.mxu1 %v970_v24  ;;  %2487 = vmatmul.bf16.gmra.mxu2 %v3895_v20  ;;  %v4970_v26 = vadd.f32 %v2307_v18, %v2179_v55  ;;  %v971_v18 = vrot.slane %v3896_v37, 1 }
 0x26c   : > { %2616 = vmatmul.bf16.gmra.mxu3 %v4456_v21  ;;  %v1800_v21 = vadd.f32 %v4839_v31, %v5284_v29 }
 0x26d   : > { %2745 = vmatmul.bf16.gmra.mxu0 %v4459_v60  ;;  %v972_v20 = vsel %vm602_vm1, %v969_v58, %v971_v18 }
 0x26e   : > { %v2052_v28 = vpop.f32.mrf.mxu2 }
 0x26f   : > { %v2053_v8 = vadd.f32 %v2052_v28, %v1924_v25  ;;  %v2181_v12 = vpop.f32.mrf.mxu3 }
 0x270   : > { %v1925_v10 = vpop.f32.mrf.mxu1 }
 0x271   : > { %v2182_v35 = vadd.f32 %v2181_v12, %v2053_v8  ;;  %v1926_v52 = vadd.f32 %v1925_v10, %v1797_v2  ;;  %v3897_v2 = vld [vmem:[%s3996_s6 + $0x50] sm:$0xff]   ;;  %v5285_v12 = vld [vmem:[#allocation30_spill] sm:$0xff] }
 0x272   : > { %v2312_v1 = vpop.f32.mrf.mxu0  ;;  %v1802_v10 = vadd.f32 %v4839_v31, %v5285_v12 }
 0x273   : > { %v4976_v9 = vadd.f32 %v2310_v3, %v2182_v35 }
 0x276   : > { %v2054_v34 = vpop.f32.mrf.mxu2 }
 0x277   : > { %v2055_v60 = vadd.f32 %v2054_v34, %v1926_v52  ;;  %v2183_v24 = vpop.f32.mrf.mxu3 }
 0x278   : > { %v1928_v55 = vpop.f32.mrf.mxu1 }
 0x279   : > { %v2184_v25 = vadd.f32 %v2183_v24, %v2055_v60  ;;  %v1929_v28 = vadd.f32 %v1928_v55, %v1800_v21  ;;  %v3898_v60 = vld [vmem:[%s3996_s6 + $0x54] sm:$0xff]  }
 0x27a   : > { %v2315_v11 = vpop.f32.mrf.mxu0 }
 0x27b   : > { %2363 = vmatmul.bf16.gmra.mxu1 %v972_v20  ;;  %2492 = vmatmul.bf16.gmra.mxu2 %v3897_v2  ;;  %v4983_v3 = vadd.f32 %v2312_v1, %v2184_v25  ;;  %v973_v1 = vrot.slane %v3898_v60, 1  ;;  %v5287_v60 = vld [vmem:[#allocation34_spill] sm:$0xff] }
 0x27c   : > { %2621 = vmatmul.bf16.gmra.mxu3 %v4482_v38 }
 0x27d   : > { %2750 = vmatmul.bf16.gmra.mxu0 %v4485_v4  ;;  %v974_v4 = vsel %vm602_vm1, %v971_v18, %v973_v1  ;;  %v3900_v18 = vld [vmem:[%s3996_s6 + $0x5c] sm:$0xff]  }
 0x27e   : > { %v2057_v8 = vpop.f32.mrf.mxu2 }
 0x27f   : > { %v2058_v35 = vadd.f32 %v2057_v8, %v1929_v28  ;;  %v2186_v52 = vpop.f32.mrf.mxu3  ;;  %v3899_v28 = vld [vmem:[%s3996_s6 + $0x58] sm:$0xff]  }
 0x280   : > { %v1930_v58 = vpop.f32.mrf.mxu1  ;;  %v5286_v8 = vld [vmem:[#allocation33_spill] sm:$0xff] }
 0x281   : > { %v2187_v37 = vadd.f32 %v2186_v52, %v2058_v35  ;;  %v1931_v34 = vadd.f32 %v1930_v58, %v1802_v10 }
 0x282   : > { %v2317_v29 = vpop.f32.mrf.mxu0 }
 0x283   : > { %v4989_v21 = vadd.f32 %v2315_v11, %v2187_v37  ;;  %v975_v37 = vrot.slane %v3900_v18, 1 }
 0x286   : > { %v2059_v24 = vpop.f32.mrf.mxu2 }
 0x287   : > { %v2060_v55 = vadd.f32 %v2059_v24, %v1931_v34  ;;  %v2188_v38 = vpop.f32.mrf.mxu3 }
 0x288   : > { %v2329_v20 = vpop.f32.mrf.mxu1 }
 0x289   : > { %v2189_v25 = vadd.f32 %v2188_v38, %v2060_v55  ;;  %v2330_v12 = vadd.f32 %v2329_v20, %v5286_v8 }
 0x28a   : > { %v2716_v31 = vpop.f32.mrf.mxu0 }
 0x28b   : > { %2368 = vmatmul.bf16.gmra.mxu1 %v974_v4  ;;  %2497 = vmatmul.bf16.gmra.mxu2 %v3899_v28  ;;  %v4994_v2 = vadd.f32 %v2317_v29, %v2189_v25 }
 0x28c   : > { %2626 = vmatmul.bf16.gmra.mxu3 %v4520_v27 }
 0x28d   : > { %2755 = vmatmul.bf16.gmra.mxu0 %v4523_v57  ;;  %v976_v57 = vsel %vm602_vm1, %v973_v1, %v975_v37 }
 0x28e   : > { %v2458_v11 = vpop.f32.mrf.mxu2 }
 0x28f   : > { %v2587_v10 = vpop.f32.mrf.mxu3  ;;  %v2459_v52 = vadd.f32 %v2458_v11, %v2330_v12  ;;  %v3901_v11 = vld [vmem:[%s3996_s6 + $0x60] sm:$0xff]  }
 0x290   : > { %v2331_v35 = vpop.f32.mrf.mxu1 }
 0x291   : > { %v2588_v34 = vadd.f32 %v2587_v10, %v2459_v52  ;;  %v2332_v24 = vadd.f32 %v2331_v35, %v5287_v60  ;;  %v5288_v10 = vld [vmem:[#allocation35_spill] sm:$0xff] }
 0x292   : > { %v2718_v58 = vpop.f32.mrf.mxu0 }
 0x293   : > { %v2717_v4 = vadd.f32 %v2716_v31, %v2588_v34  ;;  %v3902_v34 = vld [vmem:[%s3996_s6 + $0x64] sm:$0xff]  }
 0x295   : > { %v2836_v8 = vmax.f32 %v2717_v4, 0.0 }
 0x296   : > { %v2460_v29 = vpop.f32.mrf.mxu2 }
 0x297   : > { %v2461_v55 = vadd.f32 %v2460_v29, %v2332_v24  ;;  %v2589_v38 = vpop.f32.mrf.mxu3  ;;  %v5289_v24 = vld [vmem:[#allocation36_spill] sm:$0xff] }
 0x298   : > { %v2334_v27 = vpop.f32.mrf.mxu1 }
 0x299   : > { %v2590_v25 = vadd.f32 %v2589_v38, %v2461_v55  ;;  %v2335_v35 = vadd.f32 %v2334_v27, %v5288_v10 }
 0x29a   : > { %v2721_v20 = vpop.f32.mrf.mxu0 }
 0x29b   : > { %v2719_v28 = vadd.f32 %v2718_v58, %v2590_v25  ;;  %2373 = vmatmul.bf16.gmra.mxu1 %v976_v57  ;;  %2502 = vmatmul.bf16.gmra.mxu2 %v3901_v11 }
 0x29c   : > { %2631 = vmatmul.bf16.gmra.mxu3 %v4546_v5 }
 0x29d   : > { %2760 = vmatmul.bf16.gmra.mxu0 %v4549_v45  ;;  %v2837_v12 = vmax.f32 %v2719_v28, 0.0  ;;  %v977_v45 = vrot.slane %v3902_v34, 1 }
 0x29e   : > { %v2463_v1 = vpop.f32.mrf.mxu2 }
 0x29f   : > { %v3516_v31 = vpack.c.bf16 %v2837_v12, %v2836_v8  ;;  %v2592_v52 = vpop.f32.mrf.mxu3  ;;  %v2464_v18 = vadd.f32 %v2463_v1, %v2335_v35  ;;  %v978_v25 = vsel %vm602_vm1, %v975_v37, %v977_v45  ;;  %v3903_v12 = vld [vmem:[%s3996_s6 + $0x68] sm:$0xff]  }
 0x2a0   : > { %v2336_v58 = vpop.f32.mrf.mxu1 }
 0x2a1   : > { %3517 = vst [vmem:[%s5009_s24] sm:$0xff] %v3516_v31   ;;  %v2593_v60 = vadd.f32 %v2592_v52, %v2464_v18  ;;  %v2337_v29 = vadd.f32 %v2336_v58, %v5289_v24 }
 0x2a2   : > { %v2723_v5 = vpop.f32.mrf.mxu0 }
 0x2a3   : > { %v2722_v28 = vadd.f32 %v2721_v20, %v2593_v60 }
 0x2a5   : > { %v2838_v1 = vmax.f32 %v2722_v28, 0.0  ;;  %v3905_v28 = vld [vmem:[%s3996_s6 + $0x70] sm:$0xff]  }
 0x2a6   : > { %v2465_v55 = vpop.f32.mrf.mxu2 }
 0x2a7   : > { %v2466_v38 = vadd.f32 %v2465_v55, %v2337_v29  ;;  %v2594_v57 = vpop.f32.mrf.mxu3 }
 0x2a8   : > { %v2339_v4 = vpop.f32.mrf.mxu1 }
 0x2a9   : > { %v2595_v27 = vadd.f32 %v2594_v57, %v2466_v38  ;;  %v2340_v52 = vadd.f32 %v2339_v4, %v4514_v16 }
 0x2aa   : > { %v2726_v11 = vpop.f32.mrf.mxu0 }
 0x2ab   : > { %v2724_v8 = vadd.f32 %v2723_v5, %v2595_v27  ;;  %2378 = vmatmul.bf16.gmra.mxu1 %v978_v25  ;;  %2507 = vmatmul.bf16.gmra.mxu2 %v3903_v12  ;;  %v3904_v5 = vld [vmem:[%s3996_s6 + $0x6c] sm:$0xff]  }
 0x2ac   : > { %2636 = vmatmul.bf16.gmra.mxu3 %v4572_v50  ;;  %v979_v34 = vrot.slane %v3904_v5, 1 }
 0x2ad   : > { %2765 = vmatmul.bf16.gmra.mxu0 %v4575_v53  ;;  %v2839_v31 = vmax.f32 %v2724_v8, 0.0 }
 0x2ae   : > { %v2468_v10 = vpop.f32.mrf.mxu2  ;;  %v980_v38 = vsel %vm602_vm1, %v977_v45, %v979_v34 }
 0x2af   : > { %v3521_v35 = vpack.c.bf16 %v2839_v31, %v2838_v1  ;;  %v2597_v37 = vpop.f32.mrf.mxu3  ;;  %v2469_v58 = vadd.f32 %v2468_v10, %v2340_v52 }
 0x2b0   : > { %v2341_v20 = vpop.f32.mrf.mxu1 }
 0x2b1   : > { %3761 = vst [vmem:[%s5009_s24 + $0x8] sm:$0xff] %v3521_v35   ;;  %v2598_v60 = vadd.f32 %v2597_v37, %v2469_v58  ;;  %v2342_v24 = vadd.f32 %v2341_v20, %v4528_v19  ;;  %v3906_v35 = vld [vmem:[%s3996_s6 + $0x74] sm:$0xff]  }
 0x2b2   : > { %v2728_v18 = vpop.f32.mrf.mxu0  ;;  %v981_v52 = vrot.slane %v3906_v35, 1  ;;  %v5290_v20 = vld [vmem:[#allocation37_spill] sm:$0xff] }
 0x2b3   : > { %v2727_v57 = vadd.f32 %v2726_v11, %v2598_v60 }
 0x2b4   : > { %v982_v60 = vsel %vm602_vm1, %v979_v34, %v981_v52 }
 0x2b5   : > { %v2840_v19 = vmax.f32 %v2727_v57, 0.0 }
 0x2b6   : > { %v2470_v50 = vpop.f32.mrf.mxu2 }
 0x2b7   : > { %v2471_v29 = vadd.f32 %v2470_v50, %v2342_v24  ;;  %v2599_v53 = vpop.f32.mrf.mxu3 }
 0x2b8   : > { %v2344_v55 = vpop.f32.mrf.mxu1 }
 0x2b9   : > { %v2600_v16 = vadd.f32 %v2599_v53, %v2471_v29  ;;  %v2345_v1 = vadd.f32 %v2344_v55, %v4540_v15  ;;  %v3907_v53 = vld [vmem:[%s3996_s6 + $0x78] sm:$0xff]  }
 0x2ba   : > { %v2731_v4 = vpop.f32.mrf.mxu0 }
 0x2bb   : > { %v2729_v25 = vadd.f32 %v2728_v18, %v2600_v16  ;;  %2383 = vmatmul.bf16.gmra.mxu1 %v980_v38  ;;  %2512 = vmatmul.bf16.gmra.mxu2 %v3905_v28 }
 0x2bc   : > { %2641 = vmatmul.bf16.gmra.mxu3 %v4610_v54 }
 0x2bd   : > { %2770 = vmatmul.bf16.gmra.mxu0 %v4613_v13  ;;  %v2841_v27 = vmax.f32 %v2729_v25, 0.0  ;;  %v5291_v25 = vld [vmem:[#allocation38_spill] sm:$0xff] }
 0x2be   : > { %v2473_v8 = vpop.f32.mrf.mxu2 }
 0x2bf   : > { %v3526_v12 = vpack.c.bf16 %v2841_v27, %v2840_v19  ;;  %v2602_v45 = vpop.f32.mrf.mxu3  ;;  %v2474_v31 = vadd.f32 %v2473_v8, %v2345_v1  ;;  %v3908_v8 = vld [vmem:[%s3996_s6 + $0x7c] sm:$0xff]  }
 0x2c0   : > { %v2346_v11 = vpop.f32.mrf.mxu1 }
 0x2c1   : > { %3762 = vst [vmem:[%s5009_s24 + $0x10] sm:$0xff] %v3526_v12   ;;  %v2603_v37 = vadd.f32 %v2602_v45, %v2474_v31  ;;  %v2347_v58 = vadd.f32 %v2346_v11, %v5290_v20  ;;  %v983_v12 = vrot.slane %v3908_v8, 1  ;;  %v5292_v45 = vld [vmem:[#allocation39_spill] sm:$0xff] }
 0x2c2   : > { %v2733_v10 = vpop.f32.mrf.mxu0  ;;  %v3911_v8 = vld [vmem:[%s3996_s6 + $0x88] sm:$0xff]  }
 0x2c3   : > { %v2732_v24 = vadd.f32 %v2731_v4, %v2603_v37  ;;  %v984_v35 = vsel %vm602_vm1, %v981_v52, %v983_v12 }
 0x2c5   : > { %v2842_v55 = vmax.f32 %v2732_v24, 0.0 }
 0x2c6   : > { %v2475_v54 = vpop.f32.mrf.mxu2 }
 0x2c7   : > { %v2476_v18 = vadd.f32 %v2475_v54, %v2347_v58  ;;  %v2604_v13 = vpop.f32.mrf.mxu3 }
 0x2c8   : > { %v2349_v5 = vpop.f32.mrf.mxu1 }
 0x2c9   : > { %v2605_v15 = vadd.f32 %v2604_v13, %v2476_v18  ;;  %v2350_v28 = vadd.f32 %v2349_v5, %v5291_v25  ;;  %v3909_v18 = vld [vmem:[%s3996_s6 + $0x80] sm:$0xff]  }
 0x2ca   : > { %v2736_v50 = vpop.f32.mrf.mxu0 }
 0x2cb   : > { %v2734_v29 = vadd.f32 %v2733_v10, %v2605_v15  ;;  %2388 = vmatmul.bf16.gmra.mxu1 %v982_v60  ;;  %2517 = vmatmul.bf16.gmra.mxu2 %v3907_v53 }
 0x2cc   : > { %2646 = vmatmul.bf16.gmra.mxu3 %v4636_v61 }
 0x2cd   : > { %2775 = vmatmul.bf16.gmra.mxu0 %v4639_v51  ;;  %v2843_v38 = vmax.f32 %v2734_v29, 0.0 }
 0x2ce   : > { %v2478_v57 = vpop.f32.mrf.mxu2 }
 0x2cf   : > { %v3531_v16 = vpack.c.bf16 %v2843_v38, %v2842_v55  ;;  %v2607_v34 = vpop.f32.mrf.mxu3  ;;  %v2479_v19 = vadd.f32 %v2478_v57, %v2350_v28  ;;  %v3910_v55 = vld [vmem:[%s3996_s6 + $0x84] sm:$0xff]  }
 0x2d0   : > { %v2351_v4 = vpop.f32.mrf.mxu1  ;;  %v985_v38 = vrot.slane %v3910_v55, 1 }
 0x2d1   : > { %3763 = vst [vmem:[%s5009_s24 + $0x18] sm:$0xff] %v3531_v16   ;;  %v2608_v1 = vadd.f32 %v2607_v34, %v2479_v19  ;;  %v2352_v11 = vadd.f32 %v2351_v4, %v5292_v45 }
 0x2d2   : > { %v2738_v27 = vpop.f32.mrf.mxu0  ;;  %v986_v34 = vsel %vm602_vm1, %v983_v12, %v985_v38 }
 0x2d3   : > { %v2737_v37 = vadd.f32 %v2736_v50, %v2608_v1 }
 0x2d5   : > { %v2844_v13 = vmax.f32 %v2737_v37, 0.0  ;;  %v3912_v37 = vld [vmem:[%s3996_s6 + $0x8c] sm:$0xff]  }
 0x2d6   : > { %v2480_v61 = vpop.f32.mrf.mxu2 }
 0x2d7   : > { %v2481_v31 = vadd.f32 %v2480_v61, %v2352_v11  ;;  %v2609_v51 = vpop.f32.mrf.mxu3  ;;  %v5293_v61 = vld [vmem:[#allocation40_spill] sm:$0xff] }
 0x2d8   : > { %v2354_v10 = vpop.f32.mrf.mxu1 }
 0x2d9   : > { %v2610_v20 = vadd.f32 %v2609_v51, %v2481_v31  ;;  %v2355_v15 = vadd.f32 %v2354_v10, %v4604_v39 }
 0x2da   : > { %v2741_v58 = vpop.f32.mrf.mxu0 }
 0x2db   : > { %v2739_v54 = vadd.f32 %v2738_v27, %v2610_v20  ;;  %2393 = vmatmul.bf16.gmra.mxu1 %v984_v35  ;;  %2522 = vmatmul.bf16.gmra.mxu2 %v3909_v18  ;;  %v987_v20 = vrot.slane %v3912_v37, 1 }
 0x2dc   : > { %2651 = vmatmul.bf16.gmra.mxu3 %v4662_v43 }
 0x2dd   : > { %2780 = vmatmul.bf16.gmra.mxu0 %v4665_v0  ;;  %v2845_v5 = vmax.f32 %v2739_v54, 0.0  ;;  %v5294_v54 = vld [vmem:[#allocation41_spill] sm:$0xff] }
 0x2de   : > { %v2483_v60 = vpop.f32.mrf.mxu2 }
 0x2df   : > { %v3536_v24 = vpack.c.bf16 %v2845_v5, %v2844_v13  ;;  %v2612_v52 = vpop.f32.mrf.mxu3  ;;  %v2484_v29 = vadd.f32 %v2483_v60, %v2355_v15  ;;  %v988_v60 = vsel %vm602_vm1, %v985_v38, %v987_v20 }
 0x2e0   : > { %v2356_v50 = vpop.f32.mrf.mxu1 }
 0x2e1   : > { %3764 = vst [vmem:[%s5009_s24 + $0x20] sm:$0xff] %v3536_v24   ;;  %v2613_v57 = vadd.f32 %v2612_v52, %v2484_v29  ;;  %v2357_v16 = vadd.f32 %v2356_v50, %v4618_v6  ;;  %v3913_v29 = vld [vmem:[%s3996_s6 + $0x90] sm:$0xff]  }
 0x2e2   : > { %v2743_v53 = vpop.f32.mrf.mxu0 }
 0x2e3   : > { %v2742_v4 = vadd.f32 %v2741_v58, %v2613_v57 }
 0x2e5   : > { %v2846_v6 = vmax.f32 %v2742_v4, 0.0  ;;  %v3914_v4 = vld [vmem:[%s3996_s6 + $0x94] sm:$0xff]  }
 0x2e6   : > { %v2485_v43 = vpop.f32.mrf.mxu2 }
 0x2e7   : > { %v2486_v25 = vadd.f32 %v2485_v43, %v2357_v16  ;;  %v2614_v0 = vpop.f32.mrf.mxu3  ;;  %v5295_v43 = vld [vmem:[#allocation42_spill] sm:$0xff] }
 0x2e8   : > { %v2359_v28 = vpop.f32.mrf.mxu1 }
 0x2e9   : > { %v2615_v39 = vadd.f32 %v2614_v0, %v2486_v25  ;;  %v2360_v31 = vadd.f32 %v2359_v28, %v5293_v61 }
 0x2ea   : > { %v2746_v19 = vpop.f32.mrf.mxu0 }
 0x2eb   : > { %v2744_v27 = vadd.f32 %v2743_v53, %v2615_v39  ;;  %2398 = vmatmul.bf16.gmra.mxu1 %v986_v34  ;;  %2527 = vmatmul.bf16.gmra.mxu2 %v3911_v8  ;;  %v989_v39 = vrot.slane %v3914_v4, 1  ;;  %v5299_v4 = vld [vmem:[#allocation46_spill] sm:$0xff] }
 0x2ec   : > { %2656 = vmatmul.bf16.gmra.mxu3 %v4698_v63 }
 0x2ed   : > { %2785 = vmatmul.bf16.gmra.mxu0 %v4701_v23  ;;  %v2847_v1 = vmax.f32 %v2744_v27, 0.0  ;;  %v5296_v27 = vld [vmem:[#allocation43_spill] sm:$0xff] }
 0x2ee   : > { %v2488_v45 = vpop.f32.mrf.mxu2 }
 0x2ef   : > { %v3541_v11 = vpack.c.bf16 %v2847_v1, %v2846_v6  ;;  %v2617_v12 = vpop.f32.mrf.mxu3  ;;  %v2489_v10 = vadd.f32 %v2488_v45, %v2360_v31  ;;  %v990_v45 = vsel %vm602_vm1, %v987_v20, %v989_v39 }
 0x2f0   : > { %v2361_v51 = vpop.f32.mrf.mxu1 }
 0x2f1   : > { %3765 = vst [vmem:[%s5009_s24 + $0x28] sm:$0xff] %v3541_v11   ;;  %v2618_v58 = vadd.f32 %v2617_v12, %v2489_v10  ;;  %v2362_v18 = vadd.f32 %v2361_v51, %v5294_v54  ;;  %v3915_v51 = vld [vmem:[%s3996_s6 + $0x98] sm:$0xff]   ;;  %v5297_v54 = vld [vmem:[#allocation44_spill] sm:$0xff] }
 0x2f2   : > { %v2748_v35 = vpop.f32.mrf.mxu0 }
 0x2f3   : > { %v2747_v24 = vadd.f32 %v2746_v19, %v2618_v58 }
 0x2f5   : > { %v2848_v53 = vmax.f32 %v2747_v24, 0.0 }
 0x2f6   : > { %v2490_v63 = vpop.f32.mrf.mxu2 }
 0x2f7   : > { %v2491_v13 = vadd.f32 %v2490_v63, %v2362_v18  ;;  %v2619_v23 = vpop.f32.mrf.mxu3 }
 0x2f8   : > { %v2364_v5 = vpop.f32.mrf.mxu1 }
 0x2f9   : > { %v2620_v15 = vadd.f32 %v2619_v23, %v2491_v13  ;;  %v2365_v25 = vadd.f32 %v2364_v5, %v5295_v43  ;;  %v3916_v5 = vld [vmem:[%s3996_s6 + $0x9c] sm:$0xff]  }
 0x2fa   : > { %v2751_v52 = vpop.f32.mrf.mxu0 }
 0x2fb   : > { %v2749_v50 = vadd.f32 %v2748_v35, %v2620_v15  ;;  %2403 = vmatmul.bf16.gmra.mxu1 %v988_v60  ;;  %2532 = vmatmul.bf16.gmra.mxu2 %v3913_v29  ;;  %v991_v60 = vrot.slane %v3916_v5, 1  ;;  %v5298_v15 = vld [vmem:[#allocation45_spill] sm:$0xff] }
 0x2fc   : > { %2661 = vmatmul.bf16.gmra.mxu3 %v4722_v56 }
 0x2fd   : > { %2790 = vmatmul.bf16.gmra.mxu0 %v4725_v17  ;;  %v2849_v55 = vmax.f32 %v2749_v50, 0.0 }
 0x2fe   : > { %v2493_v57 = vpop.f32.mrf.mxu2 }
 0x2ff   : > { %v3546_v16 = vpack.c.bf16 %v2849_v55, %v2848_v53  ;;  %v2622_v38 = vpop.f32.mrf.mxu3  ;;  %v2494_v28 = vadd.f32 %v2493_v57, %v2365_v25  ;;  %v992_v53 = vsel %vm602_vm1, %v989_v39, %v991_v60  ;;  %v3917_v25 = vld [vmem:[%s3996_s6 + $0xa0] sm:$0xff]  }
 0x300   : > { %v2366_v0 = vpop.f32.mrf.mxu1 }
 0x301   : > { %3766 = vst [vmem:[%s5009_s24 + $0x30] sm:$0xff] %v3546_v16   ;;  %v2623_v19 = vadd.f32 %v2622_v38, %v2494_v28  ;;  %v2367_v8 = vadd.f32 %v2366_v0, %v5296_v27 }
 0x302   : > { %v2753_v34 = vpop.f32.mrf.mxu0 }
 0x303   : > { %v2752_v11 = vadd.f32 %v2751_v52, %v2623_v19 }
 0x305   : > { %v2850_v10 = vmax.f32 %v2752_v11, 0.0 }
 0x306   : > { %v2495_v56 = vpop.f32.mrf.mxu2 }
 0x307   : > { %v2496_v6 = vadd.f32 %v2495_v56, %v2367_v8  ;;  %v2624_v17 = vpop.f32.mrf.mxu3 }
 0x308   : > { %v2369_v1 = vpop.f32.mrf.mxu1 }
 0x309   : > { %v2625_v61 = vadd.f32 %v2624_v17, %v2496_v6  ;;  %v2370_v18 = vadd.f32 %v2369_v1, %v5297_v54  ;;  %v3918_v6 = vld [vmem:[%s3996_s6 + $0xa4] sm:$0xff]  }
 0x30a   : > { %v2756_v31 = vpop.f32.mrf.mxu0  ;;  %v993_v17 = vrot.slane %v3918_v6, 1 }
 0x30b   : > { %v2754_v12 = vadd.f32 %v2753_v34, %v2625_v61  ;;  %2408 = vmatmul.bf16.gmra.mxu1 %v990_v45  ;;  %2537 = vmatmul.bf16.gmra.mxu2 %v3915_v51  ;;  %v5300_v45 = vld [vmem:[#allocation47_spill] sm:$0xff] }
 0x30c   : > { %2666 = vmatmul.bf16.gmra.mxu3 %v4750_v44 }
 0x30d   : > { %2795 = vmatmul.bf16.gmra.mxu0 %v4753_v41  ;;  %v2851_v35 = vmax.f32 %v2754_v12, 0.0  ;;  %v994_v12 = vsel %vm602_vm1, %v991_v60, %v993_v17 }
 0x30e   : > { %v2498_v37 = vpop.f32.mrf.mxu2 }
 0x30f   : > { %v3551_v58 = vpack.c.bf16 %v2851_v35, %v2850_v10  ;;  %v2627_v20 = vpop.f32.mrf.mxu3  ;;  %v2499_v13 = vadd.f32 %v2498_v37, %v2370_v18 }
 0x310   : > { %v2371_v63 = vpop.f32.mrf.mxu1 }
 0x311   : > { %3767 = vst [vmem:[%s5009_s24 + $0x38] sm:$0xff] %v3551_v58   ;;  %v2628_v24 = vadd.f32 %v2627_v20, %v2499_v13  ;;  %v2372_v52 = vadd.f32 %v2371_v63, %v5298_v15  ;;  %v3919_v58 = vld [vmem:[%s3996_s6 + $0xa8] sm:$0xff]   ;;  %v5301_v13 = vld [vmem:[#allocation48_spill] sm:$0xff] }
 0x312   : > { %v2758_v23 = vpop.f32.mrf.mxu0 }
 0x313   : > { %v2757_v55 = vadd.f32 %v2756_v31, %v2628_v24 }
 0x315   : > { %v2852_v38 = vmax.f32 %v2757_v55, 0.0 }
 0x316   : > { %v2500_v44 = vpop.f32.mrf.mxu2 }
 0x317   : > { %v2501_v50 = vadd.f32 %v2500_v44, %v2372_v52  ;;  %v2629_v41 = vpop.f32.mrf.mxu3  ;;  %v3920_v52 = vld [vmem:[%s3996_s6 + $0xac] sm:$0xff]  }
 0x318   : > { %v2374_v29 = vpop.f32.mrf.mxu1  ;;  %v995_v44 = vrot.slane %v3920_v52, 1 }
 0x319   : > { %v2630_v57 = vadd.f32 %v2629_v41, %v2501_v50  ;;  %v2375_v19 = vadd.f32 %v2374_v29, %v5299_v4  ;;  %v5302_v41 = vld [vmem:[#allocation49_spill] sm:$0xff] }
 0x31a   : > { %v2761_v16 = vpop.f32.mrf.mxu0 }
 0x31b   : > { %v2759_v43 = vadd.f32 %v2758_v23, %v2630_v57  ;;  %2413 = vmatmul.bf16.gmra.mxu1 %v992_v53  ;;  %2542 = vmatmul.bf16.gmra.mxu2 %v3917_v25  ;;  %v996_v57 = vsel %vm602_vm1, %v993_v17, %v995_v44 }
 0x31c   : > { %2671 = vmatmul.bf16.gmra.mxu3 %v4787_v30 }
 0x31d   : > { %2800 = vmatmul.bf16.gmra.mxu0 %v4790_v32  ;;  %v2853_v0 = vmax.f32 %v2759_v43, 0.0 }
 0x31e   : > { %v2503_v28 = vpop.f32.mrf.mxu2 }
 0x31f   : > { %v3556_v34 = vpack.c.bf16 %v2853_v0, %v2852_v38  ;;  %v2632_v39 = vpop.f32.mrf.mxu3  ;;  %v2504_v8 = vadd.f32 %v2503_v28, %v2375_v19  ;;  %v3921_v0 = vld [vmem:[%s3996_s6 + $0xb0] sm:$0xff]   ;;  %v3656_v19 = vld [vmem:[%s3996_s6 + $0xc0] sm:$0xff]  }
 0x320   : > { %v2376_v27 = vpop.f32.mrf.mxu1 }
 0x321   : > { %3768 = vst [vmem:[%s5009_s24 + $0x40] sm:$0xff] %v3556_v34   ;;  %v2633_v1 = vadd.f32 %v2632_v39, %v2504_v8  ;;  %v2377_v11 = vadd.f32 %v2376_v27, %v5300_v45  ;;  %v3922_v45 = vld [vmem:[%s3996_s6 + $0xb4] sm:$0xff]  }
 0x322   : > { %v2763_v56 = vpop.f32.mrf.mxu0 }
 0x323   : > { %v2762_v51 = vadd.f32 %v2761_v16, %v2633_v1  ;;  %v1045_v1 = vshll.u32 %v3656_v19, 16 }
 0x325   : > { %v2854_v54 = vmax.f32 %v2762_v51, 0.0 }
 0x326   : > { %v2505_v30 = vpop.f32.mrf.mxu2 }
 0x327   : > { %v2506_v61 = vadd.f32 %v2505_v30, %v2377_v11  ;;  %v2634_v32 = vpop.f32.mrf.mxu3  ;;  %v997_v11 = vrot.slane %v3922_v45, 1 }
 0x328   : > { %v2379_v31 = vpop.f32.mrf.mxu1 }
 0x329   : > { %v2635_v10 = vadd.f32 %v2634_v32, %v2506_v61  ;;  %v2380_v23 = vadd.f32 %v2379_v31, %v5301_v13  ;;  %v5303_v61 = vld [vmem:[#allocation50_spill] sm:$0xff]  ;;  %v1082_v32 = vrot.slane %v3656_v19, 1 }
 0x32a   : > { %v2766_v35 = vpop.f32.mrf.mxu0 }
 0x32b   : > { %v2764_v37 = vadd.f32 %v2763_v56, %v2635_v10  ;;  %2418 = vmatmul.bf16.gmra.mxu1 %v994_v12  ;;  %2547 = vmatmul.bf16.gmra.mxu2 %v3919_v58 }
 0x32c   : > { %2676 = vmatmul.bf16.gmra.mxu3 %v4811_v48 }
 0x32d   : > { %2805 = vmatmul.bf16.gmra.mxu0 %v4814_v59  ;;  %v2855_v18 = vmax.f32 %v2764_v37, 0.0 }
 0x32e   : > { %v2508_v20 = vpop.f32.mrf.mxu2 }
 0x32f   : > { %v3561_v63 = vpack.c.bf16 %v2855_v18, %v2854_v54  ;;  %v2637_v5 = vpop.f32.mrf.mxu3  ;;  %v2509_v24 = vadd.f32 %v2508_v20, %v2380_v23  ;;  %v1083_v18 = vsel %vm602_vm1, %v4832_v62, %v1082_v32 }
 0x330   : > { %v2381_v60 = vpop.f32.mrf.mxu1 }
 0x331   : > { %3769 = vst [vmem:[%s5009_s24 + $0x48] sm:$0xff] %v3561_v63   ;;  %v2638_v50 = vadd.f32 %v2637_v5, %v2509_v24  ;;  %v2382_v29 = vadd.f32 %v2381_v60, %v5302_v41  ;;  %v3923_v63 = vld [vmem:[%s3996_s6 + $0xb8] sm:$0xff]   ;;  %v5103_v60 = vld [vmem:[%s3996_s6 + $0xc8] sm:$0xff]  }
 0x332   : > { %v2768_v15 = vpop.f32.mrf.mxu0 }
 0x333   : > { %v2767_v16 = vadd.f32 %v2766_v35, %v2638_v50  ;;  %v1049_v50 = vshrl.u32 %v3656_v19, 16 }
 0x335   : > { %v2856_v28 = vmax.f32 %v2767_v16, 0.0 }
 0x336   : > { %v2510_v48 = vpop.f32.mrf.mxu2 }
 0x337   : > { %v2511_v53 = vadd.f32 %v2510_v48, %v2382_v29  ;;  %v2639_v59 = vpop.f32.mrf.mxu3  ;;  %v1053_v29 = vshll.u32 %v5103_v60, 16  ;;  %v3924_v48 = vld [vmem:[%s3996_s6 + $0xbc] sm:$0xff]  }
 0x338   : > { %v2384_v55 = vpop.f32.mrf.mxu1 }
 0x339   : > { %v2640_v43 = vadd.f32 %v2639_v59, %v2511_v53  ;;  %v2385_v27 = vadd.f32 %v2384_v55, %v4782_v7  ;;  %v998_v7 = vsel %vm602_vm1, %v995_v44, %v997_v11  ;;  %v999_v53 = vrot.slane %v3924_v48, 1 }
 0x33a   : > { %v2771_v25 = vpop.f32.mrf.mxu0 }
 0x33b   : > { %v2769_v38 = vadd.f32 %v2768_v15, %v2640_v43  ;;  %2423 = vmatmul.bf16.gmra.mxu1 %v996_v57  ;;  %2552 = vmatmul.bf16.gmra.mxu2 %v3921_v0  ;;  %v5304_v15 = vld [vmem:[#allocation51_spill] sm:$0xff]  ;;  %v5305_v57 = vld [vmem:[#allocation52_spill] sm:$0xff]  ;;  %v1055_v43 = vrot.slane %v1053_v29, 1 }
 0x33c   : > { %2681 = vmatmul.bf16.gmra.mxu3 %v4844_v40 }
 0x33d   : > { %2810 = vmatmul.bf16.gmra.mxu0 %v4848_v33  ;;  %v2857_v34 = vmax.f32 %v2769_v38, 0.0  ;;  %v1047_v33 = vrot.slane %v1045_v1, 1  ;;  %v5115_v1 = vld [vmem:[%s3996_s6 + $0xd0] sm:$0xff] }
 0x33e   : > { %v2513_v4 = vpop.f32.mrf.mxu2 }
 0x33f   : > { %v3566_v39 = vpack.c.bf16 %v2857_v34, %v2856_v28  ;;  %v2642_v8 = vpop.f32.mrf.mxu3  ;;  %v2514_v6 = vadd.f32 %v2513_v4, %v2385_v27  ;;  %v1048_v54 = vsel %vm378_vm0, %v4864_v42, %v1047_v33  ;;  %v1051_v59 = vor.u32 %v1049_v50, %v1047_v33 }
 0x340   : > { %v2386_v56 = vpop.f32.mrf.mxu1  ;;  %v1000_v4 = vsel %vm602_vm1, %v997_v11, %v999_v53 }
 0x341   : > { %3770 = vst [vmem:[%s5009_s24 + $0x50] sm:$0xff] %v3566_v39   ;;  %v2643_v30 = vadd.f32 %v2642_v8, %v2514_v6  ;;  %v2387_v40 = vadd.f32 %v2386_v56, %v5303_v61  ;;  %v1056_v56 = vsel %vm378_vm0, %v1051_v59, %v1055_v43 }
 0x342   : > { %v2773_v17 = vpop.f32.mrf.mxu0 }
 0x343   : > { %v2772_v35 = vadd.f32 %v2771_v25, %v2643_v30  ;;  %v1084_v25 = vrot.slane %v5103_v60, 1 }
 0x345   : > { %v2858_v13 = vmax.f32 %v2772_v35, 0.0  ;;  %v1085_v6 = vsel %vm602_vm1, %v1082_v32, %v1084_v25  ;;  %v1057_v32 = vshrl.u32 %v5103_v60, 16 }
 0x346   : > { %v2515_v31 = vpop.f32.mrf.mxu2 }
 0x347   : > { %v2516_v12 = vadd.f32 %v2515_v31, %v2387_v40  ;;  %v2644_v51 = vpop.f32.mrf.mxu3  ;;  %v5306_v40 = vld [vmem:[#allocation53_spill] sm:$0xff] }
 0x348   : > { %v2389_v10 = vpop.f32.mrf.mxu1 }
 0x349   : > { %v2645_v37 = vadd.f32 %v2644_v51, %v2516_v12  ;;  %v2390_v52 = vadd.f32 %v2389_v10, %v5304_v15  ;;  %v1061_v51 = vshll.u32 %v5115_v1, 16 }
 0x34a   : > { %v2776_v58 = vpop.f32.mrf.mxu0 }
 0x34b   : > { %v2774_v20 = vadd.f32 %v2773_v17, %v2645_v37  ;;  %2428 = vmatmul.bf16.gmra.mxu1 %v998_v7  ;;  %2557 = vmatmul.bf16.gmra.mxu2 %v3923_v63  ;;  %v3925_v7 = vld [vmem:[%s3996_s6 + $0xc4] sm:$0xff]   ;;  %v1059_v37 = vor.u32 %v1057_v32, %v1055_v43 }
 0x34c   : > { %2686 = vmatmul.bf16.gmra.mxu3 %v1048_v54  ;;  %v1001_v35 = vrot.slane %v3925_v7, 1 }
 0x34d   : > { %2815 = vmatmul.bf16.gmra.mxu0 %v1083_v18  ;;  %v2859_v23 = vmax.f32 %v2774_v20, 0.0  ;;  %v1086_v20 = vrot.slane %v5115_v1, 1 }
 0x34e   : > { %v2518_v5 = vpop.f32.mrf.mxu2  ;;  %v1002_v15 = vsel %vm602_vm1, %v999_v53, %v1001_v35 }
 0x34f   : > { %v3571_v24 = vpack.c.bf16 %v2859_v23, %v2858_v13  ;;  %v2647_v42 = vpop.f32.mrf.mxu3  ;;  %v2519_v62 = vadd.f32 %v2518_v5, %v2390_v52  ;;  %v229_v13 = vld [vmem:[%s3996_s6 + $0xd8] sm:$0x1] }
 0x350   : > { %v2391_v44 = vpop.f32.mrf.mxu1 }
 0x351   : > { %3771 = vst [vmem:[%s5009_s24 + $0x58] sm:$0xff] %v3571_v24   ;;  %v2648_v55 = vadd.f32 %v2647_v42, %v2519_v62  ;;  %v2392_v16 = vadd.f32 %v2391_v44, %v5305_v57  ;;  %v1087_v62 = vsel %vm602_vm1, %v1084_v25, %v1086_v20 }
 0x352   : > { %v2778_v41 = vpop.f32.mrf.mxu0 }
 0x353   : > { %v2777_v39 = vadd.f32 %v2776_v58, %v2648_v55  ;;  %v1063_v58 = vrot.slane %v1061_v51, 1 }
 0x355   : > { %v2860_v45 = vmax.f32 %v2777_v39, 0.0  ;;  %v1064_v52 = vsel %vm378_vm0, %v1059_v37, %v1063_v58  ;;  %v5307_v39 = vld [vmem:[#allocation54_spill] sm:$0xff] }
 0x356   : > { %v2520_v38 = vpop.f32.mrf.mxu2 }
 0x357   : > { %v2521_v0 = vadd.f32 %v2520_v38, %v2392_v16  ;;  %v2649_v28 = vpop.f32.mrf.mxu3  ;;  %v1065_v38 = vshrl.u32 %v5115_v1, 16 }
 0x358   : > { %v2394_v34 = vpop.f32.mrf.mxu1 }
 0x359   : > { %v2650_v27 = vadd.f32 %v2649_v28, %v2521_v0  ;;  %v2395_v33 = vadd.f32 %v2394_v34, %v5306_v40  ;;  %v1003_v34 = vrot.slane %v4856_v47, 1 }
 0x35a   : > { %v2781_v8 = vpop.f32.mrf.mxu0 }
 0x35b   : > { %v2779_v17 = vadd.f32 %v2778_v41, %v2650_v27  ;;  %2433 = vmatmul.bf16.gmra.mxu1 %v1000_v4  ;;  %2562 = vmatmul.bf16.gmra.mxu2 %v3656_v19  ;;  %v1042_v41 = vunpack.c.l.b16 %v229_v13 }
 0x35c   : > { %2691 = vmatmul.bf16.gmra.mxu3 %v1056_v56 }
 0x35d   : > { %2820 = vmatmul.bf16.gmra.mxu0 %v1085_v6  ;;  %v2861_v30 = vmax.f32 %v2779_v17, 0.0  ;;  %v1043_v59 = vpack.c.b16 %v1042_v41, %v1042_v41 }
 0x35e   : > { %v2523_v61 = vpop.f32.mrf.mxu2 }
 0x35f   : > { %v3576_v11 = vpack.c.bf16 %v2861_v30, %v2860_v45  ;;  %v2652_v31 = vpop.f32.mrf.mxu3  ;;  %v2524_v19 = vadd.f32 %v2523_v61, %v2395_v33  ;;  %v1069_v28 = vshll.u32 %v1043_v59, 16  ;;  %v1088_v56 = vrot.slane %v1043_v59, 1  ;;  %v5309_v59 = vld [vmem:[#allocation3_spill] sm:$0xff] }
 0x360   : > { %v2396_v12 = vpop.f32.mrf.mxu1  ;;  %v1004_v30 = vsel %vm602_vm1, %v1001_v35, %v1003_v34 }
 0x361   : > { %3772 = vst [vmem:[%s5009_s24 + $0x60] sm:$0xff] %v3576_v11   ;;  %v2653_v54 = vadd.f32 %v2652_v31, %v2524_v19  ;;  %v2397_v18 = vadd.f32 %v2396_v12, %v4853_v22  ;;  %v1089_v47 = vsel %vm602_vm1, %v1086_v20, %v1088_v56 }
 0x362   : > { %v2783_v10 = vpop.f32.mrf.mxu0 }
 0x363   : > { %v2782_v42 = vadd.f32 %v2781_v8, %v2653_v54  ;;  %v1071_v8 = vrot.slane %v1069_v28, 1 }
 0x365   : > { %v2862_v22 = vmax.f32 %v2782_v42, 0.0 }
 0x366   : > { %v2525_v63 = vpop.f32.mrf.mxu2 }
 0x367   : > { %v2526_v23 = vadd.f32 %v2525_v63, %v2397_v18  ;;  %v2654_v5 = vpop.f32.mrf.mxu3 }
 0x368   : > { %v2399_v24 = vpop.f32.mrf.mxu1 }
 0x369   : > { %v2655_v44 = vadd.f32 %v2654_v5, %v2526_v23  ;;  %v2400_v57 = vadd.f32 %v2399_v24, %v4862_v14 }
 0x36a   : > { %v2786_v50 = vpop.f32.mrf.mxu0 }
 0x36b   : > { %v2784_v29 = vadd.f32 %v2783_v10, %v2655_v44  ;;  %2438 = vmatmul.bf16.gmra.mxu1 %v1002_v15  ;;  %2567 = vmatmul.bf16.gmra.mxu2 %v5103_v60  ;;  %v1067_v60 = vor.u32 %v1065_v38, %v1063_v58 }
 0x36c   : > { %2696 = vmatmul.bf16.gmra.mxu3 %v1064_v52 }
 0x36d   : > { %2825 = vmatmul.bf16.gmra.mxu0 %v1087_v62  ;;  %v2863_v48 = vmax.f32 %v2784_v29, 0.0  ;;  %v1072_v33 = vsel %vm378_vm0, %v1067_v60, %v1071_v8 }
 0x36e   : > { %v2528_v55 = vpop.f32.mrf.mxu2 }
 0x36f   : > { %v3581_v53 = vpack.c.bf16 %v2863_v48, %v2862_v22  ;;  %v2657_v16 = vpop.f32.mrf.mxu3  ;;  %v2529_v25 = vadd.f32 %v2528_v55, %v2400_v57 }
 0x370   : > { %v2401_v43 = vpop.f32.mrf.mxu1 }
 0x371   : > { %3773 = vst [vmem:[%s5009_s24 + $0x68] sm:$0xff] %v3581_v53   ;;  %v2658_v4 = vadd.f32 %v2657_v16, %v2529_v25  ;;  %v2402_v27 = vadd.f32 %v2401_v43, %v5307_v39 }
 0x372   : > { %v2788_v0 = vpop.f32.mrf.mxu0 }
 0x373   : > { %v2787_v61 = vadd.f32 %v2786_v50, %v2658_v4  ;;  %v5308_v50 = vld [vmem:[#allocation2_spill] sm:$0xff] }
 0x375   : > { %v2864_v12 = vmax.f32 %v2787_v61, 0.0 }
 0x376   : > { %v2530_v6 = vpop.f32.mrf.mxu2 }
 0x377   : > { %v2531_v17 = vadd.f32 %v2530_v6, %v2402_v27  ;;  %v2659_v45 = vpop.f32.mrf.mxu3  ;;  %v5310_v27 = vld [vmem:[#allocation21_spill] sm:$0xff] }
 0x378   : > { %v2404_v14 = vpop.f32.mrf.mxu1 }
 0x379   : > { %v2660_v11 = vadd.f32 %v2659_v45, %v2531_v17  ;;  %v2405_v10 = vadd.f32 %v2404_v14, %v4884_v46 }
 0x37a   : > { %v2791_v40 = vpop.f32.mrf.mxu0 }
 0x37b   : > { %v2789_v31 = vadd.f32 %v2788_v0, %v2660_v11  ;;  %2443 = vmatmul.bf16.gmra.mxu1 %v1004_v30  ;;  %2572 = vmatmul.bf16.gmra.mxu2 %v5115_v1  ;;  %v5311_v30 = vld [vmem:[#allocation6_spill] sm:$0xff] }
 0x37c   : > { %2701 = vmatmul.bf16.gmra.mxu3 %v1072_v33 }
 0x37d   : > { %2830 = vmatmul.bf16.gmra.mxu0 %v1089_v47  ;;  %v2865_v32 = vmax.f32 %v2789_v31, 0.0 }
 0x37e   : > { %v2533_v51 = vpop.f32.mrf.mxu2 }
 0x37f   : > { %v3586_v19 = vpack.c.bf16 %v2865_v32, %v2864_v12  ;;  %v2662_v7 = vpop.f32.mrf.mxu3  ;;  %v2534_v37 = vadd.f32 %v2533_v51, %v2405_v10 }
 0x380   : > { %v2406_v35 = vpop.f32.mrf.mxu1 }
 0x381   : > { %3774 = vst [vmem:[%s5009_s24 + $0x70] sm:$0xff] %v3586_v19   ;;  %v2663_v54 = vadd.f32 %v2662_v7, %v2534_v37  ;;  %v2407_v18 = vadd.f32 %v2406_v35, %v4893_v36  ;;  %v5312_v37 = vld [vmem:[#allocation8_spill] sm:$0xff] }
 0x382   : > { %v2793_v58 = vpop.f32.mrf.mxu0 }
 0x383   : > { %v2792_v23 = vadd.f32 %v2791_v40, %v2663_v54 }
 0x385   : > { %v2866_v52 = vmax.f32 %v2792_v23, 0.0 }
 0x386   : > { %v2535_v20 = vpop.f32.mrf.mxu2 }
 0x387   : > { %v2536_v63 = vadd.f32 %v2535_v20, %v2407_v18  ;;  %v2664_v1 = vpop.f32.mrf.mxu3 }
 0x388   : > { %v2409_v13 = vpop.f32.mrf.mxu1 }
 0x389   : > { %v2665_v5 = vadd.f32 %v2664_v1, %v2536_v63  ;;  %v2410_v62 = vadd.f32 %v2409_v13, %v5308_v50  ;;  %v5313_v13 = vld [vmem:[#allocation23_spill] sm:$0xff] }
 0x38a   : > { %v2796_v24 = vpop.f32.mrf.mxu0 }
 0x38b   : > { %v2794_v15 = vadd.f32 %v2793_v58, %v2665_v5 }
 0x38d   : > { %v2867_v42 = vmax.f32 %v2794_v15, 0.0 }
 0x38e   : > { %v2538_v46 = vpop.f32.mrf.mxu2 }
 0x38f   : > { %v3591_v44 = vpack.c.bf16 %v2867_v42, %v2866_v52  ;;  %v2667_v41 = vpop.f32.mrf.mxu3  ;;  %v2539_v22 = vadd.f32 %v2538_v46, %v2410_v62 }
 0x390   : > { %v2411_v29 = vpop.f32.mrf.mxu1 }
 0x391   : > { %3775 = vst [vmem:[%s5009_s24 + $0x78] sm:$0xff] %v3591_v44   ;;  %v2668_v48 = vadd.f32 %v2667_v41, %v2539_v22  ;;  %v2412_v55 = vadd.f32 %v2411_v29, %v5309_v59 }
 0x392   : > { %v2798_v36 = vpop.f32.mrf.mxu0 }
 0x393   : > { %v2797_v38 = vadd.f32 %v2796_v24, %v2668_v48 }
 0x395   : > { %v2868_v34 = vmax.f32 %v2797_v38, 0.0 }
 0x396   : > { %v2540_v53 = vpop.f32.mrf.mxu2 }
 0x397   : > { %v2541_v57 = vadd.f32 %v2540_v53, %v2412_v55  ;;  %v2669_v16 = vpop.f32.mrf.mxu3 }
 0x398   : > { %v2414_v43 = vpop.f32.mrf.mxu1 }
 0x399   : > { %v2670_v25 = vadd.f32 %v2669_v16, %v2541_v57  ;;  %v2415_v8 = vadd.f32 %v2414_v43, %v5310_v27  ;;  %v5315_v43 = vld [vmem:[#allocation27_spill] sm:$0xff] }
 0x39a   : > { %v2801_v0 = vpop.f32.mrf.mxu0 }
 0x39b   : > { %v2799_v28 = vadd.f32 %v2798_v36, %v2670_v25  ;;  %v5314_v36 = vld [vmem:[#allocation4_spill] sm:$0xff] }
 0x39d   : > { %v2869_v60 = vmax.f32 %v2799_v28, 0.0 }
 0x39e   : > { %v2543_v4 = vpop.f32.mrf.mxu2 }
 0x39f   : > { %v3596_v39 = vpack.c.bf16 %v2869_v60, %v2868_v34  ;;  %v2672_v56 = vpop.f32.mrf.mxu3  ;;  %v2544_v17 = vadd.f32 %v2543_v4, %v2415_v8 }
 0x3a0   : > { %v2416_v6 = vpop.f32.mrf.mxu1 }
 0x3a1   : > { %3776 = vst [vmem:[%s5009_s24 + $0x80] sm:$0xff] %v3596_v39   ;;  %v2673_v14 = vadd.f32 %v2672_v56, %v2544_v17  ;;  %v2417_v61 = vadd.f32 %v2416_v6, %v5311_v30 }
 0x3a2   : > { %v2803_v45 = vpop.f32.mrf.mxu0 }
 0x3a3   : > { %v2802_v31 = vadd.f32 %v2801_v0, %v2673_v14 }
 0x3a5   : > { %v2870_v19 = vmax.f32 %v2802_v31, 0.0 }
 0x3a6   : > { %v2545_v11 = vpop.f32.mrf.mxu2 }
 0x3a7   : > { %v2546_v40 = vadd.f32 %v2545_v11, %v2417_v61  ;;  %v2674_v33 = vpop.f32.mrf.mxu3 }
 0x3a8   : > { %v2419_v47 = vpop.f32.mrf.mxu1 }
 0x3a9   : > { %v2675_v12 = vadd.f32 %v2674_v33, %v2546_v40  ;;  %v2420_v58 = vadd.f32 %v2419_v47, %v5312_v37  ;;  %v5317_v47 = vld [vmem:[#allocation12_spill] sm:$0xff] }
 0x3aa   : > { %v2806_v32 = vpop.f32.mrf.mxu0 }
 0x3ab   : > { %v2804_v51 = vadd.f32 %v2803_v45, %v2675_v12  ;;  %v5316_v45 = vld [vmem:[#allocation11_spill] sm:$0xff] }
 0x3ad   : > { %v2871_v10 = vmax.f32 %v2804_v51, 0.0 }
 0x3ae   : > { %v2548_v7 = vpop.f32.mrf.mxu2 }
 0x3af   : > { %v3601_v35 = vpack.c.bf16 %v2871_v10, %v2870_v19  ;;  %v2677_v54 = vpop.f32.mrf.mxu3  ;;  %v2549_v20 = vadd.f32 %v2548_v7, %v2420_v58 }
 0x3b0   : > { %v2421_v18 = vpop.f32.mrf.mxu1 }
 0x3b1   : > { %3777 = vst [vmem:[%s5009_s24 + $0x88] sm:$0xff] %v3601_v35   ;;  %v2678_v1 = vadd.f32 %v2677_v54, %v2549_v20  ;;  %v2422_v23 = vadd.f32 %v2421_v18, %v5313_v13 }
 0x3b2   : > { %v2808_v63 = vpop.f32.mrf.mxu0 }
 0x3b3   : > { %v2807_v42 = vadd.f32 %v2806_v32, %v2678_v1 }
 0x3b5   : > { %v2872_v62 = vmax.f32 %v2807_v42, 0.0 }
 0x3b6   : > { %v2550_v5 = vpop.f32.mrf.mxu2 }
 0x3b7   : > { %v2551_v24 = vadd.f32 %v2550_v5, %v2422_v23  ;;  %v2679_v15 = vpop.f32.mrf.mxu3 }
 0x3b8   : > { %v2424_v52 = vpop.f32.mrf.mxu1 }
 0x3b9   : > { %v2680_v46 = vadd.f32 %v2679_v15, %v2551_v24  ;;  %v2425_v48 = vadd.f32 %v2424_v52, %v5314_v36 }
 0x3ba   : > { %v2811_v44 = vpop.f32.mrf.mxu0 }
 0x3bb   : > { %v2809_v50 = vadd.f32 %v2808_v63, %v2680_v46 }
 0x3bd   : > { %v2873_v41 = vmax.f32 %v2809_v50, 0.0 }
 0x3be   : > { %v2553_v29 = vpop.f32.mrf.mxu2 }
 0x3bf   : > { %v3606_v22 = vpack.c.bf16 %v2873_v41, %v2872_v62  ;;  %v2682_v59 = vpop.f32.mrf.mxu3  ;;  %v2554_v53 = vadd.f32 %v2553_v29, %v2425_v48 }
 0x3c0   : > { %v2426_v55 = vpop.f32.mrf.mxu1 }
 0x3c1   : > { %3778 = vst [vmem:[%s5009_s24 + $0x90] sm:$0xff] %v3606_v22   ;;  %v2683_v16 = vadd.f32 %v2682_v59, %v2554_v53  ;;  %v2427_v38 = vadd.f32 %v2426_v55, %v5315_v43 }
 0x3c2   : > { %v2813_v57 = vpop.f32.mrf.mxu0 }
 0x3c3   : > { %v2812_v60 = vadd.f32 %v2811_v44, %v2683_v16 }
 0x3c5   : > { %v2874_v8 = vmax.f32 %v2812_v60, 0.0 }
 0x3c6   : > { %v2555_v25 = vpop.f32.mrf.mxu2 }
 0x3c7   : > { %v2556_v0 = vadd.f32 %v2555_v25, %v2427_v38  ;;  %v2684_v28 = vpop.f32.mrf.mxu3 }
 0x3c8   : > { %v2429_v34 = vpop.f32.mrf.mxu1 }
 0x3c9   : > { %v2685_v4 = vadd.f32 %v2684_v28, %v2556_v0  ;;  %v2430_v14 = vadd.f32 %v2429_v34, %v5316_v45 }
 0x3ca   : > { %v2816_v39 = vpop.f32.mrf.mxu0 }
 0x3cb   : > { %v2814_v27 = vadd.f32 %v2813_v57, %v2685_v4 }
 0x3cd   : > { %v2875_v56 = vmax.f32 %v2814_v27, 0.0 }
 0x3ce   : > { %v2558_v6 = vpop.f32.mrf.mxu2 }
 0x3cf   : > { %v3611_v17 = vpack.c.bf16 %v2875_v56, %v2874_v8  ;;  %v2687_v30 = vpop.f32.mrf.mxu3  ;;  %v2559_v11 = vadd.f32 %v2558_v6, %v2430_v14 }
 0x3d0   : > { %v2431_v61 = vpop.f32.mrf.mxu1 }
 0x3d1   : > { %3779 = vst [vmem:[%s5009_s24 + $0x98] sm:$0xff] %v3611_v17   ;;  %v2688_v33 = vadd.f32 %v2687_v30, %v2559_v11  ;;  %v2432_v31 = vadd.f32 %v2431_v61, %v5317_v47 }
 0x3d2   : > { %v2818_v40 = vpop.f32.mrf.mxu0 }
 0x3d3   : > { %v2817_v10 = vadd.f32 %v2816_v39, %v2688_v33 }
 0x3d5   : > { %v2876_v58 = vmax.f32 %v2817_v10, 0.0 }
 0x3d6   : > { %v2560_v12 = vpop.f32.mrf.mxu2 }
 0x3d7   : > { %v2561_v32 = vadd.f32 %v2560_v12, %v2432_v31  ;;  %v2689_v51 = vpop.f32.mrf.mxu3 }
 0x3d8   : > { %v2434_v19 = vpop.f32.mrf.mxu1 }
 0x3d9   : > { %v2690_v7 = vadd.f32 %v2689_v51, %v2561_v32  ;;  %v2435_v63 = vadd.f32 %v2434_v19, %v4963_v49 }
 0x3da   : > { %v2821_v35 = vpop.f32.mrf.mxu0 }
 0x3db   : > { %v2819_v37 = vadd.f32 %v2818_v40, %v2690_v7 }
 0x3dd   : > { %v2877_v54 = vmax.f32 %v2819_v37, 0.0 }
 0x3de   : > { %v2563_v18 = vpop.f32.mrf.mxu2 }
 0x3df   : > { %v3616_v20 = vpack.c.bf16 %v2877_v54, %v2876_v58  ;;  %v2692_v1 = vpop.f32.mrf.mxu3  ;;  %v2564_v23 = vadd.f32 %v2563_v18, %v2435_v63 }
 0x3e0   : > { %v2436_v13 = vpop.f32.mrf.mxu1 }
 0x3e1   : > { %3780 = vst [vmem:[%s5009_s24 + $0xa0] sm:$0xff] %v3616_v20   ;;  %v2693_v24 = vadd.f32 %v2692_v1, %v2564_v23  ;;  %v2437_v15 = vadd.f32 %v2436_v13, %v4970_v26 }
 0x3e2   : > { %v2823_v5 = vpop.f32.mrf.mxu0 }
 0x3e3   : > { %v2822_v50 = vadd.f32 %v2821_v35, %v2693_v24 }
 0x3e5   : > { %v2878_v22 = vmax.f32 %v2822_v50, 0.0 }
 0x3e6   : > { %v2565_v52 = vpop.f32.mrf.mxu2 }
 0x3e7   : > { %v2566_v42 = vadd.f32 %v2565_v52, %v2437_v15  ;;  %v2694_v46 = vpop.f32.mrf.mxu3 }
 0x3e8   : > { %v2439_v44 = vpop.f32.mrf.mxu1 }
 0x3e9   : > { %v2695_v62 = vadd.f32 %v2694_v46, %v2566_v42  ;;  %v2440_v59 = vadd.f32 %v2439_v44, %v4976_v9 }
 0x3ea   : > { %v2826_v29 = vpop.f32.mrf.mxu0 }
 0x3eb   : > { %v2824_v41 = vadd.f32 %v2823_v5, %v2695_v62 }
 0x3ed   : > { %v2879_v36 = vmax.f32 %v2824_v41, 0.0 }
 0x3ee   : > { %v2568_v49 = vpop.f32.mrf.mxu2 }
 0x3ef   : > { %v3621_v48 = vpack.c.bf16 %v2879_v36, %v2878_v22  ;;  %v2697_v55 = vpop.f32.mrf.mxu3  ;;  %v2569_v57 = vadd.f32 %v2568_v49, %v2440_v59 }
 0x3f0   : > { %v2441_v53 = vpop.f32.mrf.mxu1 }
 0x3f1   : > { %3781 = vst [vmem:[%s5009_s24 + $0xa8] sm:$0xff] %v3621_v48   ;;  %v2698_v26 = vadd.f32 %v2697_v55, %v2569_v57  ;;  %v2442_v16 = vadd.f32 %v2441_v53, %v4983_v3 }
 0x3f2   : > { %v2828_v43 = vpop.f32.mrf.mxu0 }
 0x3f3   : > { %v2827_v34 = vadd.f32 %v2826_v29, %v2698_v26 }
 0x3f5   : > { %v2880_v39 = vmax.f32 %v2827_v34, 0.0 }
 0x3f6   : > { %v2570_v38 = vpop.f32.mrf.mxu2 }
 0x3f7   : > { %v2571_v25 = vadd.f32 %v2570_v38, %v2442_v16  ;;  %v2699_v0 = vpop.f32.mrf.mxu3 }
 0x3f8   : > { %v2444_v28 = vpop.f32.mrf.mxu1 }
 0x3f9   : > { %v2700_v60 = vadd.f32 %v2699_v0, %v2571_v25  ;;  %v2445_v56 = vadd.f32 %v2444_v28, %v4989_v21 }
 0x3fa   : > { %v2831_v17 = vpop.f32.mrf.mxu0 }
 0x3fb   : > { %v2829_v4 = vadd.f32 %v2828_v43, %v2700_v60 }
 0x3fd   : > { %v2881_v27 = vmax.f32 %v2829_v4, 0.0 }
 0x3fe   : > { %v2573_v8 = vpop.f32.mrf.mxu2 }
 0x3ff   : > { %v3626_v9 = vpack.c.bf16 %v2881_v27, %v2880_v39  ;;  %v2702_v6 = vpop.f32.mrf.mxu3  ;;  %v2574_v3 = vadd.f32 %v2573_v8, %v2445_v56 }
 0x400   : > { %v2446_v45 = vpop.f32.mrf.mxu1 }
 0x401   : > { %3782 = vst [vmem:[%s5009_s24 + $0xb0] sm:$0xff] %v3626_v9   ;;  %v2703_v14 = vadd.f32 %v2702_v6, %v2574_v3  ;;  %v2447_v30 = vadd.f32 %v2446_v45, %v4994_v2 }
 0x402   : > { %v2833_v31 = vpop.f32.mrf.mxu0 }
 0x403   : > { %v2832_v33 = vadd.f32 %v2831_v17, %v2703_v14 }
 0x405   : > { %v2882_v32 = vmax.f32 %v2832_v33, 0.0 }
 0x406   : > { %v2575_v61 = vpop.f32.mrf.mxu2 }
 0x407   : > { %v2576_v11 = vadd.f32 %v2575_v61, %v2447_v30  ;;  %v2704_v40 = vpop.f32.mrf.mxu3 }
 0x409   : > { %v2705_v47 = vadd.f32 %v2704_v40, %v2576_v11 }
 0x40b   : > { %v2834_v12 = vadd.f32 %v2833_v31, %v2705_v47 }
 0x40d   : > { %v2883_v51 = vmax.f32 %v2834_v12, 0.0 }
 0x40f   : > { %v3631_v19 = vpack.c.bf16 %v2883_v51, %v2882_v32 }
 0x411   : > { %3783 = vst [vmem:[%s5009_s24 + $0xb8] sm:$0xff] %v3631_v19  }
 0x412 PF: > { %s13_s12 = sadd.s32 1, %s3932_s12  }
 0x413   : > { %p10_p4 = scmp.ge.s32.totalorder %s13_s12, 4  }
 0x415   :  { %12 = sbr.rel (!%p10_p4) target bundleno = 1 (0x1), region = 62 }

// kernel: generalized_rcnn_forward.10
= control target key start
LH: loop header
LB: loop body
LE: loop exit
PB: predicated region body
PF: predicated region fallthrough
CT: control target
= control target key end

     0   :  { %s469_s9 = smov 0   ;;  %s583_s0 = inlined_call_operand.vmem [shape: f32[8,768], index: 0, kind: input, shape index: {}]   ;;  %s584_s1 = inlined_call_operand.vmem [shape: bf16[2,8,768], index: 1, kind: input, shape index: {}]   ;;  %s585_s2 = inlined_call_operand.vmem [shape: f32[2,8,768], index: 2, kind: output, shape index: {}]  }
   0x1 LB: > { %s413_s10 = sadd.s32 4294967295, %s451_s9   ;;  %p417_p0 = scmp.ge.s32.totalorder %s451_s9, 1  ;;  %s451_s9 = sphi %s469_s9, %s12_s9  }
   0x2   : > { %p112_p1 = scmp.lt.s32.totalorder %s451_s9, 3 }
   0x4   : > { %p113_p2 = pnand %p417_p0, %p112_p1 }
   0x5   : > { %p134_p3 = scmp.lt.s32.totalorder (!%p113_p2), %s413_s10, 1 }
   0x6   : > { %116 = sbr.rel (%p113_p2) target bundleno = 53 (0x35), region = 28 }
   0xb   : > { %s587_s10 = smov (!%p134_p3, %s413_s10), 1  ;;  %v482_v0 = vld [vmem:[%s583_s0] sm:$0xff]  ;;  %v487_v1 = vld [vmem:[%s583_s0 + $0x8] sm:$0xff]  ;;  %v492_v2 = vld [vmem:[%s583_s0 + $0x10] sm:$0xff]  ;;  %v453_v52 = vmov 0   ;;  %vm321_vm0 = vcmask 1041408  }
   0xc   : > { %s422_s17 = smul.u32 24, %s587_s10  ;;  %v498_v3 = vld [vmem:[%s583_s0 + $0x18] sm:$0xff]  ;;  %v503_v4 = vld [vmem:[%s583_s0 + $0x20] sm:$0xff]  ;;  %v508_v5 = vld [vmem:[%s583_s0 + $0x28] sm:$0xff]  ;;  %v165_v6 = vrot.slane %v482_v0, 6  ;;  %v166_v7 = vrot.slane %v487_v1, 6  ;;  %335 = vset.pattern.permute.xlu0 %v453_v52 }
   0xd   : > { %v167_v8 = vrot.slane %v492_v2, 6  ;;  %v168_v10 = vrot.slane %v498_v3, 6  ;;  %v169_v11 = vrot.slane %v503_v4, 6  ;;  %v170_v13 = vrot.slane %v508_v5, 6  ;;  %s423_s27 = smul.u32 48, %s587_s10 }
   0xe   : > { %s138_s26 = scalar_lea.vmem %s584_s1, %s422_s17  ;;  %v177_v17 = vsub.f32 %v482_v0, %v165_v6  ;;  %v525_v18 = vsub.f32 %v487_v1, %v166_v7  ;;  %vm345_vm1 = vcmask 1043456  }
   0xf   : > { %v150_v9 = vld [vmem:[%s138_s26] sm:$0xff]  ;;  %v518_v12 = vld [vmem:[%s138_s26 + $0x8] sm:$0xff]  ;;  %v521_v14 = vld [vmem:[%s138_s26 + $0x10] sm:$0xff]  ;;  %v528_v19 = vsub.f32 %v492_v2, %v167_v8  ;;  %v532_v21 = vsub.f32 %v498_v3, %v168_v10  ;;  %v535_v22 = vsub.f32 %v503_v4, %v169_v11  ;;  %v540_v25 = vsub.f32 %v508_v5, %v170_v13  ;;  %s143_s30 = scalar_lea.vmem %s585_s2, %s423_s27 }
  0x10   : > { %v153_v15 = vunpack.c.l.bf16 %v150_v9  ;;  %v154_v16 = vunpack.c.h.bf16 %v150_v9  ;;  %v155_v20 = vunpack.c.l.bf16 %v518_v12  ;;  %v156_v23 = vunpack.c.h.bf16 %v518_v12 }
  0x11   : > { %v157_v24 = vunpack.c.l.bf16 %v521_v14  ;;  %v158_v26 = vunpack.c.h.bf16 %v521_v14  ;;  %v183_v28 = vmul.f32 0.5, %v177_v17  ;;  %v184_v29 = vmul.f32 0.5, %v525_v18 }
  0x12   : > { %v243_v27 = vmin.f32 %v153_v15, 4.135  ;;  %v185_v30 = vmul.f32 0.5, %v528_v19  ;;  %v244_v31 = vmin.f32 %v154_v16, 4.135  ;;  %v186_v32 = vmul.f32 0.5, %v532_v21 }
  0x13   : > { %v187_v33 = vmul.f32 0.5, %v535_v22  ;;  %v219_v34 = vrot.slane %v177_v17, 2  ;;  %v245_v35 = vmin.f32 %v155_v20, 4.135  ;;  %v188_v36 = vmul.f32 0.5, %v540_v25 }
  0x14   : > { %v220_v37 = vrot.slane %v525_v18, 2  ;;  %v246_v38 = vmin.f32 %v156_v23, 4.135  ;;  %v247_v39 = vmin.f32 %v157_v24, 4.135  ;;  %v195_v43 = vrot.slane %v183_v28, 2 }
  0x15   : > { %v248_v40 = vmin.f32 %v158_v26, 4.135  ;;  %v249_v41 = vmul.f32 1.442695, %v243_v27  ;;  %v251_v42 = vmul.f32 1.442695, %v244_v31  ;;  %v231_v60 = vmul.f32 %v219_v34, %v153_v15 }
  0x16   : > { %v196_v44 = vrot.slane %v184_v29, 2  ;;  %v253_v45 = vmul.f32 1.442695, %v245_v35  ;;  %v255_v46 = vmul.f32 1.442695, %v246_v38  ;;  %v197_v47 = vrot.slane %v185_v30, 2 }
  0x17   : > { %433 = vpow2.f32 %v249_v41  ;;  %v257_v48 = vmul.f32 1.442695, %v247_v39  ;;  %v198_v49 = vrot.slane %v186_v32, 2  ;;  %v221_v50 = vrot.slane %v528_v19, 2 }
  0x18   : > { %435 = vpow2.f32 %v251_v42  ;;  %v259_v51 = vmul.f32 1.442695, %v248_v40  ;;  %v199_v53 = vrot.slane %v187_v33, 2  ;;  %v222_v54 = vrot.slane %v532_v21, 2 }
  0x19   : > { %v223_v55 = vrot.slane %v535_v22, 2  ;;  %437 = vpow2.f32 %v253_v45  ;;  %v200_v56 = vrot.slane %v188_v36, 2  ;;  %v224_v57 = vrot.slane %v540_v25, 2 }
  0x1a   : > { %439 = vpow2.f32 %v255_v46  ;;  %v207_v58 = vadd.f32 %v195_v43, %v482_v0  ;;  %v208_v59 = vadd.f32 %v196_v44, %v487_v1  ;;  %v209_v61 = vadd.f32 %v197_v47, %v492_v2 }
  0x1b   : > { %441 = vpow2.f32 %v257_v48  ;;  %v232_v62 = vmul.f32 %v220_v37, %v154_v16  ;;  %v233_v63 = vmul.f32 %v221_v50, %v155_v20  ;;  %v210_v7 = vadd.f32 %v198_v49, %v498_v3 }
  0x1c   : > { %443 = vpow2.f32 %v259_v51  ;;  %v211_v8 = vadd.f32 %v199_v53, %v503_v4  ;;  %v234_v9 = vmul.f32 %v222_v54, %v156_v23  ;;  %v235_v10 = vmul.f32 %v223_v55, %v157_v24 }
  0x1d   : > { %v434_v6 = vpop.eup %433  ;;  %v212_v12 = vadd.f32 %v200_v56, %v508_v5  ;;  %v236_v0 = vmul.f32 %v224_v57, %v158_v26  ;;  %v237_v14 = vadd.f32 %v231_v60, %v207_v58  ;;  %v238_v16 = vadd.f32 %v232_v62, %v208_v59 }
  0x1e   : > { %v436_v11 = vpop.eup %435  ;;  %v261_v13 = vmul.f32 %v434_v6, %v177_v17  ;;  %v239_v20 = vadd.f32 %v233_v63, %v209_v61  ;;  %v240_v29 = vadd.f32 %v234_v9, %v210_v7  ;;  %v241_v4 = vadd.f32 %v235_v10, %v211_v8 }
  0x1f   : > { %v438_v1 = vpop.eup %437  ;;  %v262_v15 = vmul.f32 %v436_v11, %v525_v18  ;;  %v242_v5 = vadd.f32 %v236_v0, %v212_v12 }
  0x20   : > { %v440_v2 = vpop.eup %439  ;;  %v263_v27 = vmul.f32 %v438_v1, %v528_v19  ;;  %v267_v28 = vmul.f32 0.5, %v261_v13 }
  0x21   : > { %v442_v3 = vpop.eup %441  ;;  %v264_v23 = vmul.f32 %v440_v2, %v532_v21  ;;  %v268_v24 = vmul.f32 0.5, %v262_v15 }
  0x22   : > { %v444_v30 = vpop.eup %443  ;;  %v265_v17 = vmul.f32 %v442_v3, %v535_v22  ;;  %v269_v26 = vmul.f32 0.5, %v263_v27  ;;  %v279_v31 = vrot.slane %v267_v28, 2 }
  0x23   : > { %v266_v18 = vmul.f32 %v444_v30, %v540_v25  ;;  %v270_v32 = vmul.f32 0.5, %v264_v23  ;;  %v280_v33 = vrot.slane %v268_v24, 2 }
  0x24   : > { %v271_v34 = vmul.f32 0.5, %v265_v17  ;;  %v281_v19 = vrot.slane %v269_v26, 2  ;;  %v291_v35 = vsub.f32 %v237_v14, %v279_v31  ;;  %v297_v36 = vadd.f32 %v279_v31, %v237_v14 }
  0x25   : > { %v272_v37 = vmul.f32 0.5, %v266_v18  ;;  %v282_v38 = vrot.slane %v270_v32, 2  ;;  %v292_v21 = vsub.f32 %v238_v16, %v280_v33  ;;  %v298_v39 = vadd.f32 %v280_v33, %v238_v16 }
  0x26   : > { %v283_v40 = vrot.slane %v271_v34, 2  ;;  %v293_v41 = vsub.f32 %v239_v20, %v281_v19  ;;  %v299_v42 = vadd.f32 %v281_v19, %v239_v20  ;;  %v309_v22 = vrot.slane %v297_v36, 6 }
  0x27   : > { %v284_v43 = vrot.slane %v272_v37, 2  ;;  %v294_v44 = vsub.f32 %v240_v29, %v282_v38  ;;  %v300_v45 = vadd.f32 %v282_v38, %v240_v29  ;;  %v310_v25 = vrot.slane %v298_v39, 6 }
  0x28   : > { %v295_v46 = vsub.f32 %v241_v4, %v283_v40  ;;  %v301_v47 = vadd.f32 %v283_v40, %v241_v4  ;;  %v311_v48 = vrot.slane %v299_v42, 6  ;;  %v322_v49 = vsel %vm321_vm0, %v291_v35, %v309_v22 }
  0x29   : > { %v296_v50 = vsub.f32 %v242_v5, %v284_v43  ;;  %v302_v51 = vadd.f32 %v284_v43, %v242_v5  ;;  %v312_v52 = vrot.slane %v300_v45, 6  ;;  %v323_v53 = vsel %vm321_vm0, %v292_v21, %v310_v25 }
  0x2a   : > { %v313_v54 = vrot.slane %v301_v47, 6  ;;  %v324_v55 = vsel %vm321_vm0, %v293_v41, %v311_v48  ;;  %v328_v56 = vmax.f32 %v322_v49, 0.0  ;;  %v329_v57 = vmax.f32 %v323_v53, 0.0 }
  0x2b   : > { %v314_v58 = vrot.slane %v302_v51, 6  ;;  %v325_v59 = vsel %vm321_vm0, %v294_v44, %v312_v52  ;;  %v330_v60 = vmax.f32 %v324_v55, 0.0 }
  0x2c   : > { %v326_v61 = vsel %vm321_vm0, %v295_v46, %v313_v54  ;;  %v331_v62 = vmax.f32 %v325_v59, 0.0  ;;  %v339_v63 = vmin.f32 %v328_v56, 32.0  ;;  %v340_v6 = vmin.f32 %v329_v57, 32.0 }
  0x2d   : > { %v327_v7 = vsel %vm321_vm0, %v296_v50, %v314_v58  ;;  %v332_v8 = vmax.f32 %v326_v61, 0.0  ;;  %v341_v9 = vmin.f32 %v330_v60, 32.0 }
  0x2e   : > { %v333_v10 = vmax.f32 %v327_v7, 0.0  ;;  %v342_v11 = vmin.f32 %v331_v62, 32.0  ;;  %v346_v12 = vsel %vm345_vm1, %v339_v63, 0.0  ;;  %v347_v0 = vsel %vm345_vm1, %v340_v6, 0.0 }
  0x2f   : > { %v343_v13 = vmin.f32 %v332_v8, 32.0  ;;  %v348_v1 = vsel %vm345_vm1, %v341_v9, 0.0  ;;  %352 = vst [vmem:[%s143_s30] sm:$0xff] %v346_v12 }
  0x30   : > { %v344_v14 = vmin.f32 %v333_v10, 32.0  ;;  %v349_v15 = vsel %vm345_vm1, %v342_v11, 0.0  ;;  %353 = vst [vmem:[%s143_s30 + $0x8] sm:$0xff] %v347_v0 }
  0x31   : > { %v350_v2 = vsel %vm345_vm1, %v343_v13, 0.0  ;;  %354 = vst [vmem:[%s143_s30 + $0x10] sm:$0xff] %v348_v1 }
  0x32   : > { %v351_v16 = vsel %vm345_vm1, %v344_v14, 0.0  ;;  %355 = vst [vmem:[%s143_s30 + $0x18] sm:$0xff] %v349_v15 }
  0x33   : > { %356 = vst [vmem:[%s143_s30 + $0x20] sm:$0xff] %v350_v2 }
  0x34   : > { %357 = vst [vmem:[%s143_s30 + $0x28] sm:$0xff] %v351_v16 }
  0x35 PF: > { %s12_s9 = sadd.s32 1, %s451_s9  }
  0x36   : > { %p9_p4 = scmp.ge.s32.totalorder %s12_s9, 4  }
  0x38   :  { %11 = sbr.rel (!%p9_p4) target bundleno = 1 (0x1), region = 58 }

// kernel: custom-call
= control target key start
LH: loop header
LB: loop body
LE: loop exit
PB: predicated region body
PF: predicated region fallthrough
CT: control target
= control target key end

     0   :  { %5 = vsyncpa [#allocation9], 0  ;;  %v1021_v0 = vmov 2147483648   ;;  %v1022_v1 = vmov 2147483647   ;;  %s1144_s0 = inlined_call_operand.vmem [shape: f32[2,768], index: 0, kind: input, shape index: {}]   ;;  %s1145_s1 = inlined_call_operand.hbm [shape: f32[2,8], index: 1, kind: output, shape index: {0}]   ;;  %s1146_s2 = inlined_call_operand.vmem [shape: s32[2,8], index: 2, kind: output, shape index: {1}]  }
   0x1   :  { %7 = vst [vmem:[#allocation12] sm:$0xff] %v1021_v0 }
   0x2   :  { %8 = vst [vmem:[#allocation14] sm:$0xff] %v1022_v1 }
   0x3   :  { %v955_v2 = vld [vmem:[%s1144_s0 + $0x8] sm:$0xf]  ;;  %v44_v3 = vlaneseq  ;;  %v27_v4 = vld [vmem:[%s1144_s0] sm:$0xff]  ;;  %v1023_v6 = vmov 2147483648   ;;  %v1024_v7 = vmov 2147483647  }
   0x4   :  { %40 = vst [vmem:[#allocation16 + $0x8] sm:$0xf] %v955_v2  ;;  %v55_v10 = vsub.s32 2147483647, %v27_v4  ;;  %vm54_vm0 = vcmp.lt.s32.totalorder %v27_v4, 0  ;;  %s1057_s0 = smov 0  }
   0x5   :  { %v1053_v5 = vshrl.u32 %v44_v3, 7  ;;  %85 = vst [vmem:[#allocation13] sm:$0xff] %v1023_v6  ;;  %v45_v8 = vand.u32 127, %v44_v3 }
   0x6   :  { %86 = vst [vmem:[#allocation15] sm:$0xff] %v1024_v7  ;;  %v56_v13 = vsel %vm54_vm0, %v55_v10, %v27_v4 }
   0x7   :  { %v48_v9 = vshrl.u32 %v1053_v5, 1 }
   0x9   :  { %v50_v11 = vmul.u32 128, %v48_v9 }
   0xb   :  { %v51_v12 = vadd.s32 %v50_v11, %v45_v8  ;;  %v62_v14 = vld [vmem:[#allocation16 + $0x8] sm:$0xff] }
   0xc   :  { %vm63_vm1 = vcmp.lt.s32.totalorder %v62_v14, 0  ;;  %v64_v15 = vsub.s32 2147483647, %v62_v14 }
   0xd   :  { %vm58_vm2 = vcmp.lt.s32.totalorder %v51_v12, 768  ;;  %v66_v16 = vadd.s32 512, %v51_v12  ;;  %80 = vst [vmem:[#allocation17] sm:$0xff] %v51_v12 }
   0xe   :  { %v59_v17 = vsel %vm58_vm2, %v56_v13, 2147483648  ;;  %v65_v18 = vsel %vm63_vm1, %v64_v15, %v62_v14 }
   0xf   :  { %60 = vst [vmem:[#allocation16] sm:$0xff] %v59_v17  ;;  %vm67_vm3 = vcmp.lt.s32.totalorder %v66_v16, 768 }
  0x10   :  { %v68_v19 = vsel %vm67_vm3, %v65_v18, 2147483648  ;;  %83 = vst [vmem:[#allocation17 + $0x8] sm:$0xff] %v66_v16 }
  0x11   :  { %69 = vst [vmem:[#allocation16 + $0x8] sm:$0xff] %v68_v19 }
  0x12 LB: > { %s420_s13 = scalar_lea.vmem [#allocation13], %s1019_s0  ;;  %s422_s14 = scalar_lea.vmem [#allocation15], %s1019_s0  ;;  %s1019_s0 = sphi %s1057_s0, %s93_s0  }
  0x13   : > { %s93_s0 = sadd.s32 1, %s1019_s0  }
  0x14   : > { %v95_v21 = vld [vmem:[#allocation17] sm:$0xff]  ;;  %p90_p2 = scmp.ge.s32.totalorder %s93_s0, 8  }
  0x15   :  { %s1030_s0 = smov (%p90_p2), [#allocation8]  }
  0x16   : > { %v94_v20 = vld [vmem:[#allocation16] sm:$0xff] }
  0x17   : > { %v100_v23 = vld [vmem:[#allocation17 + $0x8] sm:$0xff] }
  0x18   : > { %v98_v22 = vld [vmem:[#allocation16 + $0x8] sm:$0xff]  ;;  %vm104_vm6 = vcmp.lt.s32.totalorder %v100_v23, %v95_v21 }
  0x19   : > { %vm102_vm4 = vcmp.gt.s32.totalorder %v98_v22, %v94_v20  ;;  %vm103_vm5 = vcmp.eq.s32.totalorder %v98_v22, %v94_v20 }
  0x1a   : > { %vm105_vm7 = vmand %vm103_vm5, %vm104_vm6 }
  0x1b   : > { %vm106_vm8 = vmor %vm102_vm4, %vm105_vm7 }
  0x1c   : > { %v107_v24 = vsel %vm106_vm8, %v98_v22, %v94_v20  ;;  %v108_v25 = vsel %vm106_vm8, %v100_v23, %v95_v21 }
  0x1d   : > { %v110_v26 = vrot.slane %v107_v24, 2  ;;  %v111_v27 = vrot.slane %v108_v25, 2 }
  0x1f   : > { %vm113_vm9 = vcmp.gt.s32.totalorder %v110_v26, %v107_v24  ;;  %vm114_vm10 = vcmp.eq.s32.totalorder %v110_v26, %v107_v24  ;;  %vm115_vm11 = vcmp.lt.s32.totalorder %v111_v27, %v108_v25 }
  0x20   : > { %vm116_vm12 = vmand %vm114_vm10, %vm115_vm11 }
  0x21   : > { %vm117_vm13 = vmor %vm113_vm9, %vm116_vm12 }
  0x22   : > { %v118_v28 = vsel %vm117_vm13, %v110_v26, %v107_v24  ;;  %v119_v29 = vsel %vm117_vm13, %v111_v27, %v108_v25 }
  0x23   : > { %v121_v30 = vrot.slane %v118_v28, 2  ;;  %v122_v31 = vrot.slane %v119_v29, 2 }
  0x25   : > { %vm124_vm14 = vcmp.gt.s32.totalorder %v121_v30, %v118_v28  ;;  %vm125_vm15 = vcmp.eq.s32.totalorder %v121_v30, %v118_v28  ;;  %vm126_vm0 = vcmp.lt.s32.totalorder %v122_v31, %v119_v29 }
  0x26   : > { %vm127_vm1 = vmand %vm125_vm15, %vm126_vm0 }
  0x27   : > { %vm128_vm2 = vmor %vm124_vm14, %vm127_vm1 }
  0x28   : > { %v129_v32 = vsel %vm128_vm2, %v121_v30, %v118_v28  ;;  %v130_v33 = vsel %vm128_vm2, %v122_v31, %v119_v29 }
  0x29   : > { %v132_v34 = vrot.slane %v129_v32, 2  ;;  %v133_v35 = vrot.slane %v130_v33, 2 }
  0x2b   : > { %vm135_vm3 = vcmp.gt.s32.totalorder %v132_v34, %v129_v32  ;;  %vm136_vm4 = vcmp.eq.s32.totalorder %v132_v34, %v129_v32  ;;  %vm137_vm5 = vcmp.lt.s32.totalorder %v133_v35, %v130_v33 }
  0x2c   : > { %vm138_vm6 = vmand %vm136_vm4, %vm137_vm5 }
  0x2d   : > { %vm139_vm7 = vmor %vm135_vm3, %vm138_vm6 }
  0x2e   : > { %v141_v36 = vsel %vm139_vm7, %v133_v35, %v130_v33  ;;  %v140_v37 = vsel %vm139_vm7, %v132_v34, %v129_v32 }
  0x2f   : > { %175 = vxpose.xlu1.b32.start [1/16] %v141_v36, 128  ;;  %143 = vxpose.xlu0.b32.start [1/16] %v140_v37, 128 }
  0x37   : > { %176 = vxpose.xlu1.b32.cont [2/16] %v141_v36, 128  ;;  %144 = vxpose.xlu0.b32.cont [2/16] %v140_v37, 128 }
  0x3f   : > { %177 = vxpose.xlu1.b32.cont [3/16] %v141_v36, 128  ;;  %145 = vxpose.xlu0.b32.cont [3/16] %v140_v37, 128 }
  0x47   : > { %178 = vxpose.xlu1.b32.cont [4/16] %v141_v36, 128  ;;  %146 = vxpose.xlu0.b32.cont [4/16] %v140_v37, 128 }
  0x4f   : > { %179 = vxpose.xlu1.b32.cont [5/16] %v141_v36, 128  ;;  %147 = vxpose.xlu0.b32.cont [5/16] %v140_v37, 128 }
  0x57   : > { %180 = vxpose.xlu1.b32.cont [6/16] %v141_v36, 128  ;;  %148 = vxpose.xlu0.b32.cont [6/16] %v140_v37, 128 }
  0x5f   : > { %181 = vxpose.xlu1.b32.cont [7/16] %v141_v36, 128  ;;  %149 = vxpose.xlu0.b32.cont [7/16] %v140_v37, 128 }
  0x67   : > { %182 = vxpose.xlu1.b32.cont [8/16] %v141_v36, 128  ;;  %150 = vxpose.xlu0.b32.cont [8/16] %v140_v37, 128 }
  0x6f   : > { %183 = vxpose.xlu1.b32.cont [9/16] %v141_v36, 128  ;;  %151 = vxpose.xlu0.b32.cont [9/16] %v140_v37, 128 }
  0x77   : > { %184 = vxpose.xlu1.b32.cont [10/16] %v141_v36, 128  ;;  %152 = vxpose.xlu0.b32.cont [10/16] %v140_v37, 128 }
  0x7f   : > { %185 = vxpose.xlu1.b32.cont [11/16] %v141_v36, 128  ;;  %153 = vxpose.xlu0.b32.cont [11/16] %v140_v37, 128 }
  0x87   : > { %186 = vxpose.xlu1.b32.cont [12/16] %v141_v36, 128  ;;  %154 = vxpose.xlu0.b32.cont [12/16] %v140_v37, 128 }
  0x8f   : > { %187 = vxpose.xlu1.b32.cont [13/16] %v141_v36, 128  ;;  %155 = vxpose.xlu0.b32.cont [13/16] %v140_v37, 128 }
  0x97   : > { %188 = vxpose.xlu1.b32.cont [14/16] %v141_v36, 128  ;;  %156 = vxpose.xlu0.b32.cont [14/16] %v140_v37, 128 }
  0x9f   : > { %189 = vxpose.xlu1.b32.cont [15/16] %v141_v36, 128  ;;  %157 = vxpose.xlu0.b32.cont [15/16] %v140_v37, 128 }
  0xa7   : > { %190 = vxpose.xlu1.b32.end [16/16] %v141_v36, 128  ;;  %158 = vxpose.xlu0.b32.end [16/16] %v140_v37, 128 }
  0xd3   : > { %v191_v38 = vpop.trf.xlu1  ;;  %v159_v39 = vpop.trf.xlu0 }
  0xdb   : > { %v192_v40 = vpop.trf.xlu1  ;;  %v160_v41 = vpop.trf.xlu0 }
  0xdc   : > { %vm211_vm8 = vcmp.lt.s32.totalorder %v192_v40, %v191_v38  ;;  %vm209_vm9 = vcmp.gt.s32.totalorder %v160_v41, %v159_v39  ;;  %vm210_vm10 = vcmp.eq.s32.totalorder %v160_v41, %v159_v39 }
  0xdd   : > { %vm212_vm11 = vmand %vm210_vm10, %vm211_vm8 }
  0xde   : > { %vm213_vm12 = vmor %vm209_vm9, %vm212_vm11 }
  0xdf   : > { %v214_v42 = vsel %vm213_vm12, %v160_v41, %v159_v39  ;;  %v215_v43 = vsel %vm213_vm12, %v192_v40, %v191_v38 }
  0xe3   : > { %v193_v44 = vpop.trf.xlu1  ;;  %v161_v45 = vpop.trf.xlu0 }
  0xe4   : > { %vm220_vm13 = vcmp.lt.s32.totalorder %v193_v44, %v215_v43  ;;  %vm218_vm14 = vcmp.gt.s32.totalorder %v161_v45, %v214_v42  ;;  %vm219_vm15 = vcmp.eq.s32.totalorder %v161_v45, %v214_v42 }
  0xe5   : > { %vm221_vm0 = vmand %vm219_vm15, %vm220_vm13 }
  0xe6   : > { %vm222_vm1 = vmor %vm218_vm14, %vm221_vm0 }
  0xe7   : > { %v223_v46 = vsel %vm222_vm1, %v161_v45, %v214_v42  ;;  %v224_v47 = vsel %vm222_vm1, %v193_v44, %v215_v43 }
  0xeb   : > { %v194_v48 = vpop.trf.xlu1  ;;  %v162_v49 = vpop.trf.xlu0 }
  0xec   : > { %vm229_vm2 = vcmp.lt.s32.totalorder %v194_v48, %v224_v47  ;;  %vm227_vm3 = vcmp.gt.s32.totalorder %v162_v49, %v223_v46  ;;  %vm228_vm4 = vcmp.eq.s32.totalorder %v162_v49, %v223_v46 }
  0xed   : > { %vm230_vm5 = vmand %vm228_vm4, %vm229_vm2 }
  0xee   : > { %vm231_vm6 = vmor %vm227_vm3, %vm230_vm5 }
  0xef   : > { %v232_v50 = vsel %vm231_vm6, %v162_v49, %v223_v46  ;;  %v233_v51 = vsel %vm231_vm6, %v194_v48, %v224_v47 }
  0xf3   : > { %v195_v52 = vpop.trf.xlu1  ;;  %v163_v53 = vpop.trf.xlu0 }
  0xf4   : > { %vm238_vm7 = vcmp.lt.s32.totalorder %v195_v52, %v233_v51  ;;  %vm236_vm8 = vcmp.gt.s32.totalorder %v163_v53, %v232_v50  ;;  %vm237_vm9 = vcmp.eq.s32.totalorder %v163_v53, %v232_v50 }
  0xf5   : > { %vm239_vm10 = vmand %vm237_vm9, %vm238_vm7 }
  0xf6   : > { %vm240_vm11 = vmor %vm236_vm8, %vm239_vm10 }
  0xf7   : > { %v241_v54 = vsel %vm240_vm11, %v163_v53, %v232_v50  ;;  %v242_v55 = vsel %vm240_vm11, %v195_v52, %v233_v51 }
  0xfb   : > { %v196_v56 = vpop.trf.xlu1  ;;  %v164_v57 = vpop.trf.xlu0 }
  0xfc   : > { %vm247_vm12 = vcmp.lt.s32.totalorder %v196_v56, %v242_v55  ;;  %vm245_vm13 = vcmp.gt.s32.totalorder %v164_v57, %v241_v54  ;;  %vm246_vm14 = vcmp.eq.s32.totalorder %v164_v57, %v241_v54 }
  0xfd   : > { %vm248_vm15 = vmand %vm246_vm14, %vm247_vm12 }
  0xfe   : > { %vm249_vm0 = vmor %vm245_vm13, %vm248_vm15 }
  0xff   : > { %v250_v58 = vsel %vm249_vm0, %v164_v57, %v241_v54  ;;  %v251_v59 = vsel %vm249_vm0, %v196_v56, %v242_v55 }
 0x103   : > { %v197_v60 = vpop.trf.xlu1  ;;  %v165_v61 = vpop.trf.xlu0 }
 0x104   : > { %vm256_vm1 = vcmp.lt.s32.totalorder %v197_v60, %v251_v59  ;;  %vm254_vm2 = vcmp.gt.s32.totalorder %v165_v61, %v250_v58  ;;  %vm255_vm3 = vcmp.eq.s32.totalorder %v165_v61, %v250_v58 }
 0x105   : > { %vm257_vm4 = vmand %vm255_vm3, %vm256_vm1 }
 0x106   : > { %vm258_vm5 = vmor %vm254_vm2, %vm257_vm4 }
 0x107   : > { %v259_v62 = vsel %vm258_vm5, %v165_v61, %v250_v58  ;;  %v260_v63 = vsel %vm258_vm5, %v197_v60, %v251_v59 }
 0x10b   : > { %v198_v0 = vpop.trf.xlu1  ;;  %v166_v1 = vpop.trf.xlu0 }
 0x10c   : > { %vm265_vm6 = vcmp.lt.s32.totalorder %v198_v0, %v260_v63  ;;  %vm263_vm7 = vcmp.gt.s32.totalorder %v166_v1, %v259_v62  ;;  %vm264_vm8 = vcmp.eq.s32.totalorder %v166_v1, %v259_v62 }
 0x10d   : > { %vm266_vm9 = vmand %vm264_vm8, %vm265_vm6 }
 0x10e   : > { %vm267_vm10 = vmor %vm263_vm7, %vm266_vm9 }
 0x10f   : > { %v268_v2 = vsel %vm267_vm10, %v166_v1, %v259_v62  ;;  %v269_v4 = vsel %vm267_vm10, %v198_v0, %v260_v63 }
 0x113   : > { %v199_v6 = vpop.trf.xlu1  ;;  %v167_v7 = vpop.trf.xlu0 }
 0x114   : > { %vm274_vm11 = vcmp.lt.s32.totalorder %v199_v6, %v269_v4  ;;  %vm272_vm12 = vcmp.gt.s32.totalorder %v167_v7, %v268_v2  ;;  %vm273_vm13 = vcmp.eq.s32.totalorder %v167_v7, %v268_v2 }
 0x115   : > { %vm275_vm14 = vmand %vm273_vm13, %vm274_vm11 }
 0x116   : > { %vm276_vm15 = vmor %vm272_vm12, %vm275_vm14 }
 0x117   : > { %v277_v8 = vsel %vm276_vm15, %v167_v7, %v268_v2  ;;  %v278_v9 = vsel %vm276_vm15, %v199_v6, %v269_v4  ;;  %v1025_v7 = vmov 2147483648  }
 0x11b   : > { %v200_v10 = vpop.trf.xlu1  ;;  %v168_v11 = vpop.trf.xlu0 }
 0x11c   : > { %vm283_vm0 = vcmp.lt.s32.totalorder %v200_v10, %v278_v9  ;;  %vm281_vm1 = vcmp.gt.s32.totalorder %v168_v11, %v277_v8  ;;  %vm282_vm2 = vcmp.eq.s32.totalorder %v168_v11, %v277_v8 }
 0x11d   : > { %vm284_vm3 = vmand %vm282_vm2, %vm283_vm0 }
 0x11e   : > { %vm285_vm4 = vmor %vm281_vm1, %vm284_vm3 }
 0x11f   : > { %v286_v12 = vsel %vm285_vm4, %v168_v11, %v277_v8  ;;  %v287_v13 = vsel %vm285_vm4, %v200_v10, %v278_v9  ;;  %v1026_v8 = vmov 2147483647  }
 0x123   : > { %v201_v14 = vpop.trf.xlu1  ;;  %v169_v15 = vpop.trf.xlu0 }
 0x124   : > { %vm292_vm5 = vcmp.lt.s32.totalorder %v201_v14, %v287_v13  ;;  %vm290_vm6 = vcmp.gt.s32.totalorder %v169_v15, %v286_v12  ;;  %vm291_vm7 = vcmp.eq.s32.totalorder %v169_v15, %v286_v12 }
 0x125   : > { %vm293_vm8 = vmand %vm291_vm7, %vm292_vm5 }
 0x126   : > { %vm294_vm9 = vmor %vm290_vm6, %vm293_vm8 }
 0x127   : > { %v295_v16 = vsel %vm294_vm9, %v169_v15, %v286_v12  ;;  %v296_v17 = vsel %vm294_vm9, %v201_v14, %v287_v13  ;;  %v518_v13 = vld [vmem:[#allocation12] sm:$0xff] (%p90_p2)  ;;  %v519_v14 = vld [vmem:[#allocation14] sm:$0xff] (%p90_p2)  ;;  %v1027_v15 = vmov (%p90_p2), 839939668  }
 0x12b   : > { %v202_v18 = vpop.trf.xlu1  ;;  %v170_v19 = vpop.trf.xlu0 }
 0x12c   : > { %vm301_vm10 = vcmp.lt.s32.totalorder %v202_v18, %v296_v17  ;;  %vm299_vm11 = vcmp.gt.s32.totalorder %v170_v19, %v295_v16  ;;  %vm300_vm12 = vcmp.eq.s32.totalorder %v170_v19, %v295_v16 }
 0x12d   : > { %vm302_vm13 = vmand %vm300_vm12, %vm301_vm10 }
 0x12e   : > { %vm303_vm14 = vmor %vm299_vm11, %vm302_vm13 }
 0x12f   : > { %v304_v20 = vsel %vm303_vm14, %v170_v19, %v295_v16  ;;  %v305_v21 = vsel %vm303_vm14, %v202_v18, %v296_v17  ;;  %v543_v16 = vunpack.c.l.s4 (%p90_p2), %v1027_v15  ;;  %v558_v18 = vand.u32 (%p90_p2), 4, %v1053_v5 }
 0x130   :  { %v1028_v19 = vmov (%p90_p2), 1417023538  }
 0x131   :  { %v1069_v17 = vunpack.c.0.s8 (%p90_p2), %v543_v16 }
 0x133   : > { %v203_v22 = vpop.trf.xlu1  ;;  %v171_v23 = vpop.trf.xlu0 }
 0x134   : > { %vm310_vm15 = vcmp.lt.s32.totalorder %v203_v22, %v305_v21  ;;  %vm308_vm0 = vcmp.gt.s32.totalorder %v171_v23, %v304_v20  ;;  %vm309_vm1 = vcmp.eq.s32.totalorder %v171_v23, %v304_v20 }
 0x135   : > { %vm311_vm2 = vmand %vm309_vm1, %vm310_vm15 }
 0x136   : > { %vm312_vm3 = vmor %vm308_vm0, %vm311_vm2 }
 0x137   : > { %v313_v24 = vsel %vm312_vm3, %v171_v23, %v304_v20  ;;  %v314_v25 = vsel %vm312_vm3, %v203_v22, %v305_v21  ;;  %v565_v20 = vunpack.c.l.s4 (%p90_p2), %v1028_v19 }
 0x13b   : > { %v204_v26 = vpop.trf.xlu1  ;;  %v172_v27 = vpop.trf.xlu0 }
 0x13c   : > { %vm319_vm4 = vcmp.lt.s32.totalorder %v204_v26, %v314_v25  ;;  %vm317_vm5 = vcmp.gt.s32.totalorder %v172_v27, %v313_v24  ;;  %vm318_vm6 = vcmp.eq.s32.totalorder %v172_v27, %v313_v24 }
 0x13d   : > { %vm320_vm7 = vmand %vm318_vm6, %vm319_vm4 }
 0x13e   : > { %vm321_vm8 = vmor %vm317_vm5, %vm320_vm7 }
 0x13f   : > { %v322_v28 = vsel %vm321_vm8, %v172_v27, %v313_v24  ;;  %v323_v29 = vsel %vm321_vm8, %v204_v26, %v314_v25 }
 0x143   : > { %v205_v30 = vpop.trf.xlu1  ;;  %v173_v31 = vpop.trf.xlu0 }
 0x144   : > { %vm328_vm9 = vcmp.lt.s32.totalorder %v205_v30, %v323_v29  ;;  %vm326_vm10 = vcmp.gt.s32.totalorder %v173_v31, %v322_v28  ;;  %vm327_vm11 = vcmp.eq.s32.totalorder %v173_v31, %v322_v28 }
 0x145   : > { %vm329_vm12 = vmand %vm327_vm11, %vm328_vm9 }
 0x146   : > { %vm330_vm13 = vmor %vm326_vm10, %vm329_vm12 }
 0x147   : > { %v331_v32 = vsel %vm330_vm13, %v173_v31, %v322_v28  ;;  %v332_v33 = vsel %vm330_vm13, %v205_v30, %v323_v29  ;;  %v1080_v29 = vunpack.c.0.s8 (%p90_p2), %v565_v20  ;;  %v580_v30 = vand.u32 (%p90_p2), 2, %v1053_v5 }
 0x14b   : > { %v206_v34 = vpop.trf.xlu1  ;;  %v174_v35 = vpop.trf.xlu0 }
 0x14c   : > { %vm337_vm14 = vcmp.lt.s32.totalorder %v206_v34, %v332_v33  ;;  %vm335_vm15 = vcmp.gt.s32.totalorder %v174_v35, %v331_v32  ;;  %vm336_vm0 = vcmp.eq.s32.totalorder %v174_v35, %v331_v32 }
 0x14d   : > { %vm338_vm1 = vmand %vm336_vm0, %vm337_vm14 }
 0x14e   : > { %vm339_vm2 = vmor %vm335_vm15, %vm338_vm1 }
 0x14f   : > { %v340_v36 = vsel %vm339_vm2, %v174_v35, %v331_v32  ;;  %v341_v37 = vsel %vm339_vm2, %v206_v34, %v332_v33  ;;  %v1029_v33 = vmov (%p90_p2), 1732584193  }
 0x150   : > { %v343_v38 = vrot.slane %v340_v36, 1  ;;  %v344_v39 = vrot.slane %v341_v37, 1  ;;  %v587_v34 = vunpack.c.l.s4 (%p90_p2), %v1029_v33 }
 0x152   : > { %vm346_vm3 = vcmp.gt.s32.totalorder %v343_v38, %v340_v36  ;;  %vm347_vm4 = vcmp.eq.s32.totalorder %v343_v38, %v340_v36  ;;  %vm348_vm5 = vcmp.lt.s32.totalorder %v344_v39, %v341_v37 }
 0x153   : > { %vm349_vm6 = vmand %vm347_vm4, %vm348_vm5 }
 0x154   : > { %vm350_vm7 = vmor %vm346_vm3, %vm349_vm6 }
 0x155   : > { %v351_v40 = vsel %vm350_vm7, %v343_v38, %v340_v36  ;;  %v352_v41 = vsel %vm350_vm7, %v344_v39, %v341_v37  ;;  %v1093_v39 = vunpack.c.0.s8 (%p90_p2), %v587_v34 }
 0x156   : > { %v354_v42 = vrot.slane %v351_v40, 1  ;;  %v355_v43 = vrot.slane %v352_v41, 1 }
 0x158   : > { %vm357_vm8 = vcmp.gt.s32.totalorder %v354_v42, %v351_v40  ;;  %vm358_vm9 = vcmp.eq.s32.totalorder %v354_v42, %v351_v40  ;;  %vm359_vm10 = vcmp.lt.s32.totalorder %v355_v43, %v352_v41 }
 0x159   : > { %vm360_vm11 = vmand %vm358_vm9, %vm359_vm10 }
 0x15a   : > { %vm361_vm12 = vmor %vm357_vm8, %vm360_vm11 }
 0x15b   : > { %v362_v44 = vsel %vm361_vm12, %v354_v42, %v351_v40  ;;  %v363_v45 = vsel %vm361_vm12, %v355_v43, %v352_v41  ;;  %v602_v43 = vand.u32 (%p90_p2), 1, %v1053_v5 }
 0x15c   : > { %v365_v46 = vrot.slane %v362_v44, 1  ;;  %v366_v47 = vrot.slane %v363_v45, 1 }
 0x15e   : > { %vm370_vm13 = vcmp.lt.s32.totalorder %v366_v47, %v363_v45  ;;  %vm368_vm14 = vcmp.gt.s32.totalorder %v365_v46, %v362_v44  ;;  %vm369_vm15 = vcmp.eq.s32.totalorder %v365_v46, %v362_v44 }
 0x15f   : > { %vm371_vm0 = vmand %vm369_vm15, %vm370_vm13 }
 0x160   : > { %vm372_vm1 = vmor %vm368_vm14, %vm371_vm0 }
 0x161   : > { %v373_v48 = vsel %vm372_vm1, %v365_v46, %v362_v44  ;;  %v374_v49 = vsel %vm372_vm1, %v366_v47, %v363_v45 }
 0x162   : > { %v376_v50 = vrot.slane %v373_v48, 1  ;;  %v377_v51 = vrot.slane %v374_v49, 1 }
 0x164   : > { %vm379_vm2 = vcmp.gt.s32.totalorder %v376_v50, %v373_v48  ;;  %vm380_vm3 = vcmp.eq.s32.totalorder %v376_v50, %v373_v48  ;;  %vm381_vm4 = vcmp.lt.s32.totalorder %v377_v51, %v374_v49 }
 0x165   : > { %vm382_vm5 = vmand %vm380_vm3, %vm381_vm4 }
 0x166   : > { %vm383_vm6 = vmor %vm379_vm2, %vm382_vm5 }
 0x167   : > { %v384_v52 = vsel %vm383_vm6, %v376_v50, %v373_v48  ;;  %v385_v53 = vsel %vm383_vm6, %v377_v51, %v374_v49 }
 0x168   : > { %v387_v54 = vrot.slane %v384_v52, 1  ;;  %v388_v55 = vrot.slane %v385_v53, 1 }
 0x16a   : > { %vm390_vm7 = vcmp.gt.s32.totalorder %v387_v54, %v384_v52  ;;  %vm391_vm8 = vcmp.eq.s32.totalorder %v387_v54, %v384_v52  ;;  %vm392_vm9 = vcmp.lt.s32.totalorder %v388_v55, %v385_v53 }
 0x16b   : > { %vm393_vm10 = vmand %vm391_vm8, %vm392_vm9 }
 0x16c   : > { %vm394_vm11 = vmor %vm390_vm7, %vm393_vm10 }
 0x16d   : > { %v395_v56 = vsel %vm394_vm11, %v387_v54, %v384_v52  ;;  %v396_v57 = vsel %vm394_vm11, %v388_v55, %v385_v53 }
 0x16e   : > { %v398_v58 = vrot.slane %v395_v56, 1  ;;  %v399_v59 = vrot.slane %v396_v57, 1 }
 0x170   : > { %vm401_vm12 = vcmp.gt.s32.totalorder %v398_v58, %v395_v56  ;;  %vm402_vm13 = vcmp.eq.s32.totalorder %v398_v58, %v395_v56  ;;  %vm403_vm14 = vcmp.lt.s32.totalorder %v399_v59, %v396_v57 }
 0x171   : > { %vm404_vm15 = vmand %vm402_vm13, %vm403_vm14 }
 0x172   : > { %vm405_vm0 = vmor %vm401_vm12, %vm404_vm15 }
 0x173   : > { %v406_v60 = vsel %vm405_vm0, %v398_v58, %v395_v56  ;;  %v407_v61 = vsel %vm405_vm0, %v399_v59, %v396_v57  ;;  %vm1076_vm0 = vcmp.ne.s32.totalorder (%p90_p2), %v558_v18, 0 }
 0x174   : > { %v409_v62 = vrot.slane %v406_v60, 1  ;;  %v410_v63 = vrot.slane %v407_v61, 1 }
 0x176   : > { %vm412_vm1 = vcmp.gt.s32.totalorder %v409_v62, %v406_v60  ;;  %vm413_vm2 = vcmp.eq.s32.totalorder %v409_v62, %v406_v60  ;;  %vm414_vm3 = vcmp.lt.s32.totalorder %v410_v63, %v407_v61 }
 0x177   : > { %vm415_vm4 = vmand %vm413_vm2, %vm414_vm3 }
 0x178   : > { %vm416_vm5 = vmor %vm412_vm1, %vm415_vm4 }
 0x179   : > { %v418_v0 = vsel %vm416_vm5, %v410_v63, %v407_v61  ;;  %v417_v1 = vsel %vm416_vm5, %v409_v62, %v406_v60 }
 0x17a   : > { %425 = vxpose.xlu2.b32.start.end [1/1] (short) (narrow) %v418_v0, 8  ;;  %421 = vst [vmem:[%s420_s13] sm:$0x1] %v417_v1  ;;  %s886_s13 = sshll.u32 (%p90_p2), %s1030_s0, 4  ;;  %s887_s13 = int_to_ptr.vmem [resolvable:$true] %s886_s13 }
 0x17b   : > { %423 = vst [vmem:[%s422_s14] sm:$0x1] %v418_v0 }
 0x181   :  { %v506_v11 = vld [vmem:[#allocation13 + $0x7] ss:$-1 sm:$0xff] (%p90_p2) }
 0x182   :  { %v512_v12 = vld [vmem:[#allocation15 + $0x7] ss:$-1 sm:$0xff] (%p90_p2)  ;;  %vm524_vm8 = vcmp.gt.s32.totalorder (%p90_p2), %v518_v13, %v506_v11  ;;  %vm525_vm9 = vcmp.eq.s32.totalorder (%p90_p2), %v518_v13, %v506_v11 }
 0x183   :  { %vm526_vm10 = vcmp.lt.s32.totalorder (%p90_p2), %v519_v14, %v512_v12 }
 0x184   :  { %vm527_vm11 = vmand (%p90_p2), %vm525_vm9, %vm526_vm10  ;;  %vm1087_vm9 = vcmp.ne.s32.totalorder (%p90_p2), %v580_v30, 0 }
 0x185   :  { %vm528_vm12 = vmor (%p90_p2), %vm524_vm8, %vm527_vm11 }
 0x186   :  { %v529_v21 = vsel (%p90_p2), %vm528_vm12, %v518_v13, %v506_v11  ;;  %v531_v22 = vsel (%p90_p2), %vm528_vm12, %v506_v11, %v518_v13  ;;  %v533_v23 = vsel (%p90_p2), %vm528_vm12, %v519_v14, %v512_v12 }
 0x187   :  { %v545_v24 = vperm.slane (%p90_p2), %v529_v21, %v1069_v17  ;;  %v549_v25 = vperm.slane (%p90_p2), %v533_v23, %v1069_v17  ;;  %v690_v26 = vperm.slane (%p90_p2), %v531_v22, %v1069_v17 }
 0x189   :  { %vm551_vm13 = vcmp.gt.s32.totalorder (%p90_p2), %v529_v21, %v545_v24  ;;  %vm552_vm14 = vcmp.eq.s32.totalorder (%p90_p2), %v529_v21, %v545_v24  ;;  %vm553_vm15 = vcmp.lt.s32.totalorder (%p90_p2), %v533_v23, %v549_v25  ;;  %vm697_vm2 = vcmp.eq.s32.totalorder (%p90_p2), %v531_v22, %v690_v26 }
 0x18a   :  { %vm554_vm1 = vmand (%p90_p2), %vm552_vm14, %vm553_vm15  ;;  %vm696_vm5 = vcmp.gt.s32.totalorder (%p90_p2), %v531_v22, %v690_v26 }
 0x18b   :  { %vm555_vm4 = vmor (%p90_p2), %vm551_vm13, %vm554_vm1 }
 0x213   : > { %v441_v2 = vpop.trf.xlu2 }
 0x214   : > { %v480_v4 = vrot.slane %v441_v2, 1  ;;  %964 = vpush %v441_v2 }
 0x216   : > { %966 = vpush %v480_v4 }
 0x245   : > { %s965_s15 = spop %964 }
 0x246   : > { %s458_s16 = sshrl.u32 %s965_s15, 9  ;;  %s460_s17 = ssub.s32 0, %s965_s15 }
 0x247   : > { %p459_p0 = scmp.lt.s32.totalorder %s965_s15, 0  ;;  %s956_s18 = smin.u32 %s965_s15, %s460_s17 }
 0x248   : > { %s462_s19 = sand.u32 511, %s956_s18   ;;  %s958_s20 = sshll.u32 %s458_s16, 3 }
 0x249   : > { %s463_s21 = ssub.s32 0, %s462_s19  ;;  %s967_s22 = spop %966 }
 0x24a   : > { %s1154_s21 = smov (!%p459_p0, %s463_s21), %s462_s19  ;;  %s484_s26 = ssub.s32 0, %s967_s22 }
 0x24b   : > { %s465_s23 = sshrl.u32 %s1154_s21, 7  ;;  %s467_s24 = sand.u32 127, %s1154_s21  }
 0x24c   : > { %s957_s25 = sshll.u32 %s465_s23, 8  ;;  %s960_s28 = smin.u32 %s967_s22, %s484_s26 }
 0x24d   : > { %s468_s27 = sadd.s32 %s957_s25, %s467_s24  ;;  %p483_p1 = scmp.lt.s32.totalorder %s967_s22, 0 }
 0x24e   : > { %v470_v6 = vstv %s468_s27  ;;  %s486_s29 = sand.u32 511, %s960_s28   ;;  %s474_s3 = scalar_lea.vmem [#allocation16], %s958_s20 }
 0x24f   : > { %vm472_vm6 = vcmp.eq.s32.totalorder %v44_v3, %v470_v6  ;;  %s487_s30 = ssub.s32 0, %s486_s29  ;;  %s477_s4 = scalar_lea.vmem [#allocation17], %s958_s20 }
 0x250   : > { %475 = vst.msk [vmem:[%s474_s3] sm:$0xff] %vm472_vm6, %v1025_v7  ;;  %s1156_s30 = smov (!%p483_p1, %s487_s30), %s486_s29  ;;  %s482_s5 = sshrl.u32 %s967_s22, 9 }
 0x251   : > { %478 = vst.msk [vmem:[%s477_s4] sm:$0xff] %vm472_vm6, %v1026_v8  ;;  %s489_s6 = sshrl.u32 %s1156_s30, 7  ;;  %s491_s7 = sand.u32 127, %s1156_s30   ;;  %vm560_vm6 = vmxor (%p90_p2), %vm555_vm4, %vm1076_vm0 }
 0x252   : > { %s961_s8 = sshll.u32 %s489_s6, 8  ;;  %s962_s10 = sshll.u32 %s482_s5, 3  ;;  %v561_v31 = vsel (%p90_p2), %vm560_vm6, %v529_v21, %v545_v24  ;;  %v562_v32 = vsel (%p90_p2), %vm560_vm6, %v533_v23, %v549_v25 }
 0x253   : > { %s492_s9 = sadd.s32 %s961_s8, %s491_s7  ;;  %s498_s11 = scalar_lea.vmem [#allocation16], %s962_s10  ;;  %v567_v35 = vperm.slane (%p90_p2), %v561_v31, %v1080_v29  ;;  %v571_v36 = vperm.slane (%p90_p2), %v562_v32, %v1080_v29 }
 0x254   : > { %v494_v9 = vstv %s492_s9  ;;  %s501_s12 = scalar_lea.vmem [#allocation17], %s962_s10  ;;  %s888_s16 = sshll.u32 (%p90_p2), %s1145_s1, 4  ;;  %s889_s16 = int_to_ptr.hbm [resolvable:$true] %s888_s16 }
 0x255   : > { %v495_v10 = vadd.s32 128, %v494_v9  ;;  %92 = sbr.rel (!%p90_p2) target bundleno = 18 (0x12), region = 107  ;;  %vm573_vm11 = vcmp.gt.s32.totalorder (%p90_p2), %v561_v31, %v567_v35  ;;  %vm575_vm13 = vcmp.lt.s32.totalorder (%p90_p2), %v562_v32, %v571_v36 }
 0x257   : > { %vm496_vm7 = vcmp.eq.s32.totalorder %v44_v3, %v495_v10  ;;  %v535_v3 = vsel (%p90_p2), %vm528_vm12, %v512_v12, %v519_v14  ;;  %vm574_vm12 = vcmp.eq.s32.totalorder (%p90_p2), %v561_v31, %v567_v35 }
 0x258   : > { %499 = vst.msk [vmem:[%s498_s11] sm:$0xff] %vm496_vm7, %v1025_v7  ;;  %v694_v27 = vperm.slane (%p90_p2), %v535_v3, %v1069_v17  ;;  %vm576_vm14 = vmand (%p90_p2), %vm574_vm12, %vm575_vm13 }
 0x259   : > { %502 = vst.msk [vmem:[%s501_s12] sm:$0xff] %vm496_vm7, %v1026_v8  ;;  %vm577_vm15 = vmor (%p90_p2), %vm573_vm11, %vm576_vm14  ;;  %vm1102_vm11 = vcmp.ne.s32.totalorder (%p90_p2), %v602_v43, 0 }
 0x25a   :  { %vm698_vm3 = vcmp.lt.s32.totalorder %v535_v3, %v694_v27  ;;  %vm582_vm1 = vmxor %vm577_vm15, %vm1087_vm9 }
 0x25b   :  { %vm699_vm7 = vmand %vm697_vm2, %vm698_vm3  ;;  %v583_v44 = vsel %vm582_vm1, %v561_v31, %v567_v35  ;;  %v584_v45 = vsel %vm582_vm1, %v562_v32, %v571_v36 }
 0x25c   :  { %vm700_vm8 = vmor %vm696_vm5, %vm699_vm7  ;;  %v589_v46 = vperm.slane %v583_v44, %v1093_v39  ;;  %v593_v47 = vperm.slane %v584_v45, %v1093_v39 }
 0x25d   :  { %vm705_vm10 = vmxor %vm700_vm8, %vm1076_vm0 }
 0x25e   :  { %v706_v38 = vsel %vm705_vm10, %v531_v22, %v690_v26  ;;  %v707_v40 = vsel %vm705_vm10, %v535_v3, %v694_v27  ;;  %vm595_vm7 = vcmp.gt.s32.totalorder %v583_v44, %v589_v46  ;;  %vm596_vm8 = vcmp.eq.s32.totalorder %v583_v44, %v589_v46 }
 0x25f   :  { %v712_v41 = vperm.slane %v706_v38, %v1080_v29  ;;  %v716_v42 = vperm.slane %v707_v40, %v1080_v29  ;;  %vm597_vm10 = vcmp.lt.s32.totalorder %v584_v45, %v593_v47 }
 0x260   :  { %vm598_vm13 = vmand %vm596_vm8, %vm597_vm10 }
 0x261   :  { %vm718_vm2 = vcmp.gt.s32.totalorder %v706_v38, %v712_v41  ;;  %vm719_vm3 = vcmp.eq.s32.totalorder %v706_v38, %v712_v41  ;;  %vm720_vm4 = vcmp.lt.s32.totalorder %v707_v40, %v716_v42  ;;  %vm599_vm14 = vmor %vm595_vm7, %vm598_vm13 }
 0x262   :  { %vm721_vm5 = vmand %vm719_vm3, %vm720_vm4 }
 0x263   :  { %vm722_vm6 = vmor %vm718_vm2, %vm721_vm5 }
 0x264   :  { %vm727_vm12 = vmxor %vm722_vm6, %vm1087_vm9 }
 0x265   :  { %v728_v5 = vsel %vm727_vm12, %v706_v38, %v712_v41  ;;  %v729_v49 = vsel %vm727_vm12, %v707_v40, %v716_v42  ;;  %vm604_vm15 = vmxor %vm599_vm14, %vm1102_vm11 }
 0x266   :  { %v734_v50 = vperm.slane %v728_v5, %v1093_v39  ;;  %v738_v51 = vperm.slane %v729_v49, %v1093_v39  ;;  %v605_v52 = vsel %vm604_vm15, %v583_v44, %v589_v46  ;;  %v606_v53 = vsel %vm604_vm15, %v584_v45, %v593_v47 }
 0x267   :  { %v617_v54 = vperm.slane %v605_v52, %v1069_v17  ;;  %v621_v55 = vperm.slane %v606_v53, %v1069_v17 }
 0x268   :  { %vm740_vm1 = vcmp.gt.s32.totalorder %v728_v5, %v734_v50  ;;  %vm741_vm2 = vcmp.eq.s32.totalorder %v728_v5, %v734_v50  ;;  %vm742_vm3 = vcmp.lt.s32.totalorder %v729_v49, %v738_v51 }
 0x269   :  { %vm743_vm4 = vmand %vm741_vm2, %vm742_vm3  ;;  %vm623_vm5 = vcmp.gt.s32.totalorder %v605_v52, %v617_v54  ;;  %vm624_vm6 = vcmp.eq.s32.totalorder %v605_v52, %v617_v54  ;;  %vm625_vm7 = vcmp.lt.s32.totalorder %v606_v53, %v621_v55 }
 0x26a   :  { %vm744_vm8 = vmor %vm740_vm1, %vm743_vm4 }
 0x26b   :  { %vm626_vm10 = vmand %vm624_vm6, %vm625_vm7 }
 0x26c   :  { %vm627_vm12 = vmor %vm623_vm5, %vm626_vm10 }
 0x26d   :  { %vm632_vm13 = vmxor %vm627_vm12, %vm1076_vm0 }
 0x26e   :  { %v633_v56 = vsel %vm632_vm13, %v605_v52, %v617_v54  ;;  %v634_v57 = vsel %vm632_vm13, %v606_v53, %v621_v55  ;;  %vm749_vm14 = vmxor %vm744_vm8, %vm1102_vm11 }
 0x26f   :  { %v639_v58 = vperm.slane %v633_v56, %v1080_v29  ;;  %v643_v59 = vperm.slane %v634_v57, %v1080_v29  ;;  %v750_v60 = vsel %vm749_vm14, %v728_v5, %v734_v50  ;;  %v751_v61 = vsel %vm749_vm14, %v729_v49, %v738_v51 }
 0x270   :  { %v762_v62 = vperm.slane %v750_v60, %v1069_v17  ;;  %v766_v63 = vperm.slane %v751_v61, %v1069_v17 }
 0x271   :  { %vm645_vm15 = vcmp.gt.s32.totalorder %v633_v56, %v639_v58  ;;  %vm646_vm1 = vcmp.eq.s32.totalorder %v633_v56, %v639_v58  ;;  %vm647_vm2 = vcmp.lt.s32.totalorder %v634_v57, %v643_v59 }
 0x272   :  { %vm648_vm3 = vmand %vm646_vm1, %vm647_vm2  ;;  %vm769_vm4 = vcmp.eq.s32.totalorder %v750_v60, %v762_v62  ;;  %vm770_vm5 = vcmp.lt.s32.totalorder %v751_v61, %v766_v63  ;;  %vm768_vm7 = vcmp.gt.s32.totalorder %v750_v60, %v762_v62 }
 0x273   :  { %vm649_vm6 = vmor %vm645_vm15, %vm648_vm3 }
 0x274   :  { %vm654_vm8 = vmxor %vm649_vm6, %vm1087_vm9 }
 0x275   :  { %v655_v0 = vsel %vm654_vm8, %v633_v56, %v639_v58  ;;  %v656_v1 = vsel %vm654_vm8, %v634_v57, %v643_v59  ;;  %vm771_vm10 = vmand %vm769_vm4, %vm770_vm5 }
 0x276   :  { %v661_v2 = vperm.slane %v655_v0, %v1093_v39  ;;  %v665_v4 = vperm.slane %v656_v1, %v1093_v39  ;;  %vm772_vm12 = vmor %vm768_vm7, %vm771_vm10 }
 0x277   :  { %vm777_vm13 = vmxor %vm772_vm12, %vm1076_vm0 }
 0x278   :  { %vm667_vm14 = vcmp.gt.s32.totalorder %v655_v0, %v661_v2  ;;  %vm668_vm1 = vcmp.eq.s32.totalorder %v655_v0, %v661_v2  ;;  %vm669_vm2 = vcmp.lt.s32.totalorder %v656_v1, %v665_v4  ;;  %v778_v6 = vsel %vm777_vm13, %v750_v60, %v762_v62 }
 0x279   :  { %vm670_vm15 = vmand %vm668_vm1, %vm669_vm2  ;;  %v779_v7 = vsel %vm777_vm13, %v751_v61, %v766_v63  ;;  %v784_v8 = vperm.slane %v778_v6, %v1080_v29 }
 0x27a   :  { %vm671_vm3 = vmor %vm667_vm14, %vm670_vm15  ;;  %v788_v9 = vperm.slane %v779_v7, %v1080_v29 }
 0x27b   :  { %vm676_vm4 = vmxor %vm671_vm3, %vm1102_vm11  ;;  %vm790_vm5 = vcmp.gt.s32.totalorder %v778_v6, %v784_v8  ;;  %vm791_vm6 = vcmp.eq.s32.totalorder %v778_v6, %v784_v8 }
 0x27c   :  { %v677_v10 = vsel %vm676_vm4, %v655_v0, %v661_v2  ;;  %v678_v11 = vsel %vm676_vm4, %v656_v1, %v665_v4  ;;  %vm792_vm7 = vcmp.lt.s32.totalorder %v779_v7, %v788_v9 }
 0x27d   :  { %680 = vst [vmem:[#allocation12] sm:$0xff] %v677_v10  ;;  %vm793_vm0 = vmand %vm791_vm6, %vm792_vm7 }
 0x27e   :  { %681 = vst [vmem:[#allocation14] sm:$0xff] %v678_v11  ;;  %vm794_vm8 = vmor %vm790_vm5, %vm793_vm0 }
 0x27f   :  { %vm799_vm10 = vmxor %vm794_vm8, %vm1087_vm9 }
 0x280   :  { %v800_v12 = vsel %vm799_vm10, %v778_v6, %v784_v8  ;;  %v801_v13 = vsel %vm799_vm10, %v779_v7, %v788_v9 }
 0x281   :  { %v806_v14 = vperm.slane %v800_v12, %v1093_v39  ;;  %v810_v15 = vperm.slane %v801_v13, %v1093_v39 }
 0x283   :  { %vm812_vm12 = vcmp.gt.s32.totalorder %v800_v12, %v806_v14  ;;  %vm813_vm13 = vcmp.eq.s32.totalorder %v800_v12, %v806_v14  ;;  %vm814_vm14 = vcmp.lt.s32.totalorder %v801_v13, %v810_v15 }
 0x284   :  { %vm815_vm1 = vmand %vm813_vm13, %vm814_vm14  ;;  %v828_v19 = vld [vmem:[#allocation12] sm:$0xff] }
 0x285   :  { %vm816_vm2 = vmor %vm812_vm12, %vm815_vm1  ;;  %v852_v18 = vld [vmem:[#allocation14] sm:$0xff]  ;;  %vm829_vm9 = vcmp.lt.s32.totalorder %v828_v19, 0  ;;  %v830_v20 = vsub.s32 2147483647, %v828_v19 }
 0x286   :  { %vm821_vm15 = vmxor %vm816_vm2, %vm1102_vm11  ;;  %853 = vxpose.xlu0.b32.start.end [1/1] (short) (narrow) %v852_v18, 8 }
 0x287   :  { %v822_v16 = vsel %vm821_vm15, %v800_v12, %v806_v14  ;;  %v823_v17 = vsel %vm821_vm15, %v801_v13, %v810_v15  ;;  %v831_v21 = vsel %vm829_vm9, %v830_v20, %v828_v19 }
 0x288   :  { %825 = vst [vmem:[#allocation13] sm:$0xff] %v822_v16 }
 0x289   :  { %826 = vst [vmem:[#allocation15] sm:$0xff] %v823_v17 }
 0x28a   :  { %832 = vst [vmem:[#allocation12] sm:$0xff] %v831_v21 }
 0x28e   :  { %834 = vxpose.xlu0.b32.start.end [1/1] (short) (narrow) %v831_v21, 8 }
 0x32a   :  { %v854_v22 = vpop.trf.xlu0 }
 0x32b   :  { %870 = vst [vmem:[#allocation10] sm:$0xff] %v854_v22 }
 0x332   :  { %v879_v23 = vld [vmem:[#allocation10] sm:$0x3]  ;;  %v835_v3 = vpop.trf.xlu0 }
 0x333   :  { %882 = vst [vmem:[#allocation11] sm:$0x3] %v879_v23 }
 0x334   :  { %851 = vst [vmem:[#allocation7] sm:$0xff] %v835_v3 }
 0x33a   :  { %v908_v24 = vld [vmem:[#allocation11] sm:$0x3] }
 0x33b   :  { %909 = vst [vmem:[%s1146_s2] sm:$0x3] %v908_v24  ;;  %v873_v25 = vld [vmem:[#allocation7] sm:$0x3] }
 0x33c   :  { %876 = vst [vmem:[#allocation8] sm:$0x3] %v873_v25 }
 0x33d   :  { %891 = dma.vmem_to_hbm [thread:$0]  %s887_s13, 32, %s889_s16, [#allocation9]  }
 0x33e   :  { %1015 = dma.done.wait [#allocation9], 32  }
 0x33f   :  { %1016 = vsyncadd [#allocation9], 4294967264 }
 0x340   :  { %927 = vsyncpa [#allocation9], 1 }

// kernel: generalized_rcnn_forward.11
= control target key start
LH: loop header
LB: loop body
LE: loop exit
PB: predicated region body
PF: predicated region fallthrough
CT: control target
= control target key end

     0   :  { %vm1288_vm0 = vcmask 261120   ;;  %s4983_s1 = inlined_call_operand.vmem [shape: bf16[1568,256], index: 1, kind: input, shape index: {}]   ;;  %s4984_s0 = inlined_call_operand.vmem [shape: bf16[16,1568], index: 0, kind: input, shape index: {}]   ;;  %s4985_s3 = inlined_call_operand.vmem [shape: bf16[256,256], index: 3, kind: input, shape index: {}]   ;;  %s4986_s2 = inlined_call_operand.vmem [shape: f32[1,256], index: 2, kind: input, shape index: {}]   ;;  %s4987_s5 = inlined_call_operand.vmem [shape: bf16[256,128], index: 5, kind: input, shape index: {}]   ;;  %s4988_s4 = inlined_call_operand.vmem [shape: f32[1,256], index: 4, kind: input, shape index: {}]   ;;  %s4989_s6 = inlined_call_operand.vmem [shape: f32[1,128], index: 6, kind: input, shape index: {}]   ;;  %s4990_s7 = inlined_call_operand.vmem [shape: f32[16,128], index: 7, kind: output, shape index: {}]  }
   0x1   :  { %v2198_v0 = vld [vmem:[%s4983_s1 + $0x70] sm:$0xf]  ;;  %v3146_v1 = vld [vmem:[%s4983_s1 + $0x74] sm:$0xf0]  ;;  %v2190_v11 = vld [vmem:[%s4983_s1 + $0x60] sm:$0xf] }
   0x2   :  { %v2262_v2 = vld [vmem:[%s4983_s1 + $0xf0] sm:$0xf]  ;;  %v2199_v3 = vor.u32 %v3146_v1, %v2198_v0  ;;  %v3162_v4 = vld [vmem:[%s4983_s1 + $0xf4] sm:$0xf0]  ;;  %v3144_v13 = vld [vmem:[%s4983_s1 + $0x64] sm:$0xf0] }
   0x3   :  { %v2326_v5 = vld [vmem:[%s4983_s1 + $0x170] sm:$0xf]  ;;  %v3178_v6 = vld [vmem:[%s4983_s1 + $0x174] sm:$0xf0]  ;;  %v2263_v7 = vor.u32 %v3162_v4, %v2262_v2  ;;  %v2254_v14 = vld [vmem:[%s4983_s1 + $0xe0] sm:$0xf]  ;;  %v2191_v16 = vor.u32 %v3144_v13, %v2190_v11 }
   0x4   :  { %v2327_v8 = vor.u32 %v3178_v6, %v2326_v5  ;;  %v2390_v9 = vld [vmem:[%s4983_s1 + $0x1f0] sm:$0xf]  ;;  %v3194_v10 = vld [vmem:[%s4983_s1 + $0x1f4] sm:$0xf0]  ;;  %1292 = vmatpush.bf16.msra.mxu0 %v2199_v3  ;;  %v3160_v15 = vld [vmem:[%s4983_s1 + $0xe4] sm:$0xf0] }
   0x5   :  { %v2391_v12 = vor.u32 %v3194_v10, %v2390_v9  ;;  %1306 = vmatpush.bf16.msra.mxu1 %v2263_v7  ;;  %v2255_v17 = vor.u32 %v3160_v15, %v2254_v14  ;;  %v2318_v18 = vld [vmem:[%s4983_s1 + $0x160] sm:$0xf]  ;;  %v3176_v19 = vld [vmem:[%s4983_s1 + $0x164] sm:$0xf0]  ;;  %v2182_v23 = vld [vmem:[%s4983_s1 + $0x50] sm:$0xf] }
   0x6   :  { %1320 = vmatpush.bf16.msra.mxu2 %v2327_v8  ;;  %v2382_v20 = vld [vmem:[%s4983_s1 + $0x1e0] sm:$0xf]  ;;  %v2319_v21 = vor.u32 %v3176_v19, %v2318_v18  ;;  %v3192_v22 = vld [vmem:[%s4983_s1 + $0x1e4] sm:$0xf0]  ;;  %v3142_v24 = vld [vmem:[%s4983_s1 + $0x54] sm:$0xf0] }
   0x7   :  { %1334 = vmatpush.bf16.msra.mxu3 %v2391_v12  ;;  %v2383_v25 = vor.u32 %v3192_v22, %v2382_v20  ;;  %v2246_v26 = vld [vmem:[%s4983_s1 + $0xd0] sm:$0xf]  ;;  %v3158_v27 = vld [vmem:[%s4983_s1 + $0xd4] sm:$0xf0]  ;;  %v2183_v29 = vor.u32 %v3142_v24, %v2182_v23  ;;  %v2174_v35 = vld [vmem:[%s4983_s1 + $0x40] sm:$0xf] }
   0x8   :  { %v2310_v28 = vld [vmem:[%s4983_s1 + $0x150] sm:$0xf]  ;;  %1293 = vmatpush.bf16.msra.mxu0 %v2191_v16  ;;  %v3174_v30 = vld [vmem:[%s4983_s1 + $0x154] sm:$0xf0]  ;;  %v2247_v33 = vor.u32 %v3158_v27, %v2246_v26  ;;  %v3140_v36 = vld [vmem:[%s4983_s1 + $0x44] sm:$0xf0] }
   0x9   :  { %v2374_v31 = vld [vmem:[%s4983_s1 + $0x1d0] sm:$0xf]  ;;  %v3190_v32 = vld [vmem:[%s4983_s1 + $0x1d4] sm:$0xf0]  ;;  %1307 = vmatpush.bf16.msra.mxu1 %v2255_v17  ;;  %v2311_v34 = vor.u32 %v3174_v30, %v2310_v28  ;;  %v2238_v37 = vld [vmem:[%s4983_s1 + $0xc0] sm:$0xf]  ;;  %v2175_v44 = vor.u32 %v3140_v36, %v2174_v35 }
   0xa   :  { %1321 = vmatpush.bf16.msra.mxu2 %v2319_v21  ;;  %v2375_v38 = vor.u32 %v3190_v32, %v2374_v31  ;;  %v3156_v39 = vld [vmem:[%s4983_s1 + $0xc4] sm:$0xf0]  ;;  %v2302_v40 = vld [vmem:[%s4983_s1 + $0x140] sm:$0xf]  ;;  %v2166_v47 = vld [vmem:[%s4983_s1 + $0x30] sm:$0xf] }
   0xb   :  { %1335 = vmatpush.bf16.msra.mxu3 %v2383_v25  ;;  %v3172_v41 = vld [vmem:[%s4983_s1 + $0x144] sm:$0xf0]  ;;  %v2366_v42 = vld [vmem:[%s4983_s1 + $0x1c0] sm:$0xf]  ;;  %v2239_v45 = vor.u32 %v3156_v39, %v2238_v37  ;;  %v3138_v48 = vld [vmem:[%s4983_s1 + $0x34] sm:$0xf0] }
   0xc   :  { %v3188_v43 = vld [vmem:[%s4983_s1 + $0x1c4] sm:$0xf0]  ;;  %1294 = vmatpush.bf16.msra.mxu0 %v2183_v29  ;;  %v2303_v46 = vor.u32 %v3172_v41, %v2302_v40  ;;  %v2230_v49 = vld [vmem:[%s4983_s1 + $0xb0] sm:$0xf]  ;;  %v3154_v51 = vld [vmem:[%s4983_s1 + $0xb4] sm:$0xf0]  ;;  %v2167_v56 = vor.u32 %v3138_v48, %v2166_v47 }
   0xd   :  { %1308 = vmatpush.bf16.msra.mxu1 %v2247_v33  ;;  %v2367_v50 = vor.u32 %v3188_v43, %v2366_v42  ;;  %v2294_v52 = vld [vmem:[%s4983_s1 + $0x130] sm:$0xf]  ;;  %v3170_v53 = vld [vmem:[%s4983_s1 + $0x134] sm:$0xf0]  ;;  %v2231_v57 = vor.u32 %v3154_v51, %v2230_v49  ;;  %v2158_v59 = vld [vmem:[%s4983_s1 + $0x20] sm:$0xf] }
   0xe   :  { %1322 = vmatpush.bf16.msra.mxu2 %v2311_v34  ;;  %v2358_v54 = vld [vmem:[%s4983_s1 + $0x1b0] sm:$0xf]  ;;  %v3186_v55 = vld [vmem:[%s4983_s1 + $0x1b4] sm:$0xf0]  ;;  %v2295_v58 = vor.u32 %v3170_v53, %v2294_v52  ;;  %v3136_v60 = vld [vmem:[%s4983_s1 + $0x24] sm:$0xf0] }
   0xf   :  { %1336 = vmatpush.bf16.msra.mxu3 %v2375_v38  ;;  %v2222_v61 = vld [vmem:[%s4983_s1 + $0xa0] sm:$0xf]  ;;  %v2359_v62 = vor.u32 %v3186_v55, %v2358_v54  ;;  %v3152_v63 = vld [vmem:[%s4983_s1 + $0xa4] sm:$0xf0]  ;;  %v2159_v4 = vor.u32 %v3136_v60, %v2158_v59  ;;  %v2150_v7 = vld [vmem:[%s4983_s1 + $0x10] sm:$0xf] }
  0x10   :  { %1295 = vmatpush.bf16.msra.mxu0 %v2175_v44  ;;  %v2286_v0 = vld [vmem:[%s4983_s1 + $0x120] sm:$0xf]  ;;  %v3168_v1 = vld [vmem:[%s4983_s1 + $0x124] sm:$0xf0]  ;;  %v2223_v5 = vor.u32 %v3152_v63, %v2222_v61  ;;  %v3134_v8 = vld [vmem:[%s4983_s1 + $0x14] sm:$0xf0] }
  0x11   :  { %1309 = vmatpush.bf16.msra.mxu1 %v2239_v45  ;;  %v2350_v2 = vld [vmem:[%s4983_s1 + $0x1a0] sm:$0xf]  ;;  %v3184_v3 = vld [vmem:[%s4983_s1 + $0x1a4] sm:$0xf0]  ;;  %v2287_v6 = vor.u32 %v3168_v1, %v2286_v0  ;;  %v2214_v9 = vld [vmem:[%s4983_s1 + $0x90] sm:$0xf]  ;;  %v2151_v16 = vor.u32 %v3134_v8, %v2150_v7 }
  0x12   :  { %1323 = vmatpush.bf16.msra.mxu2 %v2303_v46  ;;  %v2351_v10 = vor.u32 %v3184_v3, %v2350_v2  ;;  %v3150_v11 = vld [vmem:[%s4983_s1 + $0x94] sm:$0xf0]  ;;  %v2278_v12 = vld [vmem:[%s4983_s1 + $0x110] sm:$0xf]  ;;  %v2142_v17 = vld [vmem:[%s4983_s1] sm:$0xf] }
  0x13   :  { %1337 = vmatpush.bf16.msra.mxu3 %v2367_v50  ;;  %v3166_v13 = vld [vmem:[%s4983_s1 + $0x114] sm:$0xf0]  ;;  %v2342_v14 = vld [vmem:[%s4983_s1 + $0x190] sm:$0xf]  ;;  %v3132_v18 = vld [vmem:[%s4983_s1 + $0x4] sm:$0xf0]  ;;  %v2215_v19 = vor.u32 %v3150_v11, %v2214_v9 }
  0x14   :  { %1296 = vmatpush.bf16.msra.mxu0 %v2167_v56  ;;  %v3182_v15 = vld [vmem:[%s4983_s1 + $0x194] sm:$0xf0]  ;;  %v2279_v20 = vor.u32 %v3166_v13, %v2278_v12  ;;  %v2206_v21 = vld [vmem:[%s4983_s1 + $0x80] sm:$0xf]  ;;  %v3148_v22 = vld [vmem:[%s4983_s1 + $0x84] sm:$0xf0]  ;;  %v2143_v31 = vor.u32 %v3132_v18, %v2142_v17 }
  0x15   :  { %1310 = vmatpush.bf16.msra.mxu1 %v2231_v57  ;;  %v2270_v23 = vld [vmem:[%s4983_s1 + $0x100] sm:$0xf]  ;;  %v2343_v24 = vor.u32 %v3182_v15, %v2342_v14  ;;  %v3164_v25 = vld [vmem:[%s4983_s1 + $0x104] sm:$0xf0]  ;;  %v2454_v28 = vld [vmem:[%s4983_s1 + $0x270] sm:$0xf]  ;;  %v2207_v35 = vor.u32 %v3148_v22, %v2206_v21 }
  0x16   :  { %1324 = vmatpush.bf16.msra.mxu2 %v2295_v58  ;;  %v2334_v26 = vld [vmem:[%s4983_s1 + $0x180] sm:$0xf]  ;;  %v3180_v27 = vld [vmem:[%s4983_s1 + $0x184] sm:$0xf0]  ;;  %v3210_v29 = vld [vmem:[%s4983_s1 + $0x274] sm:$0xf0]  ;;  %v2271_v36 = vor.u32 %v3164_v25, %v2270_v23 }
  0x17   :  { %1338 = vmatpush.bf16.msra.mxu3 %v2359_v62  ;;  %v2518_v30 = vld [vmem:[%s4983_s1 + $0x2f0] sm:$0xf]  ;;  %v3226_v32 = vld [vmem:[%s4983_s1 + $0x2f4] sm:$0xf0]  ;;  %v2335_v39 = vor.u32 %v3180_v27, %v2334_v26  ;;  %v2455_v40 = vor.u32 %v3210_v29, %v2454_v28  ;;  %v2446_v41 = vld [vmem:[%s4983_s1 + $0x260] sm:$0xf] }
  0x18   :  { %1297 = vmatpush.bf16.msra.mxu0 %v2159_v4  ;;  %v2582_v33 = vld [vmem:[%s4983_s1 + $0x370] sm:$0xf]  ;;  %v3242_v34 = vld [vmem:[%s4983_s1 + $0x374] sm:$0xf0]  ;;  %v3208_v42 = vld [vmem:[%s4983_s1 + $0x264] sm:$0xf0]  ;;  %v2519_v43 = vor.u32 %v3226_v32, %v2518_v30 }
  0x19   :  { %1311 = vmatpush.bf16.msra.mxu1 %v2223_v5  ;;  %v2646_v37 = vld [vmem:[%s4983_s1 + $0x3f0] sm:$0xf]  ;;  %v3258_v38 = vld [vmem:[%s4983_s1 + $0x3f4] sm:$0xf0]  ;;  %v2583_v44 = vor.u32 %v3242_v34, %v2582_v33  ;;  %v2510_v45 = vld [vmem:[%s4983_s1 + $0x2e0] sm:$0xf]  ;;  %v2447_v55 = vor.u32 %v3208_v42, %v2446_v41 }
  0x1a   :  { %1325 = vmatpush.bf16.msra.mxu2 %v2287_v6  ;;  %v3224_v46 = vld [vmem:[%s4983_s1 + $0x2e4] sm:$0xf0]  ;;  %v2574_v47 = vld [vmem:[%s4983_s1 + $0x360] sm:$0xf]  ;;  %v2647_v48 = vor.u32 %v3258_v38, %v2646_v37  ;;  %v3124_v53 = vld [vmem:[%s4984_s0 + $0x30] sm:$0xf0] }
  0x1b   :  { %1339 = vmatpush.bf16.msra.mxu3 %v2351_v10  ;;  %v3240_v49 = vld [vmem:[%s4983_s1 + $0x364] sm:$0xf0]  ;;  %v2638_v50 = vld [vmem:[%s4983_s1 + $0x3e0] sm:$0xf]  ;;  %v2438_v56 = vld [vmem:[%s4983_s1 + $0x250] sm:$0xf]  ;;  %v2511_v60 = vor.u32 %v3224_v46, %v2510_v45 }
  0x1c   :  { %1298 = vmatpush.bf16.msra.mxu0 %v2151_v16  ;;  %v3256_v51 = vld [vmem:[%s4983_s1 + $0x3e4] sm:$0xf0]  ;;  %v2090_v52 = vld [vmem:[%s4984_s0] sm:$0xf]  ;;  %v3206_v57 = vld [vmem:[%s4983_s1 + $0x254] sm:$0xf0]  ;;  %v2575_v61 = vor.u32 %v3240_v49, %v2574_v47 }
  0x1d   :  { %1312 = vmatpush.bf16.msra.mxu1 %v2215_v19  ;;  %v2098_v54 = vld [vmem:[%s4984_s0 + $0x8] sm:$0xf]  ;;  %v3671_v58 = vor.u32 %v3124_v53, %v2090_v52  ;;  %v3125_v59 = vld [vmem:[%s4984_s0 + $0x38] sm:$0xf0]  ;;  %v2502_v62 = vld [vmem:[%s4983_s1 + $0x2d0] sm:$0xf]  ;;  %v2639_v2 = vor.u32 %v3256_v51, %v2638_v50  ;;  %v2439_v9 = vor.u32 %v3206_v57, %v2438_v56 }
  0x1e   :  { %1326 = vmatpush.bf16.msra.mxu2 %v2279_v20  ;;  %v3222_v63 = vld [vmem:[%s4983_s1 + $0x2d4] sm:$0xf0]  ;;  %v2566_v0 = vld [vmem:[%s4983_s1 + $0x350] sm:$0xf]  ;;  %v3685_v1 = vor.u32 %v3125_v59, %v2098_v54  ;;  %v3118_v6 = vld [vmem:[%s4984_s0 + $0x4] sm:$0xf] }
  0x1f   :  { %1340 = vmatpush.bf16.msra.mxu3 %v2343_v24  ;;  %v3238_v3 = vld [vmem:[%s4983_s1 + $0x354] sm:$0xf0]  ;;  %v2630_v4 = vld [vmem:[%s4983_s1 + $0x3d0] sm:$0xf]  ;;  %v3119_v8 = vld [vmem:[%s4984_s0 + $0xc] sm:$0xf]  ;;  %v2503_v12 = vor.u32 %v3222_v63, %v2502_v62 }
  0x20   :  { %1299 = vmatpush.bf16.msra.mxu0 %v2143_v31  ;;  %v3254_v5 = vld [vmem:[%s4983_s1 + $0x3d4] sm:$0xf0]  ;;  %v2100_v11 = vld [vmem:[%s4984_s0 + $0x3c] sm:$0xf0]  ;;  %v2567_v13 = vor.u32 %v3238_v3, %v2566_v0  ;;  %v3204_v15 = vld [vmem:[%s4983_s1 + $0x244] sm:$0xf0] }
  0x21   :  { %1313 = vmatpush.bf16.msra.mxu1 %v2207_v35  ;;  %v2092_v7 = vld [vmem:[%s4984_s0 + $0x34] sm:$0xf0]  ;;  %v2430_v14 = vld [vmem:[%s4983_s1 + $0x240] sm:$0xf]  ;;  %v3721_v17 = vor.u32 %v3119_v8, %v2100_v11  ;;  %v2631_v18 = vor.u32 %v3254_v5, %v2630_v4  ;;  %v3220_v19 = vld [vmem:[%s4983_s1 + $0x2c4] sm:$0xf0] }
  0x22   :  { %1327 = vmatpush.bf16.msra.mxu2 %v2271_v36  ;;  %v3707_v10 = vor.u32 %v3118_v6, %v2092_v7  ;;  %v2494_v16 = vld [vmem:[%s4983_s1 + $0x2c0] sm:$0xf]  ;;  %v3236_v21 = vld [vmem:[%s4983_s1 + $0x344] sm:$0xf0]  ;;  %v2431_v24 = vor.u32 %v3204_v15, %v2430_v14  ;;  %v2422_v27 = vld [vmem:[%s4983_s1 + $0x230] sm:$0xf] }
  0x23   :  { %1341 = vmatpush.bf16.msra.mxu3 %v2335_v39  ;;  %1300 = vmatmul.bf16.vlgmr.msra.gmra.mxu0 %v3671_v58  ;;  %v2558_v20 = vld [vmem:[%s4983_s1 + $0x340] sm:$0xf]  ;;  %v3252_v23 = vld [vmem:[%s4983_s1 + $0x3c4] sm:$0xf0]  ;;  %v2495_v25 = vor.u32 %v3220_v19, %v2494_v16  ;;  %v3202_v28 = vld [vmem:[%s4983_s1 + $0x234] sm:$0xf0] }
  0x24   :  { %1348 = vmatpush.bf16.msrb.mxu0 %v2455_v40  ;;  %1314 = vmatmul.bf16.vlgmr.msra.gmra.mxu1 %v3707_v10  ;;  %v2622_v22 = vld [vmem:[%s4983_s1 + $0x3c0] sm:$0xf]  ;;  %v2559_v26 = vor.u32 %v3236_v21, %v2558_v20  ;;  %v2486_v29 = vld [vmem:[%s4983_s1 + $0x2b0] sm:$0xf]  ;;  %v3218_v31 = vld [vmem:[%s4983_s1 + $0x2b4] sm:$0xf0]  ;;  %v2423_v36 = vor.u32 %v3202_v28, %v2422_v27 }
  0x25   :  { %1362 = vmatpush.bf16.msrb.mxu1 %v2519_v43  ;;  %1328 = vmatmul.bf16.vlgmr.msra.gmra.mxu2 %v3685_v1  ;;  %v2623_v30 = vor.u32 %v3252_v23, %v2622_v22  ;;  %v2550_v32 = vld [vmem:[%s4983_s1 + $0x330] sm:$0xf]  ;;  %v3234_v33 = vld [vmem:[%s4983_s1 + $0x334] sm:$0xf0]  ;;  %v2487_v37 = vor.u32 %v3218_v31, %v2486_v29  ;;  %v2414_v39 = vld [vmem:[%s4983_s1 + $0x220] sm:$0xf] }
  0x26   :  { %1376 = vmatpush.bf16.msrb.mxu2 %v2583_v44  ;;  %1342 = vmatmul.bf16.vlgmr.msra.gmra.mxu3 %v3721_v17  ;;  %v2614_v34 = vld [vmem:[%s4983_s1 + $0x3b0] sm:$0xf]  ;;  %v3250_v35 = vld [vmem:[%s4983_s1 + $0x3b4] sm:$0xf0]  ;;  %v2551_v38 = vor.u32 %v3234_v33, %v2550_v32  ;;  %v3200_v40 = vld [vmem:[%s4983_s1 + $0x224] sm:$0xf0] }
  0x27   :  { %1390 = vmatpush.bf16.msrb.mxu3 %v2647_v48  ;;  %v2478_v41 = vld [vmem:[%s4983_s1 + $0x2a0] sm:$0xf]  ;;  %v2615_v42 = vor.u32 %v3250_v35, %v2614_v34  ;;  %v3216_v43 = vld [vmem:[%s4983_s1 + $0x2a4] sm:$0xf0]  ;;  %v2415_v48 = vor.u32 %v3200_v40, %v2414_v39  ;;  %v2406_v49 = vld [vmem:[%s4983_s1 + $0x210] sm:$0xf] }
  0x28   :  { %1349 = vmatpush.bf16.msrb.mxu0 %v2447_v55  ;;  %v2542_v44 = vld [vmem:[%s4983_s1 + $0x320] sm:$0xf]  ;;  %v3232_v45 = vld [vmem:[%s4983_s1 + $0x324] sm:$0xf0]  ;;  %v2479_v50 = vor.u32 %v3216_v43, %v2478_v41  ;;  %v3198_v52 = vld [vmem:[%s4983_s1 + $0x214] sm:$0xf0] }
  0x29   :  { %1363 = vmatpush.bf16.msrb.mxu1 %v2511_v60  ;;  %v2606_v46 = vld [vmem:[%s4983_s1 + $0x3a0] sm:$0xf]  ;;  %v3248_v47 = vld [vmem:[%s4983_s1 + $0x3a4] sm:$0xf0]  ;;  %v2543_v51 = vor.u32 %v3232_v45, %v2542_v44  ;;  %v2470_v53 = vld [vmem:[%s4983_s1 + $0x290] sm:$0xf]  ;;  %v2407_v63 = vor.u32 %v3198_v52, %v2406_v49 }
  0x2a   :  { %1377 = vmatpush.bf16.msrb.mxu2 %v2575_v61  ;;  %v3214_v54 = vld [vmem:[%s4983_s1 + $0x294] sm:$0xf0]  ;;  %v2607_v55 = vor.u32 %v3248_v47, %v2606_v46  ;;  %v2534_v56 = vld [vmem:[%s4983_s1 + $0x310] sm:$0xf]  ;;  %v2398_v61 = vld [vmem:[%s4983_s1 + $0x200] sm:$0xf] }
  0x2b   :  { %1391 = vmatpush.bf16.msrb.mxu3 %v2639_v2  ;;  %v3230_v57 = vld [vmem:[%s4983_s1 + $0x314] sm:$0xf0]  ;;  %v2598_v59 = vld [vmem:[%s4983_s1 + $0x390] sm:$0xf]  ;;  %v3196_v62 = vld [vmem:[%s4983_s1 + $0x204] sm:$0xf0]  ;;  %v2471_v5 = vor.u32 %v3214_v54, %v2470_v53 }
  0x2c   :  { %1350 = vmatpush.bf16.msrb.mxu0 %v2439_v9  ;;  %v3246_v60 = vld [vmem:[%s4983_s1 + $0x394] sm:$0xf0]  ;;  %v2462_v0 = vld [vmem:[%s4983_s1 + $0x280] sm:$0xf]  ;;  %v3212_v2 = vld [vmem:[%s4983_s1 + $0x284] sm:$0xf0]  ;;  %v2535_v6 = vor.u32 %v3230_v57, %v2534_v56  ;;  %v2399_v19 = vor.u32 %v3196_v62, %v2398_v61 }
  0x2d   :  { %1364 = vmatpush.bf16.msrb.mxu1 %v2503_v12  ;;  %v2526_v3 = vld [vmem:[%s4983_s1 + $0x300] sm:$0xf]  ;;  %v3228_v4 = vld [vmem:[%s4983_s1 + $0x304] sm:$0xf0]  ;;  %v2710_v9 = vld [vmem:[%s4983_s1 + $0x470] sm:$0xf]  ;;  %v2599_v11 = vor.u32 %v3246_v60, %v2598_v59  ;;  %v2463_v23 = vor.u32 %v3212_v2, %v2462_v0 }
  0x2e   :  { %1378 = vmatpush.bf16.msrb.mxu2 %v2567_v13  ;;  %v2590_v7 = vld [vmem:[%s4983_s1 + $0x380] sm:$0xf]  ;;  %v3244_v8 = vld [vmem:[%s4983_s1 + $0x384] sm:$0xf0]  ;;  %v3274_v12 = vld [vmem:[%s4983_s1 + $0x474] sm:$0xf0] }
  0x2f   :  { %1392 = vmatpush.bf16.msrb.mxu3 %v2631_v18  ;;  %v2774_v13 = vld [vmem:[%s4983_s1 + $0x4f0] sm:$0xf]  ;;  %v3290_v14 = vld [vmem:[%s4983_s1 + $0x4f4] sm:$0xf0]  ;;  %v3126_v22 = vld [vmem:[%s4984_s0 + $0x40] sm:$0xf0]  ;;  %v2591_v28 = vor.u32 %v3244_v8, %v2590_v7  ;;  %v2711_v29 = vor.u32 %v3274_v12, %v2710_v9 }
  0x30   :  { %1351 = vmatpush.bf16.msrb.mxu0 %v2431_v24  ;;  %v2838_v15 = vld [vmem:[%s4983_s1 + $0x570] sm:$0xf]  ;;  %v3306_v16 = vld [vmem:[%s4983_s1 + $0x574] sm:$0xf0]  ;;  %v2527_v24 = vor.u32 %v3228_v4, %v2526_v3  ;;  %v3120_v27 = vld [vmem:[%s4984_s0 + $0x14] sm:$0xf]  ;;  %v2775_v33 = vor.u32 %v3290_v14, %v2774_v13 }
  0x31   :  { %1365 = vmatpush.bf16.msrb.mxu1 %v2495_v25  ;;  %v2902_v18 = vld [vmem:[%s4983_s1 + $0x5f0] sm:$0xf]  ;;  %v3322_v20 = vld [vmem:[%s4983_s1 + $0x5f4] sm:$0xf0]  ;;  %v3121_v31 = vld [vmem:[%s4984_s0 + $0x1c] sm:$0xf]  ;;  %v2839_v34 = vor.u32 %v3306_v16, %v2838_v15 }
  0x32   :  { %1379 = vmatpush.bf16.msrb.mxu2 %v2559_v26  ;;  %v2106_v21 = vld [vmem:[%s4984_s0 + $0x10] sm:$0xf]  ;;  %v2114_v25 = vld [vmem:[%s4984_s0 + $0x18] sm:$0xf]  ;;  %v3127_v26 = vld [vmem:[%s4984_s0 + $0x48] sm:$0xf0] }
  0x33   :  { %1393 = vmatpush.bf16.msrb.mxu3 %v2623_v30  ;;  %v2108_v30 = vld [vmem:[%s4984_s0 + $0x44] sm:$0xf0]  ;;  %v2116_v32 = vld [vmem:[%s4984_s0 + $0x4c] sm:$0xf0]  ;;  %v2702_v35 = vld [vmem:[%s4983_s1 + $0x460] sm:$0xf]  ;;  %v3893_v39 = vor.u32 %v3126_v22, %v2106_v21  ;;  %v3904_v43 = vor.u32 %v3127_v26, %v2114_v25 }
  0x34   :  { %1352 = vmatpush.bf16.msrb.mxu0 %v2423_v36  ;;  %v3272_v36 = vld [vmem:[%s4983_s1 + $0x464] sm:$0xf0]  ;;  %v2830_v41 = vld [vmem:[%s4983_s1 + $0x560] sm:$0xf]  ;;  %v3906_v44 = vor.u32 %v3120_v27, %v2108_v30  ;;  %v3914_v47 = vor.u32 %v3121_v31, %v2116_v32  ;;  %v3270_v52 = vld [vmem:[%s4983_s1 + $0x454] sm:$0xf0] }
  0x35   :  { %1366 = vmatpush.bf16.msrb.mxu1 %v2487_v37  ;;  %v2766_v37 = vld [vmem:[%s4983_s1 + $0x4e0] sm:$0xf]  ;;  %v3288_v40 = vld [vmem:[%s4983_s1 + $0x4e4] sm:$0xf0]  ;;  %v2758_v53 = vld [vmem:[%s4983_s1 + $0x4d0] sm:$0xf] }
  0x36   :  { %1380 = vmatpush.bf16.msrb.mxu2 %v2551_v38  ;;  %v2903_v38 = vor.u32 %v3322_v20, %v2902_v18  ;;  %v2894_v45 = vld [vmem:[%s4983_s1 + $0x5e0] sm:$0xf]  ;;  %v3320_v46 = vld [vmem:[%s4983_s1 + $0x5e4] sm:$0xf0]  ;;  %v2767_v49 = vor.u32 %v3288_v40, %v2766_v37  ;;  %v2822_v56 = vld [vmem:[%s4983_s1 + $0x550] sm:$0xf] }
  0x37   :  { %1394 = vmatpush.bf16.msrb.mxu3 %v2615_v42  ;;  %v3304_v42 = vld [vmem:[%s4983_s1 + $0x564] sm:$0xf0]  ;;  %v2895_v54 = vor.u32 %v3320_v46, %v2894_v45  ;;  %v3302_v57 = vld [vmem:[%s4983_s1 + $0x554] sm:$0xf0]  ;;  %v2886_v59 = vld [vmem:[%s4983_s1 + $0x5d0] sm:$0xf] }
  0x38   :  { %1353 = vmatpush.bf16.msrb.mxu0 %v2415_v48  ;;  %v2703_v48 = vor.u32 %v3272_v36, %v2702_v35  ;;  %v3318_v60 = vld [vmem:[%s4983_s1 + $0x5d4] sm:$0xf0]  ;;  %v2686_v0 = vld [vmem:[%s4983_s1 + $0x440] sm:$0xf]  ;;  %v3268_v2 = vld [vmem:[%s4983_s1 + $0x444] sm:$0xf0] }
  0x39   :  { %1367 = vmatpush.bf16.msrb.mxu1 %v2479_v50  ;;  %v2831_v50 = vor.u32 %v3304_v42, %v2830_v41  ;;  %v2750_v3 = vld [vmem:[%s4983_s1 + $0x4c0] sm:$0xf]  ;;  %v2887_v4 = vor.u32 %v3318_v60, %v2886_v59  ;;  %v3300_v7 = vld [vmem:[%s4983_s1 + $0x544] sm:$0xf0]  ;;  %v2678_v14 = vld [vmem:[%s4983_s1 + $0x430] sm:$0xf] }
  0x3a   :  { %1381 = vmatpush.bf16.msrb.mxu2 %v2543_v51  ;;  %v2694_v51 = vld [vmem:[%s4983_s1 + $0x450] sm:$0xf]  ;;  %v2878_v8 = vld [vmem:[%s4983_s1 + $0x5c0] sm:$0xf]  ;;  %v3316_v9 = vld [vmem:[%s4983_s1 + $0x5c4] sm:$0xf0] }
  0x3b   :  { %1395 = vmatpush.bf16.msrb.mxu3 %v2607_v55  ;;  %v3286_v55 = vld [vmem:[%s4983_s1 + $0x4d4] sm:$0xf0]  ;;  %v2695_v61 = vor.u32 %v3270_v52, %v2694_v51  ;;  %v2742_v16 = vld [vmem:[%s4983_s1 + $0x4b0] sm:$0xf]  ;;  %v2879_v18 = vor.u32 %v3316_v9, %v2878_v8  ;;  %v2670_v27 = vld [vmem:[%s4983_s1 + $0x420] sm:$0xf] }
  0x3c   :  { %1354 = vmatpush.bf16.msrb.mxu0 %v2407_v63  ;;  %v2759_v62 = vor.u32 %v3286_v55, %v2758_v53  ;;  %v2823_v63 = vor.u32 %v3302_v57, %v2822_v56  ;;  %v3266_v15 = vld [vmem:[%s4983_s1 + $0x434] sm:$0xf0]  ;;  %v2806_v20 = vld [vmem:[%s4983_s1 + $0x530] sm:$0xf]  ;;  %v3280_v31 = vld [vmem:[%s4983_s1 + $0x4a4] sm:$0xf0] }
  0x3d   :  { %1368 = vmatpush.bf16.msrb.mxu1 %v2471_v5  ;;  %v3284_v5 = vld [vmem:[%s4983_s1 + $0x4c4] sm:$0xf0]  ;;  %v3298_v21 = vld [vmem:[%s4983_s1 + $0x534] sm:$0xf0]  ;;  %v2870_v22 = vld [vmem:[%s4983_s1 + $0x5b0] sm:$0xf] }
  0x3e   :  { %1382 = vmatpush.bf16.msrb.mxu2 %v2535_v6  ;;  %v2814_v6 = vld [vmem:[%s4983_s1 + $0x540] sm:$0xf]  ;;  %v2751_v12 = vor.u32 %v3284_v5, %v2750_v3  ;;  %v2807_v26 = vor.u32 %v3298_v21, %v2806_v20  ;;  %v3312_v35 = vld [vmem:[%s4983_s1 + $0x5a4] sm:$0xf0]  ;;  %v2662_v37 = vld [vmem:[%s4983_s1 + $0x410] sm:$0xf] }
  0x3f   :  { %1396 = vmatpush.bf16.msrb.mxu3 %v2599_v11  ;;  %v2687_v11 = vor.u32 %v3268_v2, %v2686_v0  ;;  %v2815_v13 = vor.u32 %v3300_v7, %v2814_v6  ;;  %v2798_v32 = vld [vmem:[%s4983_s1 + $0x520] sm:$0xf]  ;;  %v3262_v41 = vld [vmem:[%s4983_s1 + $0x414] sm:$0xf0]  ;;  %v2726_v42 = vld [vmem:[%s4983_s1 + $0x490] sm:$0xf] }
  0x40   :  { %1355 = vmatpush.bf16.msrb.mxu0 %v2399_v19  ;;  %v3282_v19 = vld [vmem:[%s4983_s1 + $0x4b4] sm:$0xf0]  ;;  %v2654_v52 = vld [vmem:[%s4983_s1 + $0x400] sm:$0xf]  ;;  %v3260_v53 = vld [vmem:[%s4983_s1 + $0x404] sm:$0xf0] }
  0x41   :  { %1369 = vmatpush.bf16.msrb.mxu1 %v2463_v23  ;;  %v3314_v23 = vld [vmem:[%s4983_s1 + $0x5b4] sm:$0xf0]  ;;  %v2743_v25 = vor.u32 %v3282_v19, %v2742_v16  ;;  %v2718_v55 = vld [vmem:[%s4983_s1 + $0x480] sm:$0xf]  ;;  %v3276_v56 = vld [vmem:[%s4983_s1 + $0x484] sm:$0xf0]  ;;  %v2655_v9 = vor.u32 %v3260_v53, %v2654_v52 }
  0x42   :  { %1383 = vmatpush.bf16.msrb.mxu2 %v2527_v24  ;;  %v2679_v24 = vor.u32 %v3266_v15, %v2678_v14  ;;  %v2871_v30 = vor.u32 %v3314_v23, %v2870_v22  ;;  %v3278_v45 = vld [vmem:[%s4983_s1 + $0x494] sm:$0xf0]  ;;  %v2782_v57 = vld [vmem:[%s4983_s1 + $0x500] sm:$0xf]  ;;  %v3292_v59 = vld [vmem:[%s4983_s1 + $0x504] sm:$0xf0]  ;;  %v2719_v14 = vor.u32 %v3276_v56, %v2718_v55 }
  0x43   :  { %1397 = vmatpush.bf16.msrb.mxu3 %v2591_v28  ;;  %1356 = vmatmul.bf16.vlgmr.msrb.gmra.mxu0 %v3893_v39  ;;  %v3264_v28 = vld [vmem:[%s4983_s1 + $0x424] sm:$0xf0]  ;;  %v3310_v51 = vld [vmem:[%s4983_s1 + $0x594] sm:$0xf0]  ;;  %v2727_v60 = vor.u32 %v3278_v45, %v2726_v42  ;;  %v3145_v0 = vld [vmem:[%s4983_s1 + $0x74] sm:$0xf]  ;;  %v2783_v15 = vor.u32 %v3292_v59, %v2782_v57 }
  0x44   :  { %1404 = vmatpush.bf16.msra.mxu0 %v2711_v29  ;;  %1370 = vmatmul.bf16.vlgmr.msrb.gmra.mxu1 %v3906_v44  ;;  %v2734_v29 = vld [vmem:[%s4983_s1 + $0x4a0] sm:$0xf]  ;;  %v2671_v36 = vor.u32 %v3264_v28, %v2670_v27  ;;  %v2200_v3 = vld [vmem:[%s4983_s1 + $0x78] sm:$0xf0]  ;;  %v3177_v6 = vld [vmem:[%s4983_s1 + $0x174] sm:$0xf] }
  0x45   :  { %1418 = vmatpush.bf16.msra.mxu1 %v2775_v33  ;;  %1384 = vmatmul.bf16.vlgmr.msrb.gmra.mxu2 %v3904_v43  ;;  %v3296_v33 = vld [vmem:[%s4983_s1 + $0x524] sm:$0xf0]  ;;  %v2264_v5 = vld [vmem:[%s4983_s1 + $0xf8] sm:$0xf0]  ;;  %v2918_v8 = vld [vmem:[%s4983_s1 + $0x610] sm:$0xf]  ;;  %v2203_v21 = vor.u32 %v3145_v0, %v2200_v3 }
  0x46   :  { %1432 = vmatpush.bf16.msra.mxu2 %v2839_v34  ;;  %1398 = vmatmul.bf16.vlgmr.msrb.gmra.mxu3 %v3914_v47  ;;  %v2862_v34 = vld [vmem:[%s4983_s1 + $0x5a0] sm:$0xf]  ;;  %v2799_v40 = vor.u32 %v3296_v33, %v2798_v32  ;;  %v2328_v7 = vld [vmem:[%s4983_s1 + $0x178] sm:$0xf0]  ;;  %v2130_v16 = vld [vmem:[%s4984_s0 + $0x28] sm:$0xf] }
  0x47   :  { %1446 = vmatpush.bf16.msra.mxu3 %v2903_v38  ;;  %v2735_v38 = vor.u32 %v3280_v31, %v2734_v29  ;;  %v2863_v46 = vor.u32 %v3312_v35, %v2862_v34  ;;  %v3122_v19 = vld [vmem:[%s4984_s0 + $0x24] sm:$0xf]  ;;  %v2124_v22 = vld [vmem:[%s4984_s0 + $0x54] sm:$0xf0]  ;;  %v3123_v23 = vld [vmem:[%s4984_s0 + $0x2c] sm:$0xf] }
  0x48   :  { %1405 = vmatpush.bf16.msra.mxu0 %v2703_v48  ;;  %v2790_v48 = vld [vmem:[%s4983_s1 + $0x510] sm:$0xf]  ;;  %v3143_v27 = vld [vmem:[%s4983_s1 + $0x64] sm:$0xf]  ;;  %v2192_v28 = vld [vmem:[%s4983_s1 + $0x68] sm:$0xf0] }
  0x49   :  { %1419 = vmatpush.bf16.msra.mxu1 %v2767_v49  ;;  %v3294_v49 = vld [vmem:[%s4983_s1 + $0x514] sm:$0xf0]  ;;  %v3159_v29 = vld [vmem:[%s4983_s1 + $0xe4] sm:$0xf]  ;;  %v2256_v32 = vld [vmem:[%s4983_s1 + $0xe8] sm:$0xf0] }
  0x4a   :  { %1433 = vmatpush.bf16.msra.mxu2 %v2831_v50  ;;  %v2854_v50 = vld [vmem:[%s4983_s1 + $0x590] sm:$0xf]  ;;  %v3175_v33 = vld [vmem:[%s4983_s1 + $0x164] sm:$0xf]  ;;  %v2320_v34 = vld [vmem:[%s4983_s1 + $0x168] sm:$0xf0] }
  0x4b   :  { %1447 = vmatpush.bf16.msra.mxu3 %v2895_v54  ;;  %v2663_v54 = vor.u32 %v3262_v41, %v2662_v37  ;;  %v2855_v2 = vor.u32 %v3310_v51, %v2854_v50  ;;  %v2910_v37 = vld [vmem:[%s4983_s1 + $0x600] sm:$0xf]  ;;  %v2195_v41 = vor.u32 %v3143_v27, %v2192_v28  ;;  %v3193_v42 = vld [vmem:[%s4983_s1 + $0x1f4] sm:$0xf]  ;;  %v2392_v45 = vld [vmem:[%s4983_s1 + $0x1f8] sm:$0xf0] }
  0x4c   :  { %1406 = vmatpush.bf16.msra.mxu0 %v2695_v61  ;;  %v2791_v61 = vor.u32 %v3294_v49, %v2790_v48  ;;  %v2323_v48 = vor.u32 %v3175_v33, %v2320_v34  ;;  %v3141_v49 = vld [vmem:[%s4983_s1 + $0x54] sm:$0xf]  ;;  %v2184_v50 = vld [vmem:[%s4983_s1 + $0x58] sm:$0xf0]  ;;  %v2395_v56 = vor.u32 %v3193_v42, %v2392_v45  ;;  %v3191_v59 = vld [vmem:[%s4983_s1 + $0x1e4] sm:$0xf] }
  0x4d   :  { %1420 = vmatpush.bf16.msra.mxu1 %v2759_v62  ;;  %v2846_v62 = vld [vmem:[%s4983_s1 + $0x580] sm:$0xf]  ;;  %v3157_v51 = vld [vmem:[%s4983_s1 + $0xd4] sm:$0xf]  ;;  %v2248_v53 = vld [vmem:[%s4983_s1 + $0xd8] sm:$0xf0]  ;;  %v2187_v57 = vor.u32 %v3141_v49, %v2184_v50 }
  0x4e   :  { %1434 = vmatpush.bf16.msra.mxu2 %v2823_v63  ;;  %v3308_v63 = vld [vmem:[%s4983_s1 + $0x584] sm:$0xf0]  ;;  %v2312_v55 = vld [vmem:[%s4983_s1 + $0x158] sm:$0xf0]  ;;  %v2176_v0 = vld [vmem:[%s4983_s1 + $0x48] sm:$0xf0] }
  0x4f   :  { %1448 = vmatpush.bf16.msra.mxu3 %v2887_v4  ;;  %v3161_v4 = vld [vmem:[%s4983_s1 + $0xf4] sm:$0xf]  ;;  %v2847_v20 = vor.u32 %v3308_v63, %v2846_v62  ;;  %v3139_v63 = vld [vmem:[%s4983_s1 + $0x44] sm:$0xf]  ;;  %v2240_v3 = vld [vmem:[%s4983_s1 + $0xc8] sm:$0xf0] }
  0x50   :  { %1407 = vmatpush.bf16.msra.mxu0 %v2687_v11  ;;  %v3326_v11 = vld [vmem:[%s4983_s1 + $0x614] sm:$0xf0]  ;;  %v3135_v28 = vld [vmem:[%s4983_s1 + $0x24] sm:$0xf]  ;;  %v2288_v34 = vld [vmem:[%s4983_s1 + $0x128] sm:$0xf0] }
  0x51   :  { %1421 = vmatpush.bf16.msra.mxu1 %v2751_v12  ;;  %v2122_v12 = vld [vmem:[%s4984_s0 + $0x20] sm:$0xf]  ;;  %v3167_v33 = vld [vmem:[%s4983_s1 + $0x124] sm:$0xf]  ;;  %v3185_v42 = vld [vmem:[%s4983_s1 + $0x1b4] sm:$0xf] }
  0x52   :  { %1435 = vmatpush.bf16.msra.mxu2 %v2815_v13  ;;  %v3128_v13 = vld [vmem:[%s4984_s0 + $0x50] sm:$0xf0]  ;;  %v2360_v45 = vld [vmem:[%s4983_s1 + $0x1b8] sm:$0xf0] }
  0x53   :  { %1449 = vmatpush.bf16.msra.mxu3 %v2879_v18  ;;  %v3129_v18 = vld [vmem:[%s4984_s0 + $0x58] sm:$0xf0]  ;;  %v4132_v35 = vor.u32 %v3128_v13, %v2122_v12  ;;  %v3137_v13 = vld [vmem:[%s4983_s1 + $0x34] sm:$0xf] }
  0x54   :  { %1408 = vmatpush.bf16.msra.mxu0 %v2679_v24  ;;  %v2132_v24 = vld [vmem:[%s4984_s0 + $0x5c] sm:$0xf0]  ;;  %v4121_v31 = vor.u32 %v3129_v18, %v2130_v16  ;;  %v2232_v16 = vld [vmem:[%s4983_s1 + $0xb8] sm:$0xf0]  ;;  %v3169_v18 = vld [vmem:[%s4983_s1 + $0x134] sm:$0xf] }
  0x55   :  { %1422 = vmatpush.bf16.msra.mxu1 %v2743_v25  ;;  %v2267_v25 = vor.u32 %v3161_v4, %v2264_v5  ;;  %v3171_v4 = vld [vmem:[%s4983_s1 + $0x144] sm:$0xf]  ;;  %v2304_v5 = vld [vmem:[%s4983_s1 + $0x148] sm:$0xf0]  ;;  %v3133_v49 = vld [vmem:[%s4983_s1 + $0x14] sm:$0xf] }
  0x56   :  { %1436 = vmatpush.bf16.msra.mxu2 %v2807_v26  ;;  %v2331_v26 = vor.u32 %v3177_v6, %v2328_v7  ;;  %v2179_v7 = vor.u32 %v3139_v63, %v2176_v0  ;;  %v2307_v12 = vor.u32 %v3171_v4, %v2304_v5  ;;  %v2152_v50 = vld [vmem:[%s4983_s1 + $0x18] sm:$0xf0]  ;;  %v2144_v63 = vld [vmem:[%s4983_s1 + $0x8] sm:$0xf0]  ;;  %v3147_v0 = vld [vmem:[%s4983_s1 + $0x84] sm:$0xf] }
  0x57   :  { %1450 = vmatpush.bf16.msra.mxu3 %v2871_v30  ;;  %v2919_v30 = vor.u32 %v3326_v11, %v2918_v8  ;;  %v3189_v8 = vld [vmem:[%s4983_s1 + $0x1d4] sm:$0xf]  ;;  %v2272_v4 = vld [vmem:[%s4983_s1 + $0x108] sm:$0xf0] }
  0x58   :  { %1409 = vmatpush.bf16.msra.mxu0 %v2671_v36  ;;  %v4134_v36 = vor.u32 %v3122_v19, %v2124_v22  ;;  %v2296_v19 = vld [vmem:[%s4983_s1 + $0x138] sm:$0xf0]  ;;  %v3209_v5 = vld [vmem:[%s4983_s1 + $0x274] sm:$0xf] }
  0x59   :  { %1423 = vmatpush.bf16.msra.mxu1 %v2735_v38  ;;  %v3324_v38 = vld [vmem:[%s4983_s1 + $0x604] sm:$0xf0]  ;;  %v2299_v27 = vor.u32 %v3169_v18, %v2296_v19  ;;  %v2344_v18 = vld [vmem:[%s4983_s1 + $0x198] sm:$0xf0] }
  0x5a   :  { %1437 = vmatpush.bf16.msra.mxu2 %v2799_v40  ;;  %v4142_v40 = vor.u32 %v3123_v23, %v2132_v24  ;;  %v2911_v52 = vor.u32 %v3324_v38, %v2910_v37  ;;  %v3130_v23 = vld [vmem:[%s4984_s0 + $0x60] sm:$0xf0] }
  0x5b   :  { %1451 = vmatpush.bf16.msra.mxu3 %v2863_v46  ;;  %v2259_v46 = vor.u32 %v3159_v29, %v2256_v32  ;;  %v3187_v24 = vld [vmem:[%s4983_s1 + $0x1c4] sm:$0xf]  ;;  %v2160_v29 = vld [vmem:[%s4983_s1 + $0x28] sm:$0xf0] }
  0x5c   :  { %1410 = vmatpush.bf16.msra.mxu0 %v2663_v54  ;;  %v3173_v54 = vld [vmem:[%s4983_s1 + $0x154] sm:$0xf]  ;;  %v2224_v32 = vld [vmem:[%s4983_s1 + $0xa8] sm:$0xf0] }
  0x5d   :  { %1424 = vmatpush.bf16.msra.mxu1 %v2727_v60  ;;  %v2384_v60 = vld [vmem:[%s4983_s1 + $0x1e8] sm:$0xf0]  ;;  %v2315_v62 = vor.u32 %v3173_v54, %v2312_v55  ;;  %v2280_v54 = vld [vmem:[%s4983_s1 + $0x118] sm:$0xf0]  ;;  %v2363_v55 = vor.u32 %v3185_v42, %v2360_v45 }
  0x5e   :  { %1438 = vmatpush.bf16.msra.mxu2 %v2791_v61  ;;  %v2251_v61 = vor.u32 %v3157_v51, %v2248_v53  ;;  %v2387_v6 = vor.u32 %v3191_v59, %v2384_v60  ;;  %v3149_v51 = vld [vmem:[%s4983_s1 + $0x94] sm:$0xf]  ;;  %v2352_v59 = vld [vmem:[%s4983_s1 + $0x1a8] sm:$0xf0]  ;;  %v3131_v60 = vld [vmem:[%s4983_s1 + $0x4] sm:$0xf] }
  0x5f   :  { %1452 = vmatpush.bf16.msra.mxu3 %v2855_v2  ;;  %v3155_v2 = vld [vmem:[%s4983_s1 + $0xc4] sm:$0xf]  ;;  %v3165_v53 = vld [vmem:[%s4983_s1 + $0x114] sm:$0xf]  ;;  %v2440_v45 = vld [vmem:[%s4983_s1 + $0x258] sm:$0xf0] }
  0x60   :  { %1411 = vmatpush.bf16.msra.mxu0 %v2655_v9  ;;  %v2376_v9 = vld [vmem:[%s4983_s1 + $0x1d8] sm:$0xf0]  ;;  %v2243_v11 = vor.u32 %v3155_v2, %v2240_v3  ;;  %v2208_v2 = vld [vmem:[%s4983_s1 + $0x88] sm:$0xf0]  ;;  %v3163_v3 = vld [vmem:[%s4983_s1 + $0x104] sm:$0xf] }
  0x61   :  { %1425 = vmatpush.bf16.msra.mxu1 %v2719_v14  ;;  %v2168_v14 = vld [vmem:[%s4983_s1 + $0x38] sm:$0xf0] }
  0x62   :  { %1439 = vmatpush.bf16.msra.mxu2 %v2783_v15  ;;  %v3153_v15 = vld [vmem:[%s4983_s1 + $0xb4] sm:$0xf]  ;;  %v2171_v22 = vor.u32 %v3137_v13, %v2168_v14  ;;  %v2584_v13 = vld [vmem:[%s4983_s1 + $0x378] sm:$0xf0]  ;;  %v2211_v14 = vor.u32 %v3147_v0, %v2208_v2 }
  0x63   :  { %1453 = vmatpush.bf16.msra.mxu3 %v2847_v20  ;;  %1412 = vmatmul.bf16.vlgmr.msra.gmra.mxu0 %v4132_v35  ;;  %v2379_v20 = vor.u32 %v3189_v8, %v2376_v9  ;;  %v2520_v8 = vld [vmem:[%s4983_s1 + $0x2f8] sm:$0xf0]  ;;  %v3253_v2 = vld [vmem:[%s4983_s1 + $0x3d4] sm:$0xf] }
  0x64   :  { %1466 = vmatpush.bf16.msrb.mxu0 %v2919_v30  ;;  %1426 = vmatmul.bf16.vlgmr.msra.gmra.mxu1 %v4134_v36  ;;  %v3151_v30 = vld [vmem:[%s4983_s1 + $0xa4] sm:$0xf] }
  0x65   :  { %1474 = vmatpush.bf16.msrb.mxu1 %v2203_v21  ;;  %1440 = vmatmul.bf16.vlgmr.msra.gmra.mxu2 %v4121_v31  ;;  %v2138_v21 = vld [vmem:[%s4984_s0 + $0x30] sm:$0xf] }
  0x66   :  { %1488 = vmatpush.bf16.msrb.mxu2 %v2267_v25  ;;  %1454 = vmatmul.bf16.vlgmr.msra.gmra.mxu3 %v4142_v40  ;;  %v2368_v25 = vld [vmem:[%s4983_s1 + $0x1c8] sm:$0xf0]  ;;  %v4250_v37 = vor.u32 %v3130_v23, %v2138_v21  ;;  %v3207_v21 = vld [vmem:[%s4983_s1 + $0x264] sm:$0xf] }
  0x67   :  { %1502 = vmatpush.bf16.msrb.mxu3 %v2331_v26  ;;  %v2235_v26 = vor.u32 %v3153_v15, %v2232_v16  ;;  %v2371_v38 = vor.u32 %v3187_v24, %v2368_v25  ;;  %v2275_v15 = vor.u32 %v3163_v3, %v2272_v4  ;;  %v3181_v16 = vld [vmem:[%s4983_s1 + $0x194] sm:$0xf]  ;;  %v2448_v23 = vld [vmem:[%s4983_s1 + $0x268] sm:$0xf0]  ;;  %v3223_v24 = vld [vmem:[%s4983_s1 + $0x2e4] sm:$0xf] }
  0x68   :  { %1467 = vmatpush.bf16.msrb.mxu0 %v2911_v52  ;;  %v2216_v52 = vld [vmem:[%s4983_s1 + $0x98] sm:$0xf0]  ;;  %v2512_v25 = vld [vmem:[%s4983_s1 + $0x2e8] sm:$0xf0]  ;;  %v3201_v4 = vld [vmem:[%s4983_s1 + $0x234] sm:$0xf] }
  0x69   :  { %1475 = vmatpush.bf16.msrb.mxu1 %v2195_v41  ;;  %v2163_v41 = vor.u32 %v3135_v28, %v2160_v29  ;;  %v2576_v28 = vld [vmem:[%s4983_s1 + $0x368] sm:$0xf0]  ;;  %v3179_v29 = vld [vmem:[%s4983_s1 + $0x184] sm:$0xf]  ;;  %v2632_v3 = vld [vmem:[%s4983_s1 + $0x3d8] sm:$0xf0] }
  0x6a   :  { %1489 = vmatpush.bf16.msrb.mxu2 %v2259_v46  ;;  %v2227_v46 = vor.u32 %v3151_v30, %v2224_v32  ;;  %v2336_v30 = vld [vmem:[%s4983_s1 + $0x188] sm:$0xf0]  ;;  %v2451_v32 = vor.u32 %v3207_v21, %v2448_v23 }
  0x6b   :  { %1503 = vmatpush.bf16.msrb.mxu3 %v2323_v48  ;;  %v2291_v48 = vor.u32 %v3167_v33, %v2288_v34  ;;  %v2515_v33 = vor.u32 %v3223_v24, %v2512_v25  ;;  %v3257_v34 = vld [vmem:[%s4983_s1 + $0x3f4] sm:$0xf]  ;;  %v2480_v21 = vld [vmem:[%s4983_s1 + $0x2a8] sm:$0xf0] }
  0x6c   :  { %1516 = vmatpush.bf16.msra.mxu0 %v2395_v56  ;;  %v2155_v56 = vor.u32 %v3133_v49, %v2152_v50  ;;  %v2339_v49 = vor.u32 %v3179_v29, %v2336_v30  ;;  %v3237_v50 = vld [vmem:[%s4983_s1 + $0x354] sm:$0xf]  ;;  %v2544_v23 = vld [vmem:[%s4983_s1 + $0x328] sm:$0xf0] }
  0x6d   :  { %1476 = vmatpush.bf16.msrb.mxu1 %v2187_v57  ;;  %v3183_v57 = vld [vmem:[%s4983_s1 + $0x1a4] sm:$0xf]  ;;  %v3197_v29 = vld [vmem:[%s4983_s1 + $0x214] sm:$0xf] }
  0x6e   :  { %1490 = vmatpush.bf16.msrb.mxu2 %v2251_v61  ;;  %v2219_v61 = vor.u32 %v3149_v51, %v2216_v52  ;;  %v2355_v9 = vor.u32 %v3183_v57, %v2352_v59  ;;  %v2568_v51 = vld [vmem:[%s4983_s1 + $0x358] sm:$0xf0]  ;;  %v3219_v57 = vld [vmem:[%s4983_s1 + $0x2c4] sm:$0xf]  ;;  %v2496_v59 = vld [vmem:[%s4983_s1 + $0x2c8] sm:$0xf0] }
  0x6f   :  { %1504 = vmatpush.bf16.msrb.mxu3 %v2315_v62  ;;  %v2283_v62 = vor.u32 %v3165_v53, %v2280_v54  ;;  %v2499_v0 = vor.u32 %v3219_v57, %v2496_v59  ;;  %v2776_v59 = vld [vmem:[%s4983_s1 + $0x4f8] sm:$0xf0] }
  0x70   :  { %1517 = vmatpush.bf16.msra.mxu0 %v2387_v6  ;;  %v2456_v6 = vld [vmem:[%s4983_s1 + $0x278] sm:$0xf0] }
  0x71   :  { %1477 = vmatpush.bf16.msrb.mxu1 %v2179_v7  ;;  %v3225_v7 = vld [vmem:[%s4983_s1 + $0x2f4] sm:$0xf]  ;;  %v2459_v19 = vor.u32 %v3209_v5, %v2456_v6  ;;  %v2424_v6 = vld [vmem:[%s4983_s1 + $0x238] sm:$0xf0] }
  0x72   :  { %1491 = vmatpush.bf16.msrb.mxu2 %v2243_v11  ;;  %v2147_v11 = vor.u32 %v3131_v60, %v2144_v63  ;;  %v3235_v60 = vld [vmem:[%s4983_s1 + $0x344] sm:$0xf] }
  0x73   :  { %1505 = vmatpush.bf16.msrb.mxu3 %v2307_v12  ;;  %2924 = vmatmul.msk.bf16.vlgmr.msrb.gmra.mxu0 %vm1288_vm0, %v4250_v37  ;;  %v3241_v12 = vld [vmem:[%s4983_s1 + $0x374] sm:$0xf] }
  0x74   :  { %1518 = vmatpush.bf16.msra.mxu0 %v2379_v20  ;;  %v2523_v20 = vor.u32 %v3225_v7, %v2520_v8  ;;  %v3217_v7 = vld [vmem:[%s4983_s1 + $0x2b4] sm:$0xf]  ;;  %v2488_v8 = vld [vmem:[%s4983_s1 + $0x2b8] sm:$0xf0] }
  0x75   :  { %1478 = vmatpush.bf16.msrb.mxu1 %v2171_v22  ;;  %v2587_v22 = vor.u32 %v3241_v12, %v2584_v13  ;;  %v2635_v12 = vor.u32 %v3253_v2, %v2632_v3  ;;  %v2427_v13 = vor.u32 %v3201_v4, %v2424_v6  ;;  %v2600_v2 = vld [vmem:[%s4983_s1 + $0x398] sm:$0xf0] }
  0x76   :  { %1492 = vmatpush.bf16.msrb.mxu2 %v2235_v26  ;;  %v2347_v26 = vor.u32 %v3181_v16, %v2344_v18  ;;  %v3199_v16 = vld [vmem:[%s4983_s1 + $0x224] sm:$0xf] }
  0x77   :  { %1506 = vmatpush.bf16.msrb.mxu3 %v2299_v27  ;;  %v3239_v27 = vld [vmem:[%s4983_s1 + $0x364] sm:$0xf] }
  0x78   :  { %1519 = vmatpush.bf16.msra.mxu0 %v2371_v38  ;;  %v2648_v38 = vld [vmem:[%s4983_s1 + $0x3f8] sm:$0xf0]  ;;  %v2579_v42 = vor.u32 %v3239_v27, %v2576_v28  ;;  %v3249_v27 = vld [vmem:[%s4983_s1 + $0x3b4] sm:$0xf] }
  0x79   :  { %1479 = vmatpush.bf16.msrb.mxu1 %v2163_v41  ;;  %v3205_v41 = vld [vmem:[%s4983_s1 + $0x254] sm:$0xf]  ;;  %v2651_v52 = vor.u32 %v3257_v34, %v2648_v38  ;;  %v2616_v28 = vld [vmem:[%s4983_s1 + $0x3b8] sm:$0xf0] }
  0x7a   :  { %1493 = vmatpush.bf16.msrb.mxu2 %v2227_v46  ;;  %v3221_v46 = vld [vmem:[%s4983_s1 + $0x2d4] sm:$0xf]  ;;  %v2443_v53 = vor.u32 %v3205_v41, %v2440_v45  ;;  %v2472_v34 = vld [vmem:[%s4983_s1 + $0x298] sm:$0xf0]  ;;  %v3247_v45 = vld [vmem:[%s4983_s1 + $0x3a4] sm:$0xf] }
  0x7b   :  { %1507 = vmatpush.bf16.msrb.mxu3 %v2291_v48  ;;  %v2504_v48 = vld [vmem:[%s4983_s1 + $0x2d8] sm:$0xf0]  ;;  %v3229_v38 = vld [vmem:[%s4983_s1 + $0x314] sm:$0xf] }
  0x7c   :  { %1520 = vmatpush.bf16.msra.mxu0 %v2363_v55  ;;  %v2507_v54 = vor.u32 %v3221_v46, %v2504_v48  ;;  %v2640_v55 = vld [vmem:[%s4983_s1 + $0x3e8] sm:$0xf0]  ;;  %v2536_v41 = vld [vmem:[%s4983_s1 + $0x318] sm:$0xf0] }
  0x7d   :  { %1480 = vmatpush.bf16.msrb.mxu1 %v2155_v56  ;;  %v3203_v56 = vld [vmem:[%s4983_s1 + $0x244] sm:$0xf]  ;;  %v2608_v46 = vld [vmem:[%s4983_s1 + $0x3a8] sm:$0xf0] }
  0x7e   :  { %1494 = vmatpush.bf16.msrb.mxu2 %v2219_v61  ;;  %v2560_v61 = vld [vmem:[%s4983_s1 + $0x348] sm:$0xf0]  ;;  %v2611_v57 = vor.u32 %v3247_v45, %v2608_v46 }
  0x7f   :  { %1508 = vmatpush.bf16.msrb.mxu3 %v2283_v62  ;;  %v2563_v5 = vor.u32 %v3235_v60, %v2560_v61  ;;  %v3305_v60 = vld [vmem:[%s4983_s1 + $0x574] sm:$0xf]  ;;  %v2840_v61 = vld [vmem:[%s4983_s1 + $0x578] sm:$0xf0]  ;;  %v2816_v45 = vld [vmem:[%s4983_s1 + $0x548] sm:$0xf0] }
  0x80   :  { %1521 = vmatpush.bf16.msra.mxu0 %v2355_v9  ;;  %v3233_v9 = vld [vmem:[%s4983_s1 + $0x334] sm:$0xf]  ;;  %v2843_v6 = vor.u32 %v3305_v60, %v2840_v61 }
  0x81   :  { %1481 = vmatpush.bf16.msrb.mxu1 %v2147_v11  ;;  %v2552_v11 = vld [vmem:[%s4983_s1 + $0x338] sm:$0xf0] }
  0x82   :  { %1495 = vmatpush.bf16.msrb.mxu2 %v2211_v14  ;;  %v2491_v14 = vor.u32 %v3217_v7, %v2488_v8  ;;  %v2555_v18 = vor.u32 %v3233_v9, %v2552_v11  ;;  %v3271_v7 = vld [vmem:[%s4983_s1 + $0x464] sm:$0xf]  ;;  %v2704_v8 = vld [vmem:[%s4983_s1 + $0x468] sm:$0xf0] }
  0x83   :  { %1509 = vmatpush.bf16.msrb.mxu3 %v2275_v15  ;;  %v3251_v15 = vld [vmem:[%s4983_s1 + $0x3c4] sm:$0xf] }
  0x84   :  { %1482 = vmatmul.bf16.vlgmr.msrb.gmra.mxu1 %v3671_v58  ;;  %1522 = vmatpush.bf16.msra.mxu0 %v2347_v26  ;;  %v3255_v58 = vld [vmem:[%s4983_s1 + $0x3e4] sm:$0xf] }
  0x85   :  { %1530 = vmatpush.bf16.msra.mxu1 %v2459_v19  ;;  %1496 = vmatmul.bf16.vlgmr.msrb.gmra.mxu2 %v3707_v10  ;;  %v2571_v10 = vor.u32 %v3237_v50, %v2568_v51  ;;  %v2643_v62 = vor.u32 %v3255_v58, %v2640_v55  ;;  %v2416_v19 = vld [vmem:[%s4983_s1 + $0x228] sm:$0xf0]  ;;  %v3195_v50 = vld [vmem:[%s4983_s1 + $0x204] sm:$0xf] }
  0x86   :  { %1544 = vmatpush.bf16.msra.mxu2 %v2523_v20  ;;  %1510 = vmatmul.bf16.vlgmr.msrb.gmra.mxu3 %v3685_v1  ;;  %v2432_v1 = vld [vmem:[%s4983_s1 + $0x248] sm:$0xf0]  ;;  %v3215_v20 = vld [vmem:[%s4983_s1 + $0x2a4] sm:$0xf]  ;;  %v2419_v25 = vor.u32 %v3199_v16, %v2416_v19  ;;  %v2707_v16 = vor.u32 %v3271_v7, %v2704_v8  ;;  %v2904_v19 = vld [vmem:[%s4983_s1 + $0x5f8] sm:$0xf0] }
  0x87   :  { %1558 = vmatpush.bf16.msra.mxu3 %v2587_v22  ;;  %v2435_v63 = vor.u32 %v3203_v56, %v2432_v1  ;;  %v3231_v22 = vld [vmem:[%s4983_s1 + $0x324] sm:$0xf]  ;;  %v2483_v26 = vor.u32 %v3215_v20, %v2480_v21  ;;  %v2400_v51 = vld [vmem:[%s4983_s1 + $0x208] sm:$0xf0]  ;;  %v3273_v56 = vld [vmem:[%s4983_s1 + $0x474] sm:$0xf] }
  0x88   :  { %1523 = vmatpush.bf16.msra.mxu0 %v2339_v49  ;;  %v2547_v30 = vor.u32 %v3231_v22, %v2544_v23  ;;  %v3227_v58 = vld [vmem:[%s4983_s1 + $0x304] sm:$0xf]  ;;  %v2528_v55 = vld [vmem:[%s4983_s1 + $0x308] sm:$0xf0]  ;;  %v3289_v1 = vld [vmem:[%s4983_s1 + $0x4f4] sm:$0xf] }
  0x89   :  { %1531 = vmatpush.bf16.msra.mxu1 %v2451_v32  ;;  %v2408_v32 = vld [vmem:[%s4983_s1 + $0x218] sm:$0xf0]  ;;  %v2531_v3 = vor.u32 %v3227_v58, %v2528_v55  ;;  %v3287_v9 = vld [vmem:[%s4983_s1 + $0x4e4] sm:$0xf]  ;;  %v3269_v22 = vld [vmem:[%s4983_s1 + $0x454] sm:$0xf] }
  0x8a   :  { %1545 = vmatpush.bf16.msra.mxu2 %v2515_v33  ;;  %v3213_v33 = vld [vmem:[%s4983_s1 + $0x294] sm:$0xf]  ;;  %v2411_v48 = vor.u32 %v3197_v29, %v2408_v32  ;;  %v2696_v23 = vld [vmem:[%s4983_s1 + $0x458] sm:$0xf0]  ;;  %v2896_v32 = vld [vmem:[%s4983_s1 + $0x5e8] sm:$0xf0] }
  0x8b   :  { %1559 = vmatpush.bf16.msra.mxu3 %v2579_v42  ;;  %1524 = vmatmul.bf16.vlgmr.msra.gmra.mxu0 %v3721_v17  ;;  %v2624_v17 = vld [vmem:[%s4983_s1 + $0x3c8] sm:$0xf0]  ;;  %v2619_v42 = vor.u32 %v3249_v27, %v2616_v28  ;;  %v2475_v49 = vor.u32 %v3213_v33, %v2472_v34  ;;  %v3301_v27 = vld [vmem:[%s4983_s1 + $0x554] sm:$0xf]  ;;  %v2824_v28 = vld [vmem:[%s4983_s1 + $0x558] sm:$0xf0] }
  0x8c   :  { %1572 = vmatpush.bf16.msrb.mxu0 %v2651_v52  ;;  %v2627_v24 = vor.u32 %v3251_v15, %v2624_v17  ;;  %v3211_v52 = vld [vmem:[%s4983_s1 + $0x284] sm:$0xf]  ;;  %v2592_v17 = vld [vmem:[%s4983_s1 + $0x388] sm:$0xf0]  ;;  %v2827_v34 = vor.u32 %v3301_v27, %v2824_v28  ;;  %v3281_v58 = vld [vmem:[%s4983_s1 + $0x4b4] sm:$0xf] }
  0x8d   :  { %1532 = vmatpush.bf16.msra.mxu1 %v2443_v53  ;;  %v2539_v53 = vor.u32 %v3229_v38, %v2536_v41  ;;  %v3243_v15 = vld [vmem:[%s4983_s1 + $0x384] sm:$0xf]  ;;  %v2752_v41 = vld [vmem:[%s4983_s1 + $0x4c8] sm:$0xf0]  ;;  %v2744_v55 = vld [vmem:[%s4983_s1 + $0x4b8] sm:$0xf0] }
  0x8e   :  { %1546 = vmatpush.bf16.msra.mxu2 %v2507_v54  ;;  %v2464_v54 = vld [vmem:[%s4983_s1 + $0x288] sm:$0xf0]  ;;  %v3283_v38 = vld [vmem:[%s4983_s1 + $0x4c4] sm:$0xf]  ;;  %v2747_v60 = vor.u32 %v3281_v58, %v2744_v55  ;;  %v3313_v7 = vld [vmem:[%s4983_s1 + $0x5b4] sm:$0xf] }
  0x8f   :  { %1560 = vmatpush.bf16.msra.mxu3 %v2571_v10  ;;  %v2712_v10 = vld [vmem:[%s4983_s1 + $0x478] sm:$0xf0]  ;;  %v2720_v27 = vld [vmem:[%s4983_s1 + $0x488] sm:$0xf0]  ;;  %v3291_v28 = vld [vmem:[%s4983_s1 + $0x504] sm:$0xf] }
  0x90   :  { %1573 = vmatpush.bf16.msrb.mxu0 %v2643_v62  ;;  %v2403_v62 = vor.u32 %v3195_v50, %v2400_v51  ;;  %v2715_v4 = vor.u32 %v3273_v56, %v2712_v10  ;;  %v2888_v50 = vld [vmem:[%s4983_s1 + $0x5d8] sm:$0xf0]  ;;  %v2755_v51 = vor.u32 %v3283_v38, %v2752_v41  ;;  %v3297_v56 = vld [vmem:[%s4983_s1 + $0x534] sm:$0xf]  ;;  %v3342_v58 = vld [vmem:[%s4985_s3 + $0x74] sm:$0xf0] }
  0x91   :  { %1533 = vmatpush.bf16.msra.mxu1 %v2435_v63  ;;  %v2467_v63 = vor.u32 %v3211_v52, %v2464_v54  ;;  %v2680_v54 = vld [vmem:[%s4983_s1 + $0x438] sm:$0xf0] }
  0x92   :  { %1547 = vmatpush.bf16.msra.mxu2 %v2499_v0  ;;  %v3245_v0 = vld [vmem:[%s4983_s1 + $0x394] sm:$0xf]  ;;  %v2808_v10 = vld [vmem:[%s4983_s1 + $0x538] sm:$0xf0] }
  0x93   :  { %1561 = vmatpush.bf16.msra.mxu3 %v2563_v5  ;;  %v2779_v5 = vor.u32 %v3289_v1, %v2776_v59  ;;  %v2603_v11 = vor.u32 %v3245_v0, %v2600_v2  ;;  %v2880_v59 = vld [vmem:[%s4983_s1 + $0x5c8] sm:$0xf0]  ;;  %v2811_v61 = vor.u32 %v3297_v56, %v2808_v10  ;;  %v3279_v0 = vld [vmem:[%s4983_s1 + $0x4a4] sm:$0xf]  ;;  %v2872_v8 = vld [vmem:[%s4983_s1 + $0x5b8] sm:$0xf0] }
  0x94   :  { %1574 = vmatpush.bf16.msrb.mxu0 %v2635_v12  ;;  %v2768_v12 = vld [vmem:[%s4983_s1 + $0x4e8] sm:$0xf0]  ;;  %v2976_v10 = vld [vmem:[%s4985_s3 + $0x60] sm:$0xf] }
  0x95   :  { %1534 = vmatpush.bf16.msra.mxu1 %v2427_v13  ;;  %v3303_v13 = vld [vmem:[%s4983_s1 + $0x564] sm:$0xf]  ;;  %v2771_v20 = vor.u32 %v3287_v9, %v2768_v12  ;;  %v2736_v2 = vld [vmem:[%s4983_s1 + $0x4a8] sm:$0xf0]  ;;  %v3261_v12 = vld [vmem:[%s4983_s1 + $0x414] sm:$0xf] }
  0x96   :  { %1548 = vmatpush.bf16.msra.mxu2 %v2491_v14  ;;  %v2832_v14 = vld [vmem:[%s4983_s1 + $0x568] sm:$0xf0]  ;;  %v2739_v9 = vor.u32 %v3279_v0, %v2736_v2  ;;  %v3338_v0 = vld [vmem:[%s4985_s3 + $0x54] sm:$0xf0]  ;;  %v3337_v2 = vld [vmem:[%s4985_s3 + $0x54] sm:$0xf] }
  0x97   :  { %1562 = vmatpush.bf16.msra.mxu3 %v2555_v18  ;;  %v3321_v18 = vld [vmem:[%s4983_s1 + $0x5f4] sm:$0xf]  ;;  %v2835_v21 = vor.u32 %v3303_v13, %v2832_v14  ;;  %v2664_v13 = vld [vmem:[%s4983_s1 + $0x418] sm:$0xf0] }
  0x98   :  { %1575 = vmatpush.bf16.msrb.mxu0 %v2627_v24  ;;  %v3285_v24 = vld [vmem:[%s4983_s1 + $0x4d4] sm:$0xf]  ;;  %v2907_v29 = vor.u32 %v3321_v18, %v2904_v19  ;;  %v2875_v18 = vor.u32 %v3313_v7, %v2872_v8  ;;  %v2667_v19 = vor.u32 %v3261_v12, %v2664_v13  ;;  %v3335_v12 = vld [vmem:[%s4985_s3 + $0x44] sm:$0xf] }
  0x99   :  { %1535 = vmatpush.bf16.msra.mxu1 %v2419_v25  ;;  %v2595_v25 = vor.u32 %v3243_v15, %v2592_v17  ;;  %v3277_v14 = vld [vmem:[%s4983_s1 + $0x494] sm:$0xf]  ;;  %v2728_v15 = vld [vmem:[%s4983_s1 + $0x498] sm:$0xf0] }
  0x9a   :  { %1549 = vmatpush.bf16.msra.mxu2 %v2483_v26  ;;  %v2760_v26 = vld [vmem:[%s4983_s1 + $0x4d8] sm:$0xf0]  ;;  %v3293_v17 = vld [vmem:[%s4983_s1 + $0x514] sm:$0xf] }
  0x9b   :  { %1563 = vmatpush.bf16.msra.mxu3 %v2547_v30  ;;  %v3319_v30 = vld [vmem:[%s4983_s1 + $0x5e4] sm:$0xf]  ;;  %v2763_v33 = vor.u32 %v3285_v24, %v2760_v26 }
  0x9c   :  { %1576 = vmatpush.bf16.msrb.mxu0 %v2619_v42  ;;  %v3299_v42 = vld [vmem:[%s4983_s1 + $0x544] sm:$0xf]  ;;  %v2899_v46 = vor.u32 %v3319_v30, %v2896_v32  ;;  %v3325_v30 = vld [vmem:[%s4983_s1 + $0x614] sm:$0xf]  ;;  %v2920_v32 = vld [vmem:[%s4983_s1 + $0x618] sm:$0xf0] }
  0x9d   :  { %1536 = vmatpush.bf16.msra.mxu1 %v2411_v48  ;;  %v2819_v52 = vor.u32 %v3299_v42, %v2816_v45  ;;  %v3259_v24 = vld [vmem:[%s4983_s1 + $0x404] sm:$0xf]  ;;  %v2923_v41 = vor.u32 %v3325_v30, %v2920_v32  ;;  %v2946_v30 = vld [vmem:[%s4985_s3 + $0x28] sm:$0xf0] }
  0x9e   :  { %1550 = vmatpush.bf16.msra.mxu2 %v2475_v49  ;;  %v3317_v49 = vld [vmem:[%s4983_s1 + $0x5d4] sm:$0xf]  ;;  %v3275_v26 = vld [vmem:[%s4983_s1 + $0x484] sm:$0xf] }
  0x9f   :  { %1564 = vmatpush.bf16.msra.mxu3 %v2539_v53  ;;  %v3265_v53 = vld [vmem:[%s4983_s1 + $0x434] sm:$0xf]  ;;  %v2891_v1 = vor.u32 %v3317_v49, %v2888_v50  ;;  %v3323_v45 = vld [vmem:[%s4983_s1 + $0x604] sm:$0xf]  ;;  %v2848_v49 = vld [vmem:[%s4983_s1 + $0x588] sm:$0xf0] }
  0xa0   :  { %1577 = vmatpush.bf16.msrb.mxu0 %v2611_v57  ;;  %v2683_v57 = vor.u32 %v3265_v53, %v2680_v54  ;;  %v2984_v54 = vld [vmem:[%s4985_s3 + $0x70] sm:$0xf] }
  0xa1   :  { %1537 = vmatpush.bf16.msra.mxu1 %v2403_v62  ;;  %v3263_v62 = vld [vmem:[%s4983_s1 + $0x424] sm:$0xf]  ;;  %v1315_v53 = vpop.f32.mrf.mxu1  ;;  %v2985_v55 = vor.u32 %v3342_v58, %v2984_v54 }
  0xa2   :  { %1551 = vmatpush.bf16.msra.mxu2 %v2467_v63  ;;  %v2672_v63 = vld [vmem:[%s4983_s1 + $0x428] sm:$0xf0] }
  0xa3   :  { %1565 = vmatpush.bf16.msra.mxu3 %v2531_v3  ;;  %v3295_v3 = vld [vmem:[%s4983_s1 + $0x524] sm:$0xf] }
  0xa4   :  { %1578 = vmatpush.bf16.msrb.mxu0 %v2603_v11  ;;  %1538 = vmatmul.bf16.vlgmr.msra.gmra.mxu1 %v3893_v39  ;;  %v2699_v39 = vor.u32 %v3269_v22, %v2696_v23  ;;  %v2731_v22 = vor.u32 %v3277_v14, %v2728_v15  ;;  %v2962_v14 = vld [vmem:[%s4985_s3 + $0x48] sm:$0xf0] }
  0xa5   :  { %1586 = vmatpush.bf16.msrb.mxu1 %v2715_v4  ;;  %1552 = vmatmul.bf16.vlgmr.msra.gmra.mxu2 %v3906_v44  ;;  %v3267_v44 = vld [vmem:[%s4983_s1 + $0x444] sm:$0xf]  ;;  %v2800_v4 = vld [vmem:[%s4983_s1 + $0x528] sm:$0xf0]  ;;  %v2965_v15 = vor.u32 %v3335_v12, %v2962_v14 }
  0xa6   :  { %1600 = vmatpush.bf16.msrb.mxu2 %v2779_v5  ;;  %1566 = vmatmul.bf16.vlgmr.msra.gmra.mxu3 %v3904_v43  ;;  %v2688_v43 = vld [vmem:[%s4983_s1 + $0x448] sm:$0xf0]  ;;  %v2803_v11 = vor.u32 %v3295_v3, %v2800_v4  ;;  %v2970_v4 = vld [vmem:[%s4985_s3 + $0x58] sm:$0xf0] }
  0xa7   :  { %1614 = vmatpush.bf16.msrb.mxu3 %v2843_v6  ;;  %v2691_v48 = vor.u32 %v3267_v44, %v2688_v43  ;;  %v2675_v6 = vor.u32 %v3263_v62, %v2672_v63  ;;  %v2856_v44 = vld [vmem:[%s4983_s1 + $0x598] sm:$0xf0]  ;;  %v2723_v43 = vor.u32 %v3275_v26, %v2720_v27  ;;  %v4749_v62 = vld [vmem:[%s4986_s2] sm:$0x3]  ;;  %v2968_v63 = vld [vmem:[%s4985_s3 + $0x50] sm:$0xf] }
  0xa8   :  { %1579 = vmatpush.bf16.msrb.mxu0 %v2595_v25  ;;  %v2656_v25 = vld [vmem:[%s4983_s1 + $0x408] sm:$0xf0]  ;;  %v2969_v3 = vor.u32 %v3338_v0, %v2968_v63  ;;  %v239_v7 = vperm.slane %v4749_v62, 0  ;;  %v2944_v26 = vld [vmem:[%s4985_s3 + $0x20] sm:$0xf] }
  0xa9   :  { %1587 = vmatpush.bf16.msrb.mxu1 %v2707_v16  ;;  %v2792_v16 = vld [vmem:[%s4983_s1 + $0x518] sm:$0xf0]  ;;  %v3332_v27 = vld [vmem:[%s4985_s3 + $0x24] sm:$0xf0] }
  0xaa   :  { %1601 = vmatpush.bf16.msrb.mxu2 %v2771_v20  ;;  %v3311_v20 = vld [vmem:[%s4983_s1 + $0x5a4] sm:$0xf]  ;;  %v2795_v23 = vor.u32 %v3293_v17, %v2792_v16 }
  0xab   :  { %1615 = vmatpush.bf16.msrb.mxu3 %v2835_v21  ;;  %1580 = vmatmul.bf16.vlgmr.msrb.gmra.mxu0 %v3914_v47  ;;  %v3315_v47 = vld [vmem:[%s4983_s1 + $0x5c4] sm:$0xf]  ;;  %v2864_v21 = vld [vmem:[%s4983_s1 + $0x5a8] sm:$0xf0] }
  0xac   :  { %1628 = vmatpush.bf16.msra.mxu0 %v2907_v29  ;;  %v2883_v5 = vor.u32 %v3315_v47, %v2880_v59  ;;  %v2784_v29 = vld [vmem:[%s4983_s1 + $0x508] sm:$0xf0] }
  0xad   :  { %1588 = vmatpush.bf16.msrb.mxu1 %v2699_v39  ;;  %v2867_v39 = vor.u32 %v3311_v20, %v2864_v21  ;;  %v2787_v38 = vor.u32 %v3291_v28, %v2784_v29  ;;  %v2978_v59 = vld [vmem:[%s4985_s3 + $0x68] sm:$0xf0]  ;;  %v3333_v20 = vld [vmem:[%s4985_s3 + $0x34] sm:$0xf]  ;;  %v3331_v28 = vld [vmem:[%s4985_s3 + $0x24] sm:$0xf] }
  0xae   :  { %1602 = vmatpush.bf16.msrb.mxu2 %v2763_v33  ;;  %v2659_v33 = vor.u32 %v3259_v24, %v2656_v25 }
  0xaf   :  { %1616 = vmatpush.bf16.msrb.mxu3 %v2827_v34  ;;  %v3309_v34 = vld [vmem:[%s4983_s1 + $0x594] sm:$0xf] }
  0xb0   :  { %1629 = vmatpush.bf16.msra.mxu0 %v2899_v46  ;;  %v2859_v42 = vor.u32 %v3309_v34, %v2856_v44  ;;  %v2912_v46 = vld [vmem:[%s4983_s1 + $0x608] sm:$0xf0]  ;;  %v2936_v44 = vld [vmem:[%s4985_s3 + $0x10] sm:$0xf] }
  0xb1   :  { %1589 = vmatpush.bf16.msrb.mxu1 %v2691_v48  ;;  %v3307_v48 = vld [vmem:[%s4983_s1 + $0x584] sm:$0xf]  ;;  %v2915_v50 = vor.u32 %v3323_v45, %v2912_v46  ;;  %v2938_v45 = vld [vmem:[%s4985_s3 + $0x18] sm:$0xf0] }
  0xb2   :  { %1603 = vmatpush.bf16.msrb.mxu2 %v2755_v51  ;;  %v1301_v51 = vpop.f32.mrf.mxu0 }
  0xb3   :  { %1617 = vmatpush.bf16.msrb.mxu3 %v2819_v52  ;;  %v2851_v52 = vor.u32 %v3307_v48, %v2848_v49 }
  0xb4   :  { %1630 = vmatpush.bf16.msra.mxu0 %v2891_v1  ;;  %v3340_v1 = vld [vmem:[%s4985_s3 + $0x64] sm:$0xf0] }
  0xb5   :  { %1590 = vmatpush.bf16.msrb.mxu1 %v2683_v57  ;;  %v3339_v57 = vld [vmem:[%s4985_s3 + $0x64] sm:$0xf]  ;;  %v2977_v47 = vor.u32 %v3340_v1, %v2976_v10 }
  0xb6   :  { %1604 = vmatpush.bf16.msrb.mxu2 %v2747_v60  ;;  %v1343_v60 = vpop.f32.mrf.mxu3 }
  0xb7   :  { %1618 = vmatpush.bf16.msrb.mxu3 %v2811_v61  ;;  %v2981_v61 = vor.u32 %v3339_v57, %v2978_v59 }
  0xb8   :  { %1631 = vmatpush.bf16.msra.mxu0 %v2883_v5  ;;  %v1317_v5 = vpop.f32.mrf.mxu1 }
  0xb9   :  { %1591 = vmatpush.bf16.msrb.mxu1 %v2675_v6  ;;  %v2973_v6 = vor.u32 %v3337_v2, %v2970_v4 }
  0xba   :  { %1605 = vmatpush.bf16.msrb.mxu2 %v2739_v9  ;;  %v2960_v9 = vld [vmem:[%s4985_s3 + $0x40] sm:$0xf] }
  0xbb   :  { %1619 = vmatpush.bf16.msrb.mxu3 %v2803_v11  ;;  %v3336_v11 = vld [vmem:[%s4985_s3 + $0x44] sm:$0xf0] }
  0xbc   :  { %1632 = vmatpush.bf16.msra.mxu0 %v2875_v18  ;;  %v2961_v13 = vor.u32 %v3336_v11, %v2960_v9  ;;  %v2952_v18 = vld [vmem:[%s4985_s3 + $0x30] sm:$0xf] }
  0xbd   :  { %1592 = vmatpush.bf16.msrb.mxu1 %v2667_v19  ;;  %v3334_v19 = vld [vmem:[%s4985_s3 + $0x34] sm:$0xf0] }
  0xbe   :  { %1606 = vmatpush.bf16.msrb.mxu2 %v2731_v22  ;;  %v1345_v17 = vpop.f32.mrf.mxu3  ;;  %v2953_v21 = vor.u32 %v3334_v19, %v2952_v18  ;;  %v2954_v22 = vld [vmem:[%s4985_s3 + $0x38] sm:$0xf0] }
  0xbf   :  { %1620 = vmatpush.bf16.msrb.mxu3 %v2795_v23  ;;  %v2957_v23 = vor.u32 %v3333_v20, %v2954_v22 }
  0xc0   :  { %1633 = vmatpush.bf16.msra.mxu0 %v2867_v39  ;;  %v2945_v39 = vor.u32 %v3332_v27, %v2944_v26  ;;  %v3358_v26 = vld [vmem:[%s4985_s3 + $0xf4] sm:$0xf0]  ;;  %v3357_v27 = vld [vmem:[%s4985_s3 + $0xf4] sm:$0xf] }
  0xc1   :  { %1593 = vmatpush.bf16.msrb.mxu1 %v2659_v33  ;;  %v1371_v25 = vpop.f32.mrf.mxu1  ;;  %v2949_v33 = vor.u32 %v3331_v28, %v2946_v30 }
  0xc2   :  { %1607 = vmatpush.bf16.msrb.mxu2 %v2723_v43  ;;  %v3330_v43 = vld [vmem:[%s4985_s3 + $0x14] sm:$0xf0] }
  0xc3   :  { %1621 = vmatpush.bf16.msrb.mxu3 %v2787_v38  ;;  %v3329_v38 = vld [vmem:[%s4985_s3 + $0x14] sm:$0xf] }
  0xc4   :  { %1634 = vmatpush.bf16.msra.mxu0 %v2859_v42  ;;  %1594 = vmatmul.bf16.vlgmr.msrb.gmra.mxu1 %v4132_v35  ;;  %v3341_v35 = vld [vmem:[%s4985_s3 + $0x74] sm:$0xf]  ;;  %v2937_v42 = vor.u32 %v3330_v43, %v2936_v44  ;;  %v2941_v49 = vor.u32 %v3329_v38, %v2938_v45  ;;  %v3042_v38 = vld [vmem:[%s4985_s3 + $0xe8] sm:$0xf0] }
  0xc5   :  { %1648 = vmatpush.bf16.msra.mxu1 %v2923_v41  ;;  %1608 = vmatmul.bf16.vlgmr.msrb.gmra.mxu2 %v4134_v36  ;;  %v1329_v36 = vpop.f32.mrf.mxu2 }
  0xc6   :  { %1622 = vmatmul.bf16.vlgmr.msrb.gmra.mxu3 %v4121_v31  ;;  %v2986_v31 = vld [vmem:[%s4985_s3 + $0x78] sm:$0xf0]  ;;  %1860 = vmatpush.bf16.msra.mxu2 %v2985_v55 }
  0xc7   :  { %v2989_v56 = vor.u32 %v3341_v35, %v2986_v31  ;;  %v2930_v35 = vld [vmem:[%s4985_s3 + $0x8] sm:$0xf0] }
  0xc8   :  { %1635 = vmatpush.bf16.msra.mxu0 %v2851_v52  ;;  %v3328_v52 = vld [vmem:[%s4985_s3 + $0x4] sm:$0xf0] }
  0xc9   :  { %1649 = vmatpush.bf16.msra.mxu1 %v2915_v50  ;;  %v1399_v48 = vpop.f32.mrf.mxu3  ;;  %v1373_v55 = vpop.f32.mrf.mxu1 }
  0xca   :  { %1861 = vmatpush.bf16.msra.mxu2 %v2977_v47 }
  0xcb   :  { %1636 = vmatmul.bf16.vlgmr.msra.gmra.mxu0 %v4142_v40  ;;  %v1303_v40 = vpop.f32.mrf.mxu0 }
  0xcc   :  { %1888 = vmatpush.bf16.msrb.mxu0 %v2989_v56  ;;  %v1304_v29 = vadd.f32 %v1303_v40, %v239_v7 }
  0xcd   :  { %v1331_v8 = vpop.f32.mrf.mxu2 }
  0xce   :  { %1862 = vmatpush.bf16.msra.mxu2 %v2969_v3  ;;  %v1318_v41 = vadd.f32 %v1317_v5, %v1304_v29  ;;  %v3050_v29 = vld [vmem:[%s4985_s3 + $0xf8] sm:$0xf0] }
  0xd0   :  { %1889 = vmatpush.bf16.msrb.mxu0 %v2981_v61  ;;  %v1332_v54 = vadd.f32 %v1331_v8, %v1318_v41 }
  0xd1   :  { %v1401_v59 = vpop.f32.mrf.mxu3 }
  0xd2   :  { %1863 = vmatpush.bf16.msra.mxu2 %v2961_v13  ;;  %v1346_v10 = vadd.f32 %v1345_v17, %v1332_v54 }
  0xd3   :  { %v1357_v16 = vpop.f32.mrf.mxu0 }
  0xd4   :  { %2925 = vmatmul.msk.bf16.vlgmr.msra.gmra.mxu1 %vm1288_vm0, %v4250_v37  ;;  %1890 = vmatpush.bf16.msrb.mxu0 %v2973_v6  ;;  %v1302_v37 = vadd.f32 %v1301_v51, %v239_v7  ;;  %v2928_v51 = vld [vmem:[%s4985_s3] sm:$0xf] }
  0xd5   :  { %v1385_v32 = vpop.f32.mrf.mxu2  ;;  %v2929_v58 = vor.u32 %v3328_v52, %v2928_v51  ;;  %v3034_v51 = vld [vmem:[%s4985_s3 + $0xd8] sm:$0xf0]  ;;  %v240_v52 = vperm.slane %v4749_v62, 1  ;;  %v3026_v62 = vld [vmem:[%s4985_s3 + $0xc8] sm:$0xf0] }
  0xd6   :  { %v1316_v24 = vadd.f32 %v1315_v53, %v1302_v37  ;;  %1864 = vmatpush.bf16.msra.mxu2 %v2953_v21  ;;  %v3327_v53 = vld [vmem:[%s4985_s3 + $0x4] sm:$0xf] }
  0xd7   :  { %v2933_v31 = vor.u32 %v3327_v53, %v2930_v35  ;;  %v3352_v35 = vld [vmem:[%s4985_s3 + $0xc4] sm:$0xf0] }
  0xd8   :  { %1891 = vmatpush.bf16.msrb.mxu0 %v2965_v15  ;;  %v1330_v34 = vadd.f32 %v1329_v36, %v1316_v24 }
  0xda   :  { %1865 = vmatpush.bf16.msra.mxu2 %v2945_v39  ;;  %v1344_v50 = vadd.f32 %v1343_v60, %v1330_v34  ;;  %v3053_v39 = vor.u32 %v3357_v27, %v3050_v29  ;;  %v3355_v34 = vld [vmem:[%s4985_s3 + $0xe4] sm:$0xf]  ;;  %v2994_v27 = vld [vmem:[%s4985_s3 + $0x88] sm:$0xf0] }
  0xdb   :  { %v1359_v46 = vpop.f32.mrf.mxu0  ;;  %v3045_v41 = vor.u32 %v3355_v34, %v3042_v38 }
  0xdc   :  { %1892 = vmatpush.bf16.msrb.mxu0 %v2957_v23  ;;  %v1358_v36 = vadd.f32 %v1357_v16, %v1344_v50  ;;  %v1360_v47 = vadd.f32 %v1359_v46, %v1346_v10  ;;  %1902 = vmatpush.bf16.msrb.mxu1 %v3053_v39  ;;  %v3032_v46 = vld [vmem:[%s4985_s3 + $0xd0] sm:$0xf] }
  0xdd   :  { %v1387_v56 = vpop.f32.mrf.mxu2 }
  0xde   :  { %1866 = vmatpush.bf16.msra.mxu2 %v2937_v42  ;;  %v1372_v57 = vadd.f32 %v1371_v25, %v1358_v36  ;;  %v1374_v61 = vadd.f32 %v1373_v55, %v1360_v47  ;;  %v3048_v25 = vld [vmem:[%s4985_s3 + $0xf0] sm:$0xf]  ;;  %v3351_v55 = vld [vmem:[%s4985_s3 + $0xc4] sm:$0xf]  ;;  %v3350_v47 = vld [vmem:[%s4985_s3 + $0xb4] sm:$0xf0] }
  0xdf   :  { %v3049_v28 = vor.u32 %v3358_v26, %v3048_v25  ;;  %v3029_v10 = vor.u32 %v3351_v55, %v3026_v62 }
  0xe0   :  { %1893 = vmatpush.bf16.msrb.mxu0 %v2949_v33  ;;  %v1386_v60 = vadd.f32 %v1385_v32, %v1372_v57  ;;  %v1388_v0 = vadd.f32 %v1387_v56, %v1374_v61  ;;  %v3040_v32 = vld [vmem:[%s4985_s3 + $0xe0] sm:$0xf]  ;;  %v3356_v33 = vld [vmem:[%s4985_s3 + $0xe4] sm:$0xf0]  ;;  %1903 = vmatpush.bf16.msrb.mxu1 %v3045_v41  ;;  %v3016_v57 = vld [vmem:[%s4985_s3 + $0xb0] sm:$0xf] }
  0xe1   :  { %v1427_v40 = vpop.f32.mrf.mxu1  ;;  %1874 = vmatpush.bf16.msra.mxu3 %v3049_v28  ;;  %v3041_v43 = vor.u32 %v3356_v33, %v3040_v32  ;;  %v3018_v61 = vld [vmem:[%s4985_s3 + $0xb8] sm:$0xf0] }
  0xe2   :  { %1867 = vmatpush.bf16.msra.mxu2 %v2929_v58  ;;  %v1400_v3 = vadd.f32 %v1399_v48, %v1386_v60  ;;  %v1402_v5 = vadd.f32 %v1401_v59, %v1388_v0  ;;  %v3354_v48 = vld [vmem:[%s4985_s3 + $0xd4] sm:$0xf0]  ;;  %v3024_v58 = vld [vmem:[%s4985_s3 + $0xc0] sm:$0xf]  ;;  %v3349_v59 = vld [vmem:[%s4985_s3 + $0xb4] sm:$0xf]  ;;  %v3017_v60 = vor.u32 %v3350_v47, %v3016_v57 }
  0xe3   :  { %v1413_v1 = vpop.f32.mrf.mxu0  ;;  %v3033_v50 = vor.u32 %v3354_v48, %v3032_v46  ;;  %v3025_v36 = vor.u32 %v3352_v35, %v3024_v58  ;;  %v3021_v0 = vor.u32 %v3349_v59, %v3018_v61 }
  0xe4   :  { %1894 = vmatpush.bf16.msrb.mxu0 %v2941_v49  ;;  %v1414_v6 = vadd.f32 %v1413_v1, %v1400_v3  ;;  %v3353_v49 = vld [vmem:[%s4985_s3 + $0xd4] sm:$0xf]  ;;  %v3348_v3 = vld [vmem:[%s4985_s3 + $0xa4] sm:$0xf0] }
  0xe5   :  { %1875 = vmatpush.bf16.msra.mxu3 %v3041_v43  ;;  %v3037_v53 = vor.u32 %v3353_v49, %v3034_v51 }
  0xe6   :  { %v1428_v9 = vadd.f32 %v1427_v40, %v1414_v6 }
  0xe7   :  { %1904 = vmatpush.bf16.msrb.mxu1 %v3037_v53 }
  0xe8   :  { %1895 = vmatpush.bf16.msrb.mxu0 %v2933_v31  ;;  %v1441_v63 = vpop.f32.mrf.mxu2 }
  0xe9   :  { %v1455_v4 = vpop.f32.mrf.mxu3  ;;  %v1429_v8 = vpop.f32.mrf.mxu1  ;;  %v1442_v13 = vadd.f32 %v1441_v63, %v1428_v9  ;;  %1876 = vmatpush.bf16.msra.mxu3 %v3033_v50 }
  0xeb   :  { %v1415_v2 = vpop.f32.mrf.mxu0  ;;  %v1456_v17 = vadd.f32 %v1455_v4, %v1442_v13  ;;  %1905 = vmatpush.bf16.msrb.mxu1 %v3029_v10  ;;  %v3347_v4 = vld [vmem:[%s4985_s3 + $0xa4] sm:$0xf]  ;;  %v3000_v13 = vld [vmem:[%s4985_s3 + $0x90] sm:$0xf] }
  0xec   :  { %v1416_v7 = vadd.f32 %v1415_v2, %v1402_v5  ;;  %v3008_v2 = vld [vmem:[%s4985_s3 + $0xa0] sm:$0xf] }
  0xed   :  { %1877 = vmatpush.bf16.msra.mxu3 %v3025_v36  ;;  %v3009_v6 = vor.u32 %v3348_v3, %v3008_v2  ;;  %v3373_v2 = vld [vmem:[%s4987_s5 + $0x70] sm:$0xff] }
  0xee   :  { %v1430_v14 = vadd.f32 %v1429_v8, %v1416_v7  ;;  %v3010_v7 = vld [vmem:[%s4985_s3 + $0xa8] sm:$0xf0]  ;;  %v3365_v3 = vld [vmem:[%s4987_s5 + $0x30] sm:$0xff] }
  0xef   :  { %1906 = vmatpush.bf16.msrb.mxu1 %v3021_v0  ;;  %v3366_v0 = vld [vmem:[%s4987_s5 + $0x38] sm:$0xff] }
  0xf0   :  { %v1443_v11 = vpop.f32.mrf.mxu2  ;;  %2054 = vmatpush.bf16.msrb.mxu2 %v3366_v0 }
  0xf1   :  { %v1444_v15 = vadd.f32 %v1443_v11, %v1430_v14  ;;  %v1457_v37 = vpop.f32.mrf.mxu3  ;;  %1878 = vmatpush.bf16.msra.mxu3 %v3017_v60  ;;  %v3013_v11 = vor.u32 %v3347_v4, %v3010_v7  ;;  %v3346_v14 = vld [vmem:[%s4985_s3 + $0x94] sm:$0xf0]  ;;  %v3372_v4 = vld [vmem:[%s4987_s5 + $0x68] sm:$0xff] }
  0xf2   :  { %v3370_v7 = vld [vmem:[%s4987_s5 + $0x58] sm:$0xff] }
  0xf3   :  { %v1469_v12 = vpop.f32.mrf.mxu0  ;;  %v1458_v16 = vadd.f32 %v1457_v37, %v1444_v15  ;;  %1907 = vmatpush.bf16.msrb.mxu1 %v3013_v11  ;;  %v3345_v15 = vld [vmem:[%s4985_s3 + $0x94] sm:$0xf]  ;;  %v3362_v11 = vld [vmem:[%s4987_s5 + $0x18] sm:$0xff] }
  0xf4   :  { %v1470_v18 = vadd.f32 %v1469_v12, %v1456_v17  ;;  %2055 = vmatpush.bf16.msrb.mxu2 %v3365_v3 }
  0xf5   :  { %1879 = vmatpush.bf16.msra.mxu3 %v3009_v6  ;;  %v3371_v6 = vld [vmem:[%s4987_s5 + $0x60] sm:$0xff] }
  0xf6   :  { %v1656_v21 = vmax.f32 %v1470_v18, 0.0  ;;  %v3002_v18 = vld [vmem:[%s4985_s3 + $0x98] sm:$0xf0] }
  0xfb   :  { %v1471_v19 = vpop.f32.mrf.mxu0 }
  0xfc   :  { %v1472_v20 = vadd.f32 %v1471_v19, %v1458_v16  ;;  %v3001_v16 = vor.u32 %v3346_v14, %v3000_v13  ;;  %v3361_v13 = vld [vmem:[%s4987_s5 + $0x10] sm:$0xff]  ;;  %v3367_v14 = vld [vmem:[%s4987_s5 + $0x40] sm:$0xff] }
  0xfe   :  { %v1658_v22 = vmax.f32 %v1472_v20, 0.0  ;;  %v3005_v20 = vor.u32 %v3345_v15, %v3002_v18  ;;  %1880 = vmatpush.bf16.msra.mxu3 %v3001_v16  ;;  %v3360_v15 = vld [vmem:[%s4987_s5 + $0x8] sm:$0xff]  ;;  %v1694_v16 = vld [vmem:[%s4988_s4] sm:$0x3] }
 0x100   :  { %v1660_v23 = vpack.c.bf16 %v1658_v22, %v1656_v21  ;;  %1908 = vmatpush.bf16.msrb.mxu1 %v3005_v20  ;;  %v2992_v22 = vld [vmem:[%s4985_s3 + $0x80] sm:$0xf]  ;;  %v1697_v20 = vperm.slane %v1694_v16, 1 }
 0x101   :  { %v1483_v24 = vpop.f32.mrf.mxu1 }
 0x102   :  { %1868 = vmatmul.bf16.vlgmr.msra.gmra.mxu2 %v1660_v23  ;;  %1896 = vmatmul.bf16.vlgmr.msrb.gmra.mxu0 %v1660_v23  ;;  %v1484_v56 = vadd.f32 %v1483_v24, %v240_v52  ;;  %v3344_v23 = vld [vmem:[%s4985_s3 + $0x84] sm:$0xf0]  ;;  %v3343_v24 = vld [vmem:[%s4985_s3 + $0x84] sm:$0xf] }
 0x103   :  { %v2993_v26 = vor.u32 %v3344_v23, %v2992_v22  ;;  %v2997_v29 = vor.u32 %v3343_v24, %v2994_v27  ;;  %v1696_v24 = vperm.slane %v1694_v16, 0 }
 0x105   :  { %1881 = vmatpush.bf16.msra.mxu3 %v2993_v26  ;;  %1909 = vmatpush.bf16.msrb.mxu1 %v2997_v29 }
 0x108   :  { %v1497_v30 = vpop.f32.mrf.mxu2  ;;  %v1525_v45 = vpop.f32.mrf.mxu0 }
 0x109   :  { %v1511_v44 = vpop.f32.mrf.mxu3  ;;  %v1485_v42 = vpop.f32.mrf.mxu1  ;;  %v1498_v63 = vadd.f32 %v1497_v30, %v1484_v56 }
 0x10a   :  { %v1486_v5 = vadd.f32 %v1485_v42, %v240_v52 }
 0x10b   :  { %v1512_v8 = vadd.f32 %v1511_v44, %v1498_v63  ;;  %v3374_v63 = vld [vmem:[%s4987_s5 + $0x78] sm:$0xff] }
 0x10c   :  { %2068 = vmatpush.bf16.msrb.mxu3 %v3374_v63 }
 0x10d   :  { %v1526_v19 = vadd.f32 %v1525_v45, %v1512_v8  ;;  %v3363_v8 = vld [vmem:[%s4987_s5 + $0x20] sm:$0xff] }
 0x110   :  { %v1499_v54 = vpop.f32.mrf.mxu2  ;;  %v1527_v40 = vpop.f32.mrf.mxu0  ;;  %2069 = vmatpush.bf16.msrb.mxu3 %v3373_v2 }
 0x111   :  { %v1513_v31 = vpop.f32.mrf.mxu3  ;;  %v1500_v37 = vadd.f32 %v1499_v54, %v1486_v5  ;;  %v3364_v5 = vld [vmem:[%s4987_s5 + $0x28] sm:$0xff] }
 0x112   :  { %2056 = vmatpush.bf16.msrb.mxu2 %v3364_v5 }
 0x113   :  { %v1514_v25 = vadd.f32 %v1513_v31, %v1500_v37  ;;  %v3359_v37 = vld [vmem:[%s4987_s5] sm:$0xff] }
 0x114   :  { %2070 = vmatpush.bf16.msrb.mxu3 %v3372_v4 }
 0x115   :  { %v1528_v30 = vadd.f32 %v1527_v40, %v1514_v25 }
 0x116   :  { %2057 = vmatpush.bf16.msrb.mxu2 %v3363_v8 }
 0x118   :  { %2071 = vmatpush.bf16.msrb.mxu3 %v3371_v6 }
 0x11a   :  { %2058 = vmatpush.bf16.msrb.mxu2 %v3362_v11 }
 0x11c   :  { %2072 = vmatpush.bf16.msrb.mxu3 %v3370_v7 }
 0x11e   :  { %2059 = vmatpush.bf16.msrb.mxu2 %v3361_v13 }
 0x121   :  { %v1539_v1 = vpop.f32.mrf.mxu1 }
 0x122   :  { %v1540_v28 = vadd.f32 %v1539_v1, %v1526_v19  ;;  %2060 = vmatpush.bf16.msrb.mxu2 %v3360_v15 }
 0x126   :  { %2061 = vmatpush.bf16.msrb.mxu2 %v3359_v37 }
 0x128   :  { %v1553_v9 = vpop.f32.mrf.mxu2  ;;  %v1581_v21 = vpop.f32.mrf.mxu0 }
 0x129   :  { %v1567_v12 = vpop.f32.mrf.mxu3  ;;  %v1541_v17 = vpop.f32.mrf.mxu1  ;;  %v1554_v34 = vadd.f32 %v1553_v9, %v1540_v28  ;;  %v3369_v9 = vld [vmem:[%s4987_s5 + $0x50] sm:$0xff] }
 0x12a   :  { %v1542_v44 = vadd.f32 %v1541_v17, %v1528_v30  ;;  %2073 = vmatpush.bf16.msrb.mxu3 %v3369_v9 }
 0x12b   :  { %v1568_v41 = vadd.f32 %v1567_v12, %v1554_v34  ;;  %v3368_v12 = vld [vmem:[%s4987_s5 + $0x48] sm:$0xff] }
 0x12d   :  { %v1582_v49 = vadd.f32 %v1581_v21, %v1568_v41 }
 0x12e   :  { %2074 = vmatpush.bf16.msrb.mxu3 %v3368_v12 }
 0x130   :  { %v1555_v39 = vpop.f32.mrf.mxu2  ;;  %v1583_v38 = vpop.f32.mrf.mxu0 }
 0x131   :  { %v1569_v32 = vpop.f32.mrf.mxu3  ;;  %v1556_v43 = vadd.f32 %v1555_v39, %v1542_v44 }
 0x132   :  { %2075 = vmatpush.bf16.msrb.mxu3 %v3367_v14 }
 0x133   :  { %v1570_v45 = vadd.f32 %v1569_v32, %v1556_v43 }
 0x135   :  { %v1584_v51 = vadd.f32 %v1583_v38, %v1570_v45 }
 0x141   :  { %v1595_v33 = vpop.f32.mrf.mxu1 }
 0x142   :  { %v1596_v50 = vadd.f32 %v1595_v33, %v1582_v49 }
 0x148   :  { %v1609_v42 = vpop.f32.mrf.mxu2  ;;  %v1637_v52 = vpop.f32.mrf.mxu0 }
 0x149   :  { %v1623_v46 = vpop.f32.mrf.mxu3  ;;  %v1597_v48 = vpop.f32.mrf.mxu1  ;;  %v1610_v53 = vadd.f32 %v1609_v42, %v1596_v50 }
 0x14a   :  { %v1598_v54 = vadd.f32 %v1597_v48, %v1584_v51 }
 0x14b   :  { %v1624_v31 = vadd.f32 %v1623_v46, %v1610_v53  ;;  %v3375_v46 = vld [vmem:[%s4989_s6] ss:$0 sm:$0xff] }
 0x14d   :  { %v1638_v56 = vadd.f32 %v1637_v52, %v1624_v31 }
 0x150   :  { %v1611_v58 = vpop.f32.mrf.mxu2  ;;  %v1639_v10 = vpop.f32.mrf.mxu0 }
 0x151   :  { %v1612_v35 = vadd.f32 %v1611_v58, %v1598_v54  ;;  %v1651_v55 = vpop.f32.mrf.mxu1  ;;  %v1625_v36 = vpop.f32.mrf.mxu3 }
 0x152   :  { %v1652_v57 = vadd.f32 %v1651_v55, %v1638_v56 }
 0x153   :  { %v1626_v62 = vadd.f32 %v1625_v36, %v1612_v35 }
 0x154   :  { %v1657_v40 = vmax.f32 %v1652_v57, 0.0 }
 0x155   :  { %v1640_v1 = vadd.f32 %v1639_v10, %v1626_v62 }
 0x159   :  { %v1653_v47 = vpop.f32.mrf.mxu1 }
 0x15a   :  { %v1654_v59 = vadd.f32 %v1653_v47, %v1640_v1 }
 0x15c   :  { %v1659_v60 = vmax.f32 %v1654_v59, 0.0 }
 0x15e   :  { %v1661_v61 = vpack.c.bf16 %v1659_v60, %v1657_v40 }
 0x160   :  { %1882 = vmatmul.bf16.vlgmr.msra.gmra.mxu3 %v1661_v61  ;;  %1910 = vmatmul.bf16.vlgmr.msrb.gmra.mxu1 %v1661_v61 }
 0x17f   :  { %v1897_v17 = vpop.f32.mrf.mxu0 }
 0x180   :  { %v1898_v22 = vadd.f32 %v1897_v17, %v1697_v20 }
 0x185   :  { %v1869_v18 = vpop.f32.mrf.mxu2 }
 0x186   :  { %v1870_v39 = vadd.f32 %v1869_v18, %v1696_v24 }
 0x187   :  { %v1899_v21 = vpop.f32.mrf.mxu0 }
 0x188   :  { %v1900_v25 = vadd.f32 %v1899_v21, %v1697_v20 }
 0x18d   :  { %v1871_v29 = vpop.f32.mrf.mxu2 }
 0x18e   :  { %v1872_v33 = vadd.f32 %v1871_v29, %v1696_v24 }
 0x1dd   :  { %v1911_v19 = vpop.f32.mrf.mxu1 }
 0x1de   :  { %v1912_v26 = vadd.f32 %v1911_v19, %v1898_v22 }
 0x1e0   :  { %v1917_v30 = vmax.f32 %v1912_v26, 0.0 }
 0x1e3   :  { %v1883_v23 = vpop.f32.mrf.mxu3 }
 0x1e4   :  { %v1884_v34 = vadd.f32 %v1883_v23, %v1870_v39 }
 0x1e5   :  { %v1913_v27 = vpop.f32.mrf.mxu1 }
 0x1e6   :  { %v1914_v28 = vadd.f32 %v1913_v27, %v1900_v25  ;;  %v1916_v41 = vmax.f32 %v1884_v34, 0.0 }
 0x1e8   :  { %v1919_v32 = vmax.f32 %v1914_v28, 0.0 }
 0x1ea   :  { %v1921_v44 = vpack.c.bf16 %v1919_v32, %v1917_v30 }
 0x1eb   :  { %v1885_v43 = vpop.f32.mrf.mxu3 }
 0x1ec   :  { %v1886_v38 = vadd.f32 %v1885_v43, %v1872_v33  ;;  %2076 = vmatmul.bf16.vlgmr.msrb.gmra.mxu3 %v1921_v44 }
 0x1ee   :  { %v1918_v42 = vmax.f32 %v1886_v38, 0.0 }
 0x1f0   :  { %v1920_v45 = vpack.c.bf16 %v1918_v42, %v1916_v41 }
 0x1f2   :  { %2062 = vmatmul.bf16.vlgmr.msrb.gmra.mxu2 %v1920_v45 }
 0x26f   :  { %v2077_v48 = vpop.f32.mrf.mxu3 }
 0x275   :  { %v2063_v49 = vpop.f32.mrf.mxu2 }
 0x276   :  { %v2064_v50 = vadd.f32 %v3375_v46, %v2063_v49 }
 0x277   :  { %v2079_v54 = vpop.f32.mrf.mxu3 }
 0x278   :  { %v2078_v51 = vadd.f32 %v2077_v48, %v2064_v50 }
 0x27a   :  { %2082 = vst [vmem:[%s4990_s7] sm:$0xff] %v2078_v51 }
 0x27d   :  { %v2065_v52 = vpop.f32.mrf.mxu2 }
 0x27e   :  { %v2066_v53 = vadd.f32 %v3375_v46, %v2065_v52 }
 0x280   :  { %v2080_v58 = vadd.f32 %v2079_v54, %v2066_v53 }
 0x282   :  { %2083 = vst [vmem:[%s4990_s7 + $0x8] sm:$0xff] %v2080_v58 }

</bundles_post_ra>
